<compile_context>
chip_gen: v7x
topology: tpu7x:2x2x1
jax: 0.10.0
libtpu: 0.0.40
codegen_flags: <defaults>
</compile_context>

<pallas_src>
import functools

import jax
import jax.numpy as jnp
from jax import lax
from jax.experimental import pallas as pl
from jax.experimental.pallas import tpu as pltpu

# ---------------------------------------------------------------------------
# Static network geometry (the Linear(256, nc) head implies a 32x32 input).
# ---------------------------------------------------------------------------
H1 = W1 = 8            # after conv1 (11x11, stride 4, pad 5) on 32x32
H2 = W2 = 4            # after pool1
H3 = W3 = 2            # after pool2 (spatial of conv3..conv5)

# Flattened, zero-padded NHWC scratch geometry (widths padded to sublane mult).
HP2, WP2 = H2 + 4, 8   # conv2: 5x5 'same' (pad 2); Wp is naturally 8
HP3, WP3 = H3 + 2, 8   # conv3..5: 3x3 'same' (pad 1); width 4 padded -> 8

C1 = 64                # conv1 out channels
C2 = 256               # conv2 out channels (192 zero-padded -> 256)
C3 = 384               # conv3 out channels
C4 = 256               # conv4 out channels
C5 = 256               # conv5 out channels
K1P = 384              # conv1 patch K (3*11*11 = 363 zero-padded -> 384)
NCP = 128              # classifier out lanes (num_classes zero-padded -> 128)


# ---------------------------------------------------------------------------
# In-kernel helpers (fully unrolled; all extents are tiny and static).
# ---------------------------------------------------------------------------
def _tree_sum(parts):
    """Pairwise (log-depth) reduction of the per-tap partial sums."""
    while len(parts) > 1:
        nxt = [parts[i] + parts[i + 1] for i in range(0, len(parts) - 1, 2)]
        if len(parts) % 2:
            nxt.append(parts[-1])
        parts = nxt
    return parts[0]


def _conv_same_relu(pad_ref, w_ref, b_ref, *, BB, Hp, Wp, k):
    """Stride-1 'same' conv + bias + ReLU via shifted-slab tap accumulation.

    pad_ref: (BB*Hp*Wp, Cin) bf16, flattened zero-padded NHWC buffer.
    w_ref:   (k*k, Cin, Cout) bf16, tap index t = di*k + dj.
    b_ref:   (1, Cout) f32.
    Returns the f32 accumulation slab; the output pixel (b, oh, ow) lives at
    slab row b*Hp*Wp + oh*Wp + ow.  Halo / batch-boundary rows the slab also
    produces are never read.
    """
    R = BB * Hp * Wp
    L = R - (k - 1) * (Wp + 1)          # covers the last useful output row
    parts = []
    for di in range(k):
        base = di * Wp                  # sublane-aligned (Wp % 8 == 0)
        for dj in range(k):
            off = base + dj
            parts.append(jnp.dot(pad_ref[off:off + L, :], w_ref[di * k + dj],
                                 preferred_element_type=jnp.float32))
    acc = _tree_sum(parts)              # TODO(synk): on v7x a K-concatenated
    #                                      dot would let the MRB accumulate.
    return jnp.maximum(acc + b_ref[...], 0.0)


def _maxpool2x2_to_padded(acc, dst_ref, *, BB, Hi, Wi, src_wstride, src_bstride,
                          p_dst, Hp_dst, Wp_dst):
    """2x2 / stride-2 max-pool of a flat f32 activation slab.

    Each pooled output row is assembled as ONE (Wo, C) block (row-pair max,
    then width-pair maxes concatenated along sublanes) and stored with a
    single write into the interior of the next conv's zero-padded bf16 buffer.
    """
    Ho, Wo = Hi // 2, Wi // 2
    for b in range(BB):
        sb = b * src_bstride
        for i in range(Ho):
            r0 = sb + (2 * i) * src_wstride
            r1 = sb + (2 * i + 1) * src_wstride
            v = jnp.maximum(acc[r0:r0 + Wi, :], acc[r1:r1 + Wi, :])   # (Wi, C)
            pooled = jnp.concatenate(
                [jnp.maximum(v[2 * j:2 * j + 1, :], v[2 * j + 1:2 * j + 2, :])
                 for j in range(Wo)], axis=0)                          # (Wo, C)
            db = b * Hp_dst * Wp_dst + (p_dst + i) * Wp_dst + p_dst
            dst_ref[db:db + Wo, :] = pooled.astype(dst_ref.dtype)


def _write_rows_to_padded(acc, dst_ref, *, BB, Hi, Wi, src_wstride, src_bstride,
                          p_dst, Hp_dst, Wp_dst):
    """Store conv output rows into the interior of the next conv's buffer."""
    for b in range(BB):
        sb = b * src_bstride
        for h in range(Hi):
            sr = sb + h * src_wstride
            db = b * Hp_dst * Wp_dst + (p_dst + h) * Wp_dst + p_dst
            dst_ref[db:db + Wi, :] = acc[sr:sr + Wi, :].astype(dst_ref.dtype)


# ---------------------------------------------------------------------------
# The fused AlexNet kernel (one grid step == one batch block of BB images).
# ---------------------------------------------------------------------------
def _alexnet_kernel(p1_ref, w1_ref, b1_ref, w2_ref, b2_ref, w3_ref, b3_ref,
                    w4_ref, b4_ref, w5_ref, b5_ref, wf_ref, bf_ref,
                    out_ref, pad2_ref, pad3_ref, pad4_ref, pad5_ref, *, BB):
    # Re-zero the (tiny) padded scratch buffers every step so the conv halos
    # are valid regardless of how the "parallel" batch axis is sharded across
    # TensorCores; only the interiors are overwritten below.
    pad2_ref[...] = jnp.zeros_like(pad2_ref)
    pad3_ref[...] = jnp.zeros_like(pad3_ref)
    pad4_ref[...] = jnp.zeros_like(pad4_ref)
    pad5_ref[...] = jnp.zeros_like(pad5_ref)

    # conv1 (11x11 s4 p5): one GEMM on pre-extracted, K-padded patches.
    h1 = jnp.dot(p1_ref[...], w1_ref[...], preferred_element_type=jnp.float32)
    h1 = jnp.maximum(h1 + b1_ref[...], 0.0)                 # (BB*H1*W1, 64)

    # pool1 -> conv2 padded input (pad 2 for the 5x5 conv)
    _maxpool2x2_to_padded(h1, pad2_ref, BB=BB, Hi=H1, Wi=W1,
                          src_wstride=W1, src_bstride=H1 * W1,
                          p_dst=2, Hp_dst=HP2, Wp_dst=WP2)
    # conv2 (5x5 'same') + ReLU, then pool2 -> conv3 padded input
    a2 = _conv_same_relu(pad2_ref, w2_ref, b2_ref, BB=BB, Hp=HP2, Wp=WP2, k=5)
    _maxpool2x2_to_padded(a2, pad3_ref, BB=BB, Hi=H2, Wi=W2,
                          src_wstride=WP2, src_bstride=HP2 * WP2,
                          p_dst=1, Hp_dst=HP3, Wp_dst=WP3)
    # conv3 + ReLU -> conv4 padded input
    a3 = _conv_same_relu(pad3_ref, w3_ref, b3_ref, BB=BB, Hp=HP3, Wp=WP3, k=3)
    _write_rows_to_padded(a3, pad4_ref, BB=BB, Hi=H3, Wi=W3,
                          src_wstride=WP3, src_bstride=HP3 * WP3,
                          p_dst=1, Hp_dst=HP3, Wp_dst=WP3)
    # conv4 + ReLU -> conv5 padded input
    a4 = _conv_same_relu(pad4_ref, w4_ref, b4_ref, BB=BB, Hp=HP3, Wp=WP3, k=3)
    _write_rows_to_padded(a4, pad5_ref, BB=BB, Hi=H3, Wi=W3,
                          src_wstride=WP3, src_bstride=HP3 * WP3,
                          p_dst=1, Hp_dst=HP3, Wp_dst=WP3)
    # conv5 + ReLU
    a5 = _conv_same_relu(pad5_ref, w5_ref, b5_ref, BB=BB, Hp=HP3, Wp=WP3, k=3)

    # pool3 (2x2 -> 1x1) fused across batch + ONE classifier GEMM + ONE store.
    feats = []
    for b in range(BB):
        sb = b * HP3 * WP3
        v = jnp.maximum(a5[sb:sb + W3, :], a5[sb + WP3:sb + WP3 + W3, :])  # (2,256)
        feats.append(jnp.maximum(v[0:1, :], v[1:2, :]))                    # (1,256)
    features = jnp.concatenate(feats, axis=0)                              # (BB,256)
    logits = jnp.dot(features, wf_ref[...], preferred_element_type=jnp.float32)
    out_ref[...] = logits + bf_ref[...]                                    # (BB,128)


# ---------------------------------------------------------------------------
# Host-side wrapper
# ---------------------------------------------------------------------------
def alexnet_forward(params, x, *, num_classes=10, batch_block=None):
    """x: (B, 3, 32, 32) float32, PyTorch NCHW convention. Returns (B, nc)."""
    B = x.shape[0]
    if batch_block is None:
        batch_block = B if B <= 8 else 8
    assert B % batch_block == 0, (B, batch_block)
    # Keep the output block sublane-friendly (full array or multiple of 8 rows).
    assert batch_block == B or batch_block % 8 == 0, batch_block
    BB = batch_block
    steps = B // BB

    # Glue: one NCHW->NHWC transpose + ONE patch-extraction op for conv1.
    xh = jnp.transpose(x, (0, 2, 3, 1))                                # NHWC
    patches = lax.conv_general_dilated_patches(
        xh, filter_shape=(11, 11), window_strides=(4, 4),
        padding=((5, 5), (5, 5)),
        dimension_numbers=("NHWC", "HWIO", "NHWC"))                    # (B,8,8,363)
    assert patches.shape[1] == H1 and patches.shape[2] == W1, patches.shape
    K1 = patches.shape[-1]
    p1 = patches.reshape(B * H1 * W1, K1)
    p1 = jnp.pad(p1, ((0, 0), (0, K1P - K1))).astype(jnp.bfloat16)     # K -> 384

    args = (p1, params["w1"], params["b1"], params["w2"], params["b2"],
            params["w3"], params["b3"], params["w4"], params["b4"],
            params["w5"], params["b5"], params["fc_w"], params["fc_b"])

    def _full_spec(a):
        nd = a.ndim
        return pl.BlockSpec(a.shape, lambda i, nd=nd: (0,) * nd)       # resident

    rows1 = BB * H1 * W1
    in_specs = ([pl.BlockSpec((rows1, K1P), lambda i: (i, 0))]
                + [_full_spec(a) for a in args[1:]])
    out_specs = pl.BlockSpec((BB, NCP), lambda i: (i, 0))

    # Advisory cost estimate.
    L2 = BB * HP2 * WP2 - 4 * (WP2 + 1)
    L3 = BB * HP3 * WP3 - 2 * (WP3 + 1)
    flops = 2 * steps * (rows1 * K1P * C1 + 25 * L2 * C1 * C2
                         + 9 * L3 * (C2 * C3 + C3 * C4 + C4 * C5)
                         + BB * C5 * NCP)
    bytes_accessed = int(sum(int(a.size) * a.dtype.itemsize for a in args)
                         + B * NCP * 4)

    out = pl.pallas_call(
        functools.partial(_alexnet_kernel, BB=BB),
        out_shape=jax.ShapeDtypeStruct((B, NCP), jnp.float32),
        grid=(steps,),
        in_specs=in_specs,
        out_specs=out_specs,
        scratch_shapes=[
            # Flattened, zero-padded NHWC input buffers for conv2..conv5.
            pltpu.VMEM((BB * HP2 * WP2, C1), jnp.bfloat16),
            pltpu.VMEM((BB * HP3 * WP3, C2), jnp.bfloat16),
            pltpu.VMEM((BB * HP3 * WP3, C3), jnp.bfloat16),
            pltpu.VMEM((BB * HP3 * WP3, C4), jnp.bfloat16),
        ],
        compiler_params=pltpu.CompilerParams(
            dimension_semantics=("parallel",),          # shards over v7x's 2 TCs
            vmem_limit_bytes=32 * 1024 * 1024),          # v7x-safe (<64 MiB)
        cost_estimate=pl.CostEstimate(flops=int(flops), transcendentals=0,
                                      bytes_accessed=bytes_accessed),
    )(*args)
    return out[:, :num_classes]


# ---------------------------------------------------------------------------
# Parameters pre-arranged (and zero-padded) for the kernel at init time.
# Mapping from the PyTorch layouts:
#   conv1: (Cin*kh*kw, Cout) == torch_w.reshape(Cout,-1).T, K-padded 363->384 (bf16)
#   convN: (kh*kw, Cin, Cout) == torch_w.permute(2,3,1,0).reshape(k*k,Cin,Cout),
#          with conv2 Cout / conv3 Cin zero-padded 192->256                  (bf16)
#   fc:    (256, NCP) == torch_w.T zero-padded to 128 output lanes           (f32)
#   biases stored as (1, Cout) f32 (zero-padded to match).
# ---------------------------------------------------------------------------
def init_params(key, num_classes=10):
    assert num_classes <= NCP
    keys = jax.random.split(key, 6)
    params = {}

    wk, bk = jax.random.split(keys[0])
    w1 = jax.random.normal(wk, (64, 3, 11, 11), jnp.float32) * 0.05
    w1 = w1.reshape(64, 3 * 11 * 11).T                                  # (363, 64)
    params["w1"] = jnp.pad(w1, ((0, K1P - 363), (0, 0))).astype(jnp.bfloat16)
    params["b1"] = jax.random.normal(bk, (1, 64), jnp.float32) * 0.05

    # (name, cout, cin, k, padded_cout, padded_cin)
    conv_defs = [("2", 192, 64, 5, C2, C1), ("3", 384, 192, 3, C3, C2),
                 ("4", 256, 384, 3, C4, C3), ("5", 256, 256, 3, C5, C4)]
    for i, (name, cout, cin, k, cout_p, cin_p) in enumerate(conv_defs):
        wk, bk = jax.random.split(keys[i + 1])
        w = jax.random.normal(wk, (cout, cin, k, k), jnp.float32) * 0.05
        w = jnp.transpose(w, (2, 3, 1, 0)).reshape(k * k, cin, cout)
        w = jnp.pad(w, ((0, 0), (0, cin_p - cin), (0, cout_p - cout)))
        params[f"w{name}"] = w.astype(jnp.bfloat16)
        b = jax.random.normal(bk, (1, cout), jnp.float32) * 0.05
        params[f"b{name}"] = jnp.pad(b, ((0, 0), (0, cout_p - cout)))

    wk, bk = jax.random.split(keys[5])
    fc_w = jax.random.normal(wk, (256, num_classes), jnp.float32) * 0.05
    params["fc_w"] = jnp.pad(fc_w, ((0, 0), (0, NCP - num_classes)))
    fc_b = jax.random.normal(bk, (1, num_classes), jnp.float32) * 0.05
    params["fc_b"] = jnp.pad(fc_b, ((0, 0), (0, NCP - num_classes)))
    return params


if __name__ == "__main__":
    key = jax.random.PRNGKey(0)
    pkey, xkey = jax.random.split(key)
    params = init_params(pkey, num_classes=10)
    # CIFAR-sized input: the 256 -> num_classes Linear implies a 32x32 input.
    x = jax.random.normal(xkey, (2, 3, 32, 32), jnp.float32)

    out = jax.jit(alexnet_forward)(params, x)
    out = jax.block_until_ready(out)
    assert out.shape == (2, 10), out.shape
    assert bool(jnp.all(jnp.isfinite(out)))
    print("KERNEL_OK")
</pallas_src>

<mosaic_0001>
module attributes {stable_mosaic.version = 11 : i64} {
  func.func @_alexnet_kernel(%arg0: i32, %arg1: memref<128x384xbf16, #tpu.memory_space<vmem>>, %arg2: memref<384x64xbf16, #tpu.memory_space<vmem>>, %arg3: memref<1x64xf32, #tpu.memory_space<vmem>>, %arg4: memref<25x64x256xbf16, #tpu.memory_space<vmem>>, %arg5: memref<1x256xf32, #tpu.memory_space<vmem>>, %arg6: memref<9x256x384xbf16, #tpu.memory_space<vmem>>, %arg7: memref<1x384xf32, #tpu.memory_space<vmem>>, %arg8: memref<9x384x256xbf16, #tpu.memory_space<vmem>>, %arg9: memref<1x256xf32, #tpu.memory_space<vmem>>, %arg10: memref<9x256x256xbf16, #tpu.memory_space<vmem>>, %arg11: memref<1x256xf32, #tpu.memory_space<vmem>>, %arg12: memref<256x128xf32, #tpu.memory_space<vmem>>, %arg13: memref<1x128xf32, #tpu.memory_space<vmem>>, %arg14: memref<2x128xf32, #tpu.memory_space<vmem>>, %arg15: memref<128x64xbf16, #tpu.memory_space<vmem>>, %arg16: memref<64x256xbf16, #tpu.memory_space<vmem>>, %arg17: memref<64x384xbf16, #tpu.memory_space<vmem>>, %arg18: memref<64x256xbf16, #tpu.memory_space<vmem>>) attributes {dimension_semantics = [#tpu.dimension_semantics<parallel>], iteration_bounds = array<i64: 1>, scalar_prefetch = 0 : i64, scratch_operands = 4 : i64, tpu.core_type = #tpu.core_type<tc>, window_params = [{transform_indices = @transform_0, window_bounds = array<i64: 128, 384>}, {pipeline_mode = #tpu.pipeline_mode<synchronous>, transform_indices = @transform_1, window_bounds = array<i64: 384, 64>}, {pipeline_mode = #tpu.pipeline_mode<synchronous>, transform_indices = @transform_2, window_bounds = array<i64: 1, 64>}, {pipeline_mode = #tpu.pipeline_mode<synchronous>, transform_indices = @transform_3, window_bounds = array<i64: 25, 64, 256>}, {pipeline_mode = #tpu.pipeline_mode<synchronous>, transform_indices = @transform_4, window_bounds = array<i64: 1, 256>}, {pipeline_mode = #tpu.pipeline_mode<synchronous>, transform_indices = @transform_5, window_bounds = array<i64: 9, 256, 384>}, {pipeline_mode = #tpu.pipeline_mode<synchronous>, transform_indices = @transform_6, window_bounds = array<i64: 1, 384>}, {pipeline_mode = #tpu.pipeline_mode<synchronous>, transform_indices = @transform_7, window_bounds = array<i64: 9, 384, 256>}, {pipeline_mode = #tpu.pipeline_mode<synchronous>, transform_indices = @transform_8, window_bounds = array<i64: 1, 256>}, {pipeline_mode = #tpu.pipeline_mode<synchronous>, transform_indices = @transform_9, window_bounds = array<i64: 9, 256, 256>}, {pipeline_mode = #tpu.pipeline_mode<synchronous>, transform_indices = @transform_10, window_bounds = array<i64: 1, 256>}, {pipeline_mode = #tpu.pipeline_mode<synchronous>, transform_indices = @transform_11, window_bounds = array<i64: 256, 128>}, {pipeline_mode = #tpu.pipeline_mode<synchronous>, transform_indices = @transform_12, window_bounds = array<i64: 1, 128>}, {transform_indices = @transform_13, window_bounds = array<i64: 2, 128>}]} {
    %cst = arith.constant 0.000000e+00 : bf16
    %0 = vector.broadcast %cst : bf16 to vector<128x64xbf16>
    %c0 = arith.constant 0 : index
    %c0_0 = arith.constant 0 : index
    %1 = vector.load %arg15[%c0, %c0_0] : memref<128x64xbf16, #tpu.memory_space<vmem>>, vector<128x64xbf16>
    tpu.vector_store %arg15[%c0, %c0_0], %0 {strides = array<i32>} : memref<128x64xbf16, #tpu.memory_space<vmem>>, vector<128x64xbf16>,
    %cst_1 = arith.constant 0.000000e+00 : bf16
    %2 = vector.broadcast %cst_1 : bf16 to vector<64x256xbf16>
    %c0_2 = arith.constant 0 : index
    %c0_3 = arith.constant 0 : index
    %3 = vector.load %arg16[%c0_2, %c0_3] : memref<64x256xbf16, #tpu.memory_space<vmem>>, vector<64x256xbf16>
    tpu.vector_store %arg16[%c0_2, %c0_3], %2 {strides = array<i32>} : memref<64x256xbf16, #tpu.memory_space<vmem>>, vector<64x256xbf16>,
    %cst_4 = arith.constant 0.000000e+00 : bf16
    %4 = vector.broadcast %cst_4 : bf16 to vector<64x384xbf16>
    %c0_5 = arith.constant 0 : index
    %c0_6 = arith.constant 0 : index
    %5 = vector.load %arg17[%c0_5, %c0_6] : memref<64x384xbf16, #tpu.memory_space<vmem>>, vector<64x384xbf16>
    tpu.vector_store %arg17[%c0_5, %c0_6], %4 {strides = array<i32>} : memref<64x384xbf16, #tpu.memory_space<vmem>>, vector<64x384xbf16>,
    %cst_7 = arith.constant 0.000000e+00 : bf16
    %6 = vector.broadcast %cst_7 : bf16 to vector<64x256xbf16>
    %c0_8 = arith.constant 0 : index
    %c0_9 = arith.constant 0 : index
    %7 = vector.load %arg18[%c0_8, %c0_9] : memref<64x256xbf16, #tpu.memory_space<vmem>>, vector<64x256xbf16>
    tpu.vector_store %arg18[%c0_8, %c0_9], %6 {strides = array<i32>} : memref<64x256xbf16, #tpu.memory_space<vmem>>, vector<64x256xbf16>,
    %c0_10 = arith.constant 0 : index
    %c0_11 = arith.constant 0 : index
    %8 = vector.load %arg1[%c0_10, %c0_11] : memref<128x384xbf16, #tpu.memory_space<vmem>>, vector<128x384xbf16>
    %c0_12 = arith.constant 0 : index
    %c0_13 = arith.constant 0 : index
    %9 = vector.load %arg2[%c0_12, %c0_13] : memref<384x64xbf16, #tpu.memory_space<vmem>>, vector<384x64xbf16>
    %cst_14 = arith.constant dense<0.000000e+00> : vector<128x64xf32>
    %10 = tpu.matmul %8, %9, %cst_14 {dimension_numbers = #tpu.dot_dimension_numbers<[1], [0], [0], [1], [0, 0, 1, 1], [], []>} : vector<128x384xbf16>, vector<384x64xbf16>, vector<128x64xf32> -> vector<128x64xf32>
    %c0_15 = arith.constant 0 : index
    %c0_16 = arith.constant 0 : index
    %11 = vector.load %arg3[%c0_15, %c0_16] : memref<1x64xf32, #tpu.memory_space<vmem>>, vector<1x64xf32>
    %12 = vector.broadcast %11 : vector<1x64xf32> to vector<128x64xf32>
    %13 = arith.addf %10, %12 : vector<128x64xf32>
    %cst_17 = arith.constant 0.000000e+00 : f32
    %14 = vector.broadcast %cst_17 : f32 to vector<128x64xf32>
    %15 = arith.maximumf %13, %14 : vector<128x64xf32>
    %16 = vector.extract_strided_slice %15 {offsets = [0, 0], sizes = [8, 64], strides = [1, 1]} : vector<128x64xf32> to vector<8x64xf32>
    %17 = vector.extract_strided_slice %15 {offsets = [8, 0], sizes = [8, 64], strides = [1, 1]} : vector<128x64xf32> to vector<8x64xf32>
    %18 = arith.maximumf %16, %17 : vector<8x64xf32>
    %19 = vector.extract_strided_slice %18 {offsets = [0, 0], sizes = [1, 64], strides = [1, 1]} : vector<8x64xf32> to vector<1x64xf32>
    %20 = vector.extract_strided_slice %18 {offsets = [1, 0], sizes = [1, 64], strides = [1, 1]} : vector<8x64xf32> to vector<1x64xf32>
    %21 = arith.maximumf %19, %20 : vector<1x64xf32>
    %22 = vector.extract_strided_slice %18 {offsets = [2, 0], sizes = [1, 64], strides = [1, 1]} : vector<8x64xf32> to vector<1x64xf32>
    %23 = vector.extract_strided_slice %18 {offsets = [3, 0], sizes = [1, 64], strides = [1, 1]} : vector<8x64xf32> to vector<1x64xf32>
    %24 = arith.maximumf %22, %23 : vector<1x64xf32>
    %25 = vector.extract_strided_slice %18 {offsets = [4, 0], sizes = [1, 64], strides = [1, 1]} : vector<8x64xf32> to vector<1x64xf32>
    %26 = vector.extract_strided_slice %18 {offsets = [5, 0], sizes = [1, 64], strides = [1, 1]} : vector<8x64xf32> to vector<1x64xf32>
    %27 = arith.maximumf %25, %26 : vector<1x64xf32>
    %28 = vector.extract_strided_slice %18 {offsets = [6, 0], sizes = [1, 64], strides = [1, 1]} : vector<8x64xf32> to vector<1x64xf32>
    %29 = vector.extract_strided_slice %18 {offsets = [7, 0], sizes = [1, 64], strides = [1, 1]} : vector<8x64xf32> to vector<1x64xf32>
    %30 = arith.maximumf %28, %29 : vector<1x64xf32>
    %31 = tpu.concatenate %21, %24, %27, %30 in 0 : vector<1x64xf32>, vector<1x64xf32>, vector<1x64xf32>, vector<1x64xf32> -> vector<4x64xf32>
    %32 = arith.truncf %31 : vector<4x64xf32> to vector<4x64xbf16>
    %c18 = arith.constant 18 : index
    %c0_18 = arith.constant 0 : index
    %33 = vector.load %arg15[%c18, %c0_18] : memref<128x64xbf16, #tpu.memory_space<vmem>>, vector<4x64xbf16>
    tpu.vector_store %arg15[%c18, %c0_18], %32 {strides = array<i32>} : memref<128x64xbf16, #tpu.memory_space<vmem>>, vector<4x64xbf16>,
    %34 = vector.extract_strided_slice %15 {offsets = [16, 0], sizes = [8, 64], strides = [1, 1]} : vector<128x64xf32> to vector<8x64xf32>
    %35 = vector.extract_strided_slice %15 {offsets = [24, 0], sizes = [8, 64], strides = [1, 1]} : vector<128x64xf32> to vector<8x64xf32>
    %36 = arith.maximumf %34, %35 : vector<8x64xf32>
    %37 = vector.extract_strided_slice %36 {offsets = [0, 0], sizes = [1, 64], strides = [1, 1]} : vector<8x64xf32> to vector<1x64xf32>
    %38 = vector.extract_strided_slice %36 {offsets = [1, 0], sizes = [1, 64], strides = [1, 1]} : vector<8x64xf32> to vector<1x64xf32>
    %39 = arith.maximumf %37, %38 : vector<1x64xf32>
    %40 = vector.extract_strided_slice %36 {offsets = [2, 0], sizes = [1, 64], strides = [1, 1]} : vector<8x64xf32> to vector<1x64xf32>
    %41 = vector.extract_strided_slice %36 {offsets = [3, 0], sizes = [1, 64], strides = [1, 1]} : vector<8x64xf32> to vector<1x64xf32>
    %42 = arith.maximumf %40, %41 : vector<1x64xf32>
    %43 = vector.extract_strided_slice %36 {offsets = [4, 0], sizes = [1, 64], strides = [1, 1]} : vector<8x64xf32> to vector<1x64xf32>
    %44 = vector.extract_strided_slice %36 {offsets = [5, 0], sizes = [1, 64], strides = [1, 1]} : vector<8x64xf32> to vector<1x64xf32>
    %45 = arith.maximumf %43, %44 : vector<1x64xf32>
    %46 = vector.extract_strided_slice %36 {offsets = [6, 0], sizes = [1, 64], strides = [1, 1]} : vector<8x64xf32> to vector<1x64xf32>
    %47 = vector.extract_strided_slice %36 {offsets = [7, 0], sizes = [1, 64], strides = [1, 1]} : vector<8x64xf32> to vector<1x64xf32>
    %48 = arith.maximumf %46, %47 : vector<1x64xf32>
    %49 = tpu.concatenate %39, %42, %45, %48 in 0 : vector<1x64xf32>, vector<1x64xf32>, vector<1x64xf32>, vector<1x64xf32> -> vector<4x64xf32>
    %50 = arith.truncf %49 : vector<4x64xf32> to vector<4x64xbf16>
    %c26 = arith.constant 26 : index
    %c0_19 = arith.constant 0 : index
    %51 = vector.load %arg15[%c26, %c0_19] : memref<128x64xbf16, #tpu.memory_space<vmem>>, vector<4x64xbf16>
    tpu.vector_store %arg15[%c26, %c0_19], %50 {strides = array<i32>} : memref<128x64xbf16, #tpu.memory_space<vmem>>, vector<4x64xbf16>,
    %52 = vector.extract_strided_slice %15 {offsets = [32, 0], sizes = [8, 64], strides = [1, 1]} : vector<128x64xf32> to vector<8x64xf32>
    %53 = vector.extract_strided_slice %15 {offsets = [40, 0], sizes = [8, 64], strides = [1, 1]} : vector<128x64xf32> to vector<8x64xf32>
    %54 = arith.maximumf %52, %53 : vector<8x64xf32>
    %55 = vector.extract_strided_slice %54 {offsets = [0, 0], sizes = [1, 64], strides = [1, 1]} : vector<8x64xf32> to vector<1x64xf32>
    %56 = vector.extract_strided_slice %54 {offsets = [1, 0], sizes = [1, 64], strides = [1, 1]} : vector<8x64xf32> to vector<1x64xf32>
    %57 = arith.maximumf %55, %56 : vector<1x64xf32>
    %58 = vector.extract_strided_slice %54 {offsets = [2, 0], sizes = [1, 64], strides = [1, 1]} : vector<8x64xf32> to vector<1x64xf32>
    %59 = vector.extract_strided_slice %54 {offsets = [3, 0], sizes = [1, 64], strides = [1, 1]} : vector<8x64xf32> to vector<1x64xf32>
    %60 = arith.maximumf %58, %59 : vector<1x64xf32>
    %61 = vector.extract_strided_slice %54 {offsets = [4, 0], sizes = [1, 64], strides = [1, 1]} : vector<8x64xf32> to vector<1x64xf32>
    %62 = vector.extract_strided_slice %54 {offsets = [5, 0], sizes = [1, 64], strides = [1, 1]} : vector<8x64xf32> to vector<1x64xf32>
    %63 = arith.maximumf %61, %62 : vector<1x64xf32>
    %64 = vector.extract_strided_slice %54 {offsets = [6, 0], sizes = [1, 64], strides = [1, 1]} : vector<8x64xf32> to vector<1x64xf32>
    %65 = vector.extract_strided_slice %54 {offsets = [7, 0], sizes = [1, 64], strides = [1, 1]} : vector<8x64xf32> to vector<1x64xf32>
    %66 = arith.maximumf %64, %65 : vector<1x64xf32>
    %67 = tpu.concatenate %57, %60, %63, %66 in 0 : vector<1x64xf32>, vector<1x64xf32>, vector<1x64xf32>, vector<1x64xf32> -> vector<4x64xf32>
    %68 = arith.truncf %67 : vector<4x64xf32> to vector<4x64xbf16>
    %c34 = arith.constant 34 : index
    %c0_20 = arith.constant 0 : index
    %69 = vector.load %arg15[%c34, %c0_20] : memref<128x64xbf16, #tpu.memory_space<vmem>>, vector<4x64xbf16>
    tpu.vector_store %arg15[%c34, %c0_20], %68 {strides = array<i32>} : memref<128x64xbf16, #tpu.memory_space<vmem>>, vector<4x64xbf16>,
    %70 = vector.extract_strided_slice %15 {offsets = [48, 0], sizes = [8, 64], strides = [1, 1]} : vector<128x64xf32> to vector<8x64xf32>
    %71 = vector.extract_strided_slice %15 {offsets = [56, 0], sizes = [8, 64], strides = [1, 1]} : vector<128x64xf32> to vector<8x64xf32>
    %72 = arith.maximumf %70, %71 : vector<8x64xf32>
    %73 = vector.extract_strided_slice %72 {offsets = [0, 0], sizes = [1, 64], strides = [1, 1]} : vector<8x64xf32> to vector<1x64xf32>
    %74 = vector.extract_strided_slice %72 {offsets = [1, 0], sizes = [1, 64], strides = [1, 1]} : vector<8x64xf32> to vector<1x64xf32>
    %75 = arith.maximumf %73, %74 : vector<1x64xf32>
    %76 = vector.extract_strided_slice %72 {offsets = [2, 0], sizes = [1, 64], strides = [1, 1]} : vector<8x64xf32> to vector<1x64xf32>
    %77 = vector.extract_strided_slice %72 {offsets = [3, 0], sizes = [1, 64], strides = [1, 1]} : vector<8x64xf32> to vector<1x64xf32>
    %78 = arith.maximumf %76, %77 : vector<1x64xf32>
    %79 = vector.extract_strided_slice %72 {offsets = [4, 0], sizes = [1, 64], strides = [1, 1]} : vector<8x64xf32> to vector<1x64xf32>
    %80 = vector.extract_strided_slice %72 {offsets = [5, 0], sizes = [1, 64], strides = [1, 1]} : vector<8x64xf32> to vector<1x64xf32>
    %81 = arith.maximumf %79, %80 : vector<1x64xf32>
    %82 = vector.extract_strided_slice %72 {offsets = [6, 0], sizes = [1, 64], strides = [1, 1]} : vector<8x64xf32> to vector<1x64xf32>
    %83 = vector.extract_strided_slice %72 {offsets = [7, 0], sizes = [1, 64], strides = [1, 1]} : vector<8x64xf32> to vector<1x64xf32>
    %84 = arith.maximumf %82, %83 : vector<1x64xf32>
    %85 = tpu.concatenate %75, %78, %81, %84 in 0 : vector<1x64xf32>, vector<1x64xf32>, vector<1x64xf32>, vector<1x64xf32> -> vector<4x64xf32>
    %86 = arith.truncf %85 : vector<4x64xf32> to vector<4x64xbf16>
    %c42 = arith.constant 42 : index
    %c0_21 = arith.constant 0 : index
    %87 = vector.load %arg15[%c42, %c0_21] : memref<128x64xbf16, #tpu.memory_space<vmem>>, vector<4x64xbf16>
    tpu.vector_store %arg15[%c42, %c0_21], %86 {strides = array<i32>} : memref<128x64xbf16, #tpu.memory_space<vmem>>, vector<4x64xbf16>,
    %88 = vector.extract_strided_slice %15 {offsets = [64, 0], sizes = [8, 64], strides = [1, 1]} : vector<128x64xf32> to vector<8x64xf32>
    %89 = vector.extract_strided_slice %15 {offsets = [72, 0], sizes = [8, 64], strides = [1, 1]} : vector<128x64xf32> to vector<8x64xf32>
    %90 = arith.maximumf %88, %89 : vector<8x64xf32>
    %91 = vector.extract_strided_slice %90 {offsets = [0, 0], sizes = [1, 64], strides = [1, 1]} : vector<8x64xf32> to vector<1x64xf32>
    %92 = vector.extract_strided_slice %90 {offsets = [1, 0], sizes = [1, 64], strides = [1, 1]} : vector<8x64xf32> to vector<1x64xf32>
    %93 = arith.maximumf %91, %92 : vector<1x64xf32>
    %94 = vector.extract_strided_slice %90 {offsets = [2, 0], sizes = [1, 64], strides = [1, 1]} : vector<8x64xf32> to vector<1x64xf32>
    %95 = vector.extract_strided_slice %90 {offsets = [3, 0], sizes = [1, 64], strides = [1, 1]} : vector<8x64xf32> to vector<1x64xf32>
    %96 = arith.maximumf %94, %95 : vector<1x64xf32>
    %97 = vector.extract_strided_slice %90 {offsets = [4, 0], sizes = [1, 64], strides = [1, 1]} : vector<8x64xf32> to vector<1x64xf32>
    %98 = vector.extract_strided_slice %90 {offsets = [5, 0], sizes = [1, 64], strides = [1, 1]} : vector<8x64xf32> to vector<1x64xf32>
    %99 = arith.maximumf %97, %98 : vector<1x64xf32>
    %100 = vector.extract_strided_slice %90 {offsets = [6, 0], sizes = [1, 64], strides = [1, 1]} : vector<8x64xf32> to vector<1x64xf32>
    %101 = vector.extract_strided_slice %90 {offsets = [7, 0], sizes = [1, 64], strides = [1, 1]} : vector<8x64xf32> to vector<1x64xf32>
    %102 = arith.maximumf %100, %101 : vector<1x64xf32>
    %103 = tpu.concatenate %93, %96, %99, %102 in 0 : vector<1x64xf32>, vector<1x64xf32>, vector<1x64xf32>, vector<1x64xf32> -> vector<4x64xf32>
    %104 = arith.truncf %103 : vector<4x64xf32> to vector<4x64xbf16>
    %c82 = arith.constant 82 : index
    %c0_22 = arith.constant 0 : index
    %105 = vector.load %arg15[%c82, %c0_22] : memref<128x64xbf16, #tpu.memory_space<vmem>>, vector<4x64xbf16>
    tpu.vector_store %arg15[%c82, %c0_22], %104 {strides = array<i32>} : memref<128x64xbf16, #tpu.memory_space<vmem>>, vector<4x64xbf16>,
    %106 = vector.extract_strided_slice %15 {offsets = [80, 0], sizes = [8, 64], strides = [1, 1]} : vector<128x64xf32> to vector<8x64xf32>
    %107 = vector.extract_strided_slice %15 {offsets = [88, 0], sizes = [8, 64], strides = [1, 1]} : vector<128x64xf32> to vector<8x64xf32>
    %108 = arith.maximumf %106, %107 : vector<8x64xf32>
    %109 = vector.extract_strided_slice %108 {offsets = [0, 0], sizes = [1, 64], strides = [1, 1]} : vector<8x64xf32> to vector<1x64xf32>
    %110 = vector.extract_strided_slice %108 {offsets = [1, 0], sizes = [1, 64], strides = [1, 1]} : vector<8x64xf32> to vector<1x64xf32>
    %111 = arith.maximumf %109, %110 : vector<1x64xf32>
    %112 = vector.extract_strided_slice %108 {offsets = [2, 0], sizes = [1, 64], strides = [1, 1]} : vector<8x64xf32> to vector<1x64xf32>
    %113 = vector.extract_strided_slice %108 {offsets = [3, 0], sizes = [1, 64], strides = [1, 1]} : vector<8x64xf32> to vector<1x64xf32>
    %114 = arith.maximumf %112, %113 : vector<1x64xf32>
    %115 = vector.extract_strided_slice %108 {offsets = [4, 0], sizes = [1, 64], strides = [1, 1]} : vector<8x64xf32> to vector<1x64xf32>
    %116 = vector.extract_strided_slice %108 {offsets = [5, 0], sizes = [1, 64], strides = [1, 1]} : vector<8x64xf32> to vector<1x64xf32>
    %117 = arith.maximumf %115, %116 : vector<1x64xf32>
    %118 = vector.extract_strided_slice %108 {offsets = [6, 0], sizes = [1, 64], strides = [1, 1]} : vector<8x64xf32> to vector<1x64xf32>
    %119 = vector.extract_strided_slice %108 {offsets = [7, 0], sizes = [1, 64], strides = [1, 1]} : vector<8x64xf32> to vector<1x64xf32>
    %120 = arith.maximumf %118, %119 : vector<1x64xf32>
    %121 = tpu.concatenate %111, %114, %117, %120 in 0 : vector<1x64xf32>, vector<1x64xf32>, vector<1x64xf32>, vector<1x64xf32> -> vector<4x64xf32>
    %122 = arith.truncf %121 : vector<4x64xf32> to vector<4x64xbf16>
    %c90 = arith.constant 90 : index
    %c0_23 = arith.constant 0 : index
    %123 = vector.load %arg15[%c90, %c0_23] : memref<128x64xbf16, #tpu.memory_space<vmem>>, vector<4x64xbf16>
    tpu.vector_store %arg15[%c90, %c0_23], %122 {strides = array<i32>} : memref<128x64xbf16, #tpu.memory_space<vmem>>, vector<4x64xbf16>,
    %124 = vector.extract_strided_slice %15 {offsets = [96, 0], sizes = [8, 64], strides = [1, 1]} : vector<128x64xf32> to vector<8x64xf32>
    %125 = vector.extract_strided_slice %15 {offsets = [104, 0], sizes = [8, 64], strides = [1, 1]} : vector<128x64xf32> to vector<8x64xf32>
    %126 = arith.maximumf %124, %125 : vector<8x64xf32>
    %127 = vector.extract_strided_slice %126 {offsets = [0, 0], sizes = [1, 64], strides = [1, 1]} : vector<8x64xf32> to vector<1x64xf32>
    %128 = vector.extract_strided_slice %126 {offsets = [1, 0], sizes = [1, 64], strides = [1, 1]} : vector<8x64xf32> to vector<1x64xf32>
    %129 = arith.maximumf %127, %128 : vector<1x64xf32>
    %130 = vector.extract_strided_slice %126 {offsets = [2, 0], sizes = [1, 64], strides = [1, 1]} : vector<8x64xf32> to vector<1x64xf32>
    %131 = vector.extract_strided_slice %126 {offsets = [3, 0], sizes = [1, 64], strides = [1, 1]} : vector<8x64xf32> to vector<1x64xf32>
    %132 = arith.maximumf %130, %131 : vector<1x64xf32>
    %133 = vector.extract_strided_slice %126 {offsets = [4, 0], sizes = [1, 64], strides = [1, 1]} : vector<8x64xf32> to vector<1x64xf32>
    %134 = vector.extract_strided_slice %126 {offsets = [5, 0], sizes = [1, 64], strides = [1, 1]} : vector<8x64xf32> to vector<1x64xf32>
    %135 = arith.maximumf %133, %134 : vector<1x64xf32>
    %136 = vector.extract_strided_slice %126 {offsets = [6, 0], sizes = [1, 64], strides = [1, 1]} : vector<8x64xf32> to vector<1x64xf32>
    %137 = vector.extract_strided_slice %126 {offsets = [7, 0], sizes = [1, 64], strides = [1, 1]} : vector<8x64xf32> to vector<1x64xf32>
    %138 = arith.maximumf %136, %137 : vector<1x64xf32>
    %139 = tpu.concatenate %129, %132, %135, %138 in 0 : vector<1x64xf32>, vector<1x64xf32>, vector<1x64xf32>, vector<1x64xf32> -> vector<4x64xf32>
    %140 = arith.truncf %139 : vector<4x64xf32> to vector<4x64xbf16>
    %c98 = arith.constant 98 : index
    %c0_24 = arith.constant 0 : index
    %141 = vector.load %arg15[%c98, %c0_24] : memref<128x64xbf16, #tpu.memory_space<vmem>>, vector<4x64xbf16>
    tpu.vector_store %arg15[%c98, %c0_24], %140 {strides = array<i32>} : memref<128x64xbf16, #tpu.memory_space<vmem>>, vector<4x64xbf16>,
    %142 = vector.extract_strided_slice %15 {offsets = [112, 0], sizes = [8, 64], strides = [1, 1]} : vector<128x64xf32> to vector<8x64xf32>
    %143 = vector.extract_strided_slice %15 {offsets = [120, 0], sizes = [8, 64], strides = [1, 1]} : vector<128x64xf32> to vector<8x64xf32>
    %144 = arith.maximumf %142, %143 : vector<8x64xf32>
    %145 = vector.extract_strided_slice %144 {offsets = [0, 0], sizes = [1, 64], strides = [1, 1]} : vector<8x64xf32> to vector<1x64xf32>
    %146 = vector.extract_strided_slice %144 {offsets = [1, 0], sizes = [1, 64], strides = [1, 1]} : vector<8x64xf32> to vector<1x64xf32>
    %147 = arith.maximumf %145, %146 : vector<1x64xf32>
    %148 = vector.extract_strided_slice %144 {offsets = [2, 0], sizes = [1, 64], strides = [1, 1]} : vector<8x64xf32> to vector<1x64xf32>
    %149 = vector.extract_strided_slice %144 {offsets = [3, 0], sizes = [1, 64], strides = [1, 1]} : vector<8x64xf32> to vector<1x64xf32>
    %150 = arith.maximumf %148, %149 : vector<1x64xf32>
    %151 = vector.extract_strided_slice %144 {offsets = [4, 0], sizes = [1, 64], strides = [1, 1]} : vector<8x64xf32> to vector<1x64xf32>
    %152 = vector.extract_strided_slice %144 {offsets = [5, 0], sizes = [1, 64], strides = [1, 1]} : vector<8x64xf32> to vector<1x64xf32>
    %153 = arith.maximumf %151, %152 : vector<1x64xf32>
    %154 = vector.extract_strided_slice %144 {offsets = [6, 0], sizes = [1, 64], strides = [1, 1]} : vector<8x64xf32> to vector<1x64xf32>
    %155 = vector.extract_strided_slice %144 {offsets = [7, 0], sizes = [1, 64], strides = [1, 1]} : vector<8x64xf32> to vector<1x64xf32>
    %156 = arith.maximumf %154, %155 : vector<1x64xf32>
    %157 = tpu.concatenate %147, %150, %153, %156 in 0 : vector<1x64xf32>, vector<1x64xf32>, vector<1x64xf32>, vector<1x64xf32> -> vector<4x64xf32>
    %158 = arith.truncf %157 : vector<4x64xf32> to vector<4x64xbf16>
    %c106 = arith.constant 106 : index
    %c0_25 = arith.constant 0 : index
    %159 = vector.load %arg15[%c106, %c0_25] : memref<128x64xbf16, #tpu.memory_space<vmem>>, vector<4x64xbf16>
    tpu.vector_store %arg15[%c106, %c0_25], %158 {strides = array<i32>} : memref<128x64xbf16, #tpu.memory_space<vmem>>, vector<4x64xbf16>,
    %c0_26 = arith.constant 0 : index
    %c0_27 = arith.constant 0 : index
    %160 = vector.load %arg15[%c0_26, %c0_27] : memref<128x64xbf16, #tpu.memory_space<vmem>>, vector<92x64xbf16>
    %c0_28 = arith.constant 0 : index
    %c0_29 = arith.constant 0 : index
    %c0_30 = arith.constant 0 : index
    %161 = vector.load %arg4[%c0_28, %c0_29, %c0_30] : memref<25x64x256xbf16, #tpu.memory_space<vmem>>, vector<1x64x256xbf16>
    %162 = vector.shape_cast %161 : vector<1x64x256xbf16> to vector<64x256xbf16>
    %cst_31 = arith.constant dense<0.000000e+00> : vector<92x256xf32>
    %163 = tpu.matmul %160, %162, %cst_31 {dimension_numbers = #tpu.dot_dimension_numbers<[1], [0], [0], [1], [0, 0, 1, 1], [], []>} : vector<92x64xbf16>, vector<64x256xbf16>, vector<92x256xf32> -> vector<92x256xf32>
    %c1 = arith.constant 1 : index
    %c0_32 = arith.constant 0 : index
    %164 = vector.load %arg15[%c1, %c0_32] : memref<128x64xbf16, #tpu.memory_space<vmem>>, vector<92x64xbf16>
    %c1_33 = arith.constant 1 : index
    %c0_34 = arith.constant 0 : index
    %c0_35 = arith.constant 0 : index
    %165 = vector.load %arg4[%c1_33, %c0_34, %c0_35] : memref<25x64x256xbf16, #tpu.memory_space<vmem>>, vector<1x64x256xbf16>
    %166 = vector.shape_cast %165 : vector<1x64x256xbf16> to vector<64x256xbf16>
    %cst_36 = arith.constant dense<0.000000e+00> : vector<92x256xf32>
    %167 = tpu.matmul %164, %166, %cst_36 {dimension_numbers = #tpu.dot_dimension_numbers<[1], [0], [0], [1], [0, 0, 1, 1], [], []>} : vector<92x64xbf16>, vector<64x256xbf16>, vector<92x256xf32> -> vector<92x256xf32>
    %c2 = arith.constant 2 : index
    %c0_37 = arith.constant 0 : index
    %168 = vector.load %arg15[%c2, %c0_37] : memref<128x64xbf16, #tpu.memory_space<vmem>>, vector<92x64xbf16>
    %c2_38 = arith.constant 2 : index
    %c0_39 = arith.constant 0 : index
    %c0_40 = arith.constant 0 : index
    %169 = vector.load %arg4[%c2_38, %c0_39, %c0_40] : memref<25x64x256xbf16, #tpu.memory_space<vmem>>, vector<1x64x256xbf16>
    %170 = vector.shape_cast %169 : vector<1x64x256xbf16> to vector<64x256xbf16>
    %cst_41 = arith.constant dense<0.000000e+00> : vector<92x256xf32>
    %171 = tpu.matmul %168, %170, %cst_41 {dimension_numbers = #tpu.dot_dimension_numbers<[1], [0], [0], [1], [0, 0, 1, 1], [], []>} : vector<92x64xbf16>, vector<64x256xbf16>, vector<92x256xf32> -> vector<92x256xf32>
    %c3 = arith.constant 3 : index
    %c0_42 = arith.constant 0 : index
    %172 = vector.load %arg15[%c3, %c0_42] : memref<128x64xbf16, #tpu.memory_space<vmem>>, vector<92x64xbf16>
    %c3_43 = arith.constant 3 : index
    %c0_44 = arith.constant 0 : index
    %c0_45 = arith.constant 0 : index
    %173 = vector.load %arg4[%c3_43, %c0_44, %c0_45] : memref<25x64x256xbf16, #tpu.memory_space<vmem>>, vector<1x64x256xbf16>
    %174 = vector.shape_cast %173 : vector<1x64x256xbf16> to vector<64x256xbf16>
    %cst_46 = arith.constant dense<0.000000e+00> : vector<92x256xf32>
    %175 = tpu.matmul %172, %174, %cst_46 {dimension_numbers = #tpu.dot_dimension_numbers<[1], [0], [0], [1], [0, 0, 1, 1], [], []>} : vector<92x64xbf16>, vector<64x256xbf16>, vector<92x256xf32> -> vector<92x256xf32>
    %c4 = arith.constant 4 : index
    %c0_47 = arith.constant 0 : index
    %176 = vector.load %arg15[%c4, %c0_47] : memref<128x64xbf16, #tpu.memory_space<vmem>>, vector<92x64xbf16>
    %c4_48 = arith.constant 4 : index
    %c0_49 = arith.constant 0 : index
    %c0_50 = arith.constant 0 : index
    %177 = vector.load %arg4[%c4_48, %c0_49, %c0_50] : memref<25x64x256xbf16, #tpu.memory_space<vmem>>, vector<1x64x256xbf16>
    %178 = vector.shape_cast %177 : vector<1x64x256xbf16> to vector<64x256xbf16>
    %cst_51 = arith.constant dense<0.000000e+00> : vector<92x256xf32>
    %179 = tpu.matmul %176, %178, %cst_51 {dimension_numbers = #tpu.dot_dimension_numbers<[1], [0], [0], [1], [0, 0, 1, 1], [], []>} : vector<92x64xbf16>, vector<64x256xbf16>, vector<92x256xf32> -> vector<92x256xf32>
    %c8 = arith.constant 8 : index
    %c0_52 = arith.constant 0 : index
    %180 = vector.load %arg15[%c8, %c0_52] : memref<128x64xbf16, #tpu.memory_space<vmem>>, vector<92x64xbf16>
    %c5 = arith.constant 5 : index
    %c0_53 = arith.constant 0 : index
    %c0_54 = arith.constant 0 : index
    %181 = vector.load %arg4[%c5, %c0_53, %c0_54] : memref<25x64x256xbf16, #tpu.memory_space<vmem>>, vector<1x64x256xbf16>
    %182 = vector.shape_cast %181 : vector<1x64x256xbf16> to vector<64x256xbf16>
    %cst_55 = arith.constant dense<0.000000e+00> : vector<92x256xf32>
    %183 = tpu.matmul %180, %182, %cst_55 {dimension_numbers = #tpu.dot_dimension_numbers<[1], [0], [0], [1], [0, 0, 1, 1], [], []>} : vector<92x64xbf16>, vector<64x256xbf16>, vector<92x256xf32> -> vector<92x256xf32>
    %c9 = arith.constant 9 : index
    %c0_56 = arith.constant 0 : index
    %184 = vector.load %arg15[%c9, %c0_56] : memref<128x64xbf16, #tpu.memory_space<vmem>>, vector<92x64xbf16>
    %c6 = arith.constant 6 : index
    %c0_57 = arith.constant 0 : index
    %c0_58 = arith.constant 0 : index
    %185 = vector.load %arg4[%c6, %c0_57, %c0_58] : memref<25x64x256xbf16, #tpu.memory_space<vmem>>, vector<1x64x256xbf16>
    %186 = vector.shape_cast %185 : vector<1x64x256xbf16> to vector<64x256xbf16>
    %cst_59 = arith.constant dense<0.000000e+00> : vector<92x256xf32>
    %187 = tpu.matmul %184, %186, %cst_59 {dimension_numbers = #tpu.dot_dimension_numbers<[1], [0], [0], [1], [0, 0, 1, 1], [], []>} : vector<92x64xbf16>, vector<64x256xbf16>, vector<92x256xf32> -> vector<92x256xf32>
    %c10 = arith.constant 10 : index
    %c0_60 = arith.constant 0 : index
    %188 = vector.load %arg15[%c10, %c0_60] : memref<128x64xbf16, #tpu.memory_space<vmem>>, vector<92x64xbf16>
    %c7 = arith.constant 7 : index
    %c0_61 = arith.constant 0 : index
    %c0_62 = arith.constant 0 : index
    %189 = vector.load %arg4[%c7, %c0_61, %c0_62] : memref<25x64x256xbf16, #tpu.memory_space<vmem>>, vector<1x64x256xbf16>
    %190 = vector.shape_cast %189 : vector<1x64x256xbf16> to vector<64x256xbf16>
    %cst_63 = arith.constant dense<0.000000e+00> : vector<92x256xf32>
    %191 = tpu.matmul %188, %190, %cst_63 {dimension_numbers = #tpu.dot_dimension_numbers<[1], [0], [0], [1], [0, 0, 1, 1], [], []>} : vector<92x64xbf16>, vector<64x256xbf16>, vector<92x256xf32> -> vector<92x256xf32>
    %c11 = arith.constant 11 : index
    %c0_64 = arith.constant 0 : index
    %192 = vector.load %arg15[%c11, %c0_64] : memref<128x64xbf16, #tpu.memory_space<vmem>>, vector<92x64xbf16>
    %c8_65 = arith.constant 8 : index
    %c0_66 = arith.constant 0 : index
    %c0_67 = arith.constant 0 : index
    %193 = vector.load %arg4[%c8_65, %c0_66, %c0_67] : memref<25x64x256xbf16, #tpu.memory_space<vmem>>, vector<1x64x256xbf16>
    %194 = vector.shape_cast %193 : vector<1x64x256xbf16> to vector<64x256xbf16>
    %cst_68 = arith.constant dense<0.000000e+00> : vector<92x256xf32>
    %195 = tpu.matmul %192, %194, %cst_68 {dimension_numbers = #tpu.dot_dimension_numbers<[1], [0], [0], [1], [0, 0, 1, 1], [], []>} : vector<92x64xbf16>, vector<64x256xbf16>, vector<92x256xf32> -> vector<92x256xf32>
    %c12 = arith.constant 12 : index
    %c0_69 = arith.constant 0 : index
    %196 = vector.load %arg15[%c12, %c0_69] : memref<128x64xbf16, #tpu.memory_space<vmem>>, vector<92x64xbf16>
    %c9_70 = arith.constant 9 : index
    %c0_71 = arith.constant 0 : index
    %c0_72 = arith.constant 0 : index
    %197 = vector.load %arg4[%c9_70, %c0_71, %c0_72] : memref<25x64x256xbf16, #tpu.memory_space<vmem>>, vector<1x64x256xbf16>
    %198 = vector.shape_cast %197 : vector<1x64x256xbf16> to vector<64x256xbf16>
    %cst_73 = arith.constant dense<0.000000e+00> : vector<92x256xf32>
    %199 = tpu.matmul %196, %198, %cst_73 {dimension_numbers = #tpu.dot_dimension_numbers<[1], [0], [0], [1], [0, 0, 1, 1], [], []>} : vector<92x64xbf16>, vector<64x256xbf16>, vector<92x256xf32> -> vector<92x256xf32>
    %c16 = arith.constant 16 : index
    %c0_74 = arith.constant 0 : index
    %200 = vector.load %arg15[%c16, %c0_74] : memref<128x64xbf16, #tpu.memory_space<vmem>>, vector<92x64xbf16>
    %c10_75 = arith.constant 10 : index
    %c0_76 = arith.constant 0 : index
    %c0_77 = arith.constant 0 : index
    %201 = vector.load %arg4[%c10_75, %c0_76, %c0_77] : memref<25x64x256xbf16, #tpu.memory_space<vmem>>, vector<1x64x256xbf16>
    %202 = vector.shape_cast %201 : vector<1x64x256xbf16> to vector<64x256xbf16>
    %cst_78 = arith.constant dense<0.000000e+00> : vector<92x256xf32>
    %203 = tpu.matmul %200, %202, %cst_78 {dimension_numbers = #tpu.dot_dimension_numbers<[1], [0], [0], [1], [0, 0, 1, 1], [], []>} : vector<92x64xbf16>, vector<64x256xbf16>, vector<92x256xf32> -> vector<92x256xf32>
    %c17 = arith.constant 17 : index
    %c0_79 = arith.constant 0 : index
    %204 = vector.load %arg15[%c17, %c0_79] : memref<128x64xbf16, #tpu.memory_space<vmem>>, vector<92x64xbf16>
    %c11_80 = arith.constant 11 : index
    %c0_81 = arith.constant 0 : index
    %c0_82 = arith.constant 0 : index
    %205 = vector.load %arg4[%c11_80, %c0_81, %c0_82] : memref<25x64x256xbf16, #tpu.memory_space<vmem>>, vector<1x64x256xbf16>
    %206 = vector.shape_cast %205 : vector<1x64x256xbf16> to vector<64x256xbf16>
    %cst_83 = arith.constant dense<0.000000e+00> : vector<92x256xf32>
    %207 = tpu.matmul %204, %206, %cst_83 {dimension_numbers = #tpu.dot_dimension_numbers<[1], [0], [0], [1], [0, 0, 1, 1], [], []>} : vector<92x64xbf16>, vector<64x256xbf16>, vector<92x256xf32> -> vector<92x256xf32>
    %c18_84 = arith.constant 18 : index
    %c0_85 = arith.constant 0 : index
    %208 = vector.load %arg15[%c18_84, %c0_85] : memref<128x64xbf16, #tpu.memory_space<vmem>>, vector<92x64xbf16>
    %c12_86 = arith.constant 12 : index
    %c0_87 = arith.constant 0 : index
    %c0_88 = arith.constant 0 : index
    %209 = vector.load %arg4[%c12_86, %c0_87, %c0_88] : memref<25x64x256xbf16, #tpu.memory_space<vmem>>, vector<1x64x256xbf16>
    %210 = vector.shape_cast %209 : vector<1x64x256xbf16> to vector<64x256xbf16>
    %cst_89 = arith.constant dense<0.000000e+00> : vector<92x256xf32>
    %211 = tpu.matmul %208, %210, %cst_89 {dimension_numbers = #tpu.dot_dimension_numbers<[1], [0], [0], [1], [0, 0, 1, 1], [], []>} : vector<92x64xbf16>, vector<64x256xbf16>, vector<92x256xf32> -> vector<92x256xf32>
    %c19 = arith.constant 19 : index
    %c0_90 = arith.constant 0 : index
    %212 = vector.load %arg15[%c19, %c0_90] : memref<128x64xbf16, #tpu.memory_space<vmem>>, vector<92x64xbf16>
    %c13 = arith.constant 13 : index
    %c0_91 = arith.constant 0 : index
    %c0_92 = arith.constant 0 : index
    %213 = vector.load %arg4[%c13, %c0_91, %c0_92] : memref<25x64x256xbf16, #tpu.memory_space<vmem>>, vector<1x64x256xbf16>
    %214 = vector.shape_cast %213 : vector<1x64x256xbf16> to vector<64x256xbf16>
    %cst_93 = arith.constant dense<0.000000e+00> : vector<92x256xf32>
    %215 = tpu.matmul %212, %214, %cst_93 {dimension_numbers = #tpu.dot_dimension_numbers<[1], [0], [0], [1], [0, 0, 1, 1], [], []>} : vector<92x64xbf16>, vector<64x256xbf16>, vector<92x256xf32> -> vector<92x256xf32>
    %c20 = arith.constant 20 : index
    %c0_94 = arith.constant 0 : index
    %216 = vector.load %arg15[%c20, %c0_94] : memref<128x64xbf16, #tpu.memory_space<vmem>>, vector<92x64xbf16>
    %c14 = arith.constant 14 : index
    %c0_95 = arith.constant 0 : index
    %c0_96 = arith.constant 0 : index
    %217 = vector.load %arg4[%c14, %c0_95, %c0_96] : memref<25x64x256xbf16, #tpu.memory_space<vmem>>, vector<1x64x256xbf16>
    %218 = vector.shape_cast %217 : vector<1x64x256xbf16> to vector<64x256xbf16>
    %cst_97 = arith.constant dense<0.000000e+00> : vector<92x256xf32>
    %219 = tpu.matmul %216, %218, %cst_97 {dimension_numbers = #tpu.dot_dimension_numbers<[1], [0], [0], [1], [0, 0, 1, 1], [], []>} : vector<92x64xbf16>, vector<64x256xbf16>, vector<92x256xf32> -> vector<92x256xf32>
    %c24 = arith.constant 24 : index
    %c0_98 = arith.constant 0 : index
    %220 = vector.load %arg15[%c24, %c0_98] : memref<128x64xbf16, #tpu.memory_space<vmem>>, vector<92x64xbf16>
    %c15 = arith.constant 15 : index
    %c0_99 = arith.constant 0 : index
    %c0_100 = arith.constant 0 : index
    %221 = vector.load %arg4[%c15, %c0_99, %c0_100] : memref<25x64x256xbf16, #tpu.memory_space<vmem>>, vector<1x64x256xbf16>
    %222 = vector.shape_cast %221 : vector<1x64x256xbf16> to vector<64x256xbf16>
    %cst_101 = arith.constant dense<0.000000e+00> : vector<92x256xf32>
    %223 = tpu.matmul %220, %222, %cst_101 {dimension_numbers = #tpu.dot_dimension_numbers<[1], [0], [0], [1], [0, 0, 1, 1], [], []>} : vector<92x64xbf16>, vector<64x256xbf16>, vector<92x256xf32> -> vector<92x256xf32>
    %c25 = arith.constant 25 : index
    %c0_102 = arith.constant 0 : index
    %224 = vector.load %arg15[%c25, %c0_102] : memref<128x64xbf16, #tpu.memory_space<vmem>>, vector<92x64xbf16>
    %c16_103 = arith.constant 16 : index
    %c0_104 = arith.constant 0 : index
    %c0_105 = arith.constant 0 : index
    %225 = vector.load %arg4[%c16_103, %c0_104, %c0_105] : memref<25x64x256xbf16, #tpu.memory_space<vmem>>, vector<1x64x256xbf16>
    %226 = vector.shape_cast %225 : vector<1x64x256xbf16> to vector<64x256xbf16>
    %cst_106 = arith.constant dense<0.000000e+00> : vector<92x256xf32>
    %227 = tpu.matmul %224, %226, %cst_106 {dimension_numbers = #tpu.dot_dimension_numbers<[1], [0], [0], [1], [0, 0, 1, 1], [], []>} : vector<92x64xbf16>, vector<64x256xbf16>, vector<92x256xf32> -> vector<92x256xf32>
    %c26_107 = arith.constant 26 : index
    %c0_108 = arith.constant 0 : index
    %228 = vector.load %arg15[%c26_107, %c0_108] : memref<128x64xbf16, #tpu.memory_space<vmem>>, vector<92x64xbf16>
    %c17_109 = arith.constant 17 : index
    %c0_110 = arith.constant 0 : index
    %c0_111 = arith.constant 0 : index
    %229 = vector.load %arg4[%c17_109, %c0_110, %c0_111] : memref<25x64x256xbf16, #tpu.memory_space<vmem>>, vector<1x64x256xbf16>
    %230 = vector.shape_cast %229 : vector<1x64x256xbf16> to vector<64x256xbf16>
    %cst_112 = arith.constant dense<0.000000e+00> : vector<92x256xf32>
    %231 = tpu.matmul %228, %230, %cst_112 {dimension_numbers = #tpu.dot_dimension_numbers<[1], [0], [0], [1], [0, 0, 1, 1], [], []>} : vector<92x64xbf16>, vector<64x256xbf16>, vector<92x256xf32> -> vector<92x256xf32>
    %c27 = arith.constant 27 : index
    %c0_113 = arith.constant 0 : index
    %232 = vector.load %arg15[%c27, %c0_113] : memref<128x64xbf16, #tpu.memory_space<vmem>>, vector<92x64xbf16>
    %c18_114 = arith.constant 18 : index
    %c0_115 = arith.constant 0 : index
    %c0_116 = arith.constant 0 : index
    %233 = vector.load %arg4[%c18_114, %c0_115, %c0_116] : memref<25x64x256xbf16, #tpu.memory_space<vmem>>, vector<1x64x256xbf16>
    %234 = vector.shape_cast %233 : vector<1x64x256xbf16> to vector<64x256xbf16>
    %cst_117 = arith.constant dense<0.000000e+00> : vector<92x256xf32>
    %235 = tpu.matmul %232, %234, %cst_117 {dimension_numbers = #tpu.dot_dimension_numbers<[1], [0], [0], [1], [0, 0, 1, 1], [], []>} : vector<92x64xbf16>, vector<64x256xbf16>, vector<92x256xf32> -> vector<92x256xf32>
    %c28 = arith.constant 28 : index
    %c0_118 = arith.constant 0 : index
    %236 = vector.load %arg15[%c28, %c0_118] : memref<128x64xbf16, #tpu.memory_space<vmem>>, vector<92x64xbf16>
    %c19_119 = arith.constant 19 : index
    %c0_120 = arith.constant 0 : index
    %c0_121 = arith.constant 0 : index
    %237 = vector.load %arg4[%c19_119, %c0_120, %c0_121] : memref<25x64x256xbf16, #tpu.memory_space<vmem>>, vector<1x64x256xbf16>
    %238 = vector.shape_cast %237 : vector<1x64x256xbf16> to vector<64x256xbf16>
    %cst_122 = arith.constant dense<0.000000e+00> : vector<92x256xf32>
    %239 = tpu.matmul %236, %238, %cst_122 {dimension_numbers = #tpu.dot_dimension_numbers<[1], [0], [0], [1], [0, 0, 1, 1], [], []>} : vector<92x64xbf16>, vector<64x256xbf16>, vector<92x256xf32> -> vector<92x256xf32>
    %c32 = arith.constant 32 : index
    %c0_123 = arith.constant 0 : index
    %240 = vector.load %arg15[%c32, %c0_123] : memref<128x64xbf16, #tpu.memory_space<vmem>>, vector<92x64xbf16>
    %c20_124 = arith.constant 20 : index
    %c0_125 = arith.constant 0 : index
    %c0_126 = arith.constant 0 : index
    %241 = vector.load %arg4[%c20_124, %c0_125, %c0_126] : memref<25x64x256xbf16, #tpu.memory_space<vmem>>, vector<1x64x256xbf16>
    %242 = vector.shape_cast %241 : vector<1x64x256xbf16> to vector<64x256xbf16>
    %cst_127 = arith.constant dense<0.000000e+00> : vector<92x256xf32>
    %243 = tpu.matmul %240, %242, %cst_127 {dimension_numbers = #tpu.dot_dimension_numbers<[1], [0], [0], [1], [0, 0, 1, 1], [], []>} : vector<92x64xbf16>, vector<64x256xbf16>, vector<92x256xf32> -> vector<92x256xf32>
    %c33 = arith.constant 33 : index
    %c0_128 = arith.constant 0 : index
    %244 = vector.load %arg15[%c33, %c0_128] : memref<128x64xbf16, #tpu.memory_space<vmem>>, vector<92x64xbf16>
    %c21 = arith.constant 21 : index
    %c0_129 = arith.constant 0 : index
    %c0_130 = arith.constant 0 : index
    %245 = vector.load %arg4[%c21, %c0_129, %c0_130] : memref<25x64x256xbf16, #tpu.memory_space<vmem>>, vector<1x64x256xbf16>
    %246 = vector.shape_cast %245 : vector<1x64x256xbf16> to vector<64x256xbf16>
    %cst_131 = arith.constant dense<0.000000e+00> : vector<92x256xf32>
    %247 = tpu.matmul %244, %246, %cst_131 {dimension_numbers = #tpu.dot_dimension_numbers<[1], [0], [0], [1], [0, 0, 1, 1], [], []>} : vector<92x64xbf16>, vector<64x256xbf16>, vector<92x256xf32> -> vector<92x256xf32>
    %c34_132 = arith.constant 34 : index
    %c0_133 = arith.constant 0 : index
    %248 = vector.load %arg15[%c34_132, %c0_133] : memref<128x64xbf16, #tpu.memory_space<vmem>>, vector<92x64xbf16>
    %c22 = arith.constant 22 : index
    %c0_134 = arith.constant 0 : index
    %c0_135 = arith.constant 0 : index
    %249 = vector.load %arg4[%c22, %c0_134, %c0_135] : memref<25x64x256xbf16, #tpu.memory_space<vmem>>, vector<1x64x256xbf16>
    %250 = vector.shape_cast %249 : vector<1x64x256xbf16> to vector<64x256xbf16>
    %cst_136 = arith.constant dense<0.000000e+00> : vector<92x256xf32>
    %251 = tpu.matmul %248, %250, %cst_136 {dimension_numbers = #tpu.dot_dimension_numbers<[1], [0], [0], [1], [0, 0, 1, 1], [], []>} : vector<92x64xbf16>, vector<64x256xbf16>, vector<92x256xf32> -> vector<92x256xf32>
    %c35 = arith.constant 35 : index
    %c0_137 = arith.constant 0 : index
    %252 = vector.load %arg15[%c35, %c0_137] : memref<128x64xbf16, #tpu.memory_space<vmem>>, vector<92x64xbf16>
    %c23 = arith.constant 23 : index
    %c0_138 = arith.constant 0 : index
    %c0_139 = arith.constant 0 : index
    %253 = vector.load %arg4[%c23, %c0_138, %c0_139] : memref<25x64x256xbf16, #tpu.memory_space<vmem>>, vector<1x64x256xbf16>
    %254 = vector.shape_cast %253 : vector<1x64x256xbf16> to vector<64x256xbf16>
    %cst_140 = arith.constant dense<0.000000e+00> : vector<92x256xf32>
    %255 = tpu.matmul %252, %254, %cst_140 {dimension_numbers = #tpu.dot_dimension_numbers<[1], [0], [0], [1], [0, 0, 1, 1], [], []>} : vector<92x64xbf16>, vector<64x256xbf16>, vector<92x256xf32> -> vector<92x256xf32>
    %c36 = arith.constant 36 : index
    %c0_141 = arith.constant 0 : index
    %256 = vector.load %arg15[%c36, %c0_141] : memref<128x64xbf16, #tpu.memory_space<vmem>>, vector<92x64xbf16>
    %c24_142 = arith.constant 24 : index
    %c0_143 = arith.constant 0 : index
    %c0_144 = arith.constant 0 : index
    %257 = vector.load %arg4[%c24_142, %c0_143, %c0_144] : memref<25x64x256xbf16, #tpu.memory_space<vmem>>, vector<1x64x256xbf16>
    %258 = vector.shape_cast %257 : vector<1x64x256xbf16> to vector<64x256xbf16>
    %cst_145 = arith.constant dense<0.000000e+00> : vector<92x256xf32>
    %259 = tpu.matmul %256, %258, %cst_145 {dimension_numbers = #tpu.dot_dimension_numbers<[1], [0], [0], [1], [0, 0, 1, 1], [], []>} : vector<92x64xbf16>, vector<64x256xbf16>, vector<92x256xf32> -> vector<92x256xf32>
    %260 = arith.addf %163, %167 : vector<92x256xf32>
    %261 = arith.addf %171, %175 : vector<92x256xf32>
    %262 = arith.addf %179, %183 : vector<92x256xf32>
    %263 = arith.addf %187, %191 : vector<92x256xf32>
    %264 = arith.addf %195, %199 : vector<92x256xf32>
    %265 = arith.addf %203, %207 : vector<92x256xf32>
    %266 = arith.addf %211, %215 : vector<92x256xf32>
    %267 = arith.addf %219, %223 : vector<92x256xf32>
    %268 = arith.addf %227, %231 : vector<92x256xf32>
    %269 = arith.addf %235, %239 : vector<92x256xf32>
    %270 = arith.addf %243, %247 : vector<92x256xf32>
    %271 = arith.addf %251, %255 : vector<92x256xf32>
    %272 = arith.addf %260, %261 : vector<92x256xf32>
    %273 = arith.addf %262, %263 : vector<92x256xf32>
    %274 = arith.addf %264, %265 : vector<92x256xf32>
    %275 = arith.addf %266, %267 : vector<92x256xf32>
    %276 = arith.addf %268, %269 : vector<92x256xf32>
    %277 = arith.addf %270, %271 : vector<92x256xf32>
    %278 = arith.addf %272, %273 : vector<92x256xf32>
    %279 = arith.addf %274, %275 : vector<92x256xf32>
    %280 = arith.addf %276, %277 : vector<92x256xf32>
    %281 = arith.addf %278, %279 : vector<92x256xf32>
    %282 = arith.addf %280, %259 : vector<92x256xf32>
    %283 = arith.addf %281, %282 : vector<92x256xf32>
    %c0_146 = arith.constant 0 : index
    %c0_147 = arith.constant 0 : index
    %284 = vector.load %arg5[%c0_146, %c0_147] : memref<1x256xf32, #tpu.memory_space<vmem>>, vector<1x256xf32>
    %285 = vector.broadcast %284 : vector<1x256xf32> to vector<92x256xf32>
    %286 = arith.addf %283, %285 : vector<92x256xf32>
    %cst_148 = arith.constant 0.000000e+00 : f32
    %287 = vector.broadcast %cst_148 : f32 to vector<92x256xf32>
    %288 = arith.maximumf %286, %287 : vector<92x256xf32>
    %289 = vector.extract_strided_slice %288 {offsets = [0, 0], sizes = [4, 256], strides = [1, 1]} : vector<92x256xf32> to vector<4x256xf32>
    %290 = vector.extract_strided_slice %288 {offsets = [8, 0], sizes = [4, 256], strides = [1, 1]} : vector<92x256xf32> to vector<4x256xf32>
    %291 = arith.maximumf %289, %290 : vector<4x256xf32>
    %292 = vector.extract_strided_slice %291 {offsets = [0, 0], sizes = [1, 256], strides = [1, 1]} : vector<4x256xf32> to vector<1x256xf32>
    %293 = vector.extract_strided_slice %291 {offsets = [1, 0], sizes = [1, 256], strides = [1, 1]} : vector<4x256xf32> to vector<1x256xf32>
    %294 = arith.maximumf %292, %293 : vector<1x256xf32>
    %295 = vector.extract_strided_slice %291 {offsets = [2, 0], sizes = [1, 256], strides = [1, 1]} : vector<4x256xf32> to vector<1x256xf32>
    %296 = vector.extract_strided_slice %291 {offsets = [3, 0], sizes = [1, 256], strides = [1, 1]} : vector<4x256xf32> to vector<1x256xf32>
    %297 = arith.maximumf %295, %296 : vector<1x256xf32>
    %298 = tpu.concatenate %294, %297 in 0 : vector<1x256xf32>, vector<1x256xf32> -> vector<2x256xf32>
    %299 = arith.truncf %298 : vector<2x256xf32> to vector<2x256xbf16>
    %c9_149 = arith.constant 9 : index
    %c0_150 = arith.constant 0 : index
    %300 = vector.load %arg16[%c9_149, %c0_150] : memref<64x256xbf16, #tpu.memory_space<vmem>>, vector<2x256xbf16>
    tpu.vector_store %arg16[%c9_149, %c0_150], %299 {strides = array<i32>} : memref<64x256xbf16, #tpu.memory_space<vmem>>, vector<2x256xbf16>,
    %301 = vector.extract_strided_slice %288 {offsets = [16, 0], sizes = [4, 256], strides = [1, 1]} : vector<92x256xf32> to vector<4x256xf32>
    %302 = vector.extract_strided_slice %288 {offsets = [24, 0], sizes = [4, 256], strides = [1, 1]} : vector<92x256xf32> to vector<4x256xf32>
    %303 = arith.maximumf %301, %302 : vector<4x256xf32>
    %304 = vector.extract_strided_slice %303 {offsets = [0, 0], sizes = [1, 256], strides = [1, 1]} : vector<4x256xf32> to vector<1x256xf32>
    %305 = vector.extract_strided_slice %303 {offsets = [1, 0], sizes = [1, 256], strides = [1, 1]} : vector<4x256xf32> to vector<1x256xf32>
    %306 = arith.maximumf %304, %305 : vector<1x256xf32>
    %307 = vector.extract_strided_slice %303 {offsets = [2, 0], sizes = [1, 256], strides = [1, 1]} : vector<4x256xf32> to vector<1x256xf32>
    %308 = vector.extract_strided_slice %303 {offsets = [3, 0], sizes = [1, 256], strides = [1, 1]} : vector<4x256xf32> to vector<1x256xf32>
    %309 = arith.maximumf %307, %308 : vector<1x256xf32>
    %310 = tpu.concatenate %306, %309 in 0 : vector<1x256xf32>, vector<1x256xf32> -> vector<2x256xf32>
    %311 = arith.truncf %310 : vector<2x256xf32> to vector<2x256xbf16>
    %c17_151 = arith.constant 17 : index
    %c0_152 = arith.constant 0 : index
    %312 = vector.load %arg16[%c17_151, %c0_152] : memref<64x256xbf16, #tpu.memory_space<vmem>>, vector<2x256xbf16>
    tpu.vector_store %arg16[%c17_151, %c0_152], %311 {strides = array<i32>} : memref<64x256xbf16, #tpu.memory_space<vmem>>, vector<2x256xbf16>,
    %313 = vector.extract_strided_slice %288 {offsets = [64, 0], sizes = [4, 256], strides = [1, 1]} : vector<92x256xf32> to vector<4x256xf32>
    %314 = vector.extract_strided_slice %288 {offsets = [72, 0], sizes = [4, 256], strides = [1, 1]} : vector<92x256xf32> to vector<4x256xf32>
    %315 = arith.maximumf %313, %314 : vector<4x256xf32>
    %316 = vector.extract_strided_slice %315 {offsets = [0, 0], sizes = [1, 256], strides = [1, 1]} : vector<4x256xf32> to vector<1x256xf32>
    %317 = vector.extract_strided_slice %315 {offsets = [1, 0], sizes = [1, 256], strides = [1, 1]} : vector<4x256xf32> to vector<1x256xf32>
    %318 = arith.maximumf %316, %317 : vector<1x256xf32>
    %319 = vector.extract_strided_slice %315 {offsets = [2, 0], sizes = [1, 256], strides = [1, 1]} : vector<4x256xf32> to vector<1x256xf32>
    %320 = vector.extract_strided_slice %315 {offsets = [3, 0], sizes = [1, 256], strides = [1, 1]} : vector<4x256xf32> to vector<1x256xf32>
    %321 = arith.maximumf %319, %320 : vector<1x256xf32>
    %322 = tpu.concatenate %318, %321 in 0 : vector<1x256xf32>, vector<1x256xf32> -> vector<2x256xf32>
    %323 = arith.truncf %322 : vector<2x256xf32> to vector<2x256xbf16>
    %c41 = arith.constant 41 : index
    %c0_153 = arith.constant 0 : index
    %324 = vector.load %arg16[%c41, %c0_153] : memref<64x256xbf16, #tpu.memory_space<vmem>>, vector<2x256xbf16>
    tpu.vector_store %arg16[%c41, %c0_153], %323 {strides = array<i32>} : memref<64x256xbf16, #tpu.memory_space<vmem>>, vector<2x256xbf16>,
    %325 = vector.extract_strided_slice %288 {offsets = [80, 0], sizes = [4, 256], strides = [1, 1]} : vector<92x256xf32> to vector<4x256xf32>
    %326 = vector.extract_strided_slice %288 {offsets = [88, 0], sizes = [4, 256], strides = [1, 1]} : vector<92x256xf32> to vector<4x256xf32>
    %327 = arith.maximumf %325, %326 : vector<4x256xf32>
    %328 = vector.extract_strided_slice %327 {offsets = [0, 0], sizes = [1, 256], strides = [1, 1]} : vector<4x256xf32> to vector<1x256xf32>
    %329 = vector.extract_strided_slice %327 {offsets = [1, 0], sizes = [1, 256], strides = [1, 1]} : vector<4x256xf32> to vector<1x256xf32>
    %330 = arith.maximumf %328, %329 : vector<1x256xf32>
    %331 = vector.extract_strided_slice %327 {offsets = [2, 0], sizes = [1, 256], strides = [1, 1]} : vector<4x256xf32> to vector<1x256xf32>
    %332 = vector.extract_strided_slice %327 {offsets = [3, 0], sizes = [1, 256], strides = [1, 1]} : vector<4x256xf32> to vector<1x256xf32>
    %333 = arith.maximumf %331, %332 : vector<1x256xf32>
    %334 = tpu.concatenate %330, %333 in 0 : vector<1x256xf32>, vector<1x256xf32> -> vector<2x256xf32>
    %335 = arith.truncf %334 : vector<2x256xf32> to vector<2x256xbf16>
    %c49 = arith.constant 49 : index
    %c0_154 = arith.constant 0 : index
    %336 = vector.load %arg16[%c49, %c0_154] : memref<64x256xbf16, #tpu.memory_space<vmem>>, vector<2x256xbf16>
    tpu.vector_store %arg16[%c49, %c0_154], %335 {strides = array<i32>} : memref<64x256xbf16, #tpu.memory_space<vmem>>, vector<2x256xbf16>,
    %c0_155 = arith.constant 0 : index
    %c0_156 = arith.constant 0 : index
    %337 = vector.load %arg16[%c0_155, %c0_156] : memref<64x256xbf16, #tpu.memory_space<vmem>>, vector<46x256xbf16>
    %c0_157 = arith.constant 0 : index
    %c0_158 = arith.constant 0 : index
    %c0_159 = arith.constant 0 : index
    %338 = vector.load %arg6[%c0_157, %c0_158, %c0_159] : memref<9x256x384xbf16, #tpu.memory_space<vmem>>, vector<1x256x384xbf16>
    %339 = vector.shape_cast %338 : vector<1x256x384xbf16> to vector<256x384xbf16>
    %cst_160 = arith.constant dense<0.000000e+00> : vector<46x384xf32>
    %340 = tpu.matmul %337, %339, %cst_160 {dimension_numbers = #tpu.dot_dimension_numbers<[1], [0], [0], [1], [0, 0, 1, 1], [], []>} : vector<46x256xbf16>, vector<256x384xbf16>, vector<46x384xf32> -> vector<46x384xf32>
    %c1_161 = arith.constant 1 : index
    %c0_162 = arith.constant 0 : index
    %341 = vector.load %arg16[%c1_161, %c0_162] : memref<64x256xbf16, #tpu.memory_space<vmem>>, vector<46x256xbf16>
    %c1_163 = arith.constant 1 : index
    %c0_164 = arith.constant 0 : index
    %c0_165 = arith.constant 0 : index
    %342 = vector.load %arg6[%c1_163, %c0_164, %c0_165] : memref<9x256x384xbf16, #tpu.memory_space<vmem>>, vector<1x256x384xbf16>
    %343 = vector.shape_cast %342 : vector<1x256x384xbf16> to vector<256x384xbf16>
    %cst_166 = arith.constant dense<0.000000e+00> : vector<46x384xf32>
    %344 = tpu.matmul %341, %343, %cst_166 {dimension_numbers = #tpu.dot_dimension_numbers<[1], [0], [0], [1], [0, 0, 1, 1], [], []>} : vector<46x256xbf16>, vector<256x384xbf16>, vector<46x384xf32> -> vector<46x384xf32>
    %c2_167 = arith.constant 2 : index
    %c0_168 = arith.constant 0 : index
    %345 = vector.load %arg16[%c2_167, %c0_168] : memref<64x256xbf16, #tpu.memory_space<vmem>>, vector<46x256xbf16>
    %c2_169 = arith.constant 2 : index
    %c0_170 = arith.constant 0 : index
    %c0_171 = arith.constant 0 : index
    %346 = vector.load %arg6[%c2_169, %c0_170, %c0_171] : memref<9x256x384xbf16, #tpu.memory_space<vmem>>, vector<1x256x384xbf16>
    %347 = vector.shape_cast %346 : vector<1x256x384xbf16> to vector<256x384xbf16>
    %cst_172 = arith.constant dense<0.000000e+00> : vector<46x384xf32>
    %348 = tpu.matmul %345, %347, %cst_172 {dimension_numbers = #tpu.dot_dimension_numbers<[1], [0], [0], [1], [0, 0, 1, 1], [], []>} : vector<46x256xbf16>, vector<256x384xbf16>, vector<46x384xf32> -> vector<46x384xf32>
    %c8_173 = arith.constant 8 : index
    %c0_174 = arith.constant 0 : index
    %349 = vector.load %arg16[%c8_173, %c0_174] : memref<64x256xbf16, #tpu.memory_space<vmem>>, vector<46x256xbf16>
    %c3_175 = arith.constant 3 : index
    %c0_176 = arith.constant 0 : index
    %c0_177 = arith.constant 0 : index
    %350 = vector.load %arg6[%c3_175, %c0_176, %c0_177] : memref<9x256x384xbf16, #tpu.memory_space<vmem>>, vector<1x256x384xbf16>
    %351 = vector.shape_cast %350 : vector<1x256x384xbf16> to vector<256x384xbf16>
    %cst_178 = arith.constant dense<0.000000e+00> : vector<46x384xf32>
    %352 = tpu.matmul %349, %351, %cst_178 {dimension_numbers = #tpu.dot_dimension_numbers<[1], [0], [0], [1], [0, 0, 1, 1], [], []>} : vector<46x256xbf16>, vector<256x384xbf16>, vector<46x384xf32> -> vector<46x384xf32>
    %c9_179 = arith.constant 9 : index
    %c0_180 = arith.constant 0 : index
    %353 = vector.load %arg16[%c9_179, %c0_180] : memref<64x256xbf16, #tpu.memory_space<vmem>>, vector<46x256xbf16>
    %c4_181 = arith.constant 4 : index
    %c0_182 = arith.constant 0 : index
    %c0_183 = arith.constant 0 : index
    %354 = vector.load %arg6[%c4_181, %c0_182, %c0_183] : memref<9x256x384xbf16, #tpu.memory_space<vmem>>, vector<1x256x384xbf16>
    %355 = vector.shape_cast %354 : vector<1x256x384xbf16> to vector<256x384xbf16>
    %cst_184 = arith.constant dense<0.000000e+00> : vector<46x384xf32>
    %356 = tpu.matmul %353, %355, %cst_184 {dimension_numbers = #tpu.dot_dimension_numbers<[1], [0], [0], [1], [0, 0, 1, 1], [], []>} : vector<46x256xbf16>, vector<256x384xbf16>, vector<46x384xf32> -> vector<46x384xf32>
    %c10_185 = arith.constant 10 : index
    %c0_186 = arith.constant 0 : index
    %357 = vector.load %arg16[%c10_185, %c0_186] : memref<64x256xbf16, #tpu.memory_space<vmem>>, vector<46x256xbf16>
    %c5_187 = arith.constant 5 : index
    %c0_188 = arith.constant 0 : index
    %c0_189 = arith.constant 0 : index
    %358 = vector.load %arg6[%c5_187, %c0_188, %c0_189] : memref<9x256x384xbf16, #tpu.memory_space<vmem>>, vector<1x256x384xbf16>
    %359 = vector.shape_cast %358 : vector<1x256x384xbf16> to vector<256x384xbf16>
    %cst_190 = arith.constant dense<0.000000e+00> : vector<46x384xf32>
    %360 = tpu.matmul %357, %359, %cst_190 {dimension_numbers = #tpu.dot_dimension_numbers<[1], [0], [0], [1], [0, 0, 1, 1], [], []>} : vector<46x256xbf16>, vector<256x384xbf16>, vector<46x384xf32> -> vector<46x384xf32>
    %c16_191 = arith.constant 16 : index
    %c0_192 = arith.constant 0 : index
    %361 = vector.load %arg16[%c16_191, %c0_192] : memref<64x256xbf16, #tpu.memory_space<vmem>>, vector<46x256xbf16>
    %c6_193 = arith.constant 6 : index
    %c0_194 = arith.constant 0 : index
    %c0_195 = arith.constant 0 : index
    %362 = vector.load %arg6[%c6_193, %c0_194, %c0_195] : memref<9x256x384xbf16, #tpu.memory_space<vmem>>, vector<1x256x384xbf16>
    %363 = vector.shape_cast %362 : vector<1x256x384xbf16> to vector<256x384xbf16>
    %cst_196 = arith.constant dense<0.000000e+00> : vector<46x384xf32>
    %364 = tpu.matmul %361, %363, %cst_196 {dimension_numbers = #tpu.dot_dimension_numbers<[1], [0], [0], [1], [0, 0, 1, 1], [], []>} : vector<46x256xbf16>, vector<256x384xbf16>, vector<46x384xf32> -> vector<46x384xf32>
    %c17_197 = arith.constant 17 : index
    %c0_198 = arith.constant 0 : index
    %365 = vector.load %arg16[%c17_197, %c0_198] : memref<64x256xbf16, #tpu.memory_space<vmem>>, vector<46x256xbf16>
    %c7_199 = arith.constant 7 : index
    %c0_200 = arith.constant 0 : index
    %c0_201 = arith.constant 0 : index
    %366 = vector.load %arg6[%c7_199, %c0_200, %c0_201] : memref<9x256x384xbf16, #tpu.memory_space<vmem>>, vector<1x256x384xbf16>
    %367 = vector.shape_cast %366 : vector<1x256x384xbf16> to vector<256x384xbf16>
    %cst_202 = arith.constant dense<0.000000e+00> : vector<46x384xf32>
    %368 = tpu.matmul %365, %367, %cst_202 {dimension_numbers = #tpu.dot_dimension_numbers<[1], [0], [0], [1], [0, 0, 1, 1], [], []>} : vector<46x256xbf16>, vector<256x384xbf16>, vector<46x384xf32> -> vector<46x384xf32>
    %c18_203 = arith.constant 18 : index
    %c0_204 = arith.constant 0 : index
    %369 = vector.load %arg16[%c18_203, %c0_204] : memref<64x256xbf16, #tpu.memory_space<vmem>>, vector<46x256xbf16>
    %c8_205 = arith.constant 8 : index
    %c0_206 = arith.constant 0 : index
    %c0_207 = arith.constant 0 : index
    %370 = vector.load %arg6[%c8_205, %c0_206, %c0_207] : memref<9x256x384xbf16, #tpu.memory_space<vmem>>, vector<1x256x384xbf16>
    %371 = vector.shape_cast %370 : vector<1x256x384xbf16> to vector<256x384xbf16>
    %cst_208 = arith.constant dense<0.000000e+00> : vector<46x384xf32>
    %372 = tpu.matmul %369, %371, %cst_208 {dimension_numbers = #tpu.dot_dimension_numbers<[1], [0], [0], [1], [0, 0, 1, 1], [], []>} : vector<46x256xbf16>, vector<256x384xbf16>, vector<46x384xf32> -> vector<46x384xf32>
    %373 = arith.addf %340, %344 : vector<46x384xf32>
    %374 = arith.addf %348, %352 : vector<46x384xf32>
    %375 = arith.addf %356, %360 : vector<46x384xf32>
    %376 = arith.addf %364, %368 : vector<46x384xf32>
    %377 = arith.addf %373, %374 : vector<46x384xf32>
    %378 = arith.addf %375, %376 : vector<46x384xf32>
    %379 = arith.addf %377, %378 : vector<46x384xf32>
    %380 = arith.addf %379, %372 : vector<46x384xf32>
    %c0_209 = arith.constant 0 : index
    %c0_210 = arith.constant 0 : index
    %381 = vector.load %arg7[%c0_209, %c0_210] : memref<1x384xf32, #tpu.memory_space<vmem>>, vector<1x384xf32>
    %382 = vector.broadcast %381 : vector<1x384xf32> to vector<46x384xf32>
    %383 = arith.addf %380, %382 : vector<46x384xf32>
    %cst_211 = arith.constant 0.000000e+00 : f32
    %384 = vector.broadcast %cst_211 : f32 to vector<46x384xf32>
    %385 = arith.maximumf %383, %384 : vector<46x384xf32>
    %386 = vector.extract_strided_slice %385 {offsets = [0, 0], sizes = [2, 384], strides = [1, 1]} : vector<46x384xf32> to vector<2x384xf32>
    %387 = arith.truncf %386 : vector<2x384xf32> to vector<2x384xbf16>
    %c9_212 = arith.constant 9 : index
    %c0_213 = arith.constant 0 : index
    %388 = vector.load %arg17[%c9_212, %c0_213] : memref<64x384xbf16, #tpu.memory_space<vmem>>, vector<2x384xbf16>
    tpu.vector_store %arg17[%c9_212, %c0_213], %387 {strides = array<i32>} : memref<64x384xbf16, #tpu.memory_space<vmem>>, vector<2x384xbf16>,
    %389 = vector.extract_strided_slice %385 {offsets = [8, 0], sizes = [2, 384], strides = [1, 1]} : vector<46x384xf32> to vector<2x384xf32>
    %390 = arith.truncf %389 : vector<2x384xf32> to vector<2x384xbf16>
    %c17_214 = arith.constant 17 : index
    %c0_215 = arith.constant 0 : index
    %391 = vector.load %arg17[%c17_214, %c0_215] : memref<64x384xbf16, #tpu.memory_space<vmem>>, vector<2x384xbf16>
    tpu.vector_store %arg17[%c17_214, %c0_215], %390 {strides = array<i32>} : memref<64x384xbf16, #tpu.memory_space<vmem>>, vector<2x384xbf16>,
    %392 = vector.extract_strided_slice %385 {offsets = [32, 0], sizes = [2, 384], strides = [1, 1]} : vector<46x384xf32> to vector<2x384xf32>
    %393 = arith.truncf %392 : vector<2x384xf32> to vector<2x384xbf16>
    %c41_216 = arith.constant 41 : index
    %c0_217 = arith.constant 0 : index
    %394 = vector.load %arg17[%c41_216, %c0_217] : memref<64x384xbf16, #tpu.memory_space<vmem>>, vector<2x384xbf16>
    tpu.vector_store %arg17[%c41_216, %c0_217], %393 {strides = array<i32>} : memref<64x384xbf16, #tpu.memory_space<vmem>>, vector<2x384xbf16>,
    %395 = vector.extract_strided_slice %385 {offsets = [40, 0], sizes = [2, 384], strides = [1, 1]} : vector<46x384xf32> to vector<2x384xf32>
    %396 = arith.truncf %395 : vector<2x384xf32> to vector<2x384xbf16>
    %c49_218 = arith.constant 49 : index
    %c0_219 = arith.constant 0 : index
    %397 = vector.load %arg17[%c49_218, %c0_219] : memref<64x384xbf16, #tpu.memory_space<vmem>>, vector<2x384xbf16>
    tpu.vector_store %arg17[%c49_218, %c0_219], %396 {strides = array<i32>} : memref<64x384xbf16, #tpu.memory_space<vmem>>, vector<2x384xbf16>,
    %c0_220 = arith.constant 0 : index
    %c0_221 = arith.constant 0 : index
    %398 = vector.load %arg17[%c0_220, %c0_221] : memref<64x384xbf16, #tpu.memory_space<vmem>>, vector<46x384xbf16>
    %c0_222 = arith.constant 0 : index
    %c0_223 = arith.constant 0 : index
    %c0_224 = arith.constant 0 : index
    %399 = vector.load %arg8[%c0_222, %c0_223, %c0_224] : memref<9x384x256xbf16, #tpu.memory_space<vmem>>, vector<1x384x256xbf16>
    %400 = vector.shape_cast %399 : vector<1x384x256xbf16> to vector<384x256xbf16>
    %cst_225 = arith.constant dense<0.000000e+00> : vector<46x256xf32>
    %401 = tpu.matmul %398, %400, %cst_225 {dimension_numbers = #tpu.dot_dimension_numbers<[1], [0], [0], [1], [0, 0, 1, 1], [], []>} : vector<46x384xbf16>, vector<384x256xbf16>, vector<46x256xf32> -> vector<46x256xf32>
    %c1_226 = arith.constant 1 : index
    %c0_227 = arith.constant 0 : index
    %402 = vector.load %arg17[%c1_226, %c0_227] : memref<64x384xbf16, #tpu.memory_space<vmem>>, vector<46x384xbf16>
    %c1_228 = arith.constant 1 : index
    %c0_229 = arith.constant 0 : index
    %c0_230 = arith.constant 0 : index
    %403 = vector.load %arg8[%c1_228, %c0_229, %c0_230] : memref<9x384x256xbf16, #tpu.memory_space<vmem>>, vector<1x384x256xbf16>
    %404 = vector.shape_cast %403 : vector<1x384x256xbf16> to vector<384x256xbf16>
    %cst_231 = arith.constant dense<0.000000e+00> : vector<46x256xf32>
    %405 = tpu.matmul %402, %404, %cst_231 {dimension_numbers = #tpu.dot_dimension_numbers<[1], [0], [0], [1], [0, 0, 1, 1], [], []>} : vector<46x384xbf16>, vector<384x256xbf16>, vector<46x256xf32> -> vector<46x256xf32>
    %c2_232 = arith.constant 2 : index
    %c0_233 = arith.constant 0 : index
    %406 = vector.load %arg17[%c2_232, %c0_233] : memref<64x384xbf16, #tpu.memory_space<vmem>>, vector<46x384xbf16>
    %c2_234 = arith.constant 2 : index
    %c0_235 = arith.constant 0 : index
    %c0_236 = arith.constant 0 : index
    %407 = vector.load %arg8[%c2_234, %c0_235, %c0_236] : memref<9x384x256xbf16, #tpu.memory_space<vmem>>, vector<1x384x256xbf16>
    %408 = vector.shape_cast %407 : vector<1x384x256xbf16> to vector<384x256xbf16>
    %cst_237 = arith.constant dense<0.000000e+00> : vector<46x256xf32>
    %409 = tpu.matmul %406, %408, %cst_237 {dimension_numbers = #tpu.dot_dimension_numbers<[1], [0], [0], [1], [0, 0, 1, 1], [], []>} : vector<46x384xbf16>, vector<384x256xbf16>, vector<46x256xf32> -> vector<46x256xf32>
    %c8_238 = arith.constant 8 : index
    %c0_239 = arith.constant 0 : index
    %410 = vector.load %arg17[%c8_238, %c0_239] : memref<64x384xbf16, #tpu.memory_space<vmem>>, vector<46x384xbf16>
    %c3_240 = arith.constant 3 : index
    %c0_241 = arith.constant 0 : index
    %c0_242 = arith.constant 0 : index
    %411 = vector.load %arg8[%c3_240, %c0_241, %c0_242] : memref<9x384x256xbf16, #tpu.memory_space<vmem>>, vector<1x384x256xbf16>
    %412 = vector.shape_cast %411 : vector<1x384x256xbf16> to vector<384x256xbf16>
    %cst_243 = arith.constant dense<0.000000e+00> : vector<46x256xf32>
    %413 = tpu.matmul %410, %412, %cst_243 {dimension_numbers = #tpu.dot_dimension_numbers<[1], [0], [0], [1], [0, 0, 1, 1], [], []>} : vector<46x384xbf16>, vector<384x256xbf16>, vector<46x256xf32> -> vector<46x256xf32>
    %c9_244 = arith.constant 9 : index
    %c0_245 = arith.constant 0 : index
    %414 = vector.load %arg17[%c9_244, %c0_245] : memref<64x384xbf16, #tpu.memory_space<vmem>>, vector<46x384xbf16>
    %c4_246 = arith.constant 4 : index
    %c0_247 = arith.constant 0 : index
    %c0_248 = arith.constant 0 : index
    %415 = vector.load %arg8[%c4_246, %c0_247, %c0_248] : memref<9x384x256xbf16, #tpu.memory_space<vmem>>, vector<1x384x256xbf16>
    %416 = vector.shape_cast %415 : vector<1x384x256xbf16> to vector<384x256xbf16>
    %cst_249 = arith.constant dense<0.000000e+00> : vector<46x256xf32>
    %417 = tpu.matmul %414, %416, %cst_249 {dimension_numbers = #tpu.dot_dimension_numbers<[1], [0], [0], [1], [0, 0, 1, 1], [], []>} : vector<46x384xbf16>, vector<384x256xbf16>, vector<46x256xf32> -> vector<46x256xf32>
    %c10_250 = arith.constant 10 : index
    %c0_251 = arith.constant 0 : index
    %418 = vector.load %arg17[%c10_250, %c0_251] : memref<64x384xbf16, #tpu.memory_space<vmem>>, vector<46x384xbf16>
    %c5_252 = arith.constant 5 : index
    %c0_253 = arith.constant 0 : index
    %c0_254 = arith.constant 0 : index
    %419 = vector.load %arg8[%c5_252, %c0_253, %c0_254] : memref<9x384x256xbf16, #tpu.memory_space<vmem>>, vector<1x384x256xbf16>
    %420 = vector.shape_cast %419 : vector<1x384x256xbf16> to vector<384x256xbf16>
    %cst_255 = arith.constant dense<0.000000e+00> : vector<46x256xf32>
    %421 = tpu.matmul %418, %420, %cst_255 {dimension_numbers = #tpu.dot_dimension_numbers<[1], [0], [0], [1], [0, 0, 1, 1], [], []>} : vector<46x384xbf16>, vector<384x256xbf16>, vector<46x256xf32> -> vector<46x256xf32>
    %c16_256 = arith.constant 16 : index
    %c0_257 = arith.constant 0 : index
    %422 = vector.load %arg17[%c16_256, %c0_257] : memref<64x384xbf16, #tpu.memory_space<vmem>>, vector<46x384xbf16>
    %c6_258 = arith.constant 6 : index
    %c0_259 = arith.constant 0 : index
    %c0_260 = arith.constant 0 : index
    %423 = vector.load %arg8[%c6_258, %c0_259, %c0_260] : memref<9x384x256xbf16, #tpu.memory_space<vmem>>, vector<1x384x256xbf16>
    %424 = vector.shape_cast %423 : vector<1x384x256xbf16> to vector<384x256xbf16>
    %cst_261 = arith.constant dense<0.000000e+00> : vector<46x256xf32>
    %425 = tpu.matmul %422, %424, %cst_261 {dimension_numbers = #tpu.dot_dimension_numbers<[1], [0], [0], [1], [0, 0, 1, 1], [], []>} : vector<46x384xbf16>, vector<384x256xbf16>, vector<46x256xf32> -> vector<46x256xf32>
    %c17_262 = arith.constant 17 : index
    %c0_263 = arith.constant 0 : index
    %426 = vector.load %arg17[%c17_262, %c0_263] : memref<64x384xbf16, #tpu.memory_space<vmem>>, vector<46x384xbf16>
    %c7_264 = arith.constant 7 : index
    %c0_265 = arith.constant 0 : index
    %c0_266 = arith.constant 0 : index
    %427 = vector.load %arg8[%c7_264, %c0_265, %c0_266] : memref<9x384x256xbf16, #tpu.memory_space<vmem>>, vector<1x384x256xbf16>
    %428 = vector.shape_cast %427 : vector<1x384x256xbf16> to vector<384x256xbf16>
    %cst_267 = arith.constant dense<0.000000e+00> : vector<46x256xf32>
    %429 = tpu.matmul %426, %428, %cst_267 {dimension_numbers = #tpu.dot_dimension_numbers<[1], [0], [0], [1], [0, 0, 1, 1], [], []>} : vector<46x384xbf16>, vector<384x256xbf16>, vector<46x256xf32> -> vector<46x256xf32>
    %c18_268 = arith.constant 18 : index
    %c0_269 = arith.constant 0 : index
    %430 = vector.load %arg17[%c18_268, %c0_269] : memref<64x384xbf16, #tpu.memory_space<vmem>>, vector<46x384xbf16>
    %c8_270 = arith.constant 8 : index
    %c0_271 = arith.constant 0 : index
    %c0_272 = arith.constant 0 : index
    %431 = vector.load %arg8[%c8_270, %c0_271, %c0_272] : memref<9x384x256xbf16, #tpu.memory_space<vmem>>, vector<1x384x256xbf16>
    %432 = vector.shape_cast %431 : vector<1x384x256xbf16> to vector<384x256xbf16>
    %cst_273 = arith.constant dense<0.000000e+00> : vector<46x256xf32>
    %433 = tpu.matmul %430, %432, %cst_273 {dimension_numbers = #tpu.dot_dimension_numbers<[1], [0], [0], [1], [0, 0, 1, 1], [], []>} : vector<46x384xbf16>, vector<384x256xbf16>, vector<46x256xf32> -> vector<46x256xf32>
    %434 = arith.addf %401, %405 : vector<46x256xf32>
    %435 = arith.addf %409, %413 : vector<46x256xf32>
    %436 = arith.addf %417, %421 : vector<46x256xf32>
    %437 = arith.addf %425, %429 : vector<46x256xf32>
    %438 = arith.addf %434, %435 : vector<46x256xf32>
    %439 = arith.addf %436, %437 : vector<46x256xf32>
    %440 = arith.addf %438, %439 : vector<46x256xf32>
    %441 = arith.addf %440, %433 : vector<46x256xf32>
    %c0_274 = arith.constant 0 : index
    %c0_275 = arith.constant 0 : index
    %442 = vector.load %arg9[%c0_274, %c0_275] : memref<1x256xf32, #tpu.memory_space<vmem>>, vector<1x256xf32>
    %443 = vector.broadcast %442 : vector<1x256xf32> to vector<46x256xf32>
    %444 = arith.addf %441, %443 : vector<46x256xf32>
    %cst_276 = arith.constant 0.000000e+00 : f32
    %445 = vector.broadcast %cst_276 : f32 to vector<46x256xf32>
    %446 = arith.maximumf %444, %445 : vector<46x256xf32>
    %447 = vector.extract_strided_slice %446 {offsets = [0, 0], sizes = [2, 256], strides = [1, 1]} : vector<46x256xf32> to vector<2x256xf32>
    %448 = arith.truncf %447 : vector<2x256xf32> to vector<2x256xbf16>
    %c9_277 = arith.constant 9 : index
    %c0_278 = arith.constant 0 : index
    %449 = vector.load %arg18[%c9_277, %c0_278] : memref<64x256xbf16, #tpu.memory_space<vmem>>, vector<2x256xbf16>
    tpu.vector_store %arg18[%c9_277, %c0_278], %448 {strides = array<i32>} : memref<64x256xbf16, #tpu.memory_space<vmem>>, vector<2x256xbf16>,
    %450 = vector.extract_strided_slice %446 {offsets = [8, 0], sizes = [2, 256], strides = [1, 1]} : vector<46x256xf32> to vector<2x256xf32>
    %451 = arith.truncf %450 : vector<2x256xf32> to vector<2x256xbf16>
    %c17_279 = arith.constant 17 : index
    %c0_280 = arith.constant 0 : index
    %452 = vector.load %arg18[%c17_279, %c0_280] : memref<64x256xbf16, #tpu.memory_space<vmem>>, vector<2x256xbf16>
    tpu.vector_store %arg18[%c17_279, %c0_280], %451 {strides = array<i32>} : memref<64x256xbf16, #tpu.memory_space<vmem>>, vector<2x256xbf16>,
    %453 = vector.extract_strided_slice %446 {offsets = [32, 0], sizes = [2, 256], strides = [1, 1]} : vector<46x256xf32> to vector<2x256xf32>
    %454 = arith.truncf %453 : vector<2x256xf32> to vector<2x256xbf16>
    %c41_281 = arith.constant 41 : index
    %c0_282 = arith.constant 0 : index
    %455 = vector.load %arg18[%c41_281, %c0_282] : memref<64x256xbf16, #tpu.memory_space<vmem>>, vector<2x256xbf16>
    tpu.vector_store %arg18[%c41_281, %c0_282], %454 {strides = array<i32>} : memref<64x256xbf16, #tpu.memory_space<vmem>>, vector<2x256xbf16>,
    %456 = vector.extract_strided_slice %446 {offsets = [40, 0], sizes = [2, 256], strides = [1, 1]} : vector<46x256xf32> to vector<2x256xf32>
    %457 = arith.truncf %456 : vector<2x256xf32> to vector<2x256xbf16>
    %c49_283 = arith.constant 49 : index
    %c0_284 = arith.constant 0 : index
    %458 = vector.load %arg18[%c49_283, %c0_284] : memref<64x256xbf16, #tpu.memory_space<vmem>>, vector<2x256xbf16>
    tpu.vector_store %arg18[%c49_283, %c0_284], %457 {strides = array<i32>} : memref<64x256xbf16, #tpu.memory_space<vmem>>, vector<2x256xbf16>,
    %c0_285 = arith.constant 0 : index
    %c0_286 = arith.constant 0 : index
    %459 = vector.load %arg18[%c0_285, %c0_286] : memref<64x256xbf16, #tpu.memory_space<vmem>>, vector<46x256xbf16>
    %c0_287 = arith.constant 0 : index
    %c0_288 = arith.constant 0 : index
    %c0_289 = arith.constant 0 : index
    %460 = vector.load %arg10[%c0_287, %c0_288, %c0_289] : memref<9x256x256xbf16, #tpu.memory_space<vmem>>, vector<1x256x256xbf16>
    %461 = vector.shape_cast %460 : vector<1x256x256xbf16> to vector<256x256xbf16>
    %cst_290 = arith.constant dense<0.000000e+00> : vector<46x256xf32>
    %462 = tpu.matmul %459, %461, %cst_290 {dimension_numbers = #tpu.dot_dimension_numbers<[1], [0], [0], [1], [0, 0, 1, 1], [], []>} : vector<46x256xbf16>, vector<256x256xbf16>, vector<46x256xf32> -> vector<46x256xf32>
    %c1_291 = arith.constant 1 : index
    %c0_292 = arith.constant 0 : index
    %463 = vector.load %arg18[%c1_291, %c0_292] : memref<64x256xbf16, #tpu.memory_space<vmem>>, vector<46x256xbf16>
    %c1_293 = arith.constant 1 : index
    %c0_294 = arith.constant 0 : index
    %c0_295 = arith.constant 0 : index
    %464 = vector.load %arg10[%c1_293, %c0_294, %c0_295] : memref<9x256x256xbf16, #tpu.memory_space<vmem>>, vector<1x256x256xbf16>
    %465 = vector.shape_cast %464 : vector<1x256x256xbf16> to vector<256x256xbf16>
    %cst_296 = arith.constant dense<0.000000e+00> : vector<46x256xf32>
    %466 = tpu.matmul %463, %465, %cst_296 {dimension_numbers = #tpu.dot_dimension_numbers<[1], [0], [0], [1], [0, 0, 1, 1], [], []>} : vector<46x256xbf16>, vector<256x256xbf16>, vector<46x256xf32> -> vector<46x256xf32>
    %c2_297 = arith.constant 2 : index
    %c0_298 = arith.constant 0 : index
    %467 = vector.load %arg18[%c2_297, %c0_298] : memref<64x256xbf16, #tpu.memory_space<vmem>>, vector<46x256xbf16>
    %c2_299 = arith.constant 2 : index
    %c0_300 = arith.constant 0 : index
    %c0_301 = arith.constant 0 : index
    %468 = vector.load %arg10[%c2_299, %c0_300, %c0_301] : memref<9x256x256xbf16, #tpu.memory_space<vmem>>, vector<1x256x256xbf16>
    %469 = vector.shape_cast %468 : vector<1x256x256xbf16> to vector<256x256xbf16>
    %cst_302 = arith.constant dense<0.000000e+00> : vector<46x256xf32>
    %470 = tpu.matmul %467, %469, %cst_302 {dimension_numbers = #tpu.dot_dimension_numbers<[1], [0], [0], [1], [0, 0, 1, 1], [], []>} : vector<46x256xbf16>, vector<256x256xbf16>, vector<46x256xf32> -> vector<46x256xf32>
    %c8_303 = arith.constant 8 : index
    %c0_304 = arith.constant 0 : index
    %471 = vector.load %arg18[%c8_303, %c0_304] : memref<64x256xbf16, #tpu.memory_space<vmem>>, vector<46x256xbf16>
    %c3_305 = arith.constant 3 : index
    %c0_306 = arith.constant 0 : index
    %c0_307 = arith.constant 0 : index
    %472 = vector.load %arg10[%c3_305, %c0_306, %c0_307] : memref<9x256x256xbf16, #tpu.memory_space<vmem>>, vector<1x256x256xbf16>
    %473 = vector.shape_cast %472 : vector<1x256x256xbf16> to vector<256x256xbf16>
    %cst_308 = arith.constant dense<0.000000e+00> : vector<46x256xf32>
    %474 = tpu.matmul %471, %473, %cst_308 {dimension_numbers = #tpu.dot_dimension_numbers<[1], [0], [0], [1], [0, 0, 1, 1], [], []>} : vector<46x256xbf16>, vector<256x256xbf16>, vector<46x256xf32> -> vector<46x256xf32>
    %c9_309 = arith.constant 9 : index
    %c0_310 = arith.constant 0 : index
    %475 = vector.load %arg18[%c9_309, %c0_310] : memref<64x256xbf16, #tpu.memory_space<vmem>>, vector<46x256xbf16>
    %c4_311 = arith.constant 4 : index
    %c0_312 = arith.constant 0 : index
    %c0_313 = arith.constant 0 : index
    %476 = vector.load %arg10[%c4_311, %c0_312, %c0_313] : memref<9x256x256xbf16, #tpu.memory_space<vmem>>, vector<1x256x256xbf16>
    %477 = vector.shape_cast %476 : vector<1x256x256xbf16> to vector<256x256xbf16>
    %cst_314 = arith.constant dense<0.000000e+00> : vector<46x256xf32>
    %478 = tpu.matmul %475, %477, %cst_314 {dimension_numbers = #tpu.dot_dimension_numbers<[1], [0], [0], [1], [0, 0, 1, 1], [], []>} : vector<46x256xbf16>, vector<256x256xbf16>, vector<46x256xf32> -> vector<46x256xf32>
    %c10_315 = arith.constant 10 : index
    %c0_316 = arith.constant 0 : index
    %479 = vector.load %arg18[%c10_315, %c0_316] : memref<64x256xbf16, #tpu.memory_space<vmem>>, vector<46x256xbf16>
    %c5_317 = arith.constant 5 : index
    %c0_318 = arith.constant 0 : index
    %c0_319 = arith.constant 0 : index
    %480 = vector.load %arg10[%c5_317, %c0_318, %c0_319] : memref<9x256x256xbf16, #tpu.memory_space<vmem>>, vector<1x256x256xbf16>
    %481 = vector.shape_cast %480 : vector<1x256x256xbf16> to vector<256x256xbf16>
    %cst_320 = arith.constant dense<0.000000e+00> : vector<46x256xf32>
    %482 = tpu.matmul %479, %481, %cst_320 {dimension_numbers = #tpu.dot_dimension_numbers<[1], [0], [0], [1], [0, 0, 1, 1], [], []>} : vector<46x256xbf16>, vector<256x256xbf16>, vector<46x256xf32> -> vector<46x256xf32>
    %c16_321 = arith.constant 16 : index
    %c0_322 = arith.constant 0 : index
    %483 = vector.load %arg18[%c16_321, %c0_322] : memref<64x256xbf16, #tpu.memory_space<vmem>>, vector<46x256xbf16>
    %c6_323 = arith.constant 6 : index
    %c0_324 = arith.constant 0 : index
    %c0_325 = arith.constant 0 : index
    %484 = vector.load %arg10[%c6_323, %c0_324, %c0_325] : memref<9x256x256xbf16, #tpu.memory_space<vmem>>, vector<1x256x256xbf16>
    %485 = vector.shape_cast %484 : vector<1x256x256xbf16> to vector<256x256xbf16>
    %cst_326 = arith.constant dense<0.000000e+00> : vector<46x256xf32>
    %486 = tpu.matmul %483, %485, %cst_326 {dimension_numbers = #tpu.dot_dimension_numbers<[1], [0], [0], [1], [0, 0, 1, 1], [], []>} : vector<46x256xbf16>, vector<256x256xbf16>, vector<46x256xf32> -> vector<46x256xf32>
    %c17_327 = arith.constant 17 : index
    %c0_328 = arith.constant 0 : index
    %487 = vector.load %arg18[%c17_327, %c0_328] : memref<64x256xbf16, #tpu.memory_space<vmem>>, vector<46x256xbf16>
    %c7_329 = arith.constant 7 : index
    %c0_330 = arith.constant 0 : index
    %c0_331 = arith.constant 0 : index
    %488 = vector.load %arg10[%c7_329, %c0_330, %c0_331] : memref<9x256x256xbf16, #tpu.memory_space<vmem>>, vector<1x256x256xbf16>
    %489 = vector.shape_cast %488 : vector<1x256x256xbf16> to vector<256x256xbf16>
    %cst_332 = arith.constant dense<0.000000e+00> : vector<46x256xf32>
    %490 = tpu.matmul %487, %489, %cst_332 {dimension_numbers = #tpu.dot_dimension_numbers<[1], [0], [0], [1], [0, 0, 1, 1], [], []>} : vector<46x256xbf16>, vector<256x256xbf16>, vector<46x256xf32> -> vector<46x256xf32>
    %c18_333 = arith.constant 18 : index
    %c0_334 = arith.constant 0 : index
    %491 = vector.load %arg18[%c18_333, %c0_334] : memref<64x256xbf16, #tpu.memory_space<vmem>>, vector<46x256xbf16>
    %c8_335 = arith.constant 8 : index
    %c0_336 = arith.constant 0 : index
    %c0_337 = arith.constant 0 : index
    %492 = vector.load %arg10[%c8_335, %c0_336, %c0_337] : memref<9x256x256xbf16, #tpu.memory_space<vmem>>, vector<1x256x256xbf16>
    %493 = vector.shape_cast %492 : vector<1x256x256xbf16> to vector<256x256xbf16>
    %cst_338 = arith.constant dense<0.000000e+00> : vector<46x256xf32>
    %494 = tpu.matmul %491, %493, %cst_338 {dimension_numbers = #tpu.dot_dimension_numbers<[1], [0], [0], [1], [0, 0, 1, 1], [], []>} : vector<46x256xbf16>, vector<256x256xbf16>, vector<46x256xf32> -> vector<46x256xf32>
    %495 = arith.addf %462, %466 : vector<46x256xf32>
    %496 = arith.addf %470, %474 : vector<46x256xf32>
    %497 = arith.addf %478, %482 : vector<46x256xf32>
    %498 = arith.addf %486, %490 : vector<46x256xf32>
    %499 = arith.addf %495, %496 : vector<46x256xf32>
    %500 = arith.addf %497, %498 : vector<46x256xf32>
    %501 = arith.addf %499, %500 : vector<46x256xf32>
    %502 = arith.addf %501, %494 : vector<46x256xf32>
    %c0_339 = arith.constant 0 : index
    %c0_340 = arith.constant 0 : index
    %503 = vector.load %arg11[%c0_339, %c0_340] : memref<1x256xf32, #tpu.memory_space<vmem>>, vector<1x256xf32>
    %504 = vector.broadcast %503 : vector<1x256xf32> to vector<46x256xf32>
    %505 = arith.addf %502, %504 : vector<46x256xf32>
    %cst_341 = arith.constant 0.000000e+00 : f32
    %506 = vector.broadcast %cst_341 : f32 to vector<46x256xf32>
    %507 = arith.maximumf %505, %506 : vector<46x256xf32>
    %508 = vector.extract_strided_slice %507 {offsets = [0, 0], sizes = [2, 256], strides = [1, 1]} : vector<46x256xf32> to vector<2x256xf32>
    %509 = vector.extract_strided_slice %507 {offsets = [8, 0], sizes = [2, 256], strides = [1, 1]} : vector<46x256xf32> to vector<2x256xf32>
    %510 = arith.maximumf %508, %509 : vector<2x256xf32>
    %511 = vector.extract_strided_slice %510 {offsets = [0, 0], sizes = [1, 256], strides = [1, 1]} : vector<2x256xf32> to vector<1x256xf32>
    %512 = vector.extract_strided_slice %510 {offsets = [1, 0], sizes = [1, 256], strides = [1, 1]} : vector<2x256xf32> to vector<1x256xf32>
    %513 = arith.maximumf %511, %512 : vector<1x256xf32>
    %514 = vector.extract_strided_slice %507 {offsets = [32, 0], sizes = [2, 256], strides = [1, 1]} : vector<46x256xf32> to vector<2x256xf32>
    %515 = vector.extract_strided_slice %507 {offsets = [40, 0], sizes = [2, 256], strides = [1, 1]} : vector<46x256xf32> to vector<2x256xf32>
    %516 = arith.maximumf %514, %515 : vector<2x256xf32>
    %517 = vector.extract_strided_slice %516 {offsets = [0, 0], sizes = [1, 256], strides = [1, 1]} : vector<2x256xf32> to vector<1x256xf32>
    %518 = vector.extract_strided_slice %516 {offsets = [1, 0], sizes = [1, 256], strides = [1, 1]} : vector<2x256xf32> to vector<1x256xf32>
    %519 = arith.maximumf %517, %518 : vector<1x256xf32>
    %520 = tpu.concatenate %513, %519 in 0 : vector<1x256xf32>, vector<1x256xf32> -> vector<2x256xf32>
    %c0_342 = arith.constant 0 : index
    %c0_343 = arith.constant 0 : index
    %521 = vector.load %arg12[%c0_342, %c0_343] : memref<256x128xf32, #tpu.memory_space<vmem>>, vector<256x128xf32>
    %cst_344 = arith.constant dense<0.000000e+00> : vector<2x128xf32>
    %522 = tpu.matmul %520, %521, %cst_344 {dimension_numbers = #tpu.dot_dimension_numbers<[1], [0], [0], [1], [0, 0, 1, 1], [], []>} : vector<2x256xf32>, vector<256x128xf32>, vector<2x128xf32> -> vector<2x128xf32>
    %c0_345 = arith.constant 0 : index
    %c0_346 = arith.constant 0 : index
    %523 = vector.load %arg13[%c0_345, %c0_346] : memref<1x128xf32, #tpu.memory_space<vmem>>, vector<1x128xf32>
    %524 = vector.broadcast %523 : vector<1x128xf32> to vector<2x128xf32>
    %525 = arith.addf %522, %524 : vector<2x128xf32>
    %c0_347 = arith.constant 0 : index
    %c0_348 = arith.constant 0 : index
    %526 = vector.load %arg14[%c0_347, %c0_348] : memref<2x128xf32, #tpu.memory_space<vmem>>, vector<2x128xf32>
    tpu.vector_store %arg14[%c0_347, %c0_348], %525 {strides = array<i32>} : memref<2x128xf32, #tpu.memory_space<vmem>>, vector<2x128xf32>,
    return
  }
  func.func @transform_0(%arg0: i32) -> (i32, i32) {
    %c0_i32 = arith.constant 0 : i32
    %c0_i32_0 = arith.constant 0 : i32
    return %arg0, %c0_i32 : i32, i32
  }
  func.func @transform_1(%arg0: i32) -> (i32, i32) {
    %c0_i32 = arith.constant 0 : i32
    %c0_i32_0 = arith.constant 0 : i32
    %c0_i32_1 = arith.constant 0 : i32
    return %c0_i32, %c0_i32_0 : i32, i32
  }
  func.func @transform_2(%arg0: i32) -> (i32, i32) {
    %c0_i32 = arith.constant 0 : i32
    %c0_i32_0 = arith.constant 0 : i32
    %c0_i32_1 = arith.constant 0 : i32
    return %c0_i32, %c0_i32_0 : i32, i32
  }
  func.func @transform_3(%arg0: i32) -> (i32, i32, i32) {
    %c0_i32 = arith.constant 0 : i32
    %c0_i32_0 = arith.constant 0 : i32
    %c0_i32_1 = arith.constant 0 : i32
    %c0_i32_2 = arith.constant 0 : i32
    return %c0_i32, %c0_i32_0, %c0_i32_1 : i32, i32, i32
  }
  func.func @transform_4(%arg0: i32) -> (i32, i32) {
    %c0_i32 = arith.constant 0 : i32
    %c0_i32_0 = arith.constant 0 : i32
    %c0_i32_1 = arith.constant 0 : i32
    return %c0_i32, %c0_i32_0 : i32, i32
  }
  func.func @transform_5(%arg0: i32) -> (i32, i32, i32) {
    %c0_i32 = arith.constant 0 : i32
    %c0_i32_0 = arith.constant 0 : i32
    %c0_i32_1 = arith.constant 0 : i32
    %c0_i32_2 = arith.constant 0 : i32
    return %c0_i32, %c0_i32_0, %c0_i32_1 : i32, i32, i32
  }
  func.func @transform_6(%arg0: i32) -> (i32, i32) {
    %c0_i32 = arith.constant 0 : i32
    %c0_i32_0 = arith.constant 0 : i32
    %c0_i32_1 = arith.constant 0 : i32
    return %c0_i32, %c0_i32_0 : i32, i32
  }
  func.func @transform_7(%arg0: i32) -> (i32, i32, i32) {
    %c0_i32 = arith.constant 0 : i32
    %c0_i32_0 = arith.constant 0 : i32
    %c0_i32_1 = arith.constant 0 : i32
    %c0_i32_2 = arith.constant 0 : i32
    return %c0_i32, %c0_i32_0, %c0_i32_1 : i32, i32, i32
  }
  func.func @transform_8(%arg0: i32) -> (i32, i32) {
    %c0_i32 = arith.constant 0 : i32
    %c0_i32_0 = arith.constant 0 : i32
    %c0_i32_1 = arith.constant 0 : i32
    return %c0_i32, %c0_i32_0 : i32, i32
  }
  func.func @transform_9(%arg0: i32) -> (i32, i32, i32) {
    %c0_i32 = arith.constant 0 : i32
    %c0_i32_0 = arith.constant 0 : i32
    %c0_i32_1 = arith.constant 0 : i32
    %c0_i32_2 = arith.constant 0 : i32
    return %c0_i32, %c0_i32_0, %c0_i32_1 : i32, i32, i32
  }
  func.func @transform_10(%arg0: i32) -> (i32, i32) {
    %c0_i32 = arith.constant 0 : i32
    %c0_i32_0 = arith.constant 0 : i32
    %c0_i32_1 = arith.constant 0 : i32
    return %c0_i32, %c0_i32_0 : i32, i32
  }
  func.func @transform_11(%arg0: i32) -> (i32, i32) {
    %c0_i32 = arith.constant 0 : i32
    %c0_i32_0 = arith.constant 0 : i32
    %c0_i32_1 = arith.constant 0 : i32
    return %c0_i32, %c0_i32_0 : i32, i32
  }
  func.func @transform_12(%arg0: i32) -> (i32, i32) {
    %c0_i32 = arith.constant 0 : i32
    %c0_i32_0 = arith.constant 0 : i32
    %c0_i32_1 = arith.constant 0 : i32
    return %c0_i32, %c0_i32_0 : i32, i32
  }
  func.func @transform_13(%arg0: i32) -> (i32, i32) {
    %c0_i32 = arith.constant 0 : i32
    %c0_i32_0 = arith.constant 0 : i32
    return %arg0, %c0_i32 : i32, i32
  }
}

</mosaic_0001>

<bundles_post_ra>
// kernel: alexnet_forward.1
= control target key start
LH: loop header
LB: loop body
LE: loop exit
PB: predicated region body
PF: predicated region fallthrough
CT: control target
= control target key end

     0   :  { %vm46_vm0 = vcmask 523264   ;;  %v23199_v48 = vmov 0   ;;  %vm664_vm1 = vcmask 1040384   ;;  %vm666_vm2 = vcmask 1041408   ;;  %s29484_s0 = inlined_call_operand.vmem [shape: bf16[128,384], index: 0, kind: input, shape index: {}]   ;;  %s29485_s1 = inlined_call_operand.vmem [shape: bf16[384,64], index: 1, kind: input, shape index: {}]   ;;  %s29486_s2 = inlined_call_operand.vmem [shape: f32[1,64], index: 2, kind: input, shape index: {}]   ;;  %s29487_s3 = inlined_call_operand.vmem [shape: bf16[25,64,256], index: 3, kind: input, shape index: {}]   ;;  %s29488_s4 = inlined_call_operand.vmem [shape: f32[1,256], index: 4, kind: input, shape index: {}]   ;;  %s29489_s5 = inlined_call_operand.vmem [shape: bf16[9,256,384], index: 5, kind: input, shape index: {}]   ;;  %s29490_s6 = inlined_call_operand.vmem [shape: f32[1,384], index: 6, kind: input, shape index: {}]   ;;  %s29491_s7 = inlined_call_operand.vmem [shape: bf16[9,384,256], index: 7, kind: input, shape index: {}]   ;;  %s29492_s8 = inlined_call_operand.vmem [shape: f32[1,256], index: 8, kind: input, shape index: {}]   ;;  %s29493_s9 = inlined_call_operand.vmem [shape: bf16[9,256,256], index: 9, kind: input, shape index: {}]   ;;  %s29494_s10 = inlined_call_operand.vmem [shape: f32[1,256], index: 10, kind: input, shape index: {}]   ;;  %s29495_s11 = inlined_call_operand.vmem [shape: f32[256,128], index: 11, kind: input, shape index: {}]   ;;  %s29496_s12 = inlined_call_operand.vmem [shape: f32[1,128], index: 12, kind: input, shape index: {}]   ;;  %s29497_s13 = inlined_call_operand.hbm [shape: f32[2,128], index: 13, kind: output, shape index: {}]  }
   0x1   :  { %v21107_v0 = vld [vmem:[%s29485_s1 + $0x40] sm:$0xff]   ;;  %v21109_v2 = vld [vmem:[%s29485_s1 + $0x48] sm:$0xff]   ;;  %v21112_v5 = vld [vmem:[%s29485_s1 + $0x50] sm:$0xff]   ;;  %48 = vst.msk [vmem:[#allocation2 + $0x8] sm:$0xff] %vm46_vm0, %v23199_v48  ;;  %vm668_vm3 = vcmask 1042432   ;;  %vm674_vm4 = vcmask 518145  }
   0x2   :  { %v21108_v1 = vld [vmem:[%s29485_s1] sm:$0xff]   ;;  %19972 = vmatprep.subr.bf16.mxu0 %v21107_v0  ;;  %v21111_v4 = vld [vmem:[%s29485_s1 + $0x8] sm:$0xff]   ;;  %v21114_v7 = vld [vmem:[%s29485_s1 + $0x10] sm:$0xff]   ;;  %47 = vst.msk [vmem:[#allocation2] sm:$0xff] %vm46_vm0, %v23199_v48  ;;  %vm695_vm5 = vcmask 522245   ;;  %vm3445_vm10 = vcmask 1046528  }
   0x3   :  { %19973 = vmatpush3.bf16.msra.mxu0 %v21108_v1  ;;  %v21110_v3 = vld [vmem:[%s29485_s1 + $0x80] sm:$0xff]   ;;  %v21113_v6 = vld [vmem:[%s29485_s1 + $0x88] sm:$0xff]   ;;  %v21115_v8 = vld [vmem:[%s29485_s1 + $0x58] sm:$0xff]   ;;  %49 = vst.msk [vmem:[#allocation2 + $0x10] sm:$0xff] %vm46_vm0, %v23199_v48  ;;  %vm841_vm6 = vsmask.f32 7424 }
   0x4   :  { %19974 = vmatprep.subr.bf16.mxu0 %v21109_v2  ;;  %20393 = vmatprep.subr.bf16.mxu1 %v21110_v3  ;;  %v21116_v9 = vld [vmem:[%s29485_s1 + $0x90] sm:$0xff]   ;;  %v21117_v10 = vld [vmem:[%s29485_s1 + $0x18] sm:$0xff]   ;;  %v21118_v11 = vld [vmem:[%s29485_s1 + $0x60] sm:$0xff]   ;;  %50 = vst.msk [vmem:[#allocation2 + $0x18] sm:$0xff] %vm46_vm0, %v23199_v48  ;;  %vm1052_vm7 = vsmask.f32 6400 }
   0x5   :  { %20394 = vmatpush3.bf16.msra.mxu1 %v21110_v3  ;;  %v21119_v12 = vld [vmem:[%s29485_s1 + $0x98] sm:$0xff]   ;;  %v21120_v13 = vld [vmem:[%s29485_s1 + $0x20] sm:$0xff]   ;;  %v21121_v15 = vld [vmem:[%s29485_s1 + $0x68] sm:$0xff]   ;;  %51 = vst.msk [vmem:[#allocation2 + $0x20] sm:$0xff] %vm46_vm0, %v23199_v48  ;;  %vm3756_vm8 = vsmask.f32 3328 }
   0x6   :  { %20395 = vmatprep.subr.bf16.mxu1 %v21113_v6  ;;  %v21122_v14 = vld [vmem:[%s29485_s1 + $0xa0] sm:$0xff]   ;;  %v21123_v16 = vld [vmem:[%s29485_s1 + $0x28] sm:$0xff]   ;;  %v21124_v18 = vld [vmem:[%s29485_s1 + $0x70] sm:$0xff]   ;;  %52 = vst.msk [vmem:[#allocation2 + $0x28] sm:$0xff] %vm46_vm0, %v23199_v48  ;;  %vm3937_vm9 = vsmask.f32 2304 }
   0x7   :  { %19975 = vmatpush3.bf16.msra.mxu0 %v21111_v4  ;;  %v21125_v17 = vld [vmem:[%s29485_s1 + $0xa8] sm:$0xff]   ;;  %v21126_v19 = vld [vmem:[%s29485_s1 + $0x30] sm:$0xff]   ;;  %v21127_v20 = vld [vmem:[%s29485_s1 + $0x78] sm:$0xff]   ;;  %53 = vst.msk [vmem:[#allocation2 + $0x30] sm:$0xff] %vm46_vm0, %v23199_v48  ;;  %vm1262_vm11 = vcmask 1043456  }
   0x8   :  { %19976 = vmatprep.subr.bf16.mxu0 %v21112_v5  ;;  %v21128_v21 = vld [vmem:[%s29485_s1 + $0xb0] sm:$0xff]   ;;  %v21129_v23 = vld [vmem:[%s29485_s1 + $0x38] sm:$0xff]   ;;  %v21130_v26 = vld [vmem:[%s29484_s0] ss:$12 sps:$4 sm:$0xff]   ;;  %54 = vst.msk [vmem:[#allocation2 + $0x38] sm:$0xff] %vm46_vm0, %v23199_v48 }
   0x9   :  { %20396 = vmatpush3.bf16.msra.mxu1 %v21113_v6  ;;  %v21132_v22 = vld [vmem:[%s29484_s0 + $0x4] ss:$12 sps:$4 sm:$0xff]   ;;  %v21134_v24 = vld [vmem:[%s29484_s0 + $0x8] ss:$12 sps:$4 sm:$0xff]   ;;  %v21133_v25 = vld [vmem:[%s29485_s1 + $0xb8] sm:$0xff]   ;;  %55 = vst [vmem:[#allocation3] sm:$0xff] %v23199_v48 }
   0xa   :  { %20397 = vmatprep.subr.bf16.mxu1 %v21116_v9  ;;  %474 = vmatprep.mubr.bf16.mxu0 %v21132_v22  ;;  %v21136_v27 = vld [vmem:[%s29484_s0 + $0x1c] ss:$12 sps:$4 sm:$0xff]   ;;  %v21135_v28 = vld [vmem:[%s29484_s0 + $0x20] ss:$12 sps:$4 sm:$0xff]   ;;  %v21142_v29 = vld [vmem:[%s29484_s0 + $0x38] ss:$12 sps:$4 sm:$0xff]  }
   0xb   :  { %19977 = vmatpush3.bf16.msra.mxu0 %v21114_v7  ;;  %20409 = vmatprep.mubr.bf16.mxu1 %v21134_v24  ;;  %v21138_v30 = vld [vmem:[%s29484_s0 + $0x18] ss:$12 sps:$4 sm:$0xff]   ;;  %v21139_v31 = vld [vmem:[%s29484_s0 + $0x34] ss:$12 sps:$4 sm:$0xff]   ;;  %v21143_v32 = vld [vmem:[%s29484_s0 + $0x50] ss:$12 sps:$4 sm:$0xff]  }
   0xc   :  { %19978 = vmatprep.subr.bf16.mxu0 %v21115_v8  ;;  %v21150_v33 = vld [vmem:[%s29484_s0 + $0x68] ss:$12 sps:$4 sm:$0xff]   ;;  %v21141_v34 = vld [vmem:[%s29484_s0 + $0x30] ss:$12 sps:$4 sm:$0xff]   ;;  %v21144_v35 = vld [vmem:[%s29484_s0 + $0x4c] ss:$12 sps:$4 sm:$0xff]  }
   0xd   :  { %20398 = vmatpush3.bf16.msra.mxu1 %v21116_v9  ;;  %v21151_v36 = vld [vmem:[%s29484_s0 + $0x80] ss:$12 sps:$4 sm:$0xff]   ;;  %v21158_v37 = vld [vmem:[%s29484_s0 + $0x98] ss:$12 sps:$4 sm:$0xff]   ;;  %v21146_v38 = vld [vmem:[%s29484_s0 + $0x48] ss:$12 sps:$4 sm:$0xff]  }
   0xe   :  { %20399 = vmatprep.subr.bf16.mxu1 %v21119_v12  ;;  %v21147_v39 = vld [vmem:[%s29484_s0 + $0x64] ss:$12 sps:$4 sm:$0xff]   ;;  %v21149_v41 = vld [vmem:[%s29484_s0 + $0x60] ss:$12 sps:$4 sm:$0xff]   ;;  %v21152_v42 = vld [vmem:[%s29484_s0 + $0x7c] ss:$12 sps:$4 sm:$0xff]  }
   0xf   :  { %19979 = vmatpush3.bf16.msra.mxu0 %v21117_v10  ;;  %v21159_v40 = vld [vmem:[%s29484_s0 + $0xb0] ss:$12 sps:$4 sm:$0xff]   ;;  %v21154_v43 = vld [vmem:[%s29484_s0 + $0x78] ss:$12 sps:$4 sm:$0xff]   ;;  %v21155_v44 = vld [vmem:[%s29484_s0 + $0x94] ss:$12 sps:$4 sm:$0xff]  }
  0x10   :  { %19980 = vmatprep.subr.bf16.mxu0 %v21118_v11  ;;  %v21157_v45 = vld [vmem:[%s29484_s0 + $0x90] ss:$12 sps:$4 sm:$0xff]   ;;  %v21160_v46 = vld [vmem:[%s29484_s0 + $0xac] ss:$12 sps:$4 sm:$0xff]   ;;  %v21162_v47 = vld [vmem:[%s29484_s0 + $0xa8] ss:$12 sps:$4 sm:$0xff]  }
  0x11   :  { %20400 = vmatpush3.bf16.msra.mxu1 %v21119_v12  ;;  %56 = vst [vmem:[#allocation3 + $0x8] sm:$0xff] %v23199_v48  ;;  %57 = vst [vmem:[#allocation3 + $0x10] sm:$0xff] %v23199_v48  ;;  %v21165_v49 = vld [vmem:[%s29487_s3 + $0x44] ss:$8 sps:$4 sm:$0xff]   ;;  %v21163_v50 = vld [vmem:[%s29487_s3 + $0x40] ss:$8 sps:$4 sm:$0xff]  }
  0x12   :  { %20401 = vmatprep.subr.bf16.mxu1 %v21122_v14  ;;  %58 = vst [vmem:[#allocation3 + $0x18] sm:$0xff] %v23199_v48  ;;  %59 = vst [vmem:[#allocation3 + $0x20] sm:$0xff] %v23199_v48  ;;  %v21168_v51 = vld [vmem:[%s29487_s3 + $0x54] ss:$8 sps:$4 sm:$0xff]   ;;  %v21166_v52 = vld [vmem:[%s29487_s3 + $0x50] ss:$8 sps:$4 sm:$0xff]  }
  0x13   :  { %19981 = vmatpush3.bf16.msra.mxu0 %v21120_v13  ;;  %60 = vst [vmem:[#allocation3 + $0x28] sm:$0xff] %v23199_v48  ;;  %61 = vst [vmem:[#allocation3 + $0x30] sm:$0xff] %v23199_v48  ;;  %v21171_v53 = vld [vmem:[%s29487_s3 + $0x64] ss:$8 sps:$4 sm:$0xff]   ;;  %v21169_v54 = vld [vmem:[%s29487_s3 + $0x60] ss:$8 sps:$4 sm:$0xff]  }
  0x14   :  { %19982 = vmatprep.subr.bf16.mxu0 %v21121_v15  ;;  %62 = vst [vmem:[#allocation3 + $0x38] sm:$0xff] %v23199_v48  ;;  %63 = vst [vmem:[#allocation4] sm:$0xff] %v23199_v48  ;;  %v21174_v55 = vld [vmem:[%s29487_s3 + $0x74] ss:$8 sps:$4 sm:$0xff]   ;;  %v21172_v56 = vld [vmem:[%s29487_s3 + $0x70] ss:$8 sps:$4 sm:$0xff]  }
  0x15   :  { %20402 = vmatpush3.bf16.msra.mxu1 %v21122_v14  ;;  %64 = vst [vmem:[#allocation4 + $0x8] sm:$0xff] %v23199_v48  ;;  %65 = vst [vmem:[#allocation4 + $0x10] sm:$0xff] %v23199_v48  ;;  %v21177_v57 = vld [vmem:[%s29487_s3 + $0xc4] ss:$8 sps:$4 sm:$0xff]   ;;  %v820_v58 = vld [vmem:[#allocation2 + $0x18] sm:$0xff] }
  0x16   :  { %20403 = vmatprep.subr.bf16.mxu1 %v21125_v17  ;;  %66 = vst [vmem:[#allocation4 + $0x18] sm:$0xff] %v23199_v48  ;;  %67 = vst [vmem:[#allocation4 + $0x20] sm:$0xff] %v23199_v48  ;;  %v23450_v59 = vshll.u32 %v820_v58, 16  ;;  %v23452_v60 = vshrl.u32 %v820_v58, 16  ;;  %v821_v2 = vld [vmem:[#allocation2 + $0x20] sm:$0xff] }
  0x17   :  { %19983 = vmatpush3.bf16.msra.mxu0 %v21123_v16  ;;  %68 = vst [vmem:[#allocation4 + $0x28] sm:$0xff] %v23199_v48  ;;  %69 = vst [vmem:[#allocation4 + $0x30] sm:$0xff] %v23199_v48  ;;  %v23462_v4 = vshrl.u32 %v821_v2, 16  ;;  %v23467_v5 = vld [vmem:[%s29486_s2] ss:$0 sm:$0xff]  ;;  %v23469_v8 = vshll.u32 %v821_v2, 16 }
  0x18   :  { %19984 = vmatprep.subr.bf16.mxu0 %v21124_v18  ;;  %70 = vst [vmem:[#allocation4 + $0x38] sm:$0xff] %v23199_v48  ;;  %71 = vst [vmem:[#allocation4 + $0x40] sm:$0xff] %v23199_v48  ;;  %v3773_v61 = vrot.slane %v23452_v60, 4  ;;  %v3774_v62 = vrot.slane %v23450_v59, 5  ;;  %v3954_v0 = vrot.slane %v23452_v60, 5  ;;  %v3955_v1 = vrot.slane %v23450_v59, 6 }
  0x19   :  { %20404 = vmatpush3.bf16.msra.mxu1 %v21125_v17  ;;  %72 = vst [vmem:[#allocation4 + $0x48] sm:$0xff] %v23199_v48  ;;  %73 = vst [vmem:[#allocation4 + $0x50] sm:$0xff] %v23199_v48  ;;  %v3777_v16 = vrot.slane %v23462_v4, 4  ;;  %v3778_v17 = vrot.slane %v23469_v8, 5  ;;  %v3959_v24 = vrot.slane %v23469_v8, 6 }
  0x1a   :  { %20405 = vmatprep.subr.bf16.mxu1 %v21128_v21  ;;  %74 = vst [vmem:[#allocation4 + $0x58] sm:$0xff] %v23199_v48  ;;  %75 = vst [vmem:[#allocation5] sm:$0xff] %v23199_v48  ;;  %v23456_v63 = vor.u32 %v3774_v62, %v3773_v61  ;;  %v23460_v3 = vor.u32 %v3955_v1, %v3954_v0 }
  0x1b   :  { %19985 = vmatpush3.bf16.msra.mxu0 %v21126_v19  ;;  %76 = vst [vmem:[#allocation5 + $0x8] sm:$0xff] %v23199_v48  ;;  %77 = vst [vmem:[#allocation5 + $0x10] sm:$0xff] %v23199_v48  ;;  %v23475_v22 = vor.u32 %v3778_v17, %v3777_v16 }
  0x1c   :  { %19986 = vmatprep.subr.bf16.mxu0 %v21127_v20  ;;  %78 = vst [vmem:[#allocation5 + $0x18] sm:$0xff] %v23199_v48  ;;  %79 = vst [vmem:[#allocation5 + $0x20] sm:$0xff] %v23199_v48 }
  0x1d   :  { %20406 = vmatpush3.bf16.msra.mxu1 %v21128_v21  ;;  %80 = vst [vmem:[#allocation5 + $0x28] sm:$0xff] %v23199_v48  ;;  %81 = vst [vmem:[#allocation5 + $0x30] sm:$0xff] %v23199_v48 }
  0x1e   :  { %20407 = vmatprep.subr.bf16.mxu1 %v21133_v25  ;;  %82 = vst [vmem:[#allocation5 + $0x38] sm:$0xff] %v23199_v48 }
  0x1f   :  { %19987 = vmatpush3.bf16.msra.mxu0 %v21129_v23  ;;  %v3958_v23 = vrot.slane %v23462_v4, 5 }
  0x21   :  { %20408 = vmatpush3.bf16.msra.mxu1 %v21133_v25 }
  0x22   :  { %475 = vmatmul.mubr.bf16.vlgmr.msra.gmra.mrb[0].mxu0 %v21130_v26  ;;  %947 = vmatprep.subr.bf16.mxu1 %v21165_v49 }
  0x23   :  { %482 = vmatprep.mubr.bf16.mxu0 %v21136_v27 }
  0x24   :  { %20410 = vmatmul.mubr.bf16.vlgmr.msra.gmra.mrb[0].mxu1 %v21135_v28 }
  0x25   :  { %20413 = vmatprep.mubr.bf16.mxu1 %v21142_v29  ;;  %948 = vmatpush1.bf16.msra.mxu1 %v21163_v50  ;;  %v23479_v29 = vor.u32 %v3959_v24, %v3958_v23 }
  0x26   :  { %949 = vmatprep.subr.bf16.mxu1 %v21168_v51 }
  0x29   :  { %950 = vmatpush1.bf16.msra.mxu1 %v21166_v52 }
  0x2a   :  { %483 = vmatmul.mubr.bf16.gmra.mrb[4].mxu0 %v21138_v30  ;;  %951 = vmatprep.subr.bf16.mxu1 %v21171_v53 }
  0x2b   :  { %490 = vmatprep.mubr.bf16.mxu0 %v21139_v31 }
  0x2c   :  { %20414 = vmatmul.mubr.bf16.gmra.mrb[4].mxu1 %v21143_v32 }
  0x2d   :  { %20417 = vmatprep.mubr.bf16.mxu1 %v21150_v33  ;;  %952 = vmatpush1.bf16.msra.mxu1 %v21169_v54 }
  0x2e   :  { %953 = vmatprep.subr.bf16.mxu1 %v21174_v55 }
  0x31   :  { %954 = vmatpush1.bf16.msra.mxu1 %v21172_v56  ;;  %v23489_v56 = vld [vmem:[#allocation2] sm:$0xff] }
  0x32   :  { %491 = vmatmul.mubr.bf16.gmra.mrb[8].mxu0 %v21141_v34  ;;  %1144 = vmatprep.subr.bf16.mxu1 %v21177_v57 }
  0x33   :  { %498 = vmatprep.mubr.bf16.mxu0 %v21144_v35 }
  0x34   :  { %20418 = vmatmul.mubr.bf16.gmra.mrb[8].mxu1 %v21151_v36 }
  0x35   :  { %20421 = vmatprep.mubr.bf16.mxu1 %v21158_v37 }
  0x3a   :  { %499 = vmatmul.mubr.bf16.gmra.mrb[12].mxu0 %v21146_v38 }
  0x3b   :  { %506 = vmatprep.mubr.bf16.mxu0 %v21147_v39 }
  0x3c   :  { %20422 = vmatmul.mubr.bf16.gmra.mrb[12].mxu1 %v21159_v40 }
  0x3d   :  { %979 = vmatprep.mubr.bf16.mxu1 %v23199_v48 }
  0x42   :  { %507 = vmatmul.mubr.bf16.gmra.mrb[16].mxu0 %v21149_v41 }
  0x43   :  { %514 = vmatprep.mubr.bf16.mxu0 %v21152_v42 }
  0x4a   :  { %515 = vmatmul.mubr.bf16.gmra.mrb[20].mxu0 %v21154_v43 }
  0x4b   :  { %522 = vmatprep.mubr.bf16.mxu0 %v21155_v44 }
  0x52   :  { %523 = vmatmul.mubr.bf16.gmra.mrb[24].mxu0 %v21157_v45 }
  0x53   :  { %530 = vmatprep.mubr.bf16.mxu0 %v21160_v46 }
  0x5a   :  { %531 = vmatmul.mubr.bf16.gmra.mrb[28].mxu0 %v21162_v47 }
  0xf5   :  { %v19988_v6 = vpop.f32.mrb[0].mxu0 }
  0xf6   :  { %v19989_v7 = vpop.f32.mrb[1].mxu0 }
  0xf7   :  { %v19990_v9 = vadd.f32 %v19989_v7, %v19988_v6  ;;  %v19991_v10 = vpop.f32.mrb[2].mxu0  ;;  %v20411_v12 = vpop.f32.mrb[0].mxu1 }
  0xf8   :  { %v19992_v11 = vpop.f32.mrb[3].mxu0  ;;  %v573_v15 = vpop.f32.mrb[1].mxu1 }
  0xf9   :  { %v19993_v13 = vadd.f32 %v19992_v11, %v19991_v10  ;;  %v477_v14 = vadd.f32 %v19990_v9, %v23467_v5  ;;  %v20412_v18 = vpop.f32.mrb[2].mxu1 }
  0xfa   :  { %v576_v21 = vpop.f32.mrb[3].mxu1 }
  0xfb   :  { %v574_v19 = vadd.f32 %v573_v15, %v477_v14  ;;  %v480_v20 = vadd.f32 %v19993_v13, %v23467_v5  ;;  %v845_v14 = vshll.u32 %v23489_v56, 16 }
  0xfd   :  { %v636_v25 = vmax.f32 %v574_v19, 0.0  ;;  %v577_v26 = vadd.f32 %v576_v21, %v480_v20  ;;  %v19994_v27 = vpop.f32.mrb[4].mxu0 }
  0xfe   :  { %v19995_v28 = vpop.f32.mrb[5].mxu0 }
  0xff   :  { %v637_v30 = vmax.f32 %v577_v26, 0.0  ;;  %v19996_v31 = vadd.f32 %v19995_v28, %v19994_v27  ;;  %v19997_v32 = vpop.f32.mrb[6].mxu0  ;;  %v23481_v34 = vpop.f32.mrb[4].mxu1 }
 0x100   :  { %v19998_v33 = vpop.f32.mrb[7].mxu0  ;;  %v589_v38 = vpop.f32.mrb[5].mxu1 }
 0x101   :  { %v652_v35 = vmax.f32 %v636_v25, %v637_v30  ;;  %v485_v36 = vadd.f32 %v19996_v31, %v23467_v5  ;;  %v19999_v37 = vadd.f32 %v19998_v33, %v19997_v32  ;;  %v23484_v39 = vpop.f32.mrb[6].mxu1 }
 0x102   :  { %v592_v43 = vpop.f32.mrb[7].mxu1 }
 0x103   :  { %v654_v40 = vrot.slane %v652_v35, 1  ;;  %v582_v41 = vadd.f32 %v20411_v12, %v485_v36  ;;  %v488_v42 = vadd.f32 %v19999_v37, %v23467_v5 }
 0x105   :  { %v656_v44 = vmax.f32 %v652_v35, %v654_v40  ;;  %v585_v45 = vadd.f32 %v20412_v18, %v488_v42  ;;  %v20000_v46 = vpop.f32.mrb[8].mxu0  ;;  %v638_v50 = vmax.f32 %v582_v41, 0.0 }
 0x106   :  { %v20001_v47 = vpop.f32.mrb[9].mxu0 }
 0x107   :  { %v658_v48 = vrot.slane %v656_v44, 1  ;;  %v660_v49 = vrot.slane %v656_v44, 2  ;;  %v639_v51 = vmax.f32 %v585_v45, 0.0  ;;  %v20003_v52 = vpop.f32.mrb[10].mxu0  ;;  %v20002_v53 = vadd.f32 %v20001_v47, %v20000_v46  ;;  %v23487_v55 = vpop.f32.mrb[8].mxu1 }
 0x108   :  { %v20004_v54 = vpop.f32.mrb[11].mxu0  ;;  %v662_v57 = vrot.slane %v656_v44, 3  ;;  %v23492_v0 = vpop.f32.mrb[9].mxu1 }
 0x109   :  { %v665_v58 = vsel %vm664_vm1, %v656_v44, %v658_v48  ;;  %v676_v61 = vmax.f32 %v638_v50, %v639_v51  ;;  %v20005_v62 = vadd.f32 %v20004_v54, %v20003_v52  ;;  %v493_v2 = vadd.f32 %v20002_v53, %v23467_v5  ;;  %v23496_v6 = vpop.f32.mrb[10].mxu1 }
 0x10a   :  { %v667_v1 = vsel %vm666_vm2, %v665_v58, %v660_v49  ;;  %v608_v11 = vpop.f32.mrb[11].mxu1  ;;  %v843_v49 = vshrl.u32 %v23489_v56, 16  ;;  %v847_v50 = vrot.slane %v845_v14, 1 }
 0x10b   :  { %v669_v7 = vsel %vm668_vm3, %v667_v1, %v662_v57  ;;  %v678_v9 = vrot.slane %v676_v61, 1  ;;  %v496_v10 = vadd.f32 %v20005_v62, %v23467_v5  ;;  %v590_v13 = vadd.f32 %v589_v38, %v493_v2 }
 0x10c   :  { %v670_v12 = vpack.c.bf16 %v669_v7, %v669_v7 }
 0x10d   :  { %v680_v15 = vmax.f32 %v676_v61, %v678_v9  ;;  %v593_v16 = vadd.f32 %v592_v43, %v496_v10  ;;  %v20006_v17 = vpop.f32.mrb[12].mxu0  ;;  %v640_v19 = vmax.f32 %v590_v13, 0.0 }
 0x10e   :  { %v672_v18 = vrot.slane %v670_v12, 7  ;;  %v20007_v20 = vpop.f32.mrb[13].mxu0 }
 0x10f   :  { %v682_v21 = vrot.slane %v680_v15, 1  ;;  %v684_v23 = vrot.slane %v680_v15, 2  ;;  %v686_v24 = vrot.slane %v680_v15, 3  ;;  %v641_v25 = vmax.f32 %v593_v16, 0.0  ;;  %v20009_v26 = vpop.f32.mrb[14].mxu0  ;;  %v23502_v30 = vpop.f32.mrb[12].mxu1 }
 0x110   :  { %675 = vst.msk [vmem:[#allocation2 + $0x8] sm:$0x6] %vm674_vm4, %v672_v18  ;;  %v20008_v27 = vadd.f32 %v20007_v20, %v20006_v17  ;;  %v20010_v28 = vpop.f32.mrb[15].mxu0  ;;  %v23505_v35 = vpop.f32.mrb[13].mxu1 }
 0x111   :  { %v688_v31 = vsel %vm664_vm1, %v680_v15, %v682_v21  ;;  %v697_v32 = vmax.f32 %v640_v19, %v641_v25  ;;  %v20011_v33 = vadd.f32 %v20010_v28, %v20009_v26  ;;  %v23509_v38 = vpop.f32.mrb[14].mxu1 }
 0x112   :  { %v689_v36 = vsel %vm666_vm2, %v688_v31, %v684_v23  ;;  %v501_v37 = vadd.f32 %v20008_v27, %v23467_v5  ;;  %v23513_v43 = vpop.f32.mrb[15].mxu1 }
 0x113   :  { %v690_v40 = vsel %vm668_vm3, %v689_v36, %v686_v24  ;;  %v699_v41 = vrot.slane %v697_v32, 1  ;;  %v504_v42 = vadd.f32 %v20011_v33, %v23467_v5 }
 0x114   :  { %v691_v44 = vpack.c.bf16 %v690_v40, %v690_v40  ;;  %v598_v45 = vadd.f32 %v23481_v34, %v501_v37 }
 0x115   :  { %v701_v46 = vmax.f32 %v697_v32, %v699_v41  ;;  %v601_v47 = vadd.f32 %v23484_v39, %v504_v42  ;;  %v20012_v48 = vpop.f32.mrb[16].mxu0  ;;  %v848_v32 = vor.u32 %v847_v50, %v843_v49 }
 0x116   :  { %v693_v51 = vrot.slane %v691_v44, 3  ;;  %v642_v52 = vmax.f32 %v598_v45, 0.0  ;;  %v20013_v53 = vpop.f32.mrb[17].mxu0  ;;  %v21175_v44 = vld [vmem:[%s29487_s3 + $0xc0] ss:$8 sps:$4 sm:$0xff]  }
 0x117   :  { %v703_v54 = vrot.slane %v701_v46, 1  ;;  %v705_v57 = vrot.slane %v701_v46, 2  ;;  %v707_v58 = vrot.slane %v701_v46, 3  ;;  %v643_v61 = vmax.f32 %v601_v47, 0.0  ;;  %v20015_v62 = vpop.f32.mrb[18].mxu0 }
 0x118   :  { %696 = vst.msk [vmem:[#allocation2 + $0x8] sm:$0x60] %vm695_vm5, %v693_v51  ;;  %v20014_v1 = vadd.f32 %v20013_v53, %v20012_v48  ;;  %v20016_v2 = vpop.f32.mrb[19].mxu0  ;;  %v21180_v48 = vld [vmem:[%s29487_s3 + $0xd4] ss:$8 sps:$4 sm:$0xff]  }
 0x119   :  { %v709_v34 = vsel %vm664_vm1, %v701_v46, %v703_v54  ;;  %v717_v7 = vmax.f32 %v642_v52, %v643_v61  ;;  %v20017_v39 = vadd.f32 %v20016_v2, %v20015_v62  ;;  %v21178_v52 = vld [vmem:[%s29487_s3 + $0xd0] ss:$8 sps:$4 sm:$0xff]  }
 0x11a   :  { %v710_v9 = vsel %vm666_vm2, %v709_v34, %v705_v57  ;;  %v509_v56 = vadd.f32 %v20014_v1, %v23467_v5 }
 0x11b   :  { %v711_v10 = vsel %vm668_vm3, %v710_v9, %v707_v58  ;;  %v719_v12 = vrot.slane %v717_v7, 1  ;;  %v512_v13 = vadd.f32 %v20017_v39, %v23467_v5  ;;  %v21183_v58 = vld [vmem:[%s29487_s3 + $0xe4] ss:$8 sps:$4 sm:$0xff]  }
 0x11c   :  { %v712_v14 = vpack.c.bf16 %v711_v10, %v711_v10  ;;  %v606_v15 = vadd.f32 %v23492_v0, %v509_v56 }
 0x11d   :  { %v721_v16 = vmax.f32 %v717_v7, %v719_v12  ;;  %v20018_v17 = vpop.f32.mrb[20].mxu0  ;;  %v609_v18 = vadd.f32 %v608_v11, %v512_v13  ;;  %v21181_v12 = vld [vmem:[%s29487_s3 + $0xe0] ss:$8 sps:$4 sm:$0xff]  }
 0x11e   :  { %v714_v19 = vrot.slane %v712_v14, 7  ;;  %v644_v20 = vmax.f32 %v606_v15, 0.0  ;;  %v20019_v21 = vpop.f32.mrb[21].mxu0 }
 0x11f   :  { %v723_v23 = vrot.slane %v721_v16, 1  ;;  %v725_v24 = vrot.slane %v721_v16, 2  ;;  %v645_v25 = vmax.f32 %v609_v18, 0.0  ;;  %v20021_v26 = vpop.f32.mrb[22].mxu0  ;;  %v818_v27 = vld [vmem:[#allocation2 + $0x8] sm:$0xff]  ;;  %v20020_v28 = vadd.f32 %v20019_v21, %v20018_v17 }
 0x120   :  { %716 = vst.msk [vmem:[#allocation2 + $0x10] sm:$0x6] %vm674_vm4, %v714_v19  ;;  %v20022_v31 = vpop.f32.mrb[23].mxu0  ;;  %v23526_v33 = vshll.u32 %v818_v27, 16  ;;  %v727_v0 = vrot.slane %v721_v16, 3  ;;  %v23553_v2 = vshrl.u32 %v818_v27, 16 }
 0x121   :  { %v729_v36 = vsel %vm664_vm1, %v721_v16, %v723_v23  ;;  %v737_v11 = vmax.f32 %v644_v20, %v645_v25  ;;  %v20023_v37 = vadd.f32 %v20022_v31, %v20021_v26  ;;  %v517_v41 = vadd.f32 %v20020_v28, %v23467_v5  ;;  %v21186_v17 = vld [vmem:[%s29487_s3 + $0xf4] ss:$8 sps:$4 sm:$0xff]   ;;  %v21184_v31 = vld [vmem:[%s29487_s3 + $0xf0] ss:$8 sps:$4 sm:$0xff]  }
 0x122   :  { %v730_v40 = vsel %vm666_vm2, %v729_v36, %v725_v24  ;;  %v852_v42 = vrot.slane %v23526_v33, 1 }
 0x123   :  { %v731_v45 = vsel %vm668_vm3, %v730_v40, %v727_v0  ;;  %v739_v46 = vrot.slane %v737_v11, 1  ;;  %v520_v47 = vadd.f32 %v20023_v37, %v23467_v5  ;;  %v614_v50 = vadd.f32 %v23487_v55, %v517_v41  ;;  %v23550_v55 = vld [vmem:[#allocation3] sm:$0xff] }
 0x124   :  { %v732_v49 = vpack.c.bf16 %v731_v45, %v731_v45  ;;  %v853_v51 = vsel %vm841_vm6, %v848_v32, %v852_v42  ;;  %v1803_v13 = vor.u32 %v23553_v2, %v852_v42  ;;  %v21189_v32 = vld [vmem:[%s29487_s3 + $0x144] ss:$8 sps:$4 sm:$0xff]  }
 0x125   :  { %v741_v53 = vmax.f32 %v737_v11, %v739_v46  ;;  %v617_v54 = vadd.f32 %v23496_v6, %v520_v47  ;;  %v20024_v57 = vpop.f32.mrb[24].mxu0  ;;  %17141 = vmatmul.mubr.msk.bf16.vlgmr.msra.gmra.mrb[16].mxu1 %vm46_vm0, %v853_v51  ;;  %v646_v62 = vmax.f32 %v614_v50, 0.0 }
 0x126   :  { %v734_v61 = vrot.slane %v732_v49, 3  ;;  %v20025_v1 = vpop.f32.mrb[25].mxu0  ;;  %1145 = vmatpush1.bf16.msra.mxu1 %v21175_v44  ;;  %989 = vmatprep.mubr.bf16.mxu1 %v23550_v55 }
 0x127   :  { %v743_v34 = vrot.slane %v741_v53, 1  ;;  %v745_v7 = vrot.slane %v741_v53, 2  ;;  %v747_v6 = vrot.slane %v741_v53, 3  ;;  %v647_v39 = vmax.f32 %v617_v54, 0.0  ;;  %v20027_v9 = vpop.f32.mrb[26].mxu0  ;;  %1146 = vmatprep.subr.bf16.mxu1 %v21180_v48 }
 0x128   :  { %736 = vst.msk [vmem:[#allocation2 + $0x10] sm:$0x60] %vm695_vm5, %v734_v61  ;;  %v20026_v56 = vadd.f32 %v20025_v1, %v20024_v57  ;;  %v20028_v10 = vpop.f32.mrb[27].mxu0 }
 0x129   :  { %v749_v14 = vsel %vm664_vm1, %v741_v53, %v743_v34  ;;  %v757_v15 = vmax.f32 %v646_v62, %v647_v39  ;;  %v20029_v16 = vadd.f32 %v20028_v10, %v20027_v9 }
 0x12a   :  { %v750_v18 = vsel %vm666_vm2, %v749_v14, %v745_v7  ;;  %v525_v19 = vadd.f32 %v20026_v56, %v23467_v5  ;;  %1147 = vmatpush1.bf16.msra.mxu1 %v21178_v52 }
 0x12b   :  { %v751_v20 = vsel %vm668_vm3, %v750_v18, %v747_v6  ;;  %v759_v21 = vrot.slane %v757_v15, 1  ;;  %v528_v23 = vadd.f32 %v20029_v16, %v23467_v5  ;;  %1148 = vmatprep.subr.bf16.mxu1 %v21183_v58 }
 0x12c   :  { %v752_v24 = vpack.c.bf16 %v751_v20, %v751_v20  ;;  %v622_v25 = vadd.f32 %v23505_v35, %v525_v19 }
 0x12d   :  { %v761_v26 = vmax.f32 %v757_v15, %v759_v21  ;;  %v625_v27 = vadd.f32 %v23513_v43, %v528_v23  ;;  %v20030_v28 = vpop.f32.mrb[28].mxu0 }
 0x12e   :  { %v754_v0 = vrot.slane %v752_v24, 7  ;;  %v648_v36 = vmax.f32 %v622_v25, 0.0  ;;  %v20031_v11 = vpop.f32.mrb[29].mxu0  ;;  %1149 = vmatpush1.bf16.msra.mxu1 %v21181_v12 }
 0x12f   :  { %v763_v37 = vrot.slane %v761_v26, 1  ;;  %v765_v40 = vrot.slane %v761_v26, 2  ;;  %v767_v41 = vrot.slane %v761_v26, 3  ;;  %v649_v35 = vmax.f32 %v625_v27, 0.0  ;;  %v20033_v42 = vpop.f32.mrb[30].mxu0  ;;  %v23576_v44 = vld [vmem:[#allocation2 + $0x10] sm:$0xff]  ;;  %1150 = vmatprep.subr.bf16.mxu1 %v21186_v17 }
 0x130   :  { %756 = vst.msk [vmem:[#allocation2 + $0x28] sm:$0x6] %vm674_vm4, %v754_v0  ;;  %v20032_v43 = vadd.f32 %v20031_v11, %v20030_v28  ;;  %v20034_v45 = vpop.f32.mrb[31].mxu0  ;;  %v23580_v46 = vshll.u32 %v23576_v44, 16  ;;  %v23597_v39 = vshrl.u32 %v23576_v44, 16 }
 0x131   :  { %v769_v47 = vsel %vm664_vm1, %v761_v26, %v763_v37  ;;  %v777_v48 = vmax.f32 %v648_v36, %v649_v35  ;;  %v20035_v49 = vadd.f32 %v20034_v45, %v20033_v42  ;;  %v23616_v26 = vrot.slane %v23469_v8, 1  ;;  %v1032_v45 = vld [vmem:[#allocation2] sm:$0xfe] }
 0x132   :  { %v770_v50 = vsel %vm666_vm2, %v769_v47, %v765_v40  ;;  %v533_v51 = vadd.f32 %v20032_v43, %v23467_v5  ;;  %v860_v52 = vrot.slane %v23580_v46, 1  ;;  %1151 = vmatpush1.bf16.msra.mxu1 %v21184_v31  ;;  %v23640_v47 = vld [vmem:[#allocation2] sm:$0xf0] }
 0x133   :  { %v771_v53 = vsel %vm668_vm3, %v770_v50, %v767_v41  ;;  %v779_v54 = vrot.slane %v777_v48, 1  ;;  %v536_v57 = vadd.f32 %v20035_v49, %v23467_v5  ;;  %1334 = vmatprep.subr.bf16.mxu1 %v21189_v32  ;;  %v880_v37 = vor.u32 %v23462_v4, %v23616_v26 }
 0x134   :  { %v772_v58 = vpack.c.bf16 %v771_v53, %v771_v53  ;;  %v630_v61 = vadd.f32 %v23502_v30, %v533_v51  ;;  %v23590_v62 = vsel %vm841_vm6, %v1803_v13, %v860_v52  ;;  %v23601_v10 = vor.u32 %v23597_v39, %v860_v52  ;;  %v1429_v51 = vld [vmem:[#allocation2] sm:$0xe0] }
 0x135   :  { %v781_v1 = vmax.f32 %v777_v48, %v779_v54  ;;  %v633_v34 = vadd.f32 %v23509_v38, %v536_v57  ;;  %17142 = vmatmul.mubr.msk.bf16.gmra.mrb[20].mxu1 %vm46_vm0, %v23590_v62  ;;  %v868_v38 = vrot.slane %v23450_v59, 1  ;;  %v1054_v52 = vshrl.u32 %v1032_v45, 16 }
 0x136   :  { %v774_v7 = vrot.slane %v772_v58, 3  ;;  %v650_v6 = vmax.f32 %v630_v61, 0.0  ;;  %999 = vmatprep.mubr.bf16.mxu1 %v23550_v55  ;;  %v1057_v53 = vshll.u32 %v1032_v45, 16  ;;  %v3758_v54 = vshrl.u32 %v23640_v47, 16 }
 0x137   :  { %v783_v5 = vrot.slane %v781_v1, 1  ;;  %v785_v9 = vrot.slane %v781_v1, 2  ;;  %v787_v56 = vrot.slane %v781_v1, 3  ;;  %v651_v30 = vmax.f32 %v633_v34, 0.0  ;;  %v23652_v34 = vld [vmem:[#allocation2 + $0x18] sm:$0xff] }
 0x138   :  { %776 = vst.msk [vmem:[#allocation2 + $0x28] sm:$0x60] %vm695_vm5, %v774_v7  ;;  %v23609_v18 = vsel %vm841_vm6, %v23601_v10, %v868_v38  ;;  %v872_v21 = vor.u32 %v23452_v60, %v868_v38  ;;  %v3761_v57 = vshll.u32 %v23640_v47, 16  ;;  %v3939_v58 = vshrl.u32 %v1429_v51, 16 }
 0x139   :  { %v789_v12 = vsel %vm664_vm1, %v781_v1, %v783_v5  ;;  %v797_v13 = vmax.f32 %v650_v6, %v651_v30  ;;  %v3942_v61 = vshll.u32 %v1429_v51, 16  ;;  %v23655_v7 = vshll.u32 %v23652_v34, 16 }
 0x13a   :  { %v790_v14 = vsel %vm666_vm2, %v789_v12, %v785_v9  ;;  %v23628_v36 = vsel %vm841_vm6, %v872_v21, %v23616_v26  ;;  %v23658_v6 = vshrl.u32 %v23652_v34, 16  ;;  %v1056_v5 = vrot.slane %v1054_v52, 1 }
 0x13b   :  { %v791_v15 = vsel %vm668_vm3, %v790_v14, %v787_v56  ;;  %v799_v16 = vrot.slane %v797_v13, 1  ;;  %v1059_v9 = vrot.slane %v1057_v53, 2  ;;  %v1069_v56 = vrot.slane %v23452_v60, 1  ;;  %v21192_v53 = vld [vmem:[%s29487_s3 + $0x154] ss:$8 sps:$4 sm:$0xff]  }
 0x13c   :  { %v792_v17 = vpack.c.bf16 %v791_v15, %v791_v15  ;;  %v1070_v30 = vrot.slane %v23450_v59, 2  ;;  %v3760_v12 = vrot.slane %v3758_v54, 4  ;;  %v23664_v14 = vrot.slane %v3939_v58, 5 }
 0x13d   :  { %v801_v19 = vmax.f32 %v797_v13, %v799_v16  ;;  %17143 = vmatmul.mubr.msk.bf16.gmra.mrb[24].mxu1 %vm46_vm0, %v23609_v18  ;;  %v3763_v13 = vrot.slane %v3761_v57, 5  ;;  %v23666_v15 = vrot.slane %v3942_v61, 6  ;;  %v1061_v60 = vrot.slane %v23553_v2, 1 }
 0x13e   :  { %v794_v20 = vrot.slane %v792_v17, 7  ;;  %1005 = vmatprep.mubr.bf16.mxu1 %v23550_v55  ;;  %v4580_v17 = vrot.slane %v23658_v6, 4  ;;  %v4761_v59 = vrot.slane %v23655_v7, 6  ;;  %v23694_v45 = vrot.slane %v23576_v44, 1 }
 0x13f   :  { %v803_v23 = vrot.slane %v801_v19, 1  ;;  %v805_v24 = vrot.slane %v801_v19, 2  ;;  %v807_v25 = vrot.slane %v801_v19, 3  ;;  %v23618_v27 = vld [vmem:[#allocation2 + $0x28] sm:$0xff]  ;;  %v3765_v51 = vrot.slane %v23553_v2, 4 }
 0x140   :  { %796 = vst.msk [vmem:[#allocation2 + $0x30] sm:$0x6] %vm674_vm4, %v794_v20  ;;  %v831_v31 = vld [vmem:[#allocation2 + $0x28] sm:$0x7f]  ;;  %v23623_v32 = vshll.u32 %v23618_v27, 16  ;;  %v23636_v35 = vshrl.u32 %v23618_v27, 16  ;;  %v3945_v61 = vor.u32 %v23666_v15, %v23664_v14 }
 0x141   :  { %v809_v28 = vsel %vm664_vm1, %v801_v19, %v803_v23  ;;  %v882_v41 = vshll.u32 %v831_v31, 16  ;;  %v4581_v19 = vrot.slane %v23655_v7, 5  ;;  %v4760_v20 = vrot.slane %v23658_v6, 5 }
 0x142   :  { %v810_v0 = vsel %vm666_vm2, %v809_v28, %v805_v24  ;;  %v1831_v42 = vrot.slane %v23623_v32, 1  ;;  %v886_v21 = vshrl.u32 %v831_v31, 16  ;;  %v1062_v23 = vrot.slane %v23526_v33, 2 }
 0x143   :  { %v811_v11 = vsel %vm668_vm3, %v810_v0, %v807_v25  ;;  %v884_v50 = vrot.slane %v882_v41, 1  ;;  %v1065_v24 = vrot.slane %v23597_v39, 1  ;;  %v3766_v52 = vrot.slane %v23526_v33, 5 }
 0x144   :  { %v812_v40 = vpack.c.bf16 %v811_v11, %v811_v11  ;;  %v23643_v48 = vsel %vm841_vm6, %v880_v37, %v1831_v42  ;;  %v23646_v49 = vor.u32 %v1831_v42, %v23636_v35  ;;  %v1066_v11 = vrot.slane %v23580_v46, 2 }
 0x145   :  { %17144 = vmatmul.mubr.msk.bf16.gmra.mrb[28].mxu1 %vm46_vm0, %v23628_v36  ;;  %v885_v1 = vsel %vm841_vm6, %v880_v37, %v884_v50  ;;  %v888_v0 = vor.u32 %v886_v21, %v884_v50  ;;  %v1060_v37 = vor.u32 %v1059_v9, %v1056_v5  ;;  %v23688_v42 = vor.u32 %v1070_v30, %v1069_v56  ;;  %v21190_v21 = vld [vmem:[%s29487_s3 + $0x150] ss:$8 sps:$4 sm:$0xff]  }
 0x146   :  { %v814_v43 = vrot.slane %v812_v40, 3  ;;  %1011 = vmatprep.mubr.bf16.mxu1 %v23550_v55  ;;  %v1063_v40 = vor.u32 %v1062_v23, %v1061_v60  ;;  %v3764_v50 = vor.u32 %v3763_v13, %v3760_v12  ;;  %v3769_v54 = vrot.slane %v23597_v39, 4 }
 0x147   :  { %v1419_v41 = vld [vmem:[#allocation2 + $0x30] sm:$0x7]  ;;  %v3770_v57 = vrot.slane %v23580_v46, 5  ;;  %v3781_v58 = vrot.slane %v23636_v35, 4  ;;  %v23707_v5 = vor.u32 %v1066_v11, %v1065_v24  ;;  %v3767_v56 = vor.u32 %v3766_v52, %v3765_v51 }
 0x148   :  { %816 = vst.msk [vmem:[#allocation2 + $0x30] sm:$0x60] %vm695_vm5, %v814_v43  ;;  %v21187_v43 = vld [vmem:[%s29487_s3 + $0x140] ss:$8 sps:$4 sm:$0xff]   ;;  %v1598_v9 = vld [vmem:[#allocation2 + $0x30] sm:$0xf] }
 0x149   :  { %v3782_v30 = vrot.slane %v23623_v32, 5  ;;  %v3786_v12 = vshrl.u32 %v1419_v41, 16  ;;  %v3789_v13 = vshll.u32 %v1419_v41, 16  ;;  %v3946_v60 = vrot.slane %v23553_v2, 5  ;;  %v1987_v2 = vld [vmem:[#allocation2 + $0x8] sm:$0xfe] }
 0x14a   :  { %v23717_v14 = vsel %vm3756_vm8, %v3764_v50, %v3767_v56  ;;  %v3947_v23 = vrot.slane %v23526_v33, 6  ;;  %v3950_v24 = vrot.slane %v23597_v39, 5  ;;  %v3951_v51 = vrot.slane %v23580_v46, 6  ;;  %v21198_v46 = vld [vmem:[%s29487_s3 + $0x174] ss:$8 sps:$4 sm:$0xff]  }
 0x14b   :  { %v23719_v15 = vor.u32 %v3782_v30, %v3781_v58  ;;  %v3788_v41 = vrot.slane %v3786_v12, 4  ;;  %v3791_v33 = vrot.slane %v3789_v13, 5  ;;  %v3962_v52 = vrot.slane %v23636_v35, 5 }
 0x14c   :  { %v3948_v50 = vor.u32 %v3947_v23, %v3946_v60  ;;  %v3963_v58 = vrot.slane %v23623_v32, 6  ;;  %v3952_v12 = vor.u32 %v3951_v51, %v3950_v24  ;;  %v4258_v13 = vrot.slane %v1987_v2, 1  ;;  %v2382_v51 = vld [vmem:[#allocation2 + $0x8] sm:$0xe0] }
 0x14d   :  { %17145 = vmatmul.mubr.msk.bf16.gmra.mrb[32].mxu1 %vm46_vm0, %v885_v1  ;;  %v1064_v1 = vsel %vm1052_vm7, %v1060_v37, %v1063_v40  ;;  %v23740_v39 = vsel %vm3756_vm8, %v23475_v22, %v23719_v15  ;;  %v23773_v2 = vor.u32 %v4581_v19, %v4580_v17  ;;  %v21196_v19 = vld [vmem:[%s29487_s3 + $0x170] ss:$8 sps:$4 sm:$0xff]  }
 0x14e   :  { %1021 = vmatprep.mubr.bf16.mxu1 %v23550_v55  ;;  %v23749_v30 = vsel %vm3937_vm9, %v3945_v61, %v3948_v50  ;;  %v3964_v60 = vor.u32 %v3963_v58, %v3962_v52  ;;  %v23763_v61 = vsel %vm3937_vm9, %v3952_v12, %v23460_v3  ;;  %v23767_v24 = vsel %vm3445_vm10, %v4258_v13, %v23694_v45 }
 0x14f   :  { %v1997_v38 = vld [vmem:[#allocation2 + $0x30] sm:$0xff]  ;;  %v1073_v58 = vrot.slane %v23462_v4, 1  ;;  %v23798_v4 = vor.u32 %v4761_v59, %v4760_v20 }
 0x150   :  { %v23668_v16 = vshll.u32 %v1997_v38, 16  ;;  %v23677_v25 = vshrl.u32 %v1997_v38, 16  ;;  %v23710_v38 = vor.u32 %v3770_v57, %v3769_v54  ;;  %v2193_v54 = vld [vmem:[#allocation2 + $0x8] sm:$0xf0]  ;;  %v3792_v57 = vor.u32 %v3791_v33, %v3788_v41 }
 0x151   :  { %v23759_v41 = vsel %vm3937_vm9, %v3948_v50, %v3952_v12  ;;  %v23779_v33 = vsel %vm3937_vm9, %v23479_v29, %v3964_v60  ;;  %v4569_v52 = vshrl.u32 %v2193_v54, 16 }
 0x152   :  { %v29498_v28 = vrot.slane %v23668_v16, 1  ;;  %v23729_v11 = vsel %vm3756_vm8, %v3767_v56, %v23710_v38  ;;  %v23734_v37 = vsel %vm3756_vm8, %v23710_v38, %v23456_v63  ;;  %v3970_v56 = vshll.u32 %v1598_v9, 16 }
 0x154   :  { %v23685_v31 = vor.u32 %v29498_v28, %v23677_v25 }
 0x155   :  { %17146 = vmatmul.mubr.msk.bf16.gmra.mrb[36].mxu1 %vm46_vm0, %v888_v0  ;;  %v21195_v0 = vld [vmem:[%s29487_s3 + $0x164] ss:$8 sps:$4 sm:$0xff]  }
 0x156   :  { %1176 = vmatprep.mubr.bf16.mxu1 %v23550_v55 }
 0x15d   :  { %17171 = vmatmul.mubr.msk.bf16.vlgmr.msra.gmra.mrb[16].mxu1 %vm46_vm0, %v1064_v1  ;;  %v3967_v1 = vshrl.u32 %v1598_v9, 16  ;;  %v3972_v9 = vrot.slane %v3970_v56, 6  ;;  %v4593_v56 = vrot.slane %v23668_v16, 5 }
 0x15e   :  { %1335 = vmatpush1.bf16.msra.mxu1 %v21187_v43  ;;  %1186 = vmatprep.mubr.bf16.mxu1 %v23550_v55  ;;  %v21193_v43 = vld [vmem:[%s29487_s3 + $0x160] ss:$8 sps:$4 sm:$0xff]  }
 0x15f   :  { %1336 = vmatprep.subr.bf16.mxu1 %v21192_v53  ;;  %v23756_v53 = vsel %vm3756_vm8, %v23719_v15, %v3792_v57  ;;  %v3969_v23 = vrot.slane %v3967_v1, 5  ;;  %v4572_v57 = vshll.u32 %v2193_v54, 16  ;;  %v1074_v1 = vrot.slane %v23469_v8, 2 }
 0x160   :  { %v4592_v8 = vrot.slane %v23677_v25, 4 }
 0x161   :  { %v3973_v50 = vor.u32 %v3972_v9, %v3969_v23  ;;  %v4574_v54 = vrot.slane %v4572_v57, 5  ;;  %v23805_v23 = vsel %vm3756_vm8, %v23710_v38, %v23773_v2  ;;  %v4752_v9 = vshll.u32 %v2382_v51, 16 }
 0x162   :  { %1337 = vmatpush1.bf16.msra.mxu1 %v21190_v21  ;;  %v1068_v21 = vsel %vm1052_vm7, %v1063_v40, %v23707_v5  ;;  %v21201_v40 = vld [vmem:[%s29487_s3 + $0x1c4] ss:$8 sps:$4 sm:$0xff]   ;;  %29499 = vst [vmem:[#allocation9_spill] sm:$0xff] %v23805_v23  ;;  %v4772_v57 = vrot.slane %v23677_v25, 5 }
 0x163   :  { %1338 = vmatprep.subr.bf16.mxu1 %v21195_v0  ;;  %v23785_v17 = vsel %vm3937_vm9, %v3964_v60, %v3973_v50  ;;  %v4571_v0 = vrot.slane %v4569_v52, 4  ;;  %v2372_v52 = vld [vmem:[#allocation2 + $0x38] sm:$0x7]  ;;  %v4754_v59 = vrot.slane %v4752_v9, 6 }
 0x165   :  { %17172 = vmatmul.mubr.msk.bf16.gmra.mrb[20].mxu1 %vm46_vm0, %v1068_v21  ;;  %v4575_v13 = vor.u32 %v4574_v54, %v4571_v0  ;;  %v4594_v21 = vor.u32 %v4593_v56, %v4592_v8  ;;  %v4597_v8 = vshrl.u32 %v2372_v52, 16  ;;  %v4600_v56 = vshll.u32 %v2372_v52, 16 }
 0x166   :  { %1196 = vmatprep.mubr.bf16.mxu1 %v23550_v55  ;;  %1339 = vmatpush1.bf16.msra.mxu1 %v21193_v43  ;;  %v4749_v43 = vshrl.u32 %v2382_v51, 16  ;;  %v23819_v51 = vsel %vm1052_vm7, %v23707_v5, %v23688_v42 }
 0x167   :  { %1340 = vmatprep.subr.bf16.mxu1 %v21198_v46  ;;  %v23809_v20 = vsel %vm3756_vm8, %v4575_v13, %v23710_v38  ;;  %v23813_v46 = vsel %vm3756_vm8, %v23719_v15, %v4594_v21  ;;  %v23826_v38 = vsel %vm3937_vm9, %v3952_v12, %v23798_v4  ;;  %v2550_v15 = vld [vmem:[#allocation2 + $0x38] sm:$0xf]  ;;  %v4599_v9 = vrot.slane %v4597_v8, 4  ;;  %v21205_v8 = vld [vmem:[%s29487_s3 + $0x1e0] ss:$8 sps:$4 sm:$0xff]  }
 0x168   :  { %v4751_v50 = vrot.slane %v4749_v43, 5  ;;  %29500 = vst [vmem:[#allocation10_spill] sm:$0xff] %v23809_v20  ;;  %29501 = vst [vmem:[#allocation11_spill] sm:$0xff] %v23813_v46  ;;  %v23832_v43 = vor.u32 %v1074_v1, %v1073_v58  ;;  %v4780_v46 = vshll.u32 %v2550_v15, 16 }
 0x169   :  { %29502 = vst [vmem:[#allocation12_spill] sm:$0xff] %v23826_v38  ;;  %v4777_v38 = vshrl.u32 %v2550_v15, 16  ;;  %v23884_v15 = vld [vmem:[#allocation3] sm:$0xff] }
 0x16a   :  { %1341 = vmatpush1.bf16.msra.mxu1 %v21196_v19  ;;  %v4755_v0 = vor.u32 %v4754_v59, %v4751_v50  ;;  %v4773_v19 = vrot.slane %v23668_v16, 6  ;;  %v4602_v50 = vrot.slane %v4600_v56, 5  ;;  %v23840_v59 = vsel %vm1052_vm7, %v23688_v42, %v23832_v43  ;;  %v21210_v56 = vld [vmem:[%s29487_s3 + $0x1f4] ss:$8 sps:$4 sm:$0xff]  }
 0x16b   :  { %1513 = vmatprep.subr.bf16.mxu1 %v21201_v40  ;;  %v4779_v58 = vrot.slane %v4777_v38, 5  ;;  %v4782_v1 = vrot.slane %v4780_v46, 6 }
 0x16c   :  { %v23830_v40 = vsel %vm3937_vm9, %v4755_v0, %v3952_v12  ;;  %v4774_v54 = vor.u32 %v4773_v19, %v4772_v57  ;;  %v4603_v28 = vor.u32 %v4602_v50, %v4599_v9  ;;  %v1080_v12 = vrot.slane %v23636_v35, 1  ;;  %v21199_v35 = vld [vmem:[%s29487_s3 + $0x1c0] ss:$8 sps:$4 sm:$0xff]   ;;  %v21204_v19 = vld [vmem:[%s29487_s3 + $0x1d4] ss:$8 sps:$4 sm:$0xff]  }
 0x16d   :  { %17173 = vmatmul.mubr.msk.bf16.gmra.mrb[40].mxu1 %vm46_vm0, %v23819_v51  ;;  %29503 = vst [vmem:[#allocation13_spill] sm:$0xff] %v23830_v40  ;;  %v1083_v57 = vrot.slane %v23623_v32, 2  ;;  %v4783_v52 = vor.u32 %v4782_v1, %v4779_v58  ;;  %v21208_v50 = vld [vmem:[%s29487_s3 + $0x1f0] ss:$8 sps:$4 sm:$0xff]   ;;  %v23914_v58 = vld [vmem:[#allocation2 + $0x20] sm:$0xff] }
 0x16e   :  { %1202 = vmatprep.mubr.bf16.mxu1 %v23550_v55  ;;  %v23835_v13 = vsel %vm3937_vm9, %v3964_v60, %v4774_v54  ;;  %v23847_v60 = vsel %vm3756_vm8, %v4594_v21, %v4603_v28  ;;  %v1263_v28 = vrot.slane %v23640_v47, 4  ;;  %v23870_v21 = vld [vmem:[#allocation2 + $0x8] sm:$0xff]  ;;  %v1270_v1 = vrot.slane %v23914_v58, 4 }
 0x16f   :  { %29504 = vst [vmem:[#allocation14_spill] sm:$0xff] %v23835_v13  ;;  %29505 = vst [vmem:[#allocation15_spill] sm:$0xff] %v23847_v60  ;;  %v23850_v42 = vor.u32 %v1083_v57, %v1080_v12  ;;  %v23853_v0 = vsel %vm3937_vm9, %v4774_v54, %v4783_v52  ;;  %v1264_v46 = vrot.slane %v23870_v21, 4  ;;  %v21207_v47 = vld [vmem:[%s29487_s3 + $0x1e4] ss:$8 sps:$4 sm:$0xff]   ;;  %v23888_v54 = vrot.slane %v23576_v44, 4 }
 0x170   :  { %29506 = vst [vmem:[#allocation16_spill] sm:$0xff] %v23853_v0  ;;  %v21213_v44 = vld [vmem:[%s29487_s3 + $0x244] ss:$8 sps:$4 sm:$0xff]   ;;  %v1268_v12 = vrot.slane %v23652_v34, 4  ;;  %v23924_v34 = vrot.slane %v23618_v27, 4  ;;  %v1622_v0 = vrot.slane %v23870_v21, 6 }
 0x171   :  { %v23858_v32 = vsel %vm1052_vm7, %v23832_v43, %v23850_v42  ;;  %v1265_v38 = vsel %vm1262_vm11, %v1263_v28, %v1264_v46  ;;  %v1267_v9 = vsel %vm1262_vm11, %v1264_v46, %v23888_v54  ;;  %v21211_v27 = vld [vmem:[%s29487_s3 + $0x240] ss:$8 sps:$4 sm:$0xff]   ;;  %v21228_v13 = vld [vmem:[%s29487_s3 + $0x2d4] ss:$8 sps:$4 sm:$0xff]  }
 0x172   :  { %v23909_v57 = vsel %vm1262_vm11, %v23888_v54, %v1268_v12  ;;  %v23918_v52 = vsel %vm1262_vm11, %v1268_v12, %v1270_v1  ;;  %v23928_v28 = vsel %vm1262_vm11, %v1270_v1, %v23924_v34  ;;  %v21217_v1 = vld [vmem:[%s29487_s3 + $0x260] ss:$8 sps:$4 sm:$0xff]  }
 0x175   :  { %17174 = vmatmul.mubr.msk.bf16.gmra.mrb[44].mxu1 %vm46_vm0, %v23840_v59 }
 0x176   :  { %1208 = vmatprep.mubr.bf16.mxu1 %v23550_v55 }
 0x17d   :  { %17175 = vmatmul.mubr.msk.bf16.gmra.mrb[32].mxu1 %vm46_vm0, %v23858_v32 }
 0x17e   :  { %1218 = vmatprep.mubr.bf16.mxu1 %v23550_v55 }
 0x185   :  { %17176 = vmatmul.mubr.msk.bf16.gmra.mrb[36].mxu1 %vm46_vm0, %v23850_v42 }
 0x186   :  { %1366 = vmatprep.mubr.bf16.mxu1 %v23550_v55  ;;  %v21202_v55 = vld [vmem:[%s29487_s3 + $0x1d0] ss:$8 sps:$4 sm:$0xff]  }
 0x18d   :  { %17201 = vmatmul.mubr.msk.bf16.vlgmr.msra.gmra.mrb[16].mxu1 %vm46_vm0, %v1265_v38  ;;  %v23124_v38 = vld [vmem:[#allocation2] sm:$0xe0] }
 0x18e   :  { %1514 = vmatpush1.bf16.msra.mxu1 %v21199_v35  ;;  %1376 = vmatprep.mubr.bf16.mxu1 %v23884_v15  ;;  %v1245_v35 = vld [vmem:[#allocation2 + $0x30] sm:$0x3] }
 0x18f   :  { %1515 = vmatprep.subr.bf16.mxu1 %v21204_v19  ;;  %v1274_v46 = vrot.slane %v1245_v35, 4  ;;  %v21222_v35 = vld [vmem:[%s29487_s3 + $0x274] ss:$8 sps:$4 sm:$0xff]  }
 0x191   :  { %v1275_v19 = vsel %vm1262_vm11, %v23924_v34, %v1274_v46 }
 0x192   :  { %1516 = vmatpush1.bf16.msra.mxu1 %v21202_v55  ;;  %v1442_v55 = vrot.slane %v23124_v38, 5  ;;  %v23126_v38 = vld [vmem:[#allocation2 + $0x18] sm:$0xff] }
 0x193   :  { %1517 = vmatprep.subr.bf16.mxu1 %v21207_v47  ;;  %v1443_v47 = vrot.slane %v23870_v21, 5 }
 0x195   :  { %17202 = vmatmul.mubr.msk.bf16.gmra.mrb[20].mxu1 %vm46_vm0, %v1267_v9  ;;  %v21214_v9 = vld [vmem:[%s29487_s3 + $0x250] ss:$8 sps:$4 sm:$0xff]  }
 0x196   :  { %1386 = vmatprep.mubr.bf16.mxu1 %v23884_v15  ;;  %1518 = vmatpush1.bf16.msra.mxu1 %v21205_v8  ;;  %v21216_v8 = vld [vmem:[%s29487_s3 + $0x254] ss:$8 sps:$4 sm:$0xff]  }
 0x197   :  { %1519 = vmatprep.subr.bf16.mxu1 %v21210_v56  ;;  %v1444_v56 = vsel %vm668_vm3, %v1442_v55, %v1443_v47  ;;  %v1447_v55 = vrot.slane %v23126_v38, 5 }
 0x19a   :  { %1520 = vmatpush1.bf16.msra.mxu1 %v21208_v50  ;;  %v21219_v50 = vld [vmem:[%s29487_s3 + $0x264] ss:$8 sps:$4 sm:$0xff]  }
 0x19b   :  { %1692 = vmatprep.subr.bf16.mxu1 %v21213_v44  ;;  %v23125_v44 = vld [vmem:[#allocation2 + $0x10] sm:$0xff] }
 0x19c   :  { %v23953_v12 = vrot.slane %v23125_v44, 5  ;;  %v24014_v21 = vrot.slane %v23125_v44, 6  ;;  %v1626_v44 = vrot.slane %v23126_v38, 6 }
 0x19d   :  { %17203 = vmatmul.mubr.msk.bf16.gmra.mrb[48].mxu1 %vm46_vm0, %v23909_v57 }
 0x19e   :  { %1392 = vmatprep.mubr.bf16.mxu1 %v23884_v15  ;;  %v1446_v46 = vsel %vm668_vm3, %v1443_v47, %v23953_v12  ;;  %v23973_v47 = vsel %vm668_vm3, %v23953_v12, %v1447_v55 }
 0x1a5   :  { %17204 = vmatmul.mubr.msk.bf16.gmra.mrb[52].mxu1 %vm46_vm0, %v23918_v52 }
 0x1a6   :  { %1398 = vmatprep.mubr.bf16.mxu1 %v23884_v15 }
 0x1ad   :  { %17205 = vmatmul.mubr.msk.bf16.gmra.mrb[32].mxu1 %vm46_vm0, %v23928_v28 }
 0x1ae   :  { %1408 = vmatprep.mubr.bf16.mxu1 %v23884_v15 }
 0x1b5   :  { %17206 = vmatmul.mubr.msk.bf16.gmra.mrb[36].mxu1 %vm46_vm0, %v1275_v19  ;;  %v21220_v19 = vld [vmem:[%s29487_s3 + $0x270] ss:$8 sps:$4 sm:$0xff]  }
 0x1b6   :  { %1545 = vmatprep.mubr.bf16.mxu1 %v23884_v15 }
 0x1bd   :  { %17231 = vmatmul.mubr.msk.bf16.vlgmr.msra.gmra.mrb[16].mxu1 %vm46_vm0, %v1444_v56 }
 0x1be   :  { %1693 = vmatpush1.bf16.msra.mxu1 %v21211_v27  ;;  %1555 = vmatprep.mubr.bf16.mxu1 %v23884_v15  ;;  %v21225_v27 = vld [vmem:[%s29487_s3 + $0x2c4] ss:$8 sps:$4 sm:$0xff]  }
 0x1bf   :  { %1694 = vmatprep.subr.bf16.mxu1 %v21216_v8  ;;  %v1449_v8 = vrot.slane %v23914_v58, 5 }
 0x1c1   :  { %v23980_v56 = vsel %vm668_vm3, %v1447_v55, %v1449_v8  ;;  %v21223_v55 = vld [vmem:[%s29487_s3 + $0x2c0] ss:$8 sps:$4 sm:$0xff]  }
 0x1c2   :  { %1695 = vmatpush1.bf16.msra.mxu1 %v21214_v9  ;;  %v23127_v9 = vld [vmem:[#allocation2 + $0x28] sm:$0xff] }
 0x1c3   :  { %1696 = vmatprep.subr.bf16.mxu1 %v21219_v50  ;;  %v23985_v50 = vrot.slane %v23127_v9, 5  ;;  %v24046_v38 = vrot.slane %v23127_v9, 6 }
 0x1c5   :  { %17232 = vmatmul.mubr.msk.bf16.gmra.mrb[20].mxu1 %vm46_vm0, %v1446_v46 }
 0x1c6   :  { %1565 = vmatprep.mubr.bf16.mxu1 %v23884_v15  ;;  %1697 = vmatpush1.bf16.msra.mxu1 %v21217_v1  ;;  %v23989_v1 = vsel %vm668_vm3, %v1449_v8, %v23985_v50 }
 0x1c7   :  { %1698 = vmatprep.subr.bf16.mxu1 %v21222_v35  ;;  %v23128_v35 = vld [vmem:[#allocation2 + $0x30] sm:$0x7] }
 0x1c8   :  { %v1453_v46 = vrot.slane %v23128_v35, 5 }
 0x1ca   :  { %1699 = vmatpush1.bf16.msra.mxu1 %v21220_v19  ;;  %v1608_v19 = vld [vmem:[#allocation2] sm:$0xc0] }
 0x1cb   :  { %1902 = vmatprep.subr.bf16.mxu1 %v21225_v27  ;;  %v1454_v27 = vsel %vm668_vm3, %v23985_v50, %v1453_v46  ;;  %v1621_v8 = vrot.slane %v1608_v19, 6  ;;  %v21226_v46 = vld [vmem:[%s29487_s3 + $0x2d0] ss:$8 sps:$4 sm:$0xff]   ;;  %v21229_v19 = vld [vmem:[%s29487_s3 + $0x2e0] ss:$8 sps:$4 sm:$0xff]  }
 0x1cd   :  { %17233 = vmatmul.mubr.msk.bf16.gmra.mrb[56].mxu1 %vm46_vm0, %v23973_v47  ;;  %v1623_v35 = vsel %vm666_vm2, %v1621_v8, %v1622_v0  ;;  %v21234_v8 = vld [vmem:[%s29487_s3 + $0x2f4] ss:$8 sps:$4 sm:$0xff]  }
 0x1ce   :  { %1571 = vmatprep.mubr.bf16.mxu1 %v23884_v15 }
 0x1d5   :  { %17234 = vmatmul.mubr.msk.bf16.gmra.mrb[60].mxu1 %vm46_vm0, %v23980_v56 }
 0x1d6   :  { %1577 = vmatprep.mubr.bf16.mxu1 %v23884_v15 }
 0x1dd   :  { %17235 = vmatmul.mubr.msk.bf16.gmra.mrb[32].mxu1 %vm46_vm0, %v23989_v1 }
 0x1de   :  { %1587 = vmatprep.mubr.bf16.mxu1 %v23884_v15 }
 0x1e5   :  { %17236 = vmatmul.mubr.msk.bf16.gmra.mrb[36].mxu1 %vm46_vm0, %v1454_v27  ;;  %v21231_v27 = vld [vmem:[%s29487_s3 + $0x2e4] ss:$8 sps:$4 sm:$0xff]  }
 0x1e6   :  { %1724 = vmatprep.mubr.bf16.mxu1 %v23884_v15 }
 0x1ed   :  { %17261 = vmatmul.mubr.msk.bf16.vlgmr.msra.gmra.mrb[16].mxu1 %vm46_vm0, %v1623_v35  ;;  %v1625_v35 = vsel %vm666_vm2, %v1622_v0, %v24014_v21  ;;  %v24034_v0 = vsel %vm666_vm2, %v24014_v21, %v1626_v44 }
 0x1ee   :  { %1903 = vmatpush1.bf16.msra.mxu1 %v21223_v55  ;;  %1734 = vmatprep.mubr.bf16.mxu1 %v23884_v15  ;;  %v21232_v55 = vld [vmem:[%s29487_s3 + $0x2f0] ss:$8 sps:$4 sm:$0xff]  }
 0x1ef   :  { %1904 = vmatprep.subr.bf16.mxu1 %v21228_v13  ;;  %v21237_v13 = vld [vmem:[%s29487_s3 + $0x344] ss:$8 sps:$4 sm:$0xff]  }
 0x1f2   :  { %1905 = vmatpush1.bf16.msra.mxu1 %v21226_v46  ;;  %v1628_v46 = vrot.slane %v23914_v58, 6 }
 0x1f3   :  { %1906 = vmatprep.subr.bf16.mxu1 %v21231_v27 }
 0x1f4   :  { %v24041_v27 = vsel %vm666_vm2, %v1626_v44, %v1628_v46 }
 0x1f5   :  { %17262 = vmatmul.mubr.msk.bf16.gmra.mrb[20].mxu1 %vm46_vm0, %v1625_v35 }
 0x1f6   :  { %1744 = vmatprep.mubr.bf16.mxu1 %v23884_v15  ;;  %1907 = vmatpush1.bf16.msra.mxu1 %v21229_v19  ;;  %v24050_v19 = vsel %vm666_vm2, %v1628_v46, %v24046_v38  ;;  %v21235_v46 = vld [vmem:[%s29487_s3 + $0x340] ss:$8 sps:$4 sm:$0xff]  }
 0x1f7   :  { %1908 = vmatprep.subr.bf16.mxu1 %v21234_v8  ;;  %v23129_v8 = vld [vmem:[#allocation2 + $0x30] sm:$0xf] }
 0x1f8   :  { %v1632_v35 = vrot.slane %v23129_v8, 6 }
 0x1fa   :  { %1909 = vmatpush1.bf16.msra.mxu1 %v21232_v55  ;;  %v1633_v40 = vsel %vm666_vm2, %v24046_v38, %v1632_v35  ;;  %v21238_v35 = vld [vmem:[%s29487_s3 + $0x350] ss:$8 sps:$4 sm:$0xff]  }
 0x1fb   :  { %2098 = vmatprep.subr.bf16.mxu1 %v21237_v13 }
 0x1fd   :  { %17263 = vmatmul.mubr.msk.bf16.gmra.mrb[64].mxu1 %vm46_vm0, %v24034_v0 }
 0x1fe   :  { %1750 = vmatprep.mubr.bf16.mxu1 %v23884_v15 }
 0x205   :  { %17264 = vmatmul.mubr.msk.bf16.gmra.mrb[68].mxu1 %vm46_vm0, %v24041_v27 }
 0x206   :  { %1756 = vmatprep.mubr.bf16.mxu1 %v23884_v15 }
 0x20d   :  { %17265 = vmatmul.mubr.msk.bf16.gmra.mrb[32].mxu1 %vm46_vm0, %v24050_v19 }
 0x20e   :  { %1766 = vmatprep.mubr.bf16.mxu1 %v23884_v15 }
 0x210   :  { %v1001_v58 = vpop.f32.mrb[24].mxu1 }
 0x211   :  { %v1002_v55 = vpop.f32.mrb[25].mxu1  ;;  %v21240_v58 = vld [vmem:[%s29487_s3 + $0x354] ss:$8 sps:$4 sm:$0xff]  }
 0x212   :  { %v1003_v13 = vpop.f32.mrb[26].mxu1 }
 0x213   :  { %v1004_v44 = vpop.f32.mrb[27].mxu1  ;;  %v21246_v13 = vld [vmem:[%s29487_s3 + $0x374] ss:$8 sps:$4 sm:$0xff]  }
 0x214   :  { %v21249_v44 = vld [vmem:[%s29487_s3 + $0x3c4] ss:$8 sps:$4 sm:$0xff]  }
 0x215   :  { %17266 = vmatmul.mubr.msk.bf16.gmra.mrb[36].mxu1 %vm46_vm0, %v1633_v40  ;;  %v21243_v40 = vld [vmem:[%s29487_s3 + $0x364] ss:$8 sps:$4 sm:$0xff]  }
 0x216   :  { %1934 = vmatprep.mubr.bf16.mxu1 %v23884_v15  ;;  %v24073_v15 = vld [vmem:[#allocation3] sm:$0xff] }
 0x218   :  { %v1007_v9 = vpop.f32.mrb[28].mxu1 }
 0x219   :  { %v1008_v60 = vpop.f32.mrb[29].mxu1  ;;  %v1787_v9 = vld [vmem:[#allocation2 + $0x30] sm:$0x7f] }
 0x21a   :  { %v1009_v8 = vpop.f32.mrb[30].mxu1  ;;  %v21241_v60 = vld [vmem:[%s29487_s3 + $0x360] ss:$8 sps:$4 sm:$0xff]  }
 0x21b   :  { %v1010_v55 = vpop.f32.mrb[31].mxu1  ;;  %v1841_v8 = vshrl.u32 %v1787_v9, 16 }
 0x21d   :  { %17291 = vmatmul.mubr.msk.bf16.vlgmr.msra.gmra.mrb[16].mxu1 %vm46_vm0, %v23590_v62  ;;  %v21244_v62 = vld [vmem:[%s29487_s3 + $0x370] ss:$8 sps:$4 sm:$0xff]  }
 0x21e   :  { %2099 = vmatpush1.bf16.msra.mxu1 %v21235_v46  ;;  %1944 = vmatprep.mubr.bf16.mxu1 %v24073_v15  ;;  %v1837_v46 = vshll.u32 %v1787_v9, 16 }
 0x21f   :  { %2100 = vmatprep.subr.bf16.mxu1 %v21240_v58 }
 0x222   :  { %2101 = vmatpush1.bf16.msra.mxu1 %v21238_v35 }
 0x223   :  { %2102 = vmatprep.subr.bf16.mxu1 %v21243_v40  ;;  %v23131_v40 = vld [vmem:[#allocation2 + $0x8] sm:$0xfe] }
 0x225   :  { %17292 = vmatmul.mubr.msk.bf16.gmra.mrb[20].mxu1 %vm46_vm0, %v23609_v18  ;;  %v1839_v18 = vrot.slane %v1837_v46, 1 }
 0x226   :  { %1954 = vmatprep.mubr.bf16.mxu1 %v24073_v15  ;;  %2103 = vmatpush1.bf16.msra.mxu1 %v21241_v60  ;;  %v2008_v60 = vshrl.u32 %v23131_v40, 16 }
 0x227   :  { %2104 = vmatprep.subr.bf16.mxu1 %v21246_v13  ;;  %v1840_v58 = vsel %vm841_vm6, %v23646_v49, %v1839_v18  ;;  %v2011_v13 = vshll.u32 %v23131_v40, 16 }
 0x228   :  { %v2010_v46 = vrot.slane %v2008_v60, 1  ;;  %v21256_v60 = vld [vmem:[%s29487_s3 + $0x3f0] ss:$8 sps:$4 sm:$0xff]  }
 0x229   :  { %v2013_v23 = vrot.slane %v2011_v13, 2  ;;  %v21261_v13 = vld [vmem:[%s29487_s3 + $0x444] ss:$8 sps:$4 sm:$0xff]  }
 0x22a   :  { %2105 = vmatpush1.bf16.msra.mxu1 %v21244_v62 }
 0x22b   :  { %2287 = vmatprep.subr.bf16.mxu1 %v21249_v44  ;;  %v1843_v44 = vor.u32 %v1841_v8, %v1839_v18  ;;  %v21250_v8 = vld [vmem:[%s29487_s3 + $0x3d0] ss:$8 sps:$4 sm:$0xff]  }
 0x22d   :  { %17293 = vmatmul.mubr.msk.bf16.gmra.mrb[72].mxu1 %vm46_vm0, %v23628_v36 }
 0x22e   :  { %1960 = vmatprep.mubr.bf16.mxu1 %v24073_v15 }
 0x235   :  { %17294 = vmatmul.mubr.msk.bf16.gmra.mrb[76].mxu1 %vm46_vm0, %v23643_v48 }
 0x236   :  { %1966 = vmatprep.mubr.bf16.mxu1 %v24073_v15 }
 0x23d   :  { %17295 = vmatmul.mubr.msk.bf16.gmra.mrb[32].mxu1 %vm46_vm0, %v1840_v58  ;;  %v21247_v58 = vld [vmem:[%s29487_s3 + $0x3c0] ss:$8 sps:$4 sm:$0xff]  }
 0x23e   :  { %1976 = vmatprep.mubr.bf16.mxu1 %v24073_v15 }
 0x240   :  { %v1198_v55 = vpop.f32.mrb[40].mxu1 }
 0x241   :  { %v1199_v36 = vpop.f32.mrb[41].mxu1  ;;  %v21252_v55 = vld [vmem:[%s29487_s3 + $0x3d4] ss:$8 sps:$4 sm:$0xff]  }
 0x242   :  { %v1200_v35 = vpop.f32.mrb[42].mxu1 }
 0x243   :  { %v1201_v62 = vpop.f32.mrb[43].mxu1  ;;  %v2014_v35 = vor.u32 %v2013_v23, %v2010_v46  ;;  %v21253_v23 = vld [vmem:[%s29487_s3 + $0x3e0] ss:$8 sps:$4 sm:$0xff]  }
 0x245   :  { %17296 = vmatmul.mubr.msk.bf16.gmra.mrb[36].mxu1 %vm46_vm0, %v1843_v44  ;;  %v2018_v18 = vsel %vm1052_vm7, %v2014_v35, %v23707_v5  ;;  %v21258_v5 = vld [vmem:[%s29487_s3 + $0x3f4] ss:$8 sps:$4 sm:$0xff]  }
 0x246   :  { %2130 = vmatprep.mubr.bf16.mxu1 %v24073_v15 }
 0x248   :  { %v1204_v20 = vpop.f32.mrb[44].mxu1 }
 0x249   :  { %v1205_v9 = vpop.f32.mrb[45].mxu1  ;;  %v21255_v20 = vld [vmem:[%s29487_s3 + $0x3e4] ss:$8 sps:$4 sm:$0xff]  }
 0x24a   :  { %v1206_v36 = vpop.f32.mrb[46].mxu1 }
 0x24b   :  { %v1207_v40 = vpop.f32.mrb[47].mxu1 }
 0x24d   :  { %17321 = vmatmul.mubr.msk.bf16.vlgmr.msra.gmra.mrb[16].mxu1 %vm46_vm0, %v2018_v18 }
 0x24e   :  { %2288 = vmatpush1.bf16.msra.mxu1 %v21247_v58  ;;  %2140 = vmatprep.mubr.bf16.mxu1 %v24073_v15 }
 0x24f   :  { %2289 = vmatprep.subr.bf16.mxu1 %v21252_v55 }
 0x252   :  { %2290 = vmatpush1.bf16.msra.mxu1 %v21250_v8 }
 0x253   :  { %2291 = vmatprep.subr.bf16.mxu1 %v21255_v20 }
 0x255   :  { %17322 = vmatmul.mubr.msk.bf16.gmra.mrb[20].mxu1 %vm46_vm0, %v23819_v51 }
 0x256   :  { %2150 = vmatprep.mubr.bf16.mxu1 %v24073_v15  ;;  %2292 = vmatpush1.bf16.msra.mxu1 %v21253_v23 }
 0x257   :  { %2293 = vmatprep.subr.bf16.mxu1 %v21258_v5 }
 0x25a   :  { %2294 = vmatpush1.bf16.msra.mxu1 %v21256_v60 }
 0x25b   :  { %2465 = vmatprep.subr.bf16.mxu1 %v21261_v13 }
 0x25d   :  { %17323 = vmatmul.mubr.msk.bf16.gmra.mrb[80].mxu1 %vm46_vm0, %v23840_v59 }
 0x25e   :  { %2156 = vmatprep.mubr.bf16.mxu1 %v24073_v15 }
 0x25f   :  { %18 = vsyncpa [#allocation7], 0  ;;  %v2034_v62 = vrot.slane %v23677_v25, 1  ;;  %v2037_v51 = vrot.slane %v23668_v16, 2  ;;  %v23132_v40 = vld [vmem:[#allocation2 + $0x8] sm:$0xf0] }
 0x260   :  { %v2216_v18 = vrot.slane %v23132_v40, 4  ;;  %v21264_v20 = vld [vmem:[%s29487_s3 + $0x454] ss:$8 sps:$4 sm:$0xff]   ;;  %v21262_v5 = vld [vmem:[%s29487_s3 + $0x450] ss:$8 sps:$4 sm:$0xff]   ;;  %vm3146_vm12 = vcmask 1045504  }
 0x261   :  { %v24142_v44 = vor.u32 %v2037_v51, %v2034_v62  ;;  %v21267_v60 = vld [vmem:[%s29487_s3 + $0x464] ss:$8 sps:$4 sm:$0xff]   ;;  %v21265_v13 = vld [vmem:[%s29487_s3 + $0x460] ss:$8 sps:$4 sm:$0xff]   ;;  %v21268_v62 = vld [vmem:[%s29487_s3 + $0x470] ss:$8 sps:$4 sm:$0xff]  }
 0x262   :  { %v2218_v23 = vsel %vm1262_vm11, %v2216_v18, %v23888_v54  ;;  %v21270_v54 = vld [vmem:[%s29487_s3 + $0x474] ss:$8 sps:$4 sm:$0xff]   ;;  %v21273_v51 = vld [vmem:[%s29487_s3 + $0x4c4] ss:$8 sps:$4 sm:$0xff]   ;;  %vm5496_vm13 = vcmask 1045508   ;;  %s23200_s24 = smov [#allocation6]  }
 0x263   :  { %v24147_v46 = vsel %vm1052_vm7, %v23850_v42, %v24142_v44  ;;  %v21259_v42 = vld [vmem:[%s29487_s3 + $0x440] ss:$8 sps:$4 sm:$0xff]   ;;  %vm5497_vm14 = vsmask.f32 5394 }
 0x264   :  { %vm25125_vm15 = vmand %vm5496_vm13, %vm5497_vm14 }
 0x265   :  { %17324 = vmatmul.mubr.msk.bf16.gmra.mrb[84].mxu1 %vm46_vm0, %v23858_v32 }
 0x266   :  { %2162 = vmatprep.mubr.bf16.mxu1 %v24073_v15 }
 0x26d   :  { %17325 = vmatmul.mubr.msk.bf16.gmra.mrb[32].mxu1 %vm46_vm0, %v24147_v46 }
 0x26e   :  { %2172 = vmatprep.mubr.bf16.mxu1 %v24073_v15 }
 0x270   :  { %v1388_v25 = vpop.f32.mrb[48].mxu1 }
 0x271   :  { %v1389_v59 = vpop.f32.mrb[49].mxu1 }
 0x272   :  { %v1390_v58 = vpop.f32.mrb[50].mxu1 }
 0x273   :  { %v1391_v9 = vpop.f32.mrb[51].mxu1  ;;  %v2199_v58 = vld [vmem:[#allocation2 + $0x38] sm:$0x3] }
 0x274   :  { %v2227_v9 = vrot.slane %v2199_v58, 4 }
 0x275   :  { %17326 = vmatmul.mubr.msk.bf16.gmra.mrb[36].mxu1 %vm46_vm0, %v24142_v44 }
 0x276   :  { %2319 = vmatprep.mubr.bf16.mxu1 %v24073_v15 }
 0x278   :  { %v1394_v55 = vpop.f32.mrb[52].mxu1 }
 0x279   :  { %v1395_v36 = vpop.f32.mrb[53].mxu1 }
 0x27a   :  { %v1396_v35 = vpop.f32.mrb[54].mxu1 }
 0x27b   :  { %v1397_v8 = vpop.f32.mrb[55].mxu1 }
 0x27c   :  { %v23134_v8 = vld [vmem:[#allocation2 + $0x8] sm:$0xe0] }
 0x27d   :  { %17351 = vmatmul.mubr.msk.bf16.vlgmr.msra.gmra.mrb[16].mxu1 %vm46_vm0, %v2218_v23 }
 0x27e   :  { %2466 = vmatpush1.bf16.msra.mxu1 %v21259_v42  ;;  %2329 = vmatprep.mubr.bf16.mxu1 %v24073_v15 }
 0x27f   :  { %2467 = vmatprep.subr.bf16.mxu1 %v21264_v20  ;;  %v2394_v20 = vrot.slane %v23134_v8, 5  ;;  %v21288_v8 = vld [vmem:[%s29487_s3 + $0x554] ss:$8 sps:$4 sm:$0xff]  }
 0x282   :  { %2468 = vmatpush1.bf16.msra.mxu1 %v21262_v5  ;;  %v21276_v5 = vld [vmem:[%s29487_s3 + $0x4d4] ss:$8 sps:$4 sm:$0xff]  }
 0x283   :  { %2469 = vmatprep.subr.bf16.mxu1 %v21267_v60  ;;  %v2396_v60 = vsel %vm668_vm3, %v2394_v20, %v23953_v12  ;;  %v21282_v12 = vld [vmem:[%s29487_s3 + $0x4f4] ss:$8 sps:$4 sm:$0xff]  }
 0x285   :  { %17352 = vmatmul.mubr.msk.bf16.gmra.mrb[20].mxu1 %vm46_vm0, %v23909_v57  ;;  %v24192_v57 = vld [vmem:[#allocation2 + $0x30] sm:$0xff] }
 0x286   :  { %2339 = vmatprep.mubr.bf16.mxu1 %v24073_v15  ;;  %2470 = vmatpush1.bf16.msra.mxu1 %v21265_v13  ;;  %v2225_v25 = vrot.slane %v24192_v57, 4  ;;  %v21274_v13 = vld [vmem:[%s29487_s3 + $0x4d0] ss:$8 sps:$4 sm:$0xff]  }
 0x287   :  { %2471 = vmatprep.subr.bf16.mxu1 %v21270_v54  ;;  %v21279_v54 = vld [vmem:[%s29487_s3 + $0x4e4] ss:$8 sps:$4 sm:$0xff]  }
 0x288   :  { %v2226_v59 = vsel %vm1262_vm11, %v23924_v34, %v2225_v25  ;;  %v21271_v34 = vld [vmem:[%s29487_s3 + $0x4c0] ss:$8 sps:$4 sm:$0xff]  }
 0x28a   :  { %2472 = vmatpush1.bf16.msra.mxu1 %v21268_v62  ;;  %v21277_v62 = vld [vmem:[%s29487_s3 + $0x4e0] ss:$8 sps:$4 sm:$0xff]  }
 0x28b   :  { %2643 = vmatprep.subr.bf16.mxu1 %v21273_v51  ;;  %v21280_v51 = vld [vmem:[%s29487_s3 + $0x4f0] ss:$8 sps:$4 sm:$0xff]  }
 0x28d   :  { %17353 = vmatmul.mubr.msk.bf16.gmra.mrb[88].mxu1 %vm46_vm0, %v23918_v52 }
 0x28e   :  { %2345 = vmatprep.mubr.bf16.mxu1 %v24073_v15 }
 0x295   :  { %17354 = vmatmul.mubr.msk.bf16.gmra.mrb[92].mxu1 %vm46_vm0, %v23928_v28  ;;  %v2228_v28 = vsel %vm1262_vm11, %v2225_v25, %v2227_v9  ;;  %v21285_v25 = vld [vmem:[%s29487_s3 + $0x544] ss:$8 sps:$4 sm:$0xff]  }
 0x296   :  { %2351 = vmatprep.mubr.bf16.mxu1 %v24073_v15 }
 0x29d   :  { %17355 = vmatmul.mubr.msk.bf16.gmra.mrb[32].mxu1 %vm46_vm0, %v2226_v59 }
 0x29e   :  { %2361 = vmatprep.mubr.bf16.mxu1 %v24073_v15 }
 0x2a0   :  { %v1567_v52 = vpop.f32.mrb[56].mxu1 }
 0x2a1   :  { %v1568_v55 = vpop.f32.mrb[57].mxu1  ;;  %v23135_v52 = vld [vmem:[#allocation2 + $0x38] sm:$0x7] }
 0x2a2   :  { %v1569_v36 = vpop.f32.mrb[58].mxu1  ;;  %v2405_v9 = vrot.slane %v23135_v52, 5  ;;  %v2758_v52 = vrot.slane %v23655_v7, 1 }
 0x2a3   :  { %v1570_v35 = vpop.f32.mrb[59].mxu1 }
 0x2a5   :  { %17356 = vmatmul.mubr.msk.bf16.gmra.mrb[36].mxu1 %vm46_vm0, %v2228_v28 }
 0x2a6   :  { %2497 = vmatprep.mubr.bf16.mxu1 %v24073_v15 }
 0x2a8   :  { %v1573_v42 = vpop.f32.mrb[60].mxu1 }
 0x2a9   :  { %v1574_v40 = vpop.f32.mrb[61].mxu1 }
 0x2aa   :  { %v1575_v18 = vpop.f32.mrb[62].mxu1  ;;  %v21283_v40 = vld [vmem:[%s29487_s3 + $0x540] ss:$8 sps:$4 sm:$0xff]  }
 0x2ab   :  { %v1576_v23 = vpop.f32.mrb[63].mxu1 }
 0x2ac   :  { %v21286_v23 = vld [vmem:[%s29487_s3 + $0x550] ss:$8 sps:$4 sm:$0xff]  }
 0x2ad   :  { %17381 = vmatmul.mubr.msk.bf16.vlgmr.msra.gmra.mrb[16].mxu1 %vm46_vm0, %v2396_v60  ;;  %v21289_v60 = vld [vmem:[%s29487_s3 + $0x560] ss:$8 sps:$4 sm:$0xff]  }
 0x2ae   :  { %2644 = vmatpush1.bf16.msra.mxu1 %v21271_v34  ;;  %2507 = vmatprep.mubr.bf16.mxu1 %v24073_v15 }
 0x2af   :  { %2645 = vmatprep.subr.bf16.mxu1 %v21276_v5  ;;  %v21291_v5 = vld [vmem:[%s29487_s3 + $0x564] ss:$8 sps:$4 sm:$0xff]  }
 0x2b2   :  { %2646 = vmatpush1.bf16.msra.mxu1 %v21274_v13  ;;  %v21292_v13 = vld [vmem:[%s29487_s3 + $0x570] ss:$8 sps:$4 sm:$0xff]  }
 0x2b3   :  { %2647 = vmatprep.subr.bf16.mxu1 %v21279_v54  ;;  %v21297_v54 = vld [vmem:[%s29487_s3 + $0x5c4] ss:$8 sps:$4 sm:$0xff]  }
 0x2b5   :  { %17382 = vmatmul.mubr.msk.bf16.gmra.mrb[20].mxu1 %vm46_vm0, %v23973_v47  ;;  %v2403_v47 = vrot.slane %v24192_v57, 5 }
 0x2b6   :  { %2517 = vmatprep.mubr.bf16.mxu1 %v24073_v15  ;;  %2648 = vmatpush1.bf16.msra.mxu1 %v21277_v62 }
 0x2b7   :  { %2649 = vmatprep.subr.bf16.mxu1 %v21282_v12  ;;  %v2404_v59 = vsel %vm668_vm3, %v23985_v50, %v2403_v47  ;;  %v2406_v35 = vsel %vm668_vm3, %v2403_v47, %v2405_v9 }
 0x2ba   :  { %2650 = vmatpush1.bf16.msra.mxu1 %v21280_v51  ;;  %v23136_v51 = vld [vmem:[#allocation2 + $0x38] sm:$0xf] }
 0x2bb   :  { %2853 = vmatprep.subr.bf16.mxu1 %v21285_v25  ;;  %v2583_v25 = vrot.slane %v23136_v51, 6 }
 0x2bd   :  { %17383 = vmatmul.mubr.msk.bf16.gmra.mrb[96].mxu1 %vm46_vm0, %v23980_v56 }
 0x2be   :  { %2523 = vmatprep.mubr.bf16.mxu1 %v24073_v15 }
 0x2c5   :  { %17384 = vmatmul.mubr.msk.bf16.gmra.mrb[100].mxu1 %vm46_vm0, %v23989_v1  ;;  %v2560_v1 = vld [vmem:[#allocation2 + $0x8] sm:$0xc0] }
 0x2c6   :  { %2529 = vmatprep.mubr.bf16.mxu1 %v24073_v15  ;;  %v2572_v18 = vrot.slane %v2560_v1, 6  ;;  %v2762_v1 = vor.u32 %v23658_v6, %v2758_v52 }
 0x2c8   :  { %v2574_v20 = vsel %vm666_vm2, %v2572_v18, %v24014_v21  ;;  %v21294_v21 = vld [vmem:[%s29487_s3 + $0x574] ss:$8 sps:$4 sm:$0xff]   ;;  %v21304_v18 = vld [vmem:[%s29487_s3 + $0x5f0] ss:$8 sps:$4 sm:$0xff]  }
 0x2cd   :  { %17385 = vmatmul.mubr.msk.bf16.gmra.mrb[32].mxu1 %vm46_vm0, %v2404_v59 }
 0x2ce   :  { %2539 = vmatprep.mubr.bf16.mxu1 %v24073_v15 }
 0x2d0   :  { %v1746_v58 = vpop.f32.mrb[64].mxu1 }
 0x2d1   :  { %v1747_v56 = vpop.f32.mrb[65].mxu1 }
 0x2d2   :  { %v1748_v55 = vpop.f32.mrb[66].mxu1  ;;  %v21295_v56 = vld [vmem:[%s29487_s3 + $0x5c0] ss:$8 sps:$4 sm:$0xff]  }
 0x2d3   :  { %v1749_v36 = vpop.f32.mrb[67].mxu1 }
 0x2d4   :  { %v21300_v36 = vld [vmem:[%s29487_s3 + $0x5d4] ss:$8 sps:$4 sm:$0xff]  }
 0x2d5   :  { %17386 = vmatmul.mubr.msk.bf16.gmra.mrb[36].mxu1 %vm46_vm0, %v2406_v35  ;;  %v2759_v35 = vsel %vm841_vm6, %v23601_v10, %v2758_v52  ;;  %v21301_v10 = vld [vmem:[%s29487_s3 + $0x5e0] ss:$8 sps:$4 sm:$0xff]  }
 0x2d6   :  { %2675 = vmatprep.mubr.bf16.mxu1 %v24073_v15 }
 0x2d8   :  { %v1752_v28 = vpop.f32.mrb[68].mxu1 }
 0x2d9   :  { %v1753_v42 = vpop.f32.mrb[69].mxu1  ;;  %v21298_v28 = vld [vmem:[%s29487_s3 + $0x5d0] ss:$8 sps:$4 sm:$0xff]  }
 0x2da   :  { %v1754_v50 = vpop.f32.mrb[70].mxu1  ;;  %v21303_v42 = vld [vmem:[%s29487_s3 + $0x5e4] ss:$8 sps:$4 sm:$0xff]  }
 0x2db   :  { %v1755_v34 = vpop.f32.mrb[71].mxu1  ;;  %v2767_v50 = vsel %vm841_vm6, %v2762_v1, %v23616_v26  ;;  %v21309_v26 = vld [vmem:[%s29487_s3 + $0x604] ss:$8 sps:$4 sm:$0xff]   ;;  %v21318_v1 = vld [vmem:[%s29487_s3 + $0x634] ss:$8 sps:$4 sm:$0xff]  }
 0x2dc   :  { %v2738_v34 = vld [vmem:[#allocation2 + $0x38] sm:$0x7f] }
 0x2dd   :  { %17411 = vmatmul.mubr.msk.bf16.vlgmr.msra.gmra.mrb[16].mxu1 %vm46_vm0, %v2574_v20 }
 0x2de   :  { %2854 = vmatpush1.bf16.msra.mxu1 %v21283_v40  ;;  %2685 = vmatprep.mubr.bf16.mxu1 %v24073_v15  ;;  %v21306_v40 = vld [vmem:[%s29487_s3 + $0x5f4] ss:$8 sps:$4 sm:$0xff]  }
 0x2df   :  { %2855 = vmatprep.subr.bf16.mxu1 %v21288_v8  ;;  %v29507_v8 = vrot.slane %v23668_v16, 1 }
 0x2e1   :  { %v2783_v20 = vsel %vm841_vm6, %v23646_v49, %v29507_v8 }
 0x2e2   :  { %2856 = vmatpush1.bf16.msra.mxu1 %v21286_v23  ;;  %v2788_v23 = vshll.u32 %v2738_v34, 16 }
 0x2e3   :  { %2857 = vmatprep.subr.bf16.mxu1 %v21291_v5 }
 0x2e4   :  { %v2790_v5 = vrot.slane %v2788_v23, 1 }
 0x2e5   :  { %17412 = vmatmul.mubr.msk.bf16.gmra.mrb[20].mxu1 %vm46_vm0, %v24034_v0  ;;  %v2581_v0 = vrot.slane %v24192_v57, 6 }
 0x2e6   :  { %2695 = vmatprep.mubr.bf16.mxu1 %v24073_v15  ;;  %2858 = vmatpush1.bf16.msra.mxu1 %v21289_v60  ;;  %v2791_v60 = vsel %vm841_vm6, %v23685_v31, %v2790_v5 }
 0x2e7   :  { %2859 = vmatprep.subr.bf16.mxu1 %v21294_v21  ;;  %v2582_v62 = vsel %vm666_vm2, %v24046_v38, %v2581_v0  ;;  %v2584_v58 = vsel %vm666_vm2, %v2581_v0, %v2583_v25  ;;  %v2938_v21 = vld [vmem:[#allocation2 + $0x10] sm:$0xfe] }
 0x2e8   :  { %v2959_v16 = vshrl.u32 %v2938_v21, 16 }
 0x2ea   :  { %2860 = vmatpush1.bf16.msra.mxu1 %v21292_v13  ;;  %v2961_v51 = vrot.slane %v2959_v16, 1  ;;  %v21319_v16 = vld [vmem:[%s29487_s3] ss:$8 sps:$4 sm:$0xff]  }
 0x2eb   :  { %3049 = vmatprep.subr.bf16.mxu1 %v21297_v54  ;;  %v2962_v54 = vshll.u32 %v2938_v21, 16 }
 0x2ed   :  { %17413 = vmatmul.mubr.msk.bf16.gmra.mrb[104].mxu1 %vm46_vm0, %v24041_v27  ;;  %v2964_v25 = vrot.slane %v2962_v54, 2 }
 0x2ee   :  { %2701 = vmatprep.mubr.bf16.mxu1 %v24073_v15 }
 0x2f5   :  { %17414 = vmatmul.mubr.msk.bf16.gmra.mrb[108].mxu1 %vm46_vm0, %v24050_v19 }
 0x2f6   :  { %2707 = vmatprep.mubr.bf16.mxu1 %v24073_v15 }
 0x2fd   :  { %17415 = vmatmul.mubr.msk.bf16.gmra.mrb[32].mxu1 %vm46_vm0, %v2582_v62 }
 0x2fe   :  { %2717 = vmatprep.mubr.bf16.mxu1 %v24073_v15 }
 0x300   :  { %v1956_v12 = vpop.f32.mrb[72].mxu1 }
 0x301   :  { %v1957_v27 = vpop.f32.mrb[73].mxu1 }
 0x302   :  { %v1958_v47 = vpop.f32.mrb[74].mxu1  ;;  %v2966_v27 = vrot.slane %v23658_v6, 1  ;;  %v21312_v6 = vld [vmem:[%s29487_s3 + $0x614] ss:$8 sps:$4 sm:$0xff]  }
 0x303   :  { %v1959_v59 = vpop.f32.mrb[75].mxu1  ;;  %v2967_v47 = vrot.slane %v23655_v7, 2 }
 0x304   :  { %v2965_v59 = vor.u32 %v2964_v25, %v2961_v51  ;;  %v24413_v51 = vld [vmem:[#allocation2 + $0x20] sm:$0xff] }
 0x305   :  { %17416 = vmatmul.mubr.msk.bf16.gmra.mrb[36].mxu1 %vm46_vm0, %v2584_v58  ;;  %v2968_v58 = vor.u32 %v2967_v47, %v2966_v27  ;;  %v3150_v25 = vrot.slane %v24413_v51, 2  ;;  %v21325_v47 = vld [vmem:[%s29487_s3 + $0x20] ss:$8 sps:$4 sm:$0xff]  }
 0x306   :  { %2885 = vmatprep.mubr.bf16.mxu1 %v24073_v15 }
 0x307   :  { %v2969_v7 = vsel %vm1052_vm7, %v2965_v59, %v2968_v58  ;;  %v21328_v59 = vld [vmem:[%s29487_s3 + $0x30] ss:$8 sps:$4 sm:$0xff]  }
 0x308   :  { %v1962_v19 = vpop.f32.mrb[76].mxu1 }
 0x309   :  { %v1963_v38 = vpop.f32.mrb[77].mxu1 }
 0x30a   :  { %v1964_v9 = vpop.f32.mrb[78].mxu1  ;;  %v21307_v38 = vld [vmem:[%s29487_s3 + $0x600] ss:$8 sps:$4 sm:$0xff]  }
 0x30b   :  { %v1965_v55 = vpop.f32.mrb[79].mxu1 }
 0x30c   :  { %v21315_v55 = vld [vmem:[%s29487_s3 + $0x624] ss:$8 sps:$4 sm:$0xff]  }
 0x30d   :  { %17441 = vmatmul.mubr.msk.bf16.vlgmr.msra.gmra.mrb[16].mxu1 %vm46_vm0, %v2759_v35  ;;  %v21313_v35 = vld [vmem:[%s29487_s3 + $0x620] ss:$8 sps:$4 sm:$0xff]  }
 0x30e   :  { %3050 = vmatpush1.bf16.msra.mxu1 %v21295_v56  ;;  %2895 = vmatprep.mubr.bf16.mxu1 %v24073_v15  ;;  %v21310_v56 = vld [vmem:[%s29487_s3 + $0x610] ss:$8 sps:$4 sm:$0xff]  }
 0x30f   :  { %3051 = vmatprep.subr.bf16.mxu1 %v21300_v36  ;;  %v2973_v36 = vsel %vm1052_vm7, %v2968_v58, %v23832_v43  ;;  %v21321_v43 = vld [vmem:[%s29487_s3 + $0x4] ss:$8 sps:$4 sm:$0xff]  }
 0x310   :  { %v21333_v58 = vld [vmem:[%s29487_s3 + $0x84] ss:$8 sps:$4 sm:$0xff]  }
 0x312   :  { %3052 = vmatpush1.bf16.msra.mxu1 %v21298_v28  ;;  %v21316_v28 = vld [vmem:[%s29487_s3 + $0x630] ss:$8 sps:$4 sm:$0xff]  }
 0x313   :  { %3053 = vmatprep.subr.bf16.mxu1 %v21303_v42  ;;  %v24376_v42 = vld [vmem:[#allocation2 + $0x38] sm:$0xff] }
 0x315   :  { %17442 = vmatmul.mubr.msk.bf16.gmra.mrb[20].mxu1 %vm46_vm0, %v2767_v50  ;;  %v2983_v50 = vshrl.u32 %v24376_v42, 16 }
 0x316   :  { %2905 = vmatprep.mubr.bf16.mxu1 %v24073_v15  ;;  %3054 = vmatpush1.bf16.msra.mxu1 %v21301_v10  ;;  %v2986_v10 = vshll.u32 %v24376_v42, 16 }
 0x317   :  { %3055 = vmatprep.subr.bf16.mxu1 %v21306_v40  ;;  %v2985_v40 = vrot.slane %v2983_v50, 1 }
 0x31a   :  { %3056 = vmatpush1.bf16.msra.mxu1 %v21304_v18  ;;  %v2988_v18 = vrot.slane %v2986_v10, 2  ;;  %v21336_v10 = vld [vmem:[%s29487_s3 + $0x94] ss:$8 sps:$4 sm:$0xff]  }
 0x31b   :  { %3216 = vmatprep.subr.bf16.mxu1 %v21309_v26 }
 0x31c   :  { %v2989_v26 = vor.u32 %v2988_v18, %v2985_v40  ;;  %v23141_v40 = vld [vmem:[#allocation2] sm:$0xff]  ;;  %v21334_v18 = vld [vmem:[%s29487_s3 + $0x90] ss:$8 sps:$4 sm:$0xff]  }
 0x31d   :  { %17443 = vmatmul.mubr.msk.bf16.gmra.mrb[112].mxu1 %vm46_vm0, %v23643_v48  ;;  %v2792_v48 = vshrl.u32 %v2738_v34, 16 }
 0x31e   :  { %2911 = vmatprep.mubr.bf16.mxu1 %v24073_v15  ;;  %v2990_v34 = vsel %vm1052_vm7, %v24142_v44, %v2989_v26 }
 0x31f   :  { %v2794_v49 = vor.u32 %v2792_v48, %v2790_v5  ;;  %v3134_v5 = vld [vmem:[#allocation2 + $0x10] sm:$0xfc]  ;;  %v24390_v48 = vld [vmem:[#allocation2 + $0x18] sm:$0xff] }
 0x320   :  { %v24393_v21 = vrot.slane %v24390_v48, 2 }
 0x322   :  { %v24418_v27 = vsel %vm3146_vm12, %v24393_v21, %v3150_v25 }
 0x325   :  { %17444 = vmatmul.mubr.msk.bf16.gmra.mrb[116].mxu1 %vm46_vm0, %v2783_v20 }
 0x326   :  { %2917 = vmatprep.mubr.bf16.mxu1 %v24073_v15 }
 0x32d   :  { %17445 = vmatmul.mubr.msk.bf16.gmra.mrb[32].mxu1 %vm46_vm0, %v2791_v60  ;;  %v3147_v60 = vrot.slane %v3134_v5, 2  ;;  %v24496_v5 = vld [vmem:[#allocation2 + $0x10] sm:$0xff] }
 0x32e   :  { %2927 = vmatprep.mubr.bf16.mxu1 %v24073_v15 }
 0x330   :  { %v2152_v13 = vpop.f32.mrb[80].mxu1 }
 0x331   :  { %v2153_v0 = vpop.f32.mrb[81].mxu1 }
 0x332   :  { %v2154_v62 = vpop.f32.mrb[82].mxu1  ;;  %v21324_v0 = vld [vmem:[%s29487_s3 + $0x14] ss:$8 sps:$4 sm:$0xff]  }
 0x333   :  { %v2155_v12 = vpop.f32.mrb[83].mxu1  ;;  %v21322_v62 = vld [vmem:[%s29487_s3 + $0x10] ss:$8 sps:$4 sm:$0xff]  }
 0x334   :  { %v21327_v12 = vld [vmem:[%s29487_s3 + $0x24] ss:$8 sps:$4 sm:$0xff]  }
 0x335   :  { %17446 = vmatmul.mubr.msk.bf16.gmra.mrb[36].mxu1 %vm46_vm0, %v2794_v49  ;;  %v24404_v49 = vld [vmem:[#allocation3] sm:$0xff] }
 0x336   :  { %3081 = vmatprep.mubr.bf16.mxu1 %v24073_v15 }
 0x338   :  { %v2158_v31 = vpop.f32.mrb[84].mxu1 }
 0x339   :  { %v2159_v19 = vpop.f32.mrb[85].mxu1  ;;  %v21330_v31 = vld [vmem:[%s29487_s3 + $0x34] ss:$8 sps:$4 sm:$0xff]  }
 0x33a   :  { %v2160_v52 = vpop.f32.mrb[86].mxu1  ;;  %v24435_v19 = vld [vmem:[#allocation2 + $0x28] sm:$0xff] }
 0x33b   :  { %v2161_v9 = vpop.f32.mrb[87].mxu1  ;;  %v24438_v52 = vrot.slane %v24435_v19, 2 }
 0x33c   :  { %v24448_v9 = vrot.slane %v24192_v57, 2 }
 0x33d   :  { %17471 = vmatmul.mubr.msk.bf16.vlgmr.msra.gmra.mrb[16].mxu1 %vm46_vm0, %v2969_v7  ;;  %v3156_v7 = vrot.slane %v24376_v42, 2  ;;  %v21331_v42 = vld [vmem:[%s29487_s3 + $0x80] ss:$8 sps:$4 sm:$0xff]  }
 0x33e   :  { %3217 = vmatpush1.bf16.msra.mxu1 %v21307_v38  ;;  %3091 = vmatprep.mubr.bf16.mxu1 %v24073_v15  ;;  %v24442_v38 = vsel %vm3146_vm12, %v3150_v25, %v24438_v52 }
 0x33f   :  { %3218 = vmatprep.subr.bf16.mxu1 %v21312_v6  ;;  %v24453_v6 = vsel %vm3146_vm12, %v24438_v52, %v24448_v9 }
 0x342   :  { %3219 = vmatpush1.bf16.msra.mxu1 %v21310_v56  ;;  %v3157_v56 = vsel %vm3146_vm12, %v24448_v9, %v3156_v7 }
 0x343   :  { %3220 = vmatprep.subr.bf16.mxu1 %v21315_v55 }
 0x345   :  { %17472 = vmatmul.mubr.msk.bf16.gmra.mrb[20].mxu1 %vm46_vm0, %v2973_v36 }
 0x346   :  { %3101 = vmatprep.mubr.bf16.mxu1 %v24073_v15  ;;  %3221 = vmatpush1.bf16.msra.mxu1 %v21313_v35 }
 0x347   :  { %3222 = vmatprep.subr.bf16.mxu1 %v21318_v1 }
 0x34a   :  { %3223 = vmatpush1.bf16.msra.mxu1 %v21316_v28 }
 0x34b   :  { %3354 = vmatprep.subr.bf16.mxu1 %v21321_v43 }
 0x34d   :  { %17473 = vmatmul.mubr.msk.bf16.gmra.mrb[120].mxu1 %vm46_vm0, %v23858_v32 }
 0x34e   :  { %3107 = vmatprep.mubr.bf16.mxu1 %v24073_v15 }
 0x355   :  { %17474 = vmatmul.mubr.msk.bf16.gmra.mrb[124].mxu1 %vm46_vm0, %v24147_v46 }
 0x356   :  { %3113 = vmatprep.mubr.bf16.mxu1 %v24073_v15 }
 0x35d   :  { %17475 = vmatmul.mubr.msk.bf16.gmra.mrb[32].mxu1 %vm46_vm0, %v2990_v34  ;;  %v21337_v34 = vld [vmem:[%s29487_s3 + $0xa0] ss:$8 sps:$4 sm:$0xff]  }
 0x35e   :  { %3123 = vmatprep.mubr.bf16.mxu1 %v24073_v15 }
 0x360   :  { %v2341_v32 = vpop.f32.mrb[88].mxu1 }
 0x361   :  { %v2342_v8 = vpop.f32.mrb[89].mxu1  ;;  %v21342_v32 = vld [vmem:[%s29487_s3 + $0xb4] ss:$8 sps:$4 sm:$0xff]  }
 0x362   :  { %v2343_v20 = vpop.f32.mrb[90].mxu1  ;;  %v24485_v8 = vld [vmem:[#allocation2 + $0x8] sm:$0xff] }
 0x363   :  { %v2344_v23 = vpop.f32.mrb[91].mxu1  ;;  %v21340_v20 = vld [vmem:[%s29487_s3 + $0xb0] ss:$8 sps:$4 sm:$0xff]  }
 0x364   :  { %v21345_v23 = vld [vmem:[%s29487_s3 + $0x104] ss:$8 sps:$4 sm:$0xff]  }
 0x365   :  { %17476 = vmatmul.mubr.msk.bf16.gmra.mrb[36].mxu1 %vm46_vm0, %v2989_v26  ;;  %v21339_v26 = vld [vmem:[%s29487_s3 + $0xa4] ss:$8 sps:$4 sm:$0xff]  }
 0x366   :  { %3248 = vmatprep.mubr.bf16.mxu1 %v24073_v15  ;;  %v3149_v15 = vsel %vm3146_vm12, %v3147_v60, %v24393_v21 }
 0x368   :  { %v2347_v46 = vpop.f32.mrb[92].mxu1 }
 0x369   :  { %v2348_v44 = vpop.f32.mrb[93].mxu1  ;;  %v24510_v46 = vsel %vm3756_vm8, %v23456_v63, %v23475_v22  ;;  %v21343_v63 = vld [vmem:[%s29487_s3 + $0x100] ss:$8 sps:$4 sm:$0xff]  }
 0x36a   :  { %v2349_v13 = vpop.f32.mrb[94].mxu1 }
 0x36b   :  { %v2350_v54 = vpop.f32.mrb[95].mxu1 }
 0x36c   :  { %v822_v54 = vld [vmem:[#allocation2 + $0x28] sm:$0x3f] }
 0x36d   :  { %17493 = vmatmul.mubr.msk.bf16.vlgmr.msra.gmra.mrb[16].mxu1 %vm46_vm0, %v3149_v15  ;;  %v23144_v15 = vld [vmem:[#allocation2] sm:$0xfe] }
 0x36e   :  { %3355 = vmatpush1.bf16.msra.mxu1 %v21319_v16  ;;  %3258 = vmatprep.mubr.bf16.mxu1 %v24404_v49 }
 0x36f   :  { %3356 = vmatprep.subr.bf16.mxu1 %v21324_v0 }
 0x372   :  { %3357 = vmatpush1.bf16.msra.mxu1 %v21322_v62  ;;  %v3446_v62 = vrot.slane %v23144_v15, 1  ;;  %v21360_v15 = vld [vmem:[%s29487_s3 + $0x194] ss:$8 sps:$4 sm:$0xff]  }
 0x373   :  { %3358 = vmatprep.subr.bf16.mxu1 %v21327_v12  ;;  %v3447_v12 = vrot.slane %v24485_v8, 1 }
 0x375   :  { %17494 = vmatmul.mubr.msk.bf16.gmra.mrb[20].mxu1 %vm46_vm0, %v24418_v27 }
 0x376   :  { %3268 = vmatprep.mubr.bf16.mxu1 %v24404_v49  ;;  %3359 = vmatpush1.bf16.msra.mxu1 %v21325_v47 }
 0x377   :  { %3360 = vmatprep.subr.bf16.mxu1 %v21330_v31 }
 0x37a   :  { %3361 = vmatpush1.bf16.msra.mxu1 %v21328_v59  ;;  %v21348_v59 = vld [vmem:[%s29487_s3 + $0x114] ss:$8 sps:$4 sm:$0xff]  }
 0x37b   :  { %3515 = vmatprep.subr.bf16.mxu1 %v21333_v58  ;;  %v3448_v58 = vsel %vm3445_vm10, %v3446_v62, %v3447_v12 }
 0x37d   :  { %17495 = vmatmul.mubr.msk.bf16.gmra.mrb[128].mxu1 %vm46_vm0, %v24442_v38 }
 0x37e   :  { %3274 = vmatprep.mubr.bf16.mxu1 %v24404_v49 }
 0x385   :  { %17496 = vmatmul.mubr.msk.bf16.gmra.mrb[132].mxu1 %vm46_vm0, %v24453_v6 }
 0x386   :  { %3280 = vmatprep.mubr.bf16.mxu1 %v24404_v49 }
 0x38d   :  { %17497 = vmatmul.mubr.msk.bf16.gmra.mrb[32].mxu1 %vm46_vm0, %v3157_v56  ;;  %v21351_v56 = vld [vmem:[%s29487_s3 + $0x124] ss:$8 sps:$4 sm:$0xff]  }
 0x38e   :  { %3290 = vmatprep.mubr.bf16.mxu1 %v24404_v49 }
 0x390   :  { %v2519_v57 = vpop.f32.mrb[96].mxu1 }
 0x391   :  { %v2520_v55 = vpop.f32.mrb[97].mxu1  ;;  %v21349_v57 = vld [vmem:[%s29487_s3 + $0x120] ss:$8 sps:$4 sm:$0xff]  }
 0x392   :  { %v2521_v36 = vpop.f32.mrb[98].mxu1  ;;  %v21354_v55 = vld [vmem:[%s29487_s3 + $0x134] ss:$8 sps:$4 sm:$0xff]  }
 0x393   :  { %v2522_v35 = vpop.f32.mrb[99].mxu1  ;;  %v3450_v36 = vsel %vm3445_vm10, %v3447_v12, %v23694_v45  ;;  %v21358_v12 = vld [vmem:[%s29487_s3 + $0x190] ss:$8 sps:$4 sm:$0xff]  }
 0x394   :  { %v21352_v35 = vld [vmem:[%s29487_s3 + $0x130] ss:$8 sps:$4 sm:$0xff]  }
 0x395   :  { %17498 = vmatmul.mubr.msk.bf16.gmra.mrb[36].mxu1 %vm46_vm0, %v3156_v7  ;;  %v21346_v7 = vld [vmem:[%s29487_s3 + $0x110] ss:$8 sps:$4 sm:$0xff]  }
 0x396   :  { %3386 = vmatprep.mubr.bf16.mxu1 %v24404_v49 }
 0x398   :  { %v2525_v1 = vpop.f32.mrb[100].mxu1 }
 0x399   :  { %v2526_v28 = vpop.f32.mrb[101].mxu1  ;;  %v21357_v1 = vld [vmem:[%s29487_s3 + $0x184] ss:$8 sps:$4 sm:$0xff]  }
 0x39a   :  { %v2527_v43 = vpop.f32.mrb[102].mxu1  ;;  %v24547_v28 = vrot.slane %v24390_v48, 1 }
 0x39b   :  { %v2528_v50 = vpop.f32.mrb[103].mxu1 }
 0x39c   :  { %v24552_v43 = vsel %vm3445_vm10, %v23694_v45, %v24547_v28  ;;  %v23145_v45 = vld [vmem:[#allocation2 + $0x28] sm:$0x7f] }
 0x39d   :  { %17507 = vmatmul.mubr.msk.bf16.vlgmr.msra.gmra.mrb[16].mxu1 %vm46_vm0, %v23141_v40 }
 0x39e   :  { %3516 = vmatpush1.bf16.msra.mxu1 %v21331_v42  ;;  %3396 = vmatprep.mubr.bf16.mxu1 %v24404_v49  ;;  %v24558_v42 = vrot.slane %v24413_v51, 1 }
 0x39f   :  { %3517 = vmatprep.subr.bf16.mxu1 %v21336_v10  ;;  %v3455_v10 = vrot.slane %v23145_v45, 1 }
 0x3a0   :  { %v24563_v50 = vsel %vm3445_vm10, %v24547_v28, %v24558_v42 }
 0x3a1   :  { %v3456_v40 = vsel %vm3445_vm10, %v24558_v42, %v3455_v10 }
 0x3a2   :  { %3518 = vmatpush1.bf16.msra.mxu1 %v21334_v18  ;;  %v24575_v18 = vsel %vm3937_vm9, %v23460_v3, %v23479_v29  ;;  %v21355_v3 = vld [vmem:[%s29487_s3 + $0x180] ss:$8 sps:$4 sm:$0xff]  }
 0x3a3   :  { %3519 = vmatprep.subr.bf16.mxu1 %v21339_v26 }
 0x3a5   :  { %17508 = vmatmul.mubr.msk.bf16.gmra.mrb[20].mxu1 %vm46_vm0, %v24485_v8 }
 0x3a6   :  { %3406 = vmatprep.mubr.bf16.mxu1 %v24404_v49  ;;  %3520 = vmatpush1.bf16.msra.mxu1 %v21337_v34 }
 0x3a7   :  { %3521 = vmatprep.subr.bf16.mxu1 %v21342_v32 }
 0x3aa   :  { %3522 = vmatpush1.bf16.msra.mxu1 %v21340_v20 }
 0x3ab   :  { %3671 = vmatprep.subr.bf16.mxu1 %v21345_v23  ;;  %v1229_v23 = vld [vmem:[#allocation2] sm:$0xfc] }
 0x3ad   :  { %17509 = vmatmul.mubr.msk.bf16.gmra.mrb[136].mxu1 %vm46_vm0, %v24496_v5 }
 0x3ae   :  { %3412 = vmatprep.mubr.bf16.mxu1 %v24404_v49 }
 0x3b5   :  { %17510 = vmatmul.mubr.msk.bf16.gmra.mrb[140].mxu1 %vm46_vm0, %v24390_v48 }
 0x3b6   :  { %3418 = vmatprep.mubr.bf16.mxu1 %v24404_v49 }
 0x3bd   :  { %17511 = vmatmul.mubr.msk.bf16.gmra.mrb[32].mxu1 %vm46_vm0, %v24413_v51 }
 0x3be   :  { %3428 = vmatprep.mubr.bf16.mxu1 %v24404_v49 }
 0x3c0   :  { %v2697_v60 = vpop.f32.mrb[104].mxu1 }
 0x3c1   :  { %v2698_v44 = vpop.f32.mrb[105].mxu1 }
 0x3c2   :  { %v2699_v13 = vpop.f32.mrb[106].mxu1  ;;  %v3602_v44 = vrot.slane %v1229_v23, 2  ;;  %v21381_v23 = vld [vmem:[%s29487_s3 + $0x284] ss:$8 sps:$4 sm:$0xff]  }
 0x3c3   :  { %v2700_v16 = vpop.f32.mrb[107].mxu1  ;;  %v3603_v13 = vrot.slane %v24485_v8, 2 }
 0x3c5   :  { %17512 = vmatmul.mubr.msk.bf16.gmra.mrb[36].mxu1 %vm46_vm0, %v822_v54  ;;  %v3604_v62 = vsel %vm3146_vm12, %v3602_v44, %v3603_v13 }
 0x3c6   :  { %3547 = vmatprep.mubr.bf16.mxu1 %v24404_v49 }
 0x3c8   :  { %v2703_v0 = vpop.f32.mrb[108].mxu1 }
 0x3c9   :  { %v2704_v25 = vpop.f32.mrb[109].mxu1 }
 0x3ca   :  { %v2705_v47 = vpop.f32.mrb[110].mxu1  ;;  %v21363_v25 = vld [vmem:[%s29487_s3 + $0x1a4] ss:$8 sps:$4 sm:$0xff]  }
 0x3cb   :  { %v2706_v31 = vpop.f32.mrb[111].mxu1  ;;  %v24596_v47 = vrot.slane %v24496_v5, 2 }
 0x3cc   :  { %v21366_v31 = vld [vmem:[%s29487_s3 + $0x1b4] ss:$8 sps:$4 sm:$0xff]  }
 0x3cd   :  { %17521 = vmatmul.mubr.msk.bf16.vlgmr.msra.gmra.mrb[16].mxu1 %vm46_vm0, %v3448_v58  ;;  %v21364_v58 = vld [vmem:[%s29487_s3 + $0x1b0] ss:$8 sps:$4 sm:$0xff]  }
 0x3ce   :  { %3672 = vmatpush1.bf16.msra.mxu1 %v21343_v63  ;;  %3557 = vmatprep.mubr.bf16.mxu1 %v24404_v49  ;;  %v21361_v63 = vld [vmem:[%s29487_s3 + $0x1a0] ss:$8 sps:$4 sm:$0xff]  }
 0x3cf   :  { %3673 = vmatprep.subr.bf16.mxu1 %v21348_v59  ;;  %v3606_v59 = vsel %vm3146_vm12, %v3603_v13, %v24596_v47 }
 0x3d2   :  { %3674 = vmatpush1.bf16.msra.mxu1 %v21346_v7  ;;  %v21369_v7 = vld [vmem:[%s29487_s3 + $0x204] ss:$8 sps:$4 sm:$0xff]  }
 0x3d3   :  { %3675 = vmatprep.subr.bf16.mxu1 %v21351_v56  ;;  %v24617_v56 = vsel %vm3146_vm12, %v24596_v47, %v24393_v21 }
 0x3d5   :  { %17522 = vmatmul.mubr.msk.bf16.gmra.mrb[20].mxu1 %vm46_vm0, %v3450_v36 }
 0x3d6   :  { %3567 = vmatprep.mubr.bf16.mxu1 %v24404_v49  ;;  %3676 = vmatpush1.bf16.msra.mxu1 %v21349_v57 }
 0x3d7   :  { %3677 = vmatprep.subr.bf16.mxu1 %v21354_v55 }
 0x3da   :  { %3678 = vmatpush1.bf16.msra.mxu1 %v21352_v35 }
 0x3db   :  { %3852 = vmatprep.subr.bf16.mxu1 %v21357_v1 }
 0x3dd   :  { %17523 = vmatmul.mubr.msk.bf16.gmra.mrb[144].mxu1 %vm46_vm0, %v24552_v43 }
 0x3de   :  { %3573 = vmatprep.mubr.bf16.mxu1 %v24404_v49 }
 0x3e5   :  { %17524 = vmatmul.mubr.msk.bf16.gmra.mrb[148].mxu1 %vm46_vm0, %v24563_v50 }
 0x3e6   :  { %3579 = vmatprep.mubr.bf16.mxu1 %v24404_v49 }
 0x3ed   :  { %17525 = vmatmul.mubr.msk.bf16.gmra.mrb[32].mxu1 %vm46_vm0, %v3456_v40 }
 0x3ee   :  { %3589 = vmatprep.mubr.bf16.mxu1 %v24404_v49 }
 0x3f0   :  { %v2907_v26 = vpop.f32.mrb[112].mxu1 }
 0x3f1   :  { %v2908_v34 = vpop.f32.mrb[113].mxu1  ;;  %v21372_v26 = vld [vmem:[%s29487_s3 + $0x214] ss:$8 sps:$4 sm:$0xff]  }
 0x3f2   :  { %v2909_v32 = vpop.f32.mrb[114].mxu1  ;;  %v21375_v34 = vld [vmem:[%s29487_s3 + $0x224] ss:$8 sps:$4 sm:$0xff]  }
 0x3f3   :  { %v2910_v20 = vpop.f32.mrb[115].mxu1  ;;  %v21373_v32 = vld [vmem:[%s29487_s3 + $0x220] ss:$8 sps:$4 sm:$0xff]  }
 0x3f4   :  { %v21376_v20 = vld [vmem:[%s29487_s3 + $0x230] ss:$8 sps:$4 sm:$0xff]  }
 0x3f5   :  { %17526 = vmatmul.mubr.msk.bf16.gmra.mrb[36].mxu1 %vm46_vm0, %v3455_v10  ;;  %v21367_v10 = vld [vmem:[%s29487_s3 + $0x200] ss:$8 sps:$4 sm:$0xff]  }
 0x3f6   :  { %3703 = vmatprep.mubr.bf16.mxu1 %v24404_v49 }
 0x3f8   :  { %v2913_v60 = vpop.f32.mrb[116].mxu1 }
 0x3f9   :  { %v2914_v16 = vpop.f32.mrb[117].mxu1 }
 0x3fa   :  { %v2915_v54 = vpop.f32.mrb[118].mxu1 }
 0x3fb   :  { %v2916_v0 = vpop.f32.mrb[119].mxu1 }
 0x3fc   :  { %v21384_v0 = vld [vmem:[%s29487_s3 + $0x294] ss:$8 sps:$4 sm:$0xff]  }
 0x3fd   :  { %17535 = vmatmul.mubr.msk.bf16.vlgmr.msra.gmra.mrb[16].mxu1 %vm46_vm0, %v3604_v62  ;;  %v21385_v62 = vld [vmem:[%s29487_s3 + $0x2a0] ss:$8 sps:$4 sm:$0xff]  }
 0x3fe   :  { %3853 = vmatpush1.bf16.msra.mxu1 %v21355_v3  ;;  %3713 = vmatprep.mubr.bf16.mxu1 %v24404_v49 }
 0x3ff   :  { %3854 = vmatprep.subr.bf16.mxu1 %v21360_v15  ;;  %v21387_v15 = vld [vmem:[%s29487_s3 + $0x2a4] ss:$8 sps:$4 sm:$0xff]  }
 0x402   :  { %3855 = vmatpush1.bf16.msra.mxu1 %v21358_v12  ;;  %v21388_v12 = vld [vmem:[%s29487_s3 + $0x2b0] ss:$8 sps:$4 sm:$0xff]  }
 0x403   :  { %3856 = vmatprep.subr.bf16.mxu1 %v21363_v25  ;;  %v21393_v25 = vld [vmem:[%s29487_s3 + $0x304] ss:$8 sps:$4 sm:$0xff]  }
 0x405   :  { %17536 = vmatmul.mubr.msk.bf16.gmra.mrb[20].mxu1 %vm46_vm0, %v3606_v59 }
 0x406   :  { %3723 = vmatprep.mubr.bf16.mxu1 %v24404_v49  ;;  %3857 = vmatpush1.bf16.msra.mxu1 %v21361_v63 }
 0x407   :  { %3858 = vmatprep.subr.bf16.mxu1 %v21366_v31 }
 0x40a   :  { %3859 = vmatpush1.bf16.msra.mxu1 %v21364_v58 }
 0x40b   :  { %4033 = vmatprep.subr.bf16.mxu1 %v21369_v7 }
 0x40d   :  { %17537 = vmatmul.mubr.msk.bf16.gmra.mrb[152].mxu1 %vm46_vm0, %v24617_v56 }
 0x40e   :  { %3729 = vmatprep.mubr.bf16.mxu1 %v24404_v49 }
 0x415   :  { %17538 = vmatmul.mubr.msk.bf16.gmra.mrb[156].mxu1 %vm46_vm0, %v24418_v27 }
 0x416   :  { %3735 = vmatprep.mubr.bf16.mxu1 %v24404_v49 }
 0x41d   :  { %17539 = vmatmul.mubr.msk.bf16.gmra.mrb[32].mxu1 %vm46_vm0, %v24442_v38 }
 0x41e   :  { %3745 = vmatprep.mubr.bf16.mxu1 %v24404_v49 }
 0x420   :  { %v3103_v57 = vpop.f32.mrb[120].mxu1 }
 0x421   :  { %v3104_v55 = vpop.f32.mrb[121].mxu1 }
 0x422   :  { %v3105_v36 = vpop.f32.mrb[122].mxu1  ;;  %v21396_v55 = vld [vmem:[%s29487_s3 + $0x314] ss:$8 sps:$4 sm:$0xff]  }
 0x423   :  { %v3106_v21 = vpop.f32.mrb[123].mxu1  ;;  %v21399_v36 = vld [vmem:[%s29487_s3 + $0x324] ss:$8 sps:$4 sm:$0xff]  }
 0x424   :  { %v21397_v21 = vld [vmem:[%s29487_s3 + $0x320] ss:$8 sps:$4 sm:$0xff]  }
 0x425   :  { %17540 = vmatmul.mubr.msk.bf16.gmra.mrb[36].mxu1 %vm46_vm0, %v24438_v52  ;;  %v21370_v52 = vld [vmem:[%s29487_s3 + $0x210] ss:$8 sps:$4 sm:$0xff]  }
 0x426   :  { %3884 = vmatprep.mubr.bf16.mxu1 %v24404_v49 }
 0x428   :  { %v3109_v35 = vpop.f32.mrb[124].mxu1 }
 0x429   :  { %v3110_v1 = vpop.f32.mrb[125].mxu1  ;;  %v21400_v35 = vld [vmem:[%s29487_s3 + $0x330] ss:$8 sps:$4 sm:$0xff]  }
 0x42a   :  { %v3111_v45 = vpop.f32.mrb[126].mxu1  ;;  %v21405_v1 = vld [vmem:[%s29487_s3 + $0x384] ss:$8 sps:$4 sm:$0xff]  }
 0x42b   :  { %v3112_v40 = vpop.f32.mrb[127].mxu1  ;;  %v24754_v45 = vsel %vm3756_vm8, %v23773_v2, %v23475_v22  ;;  %v21403_v22 = vld [vmem:[%s29487_s3 + $0x380] ss:$8 sps:$4 sm:$0xff]  }
 0x42d   :  { %17549 = vmatmul.mubr.msk.bf16.vlgmr.msra.gmra.mrb[16].mxu1 %vm46_vm0, %v23717_v14  ;;  %v21378_v14 = vld [vmem:[%s29487_s3 + $0x234] ss:$8 sps:$4 sm:$0xff]  }
 0x42e   :  { %4034 = vmatpush1.bf16.msra.mxu1 %v21367_v10  ;;  %3894 = vmatprep.mubr.bf16.mxu1 %v24404_v49 }
 0x42f   :  { %4035 = vmatprep.subr.bf16.mxu1 %v21372_v26 }
 0x432   :  { %4036 = vmatpush1.bf16.msra.mxu1 %v21370_v52 }
 0x433   :  { %4037 = vmatprep.subr.bf16.mxu1 %v21375_v34  ;;  %v1777_v34 = vld [vmem:[#allocation2 + $0x30] sm:$0x3f] }
 0x435   :  { %17550 = vmatmul.mubr.msk.bf16.gmra.mrb[20].mxu1 %vm46_vm0, %v23729_v11 }
 0x436   :  { %3904 = vmatprep.mubr.bf16.mxu1 %v24404_v49  ;;  %4038 = vmatpush1.bf16.msra.mxu1 %v21373_v32 }
 0x437   :  { %4039 = vmatprep.subr.bf16.mxu1 %v21378_v14 }
 0x43a   :  { %4040 = vmatpush1.bf16.msra.mxu1 %v21376_v20 }
 0x43b   :  { %4171 = vmatprep.subr.bf16.mxu1 %v21381_v23  ;;  %v21408_v23 = vld [vmem:[%s29487_s3 + $0x394] ss:$8 sps:$4 sm:$0xff]  }
 0x43d   :  { %17551 = vmatmul.mubr.msk.bf16.gmra.mrb[160].mxu1 %vm46_vm0, %v23734_v37 }
 0x43e   :  { %3910 = vmatprep.mubr.bf16.mxu1 %v24404_v49 }
 0x445   :  { %17552 = vmatmul.mubr.msk.bf16.gmra.mrb[164].mxu1 %vm46_vm0, %v24510_v46  ;;  %v21379_v46 = vld [vmem:[%s29487_s3 + $0x280] ss:$8 sps:$4 sm:$0xff]  }
 0x446   :  { %3916 = vmatprep.mubr.bf16.mxu1 %v24404_v49 }
 0x44d   :  { %17553 = vmatmul.mubr.msk.bf16.gmra.mrb[32].mxu1 %vm46_vm0, %v23740_v39 }
 0x44e   :  { %3926 = vmatprep.mubr.bf16.mxu1 %v24404_v49 }
 0x450   :  { %v3270_v11 = vpop.f32.mrb[128].mxu1 }
 0x451   :  { %v3271_v60 = vpop.f32.mrb[129].mxu1  ;;  %v21406_v11 = vld [vmem:[%s29487_s3 + $0x390] ss:$8 sps:$4 sm:$0xff]  }
 0x452   :  { %v3272_v44 = vpop.f32.mrb[130].mxu1  ;;  %v21411_v60 = vld [vmem:[%s29487_s3 + $0x3a4] ss:$8 sps:$4 sm:$0xff]  }
 0x453   :  { %v3273_v13 = vpop.f32.mrb[131].mxu1  ;;  %v21409_v44 = vld [vmem:[%s29487_s3 + $0x3a0] ss:$8 sps:$4 sm:$0xff]  }
 0x454   :  { %v21412_v13 = vld [vmem:[%s29487_s3 + $0x3b0] ss:$8 sps:$4 sm:$0xff]  }
 0x455   :  { %17554 = vmatmul.mubr.msk.bf16.gmra.mrb[36].mxu1 %vm46_vm0, %v23756_v53  ;;  %v21382_v53 = vld [vmem:[%s29487_s3 + $0x290] ss:$8 sps:$4 sm:$0xff]  }
 0x456   :  { %4065 = vmatprep.mubr.bf16.mxu1 %v24404_v49 }
 0x458   :  { %v3276_v37 = vpop.f32.mrb[132].mxu1 }
 0x459   :  { %v3277_v16 = vpop.f32.mrb[133].mxu1  ;;  %v21417_v37 = vld [vmem:[%s29487_s3 + $0x404] ss:$8 sps:$4 sm:$0xff]  }
 0x45a   :  { %v3278_v54 = vpop.f32.mrb[134].mxu1 }
 0x45b   :  { %v3279_v3 = vpop.f32.mrb[135].mxu1  ;;  %v24808_v54 = vsel %vm3937_vm9, %v23798_v4, %v23479_v29 }
 0x45d   :  { %17563 = vmatmul.mubr.msk.bf16.vlgmr.msra.gmra.mrb[16].mxu1 %vm46_vm0, %v23749_v30  ;;  %v21390_v30 = vld [vmem:[%s29487_s3 + $0x2b4] ss:$8 sps:$4 sm:$0xff]  }
 0x45e   :  { %4172 = vmatpush1.bf16.msra.mxu1 %v21379_v46  ;;  %4075 = vmatprep.mubr.bf16.mxu1 %v24404_v49  ;;  %v23146_v46 = vld [vmem:[#allocation2 + $0x30] sm:$0x7f] }
 0x45f   :  { %4173 = vmatprep.subr.bf16.mxu1 %v21384_v0  ;;  %v4267_v3 = vrot.slane %v23146_v46, 1  ;;  %v21442_v46 = vld [vmem:[%s29487_s3 + $0x510] ss:$8 sps:$4 sm:$0xff]  }
 0x462   :  { %4174 = vmatpush1.bf16.msra.mxu1 %v21382_v53 }
 0x463   :  { %4175 = vmatprep.subr.bf16.mxu1 %v21387_v15 }
 0x465   :  { %17564 = vmatmul.mubr.msk.bf16.gmra.mrb[20].mxu1 %vm46_vm0, %v23759_v41 }
 0x466   :  { %4085 = vmatprep.mubr.bf16.mxu1 %v24404_v49  ;;  %4176 = vmatpush1.bf16.msra.mxu1 %v21385_v62 }
 0x467   :  { %4177 = vmatprep.subr.bf16.mxu1 %v21390_v30  ;;  %v2183_v30 = vld [vmem:[#allocation2 + $0x8] sm:$0xfc] }
 0x46a   :  { %4178 = vmatpush1.bf16.msra.mxu1 %v21388_v12 }
 0x46b   :  { %4327 = vmatprep.subr.bf16.mxu1 %v21393_v25  ;;  %v21415_v25 = vld [vmem:[%s29487_s3 + $0x400] ss:$8 sps:$4 sm:$0xff]  }
 0x46d   :  { %17565 = vmatmul.mubr.msk.bf16.gmra.mrb[168].mxu1 %vm46_vm0, %v23763_v61 }
 0x46e   :  { %4091 = vmatprep.mubr.bf16.mxu1 %v24404_v49 }
 0x475   :  { %17566 = vmatmul.mubr.msk.bf16.gmra.mrb[172].mxu1 %vm46_vm0, %v24575_v18  ;;  %v21391_v18 = vld [vmem:[%s29487_s3 + $0x300] ss:$8 sps:$4 sm:$0xff]  }
 0x476   :  { %4097 = vmatprep.mubr.bf16.mxu1 %v24404_v49 }
 0x47d   :  { %17567 = vmatmul.mubr.msk.bf16.gmra.mrb[32].mxu1 %vm46_vm0, %v23779_v33 }
 0x47e   :  { %4107 = vmatprep.mubr.bf16.mxu1 %v24404_v49 }
 0x480   :  { %v3408_v41 = vpop.f32.mrb[136].mxu1 }
 0x481   :  { %v3409_v63 = vpop.f32.mrb[137].mxu1  ;;  %v4414_v41 = vrot.slane %v2183_v30, 2  ;;  %v29514_v30 = vld [vmem:[#allocation14_spill] sm:$0xff] }
 0x482   :  { %v3410_v31 = vpop.f32.mrb[138].mxu1 }
 0x483   :  { %v3411_v59 = vpop.f32.mrb[139].mxu1  ;;  %v21420_v31 = vld [vmem:[%s29487_s3 + $0x414] ss:$8 sps:$4 sm:$0xff]  }
 0x484   :  { %v4416_v59 = vsel %vm3146_vm12, %v4414_v41, %v24596_v47  ;;  %v21426_v47 = vld [vmem:[%s29487_s3 + $0x434] ss:$8 sps:$4 sm:$0xff]  }
 0x485   :  { %17568 = vmatmul.mubr.msk.bf16.gmra.mrb[36].mxu1 %vm46_vm0, %v23785_v17  ;;  %v21394_v17 = vld [vmem:[%s29487_s3 + $0x310] ss:$8 sps:$4 sm:$0xff]  }
 0x486   :  { %4203 = vmatprep.mubr.bf16.mxu1 %v24404_v49  ;;  %v29515_v41 = vld [vmem:[#allocation16_spill] sm:$0xff] }
 0x488   :  { %v3414_v61 = vpop.f32.mrb[140].mxu1 }
 0x489   :  { %v3415_v58 = vpop.f32.mrb[141].mxu1  ;;  %v21418_v61 = vld [vmem:[%s29487_s3 + $0x410] ss:$8 sps:$4 sm:$0xff]  }
 0x48a   :  { %v3416_v7 = vpop.f32.mrb[142].mxu1  ;;  %v21423_v58 = vld [vmem:[%s29487_s3 + $0x424] ss:$8 sps:$4 sm:$0xff]  }
 0x48b   :  { %v3417_v57 = vpop.f32.mrb[143].mxu1  ;;  %v21421_v7 = vld [vmem:[%s29487_s3 + $0x420] ss:$8 sps:$4 sm:$0xff]  }
 0x48c   :  { %v21429_v57 = vld [vmem:[%s29487_s3 + $0x484] ss:$8 sps:$4 sm:$0xff]  }
 0x48d   :  { %17577 = vmatmul.mubr.msk.bf16.vlgmr.msra.gmra.mrb[16].mxu1 %vm46_vm0, %v24485_v8  ;;  %v21402_v8 = vld [vmem:[%s29487_s3 + $0x334] ss:$8 sps:$4 sm:$0xff]  }
 0x48e   :  { %4328 = vmatpush1.bf16.msra.mxu1 %v21391_v18  ;;  %4213 = vmatprep.mubr.bf16.mxu1 %v24404_v49  ;;  %v21424_v18 = vld [vmem:[%s29487_s3 + $0x430] ss:$8 sps:$4 sm:$0xff]  }
 0x48f   :  { %4329 = vmatprep.subr.bf16.mxu1 %v21396_v55 }
 0x492   :  { %4330 = vmatpush1.bf16.msra.mxu1 %v21394_v17 }
 0x493   :  { %4331 = vmatprep.subr.bf16.mxu1 %v21399_v36 }
 0x495   :  { %17578 = vmatmul.mubr.msk.bf16.gmra.mrb[20].mxu1 %vm46_vm0, %v24496_v5 }
 0x496   :  { %4223 = vmatprep.mubr.bf16.mxu1 %v24404_v49  ;;  %4332 = vmatpush1.bf16.msra.mxu1 %v21397_v21 }
 0x497   :  { %4333 = vmatprep.subr.bf16.mxu1 %v21402_v8 }
 0x49a   :  { %4334 = vmatpush1.bf16.msra.mxu1 %v21400_v35 }
 0x49b   :  { %4483 = vmatprep.subr.bf16.mxu1 %v21405_v1  ;;  %v29508_v1 = vld [vmem:[#allocation10_spill] sm:$0xff] }
 0x49d   :  { %17579 = vmatmul.mubr.msk.bf16.gmra.mrb[176].mxu1 %vm46_vm0, %v24390_v48 }
 0x49e   :  { %4229 = vmatprep.mubr.bf16.mxu1 %v24404_v49 }
 0x4a5   :  { %17580 = vmatmul.mubr.msk.bf16.gmra.mrb[180].mxu1 %vm46_vm0, %v24413_v51 }
 0x4a6   :  { %4235 = vmatprep.mubr.bf16.mxu1 %v24404_v49 }
 0x4ad   :  { %17581 = vmatmul.mubr.msk.bf16.gmra.mrb[32].mxu1 %vm46_vm0, %v24435_v19 }
 0x4ae   :  { %4245 = vmatprep.mubr.bf16.mxu1 %v24404_v49 }
 0x4b0   :  { %v3569_v10 = vpop.f32.mrb[144].mxu1 }
 0x4b1   :  { %v3570_v40 = vpop.f32.mrb[145].mxu1  ;;  %v21435_v10 = vld [vmem:[%s29487_s3 + $0x4a4] ss:$8 sps:$4 sm:$0xff]  }
 0x4b2   :  { %v3571_v26 = vpop.f32.mrb[146].mxu1  ;;  %v21433_v40 = vld [vmem:[%s29487_s3 + $0x4a0] ss:$8 sps:$4 sm:$0xff]  }
 0x4b3   :  { %v3572_v52 = vpop.f32.mrb[147].mxu1  ;;  %v21438_v26 = vld [vmem:[%s29487_s3 + $0x4b4] ss:$8 sps:$4 sm:$0xff]  }
 0x4b4   :  { %v29509_v52 = vld [vmem:[#allocation9_spill] sm:$0xff] }
 0x4b5   :  { %17582 = vmatmul.mubr.msk.bf16.gmra.mrb[36].mxu1 %vm46_vm0, %v1777_v34  ;;  %v21436_v34 = vld [vmem:[%s29487_s3 + $0x4b0] ss:$8 sps:$4 sm:$0xff]  }
 0x4b6   :  { %4359 = vmatprep.mubr.bf16.mxu1 %v24404_v49 }
 0x4b8   :  { %v3575_v32 = vpop.f32.mrb[148].mxu1 }
 0x4b9   :  { %v3576_v14 = vpop.f32.mrb[149].mxu1  ;;  %v21441_v32 = vld [vmem:[%s29487_s3 + $0x504] ss:$8 sps:$4 sm:$0xff]  }
 0x4ba   :  { %v3577_v20 = vpop.f32.mrb[150].mxu1  ;;  %v29510_v14 = vld [vmem:[#allocation11_spill] sm:$0xff] }
 0x4bb   :  { %v3578_v2 = vpop.f32.mrb[151].mxu1 }
 0x4bd   :  { %17591 = vmatmul.mubr.msk.bf16.vlgmr.msra.gmra.mrb[16].mxu1 %vm46_vm0, %v23767_v24  ;;  %v21414_v24 = vld [vmem:[%s29487_s3 + $0x3b4] ss:$8 sps:$4 sm:$0xff]  }
 0x4be   :  { %4484 = vmatpush1.bf16.msra.mxu1 %v21403_v22  ;;  %4369 = vmatprep.mubr.bf16.mxu1 %v24404_v49 }
 0x4bf   :  { %4485 = vmatprep.subr.bf16.mxu1 %v21408_v23 }
 0x4c2   :  { %4486 = vmatpush1.bf16.msra.mxu1 %v21406_v11  ;;  %v29511_v11 = vld [vmem:[#allocation15_spill] sm:$0xff] }
 0x4c3   :  { %4487 = vmatprep.subr.bf16.mxu1 %v21411_v60 }
 0x4c5   :  { %17592 = vmatmul.mubr.msk.bf16.gmra.mrb[20].mxu1 %vm46_vm0, %v24552_v43  ;;  %v24795_v43 = vrot.slane %v24435_v19, 1 }
 0x4c6   :  { %4379 = vmatprep.mubr.bf16.mxu1 %v24404_v49  ;;  %4488 = vmatpush1.bf16.msra.mxu1 %v21409_v44 }
 0x4c7   :  { %4489 = vmatprep.subr.bf16.mxu1 %v21414_v24  ;;  %v24800_v16 = vsel %vm3445_vm10, %v24558_v42, %v24795_v43  ;;  %v4268_v0 = vsel %vm3445_vm10, %v24795_v43, %v4267_v3 }
 0x4ca   :  { %4490 = vmatpush1.bf16.msra.mxu1 %v21412_v13  ;;  %v21444_v13 = vld [vmem:[%s29487_s3 + $0x514] ss:$8 sps:$4 sm:$0xff]  }
 0x4cb   :  { %4663 = vmatprep.subr.bf16.mxu1 %v21417_v37  ;;  %v29512_v37 = vld [vmem:[#allocation13_spill] sm:$0xff] }
 0x4cd   :  { %17593 = vmatmul.mubr.msk.bf16.gmra.mrb[184].mxu1 %vm46_vm0, %v24563_v50 }
 0x4ce   :  { %4385 = vmatprep.mubr.bf16.mxu1 %v24404_v49 }
 0x4d5   :  { %17594 = vmatmul.mubr.msk.bf16.gmra.mrb[188].mxu1 %vm46_vm0, %v24800_v16 }
 0x4d6   :  { %4391 = vmatprep.mubr.bf16.mxu1 %v24404_v49 }
 0x4dd   :  { %17595 = vmatmul.mubr.msk.bf16.gmra.mrb[32].mxu1 %vm46_vm0, %v4268_v0  ;;  %v21445_v0 = vld [vmem:[%s29487_s3 + $0x520] ss:$8 sps:$4 sm:$0xff]  }
 0x4de   :  { %4401 = vmatprep.mubr.bf16.mxu1 %v24404_v49 }
 0x4e0   :  { %v3725_v42 = vpop.f32.mrb[152].mxu1 }
 0x4e1   :  { %v3726_v53 = vpop.f32.mrb[153].mxu1  ;;  %v21450_v42 = vld [vmem:[%s29487_s3 + $0x534] ss:$8 sps:$4 sm:$0xff]  }
 0x4e2   :  { %v3727_v15 = vpop.f32.mrb[154].mxu1  ;;  %v29513_v53 = vld [vmem:[#allocation12_spill] sm:$0xff] }
 0x4e3   :  { %v3728_v62 = vpop.f32.mrb[155].mxu1  ;;  %v21448_v15 = vld [vmem:[%s29487_s3 + $0x530] ss:$8 sps:$4 sm:$0xff]  }
 0x4e4   :  { %v21453_v62 = vld [vmem:[%s29487_s3 + $0x584] ss:$8 sps:$4 sm:$0xff]  }
 0x4e5   :  { %17596 = vmatmul.mubr.msk.bf16.gmra.mrb[36].mxu1 %vm46_vm0, %v4267_v3  ;;  %v21447_v3 = vld [vmem:[%s29487_s3 + $0x524] ss:$8 sps:$4 sm:$0xff]  }
 0x4e6   :  { %4515 = vmatprep.mubr.bf16.mxu1 %v24404_v49 }
 0x4e8   :  { %v3731_v29 = vpop.f32.mrb[156].mxu1 }
 0x4e9   :  { %v3732_v4 = vpop.f32.mrb[157].mxu1 }
 0x4ea   :  { %v3733_v12 = vpop.f32.mrb[158].mxu1 }
 0x4eb   :  { %v3734_v63 = vpop.f32.mrb[159].mxu1 }
 0x4ed   :  { %17605 = vmatmul.mubr.msk.bf16.vlgmr.msra.gmra.mrb[16].mxu1 %vm46_vm0, %v4416_v59 }
 0x4ee   :  { %4664 = vmatpush1.bf16.msra.mxu1 %v21415_v25  ;;  %4525 = vmatprep.mubr.bf16.mxu1 %v24404_v49 }
 0x4ef   :  { %4665 = vmatprep.subr.bf16.mxu1 %v21420_v31 }
 0x4f2   :  { %4666 = vmatpush1.bf16.msra.mxu1 %v21418_v61  ;;  %v21456_v61 = vld [vmem:[%s29487_s3 + $0x594] ss:$8 sps:$4 sm:$0xff]  }
 0x4f3   :  { %4667 = vmatprep.subr.bf16.mxu1 %v21423_v58  ;;  %v21454_v58 = vld [vmem:[%s29487_s3 + $0x590] ss:$8 sps:$4 sm:$0xff]  }
 0x4f5   :  { %17606 = vmatmul.mubr.msk.bf16.gmra.mrb[20].mxu1 %vm46_vm0, %v24617_v56 }
 0x4f6   :  { %4535 = vmatprep.mubr.bf16.mxu1 %v24404_v49  ;;  %4668 = vmatpush1.bf16.msra.mxu1 %v21421_v7  ;;  %v21459_v7 = vld [vmem:[%s29487_s3 + $0x5a4] ss:$8 sps:$4 sm:$0xff]  }
 0x4f7   :  { %4669 = vmatprep.subr.bf16.mxu1 %v21426_v47  ;;  %v21457_v47 = vld [vmem:[%s29487_s3 + $0x5a0] ss:$8 sps:$4 sm:$0xff]  }
 0x4fa   :  { %4670 = vmatpush1.bf16.msra.mxu1 %v21424_v18  ;;  %v21460_v18 = vld [vmem:[%s29487_s3 + $0x5b0] ss:$8 sps:$4 sm:$0xff]  }
 0x4fb   :  { %4843 = vmatprep.subr.bf16.mxu1 %v21429_v57 }
 0x4fd   :  { %17607 = vmatmul.mubr.msk.bf16.gmra.mrb[192].mxu1 %vm46_vm0, %v24418_v27 }
 0x4fe   :  { %4541 = vmatprep.mubr.bf16.mxu1 %v24404_v49 }
 0x505   :  { %17608 = vmatmul.mubr.msk.bf16.gmra.mrb[196].mxu1 %vm46_vm0, %v24442_v38  ;;  %v21427_v38 = vld [vmem:[%s29487_s3 + $0x480] ss:$8 sps:$4 sm:$0xff]  }
 0x506   :  { %4547 = vmatprep.mubr.bf16.mxu1 %v24404_v49 }
 0x50d   :  { %17609 = vmatmul.mubr.msk.bf16.gmra.mrb[32].mxu1 %vm46_vm0, %v24453_v6  ;;  %v21432_v6 = vld [vmem:[%s29487_s3 + $0x494] ss:$8 sps:$4 sm:$0xff]  }
 0x50e   :  { %4557 = vmatprep.mubr.bf16.mxu1 %v24404_v49 }
 0x510   :  { %v3906_v56 = vpop.f32.mrb[160].mxu1 }
 0x511   :  { %v3907_v55 = vpop.f32.mrb[161].mxu1 }
 0x512   :  { %v3908_v17 = vpop.f32.mrb[162].mxu1 }
 0x513   :  { %v3909_v36 = vpop.f32.mrb[163].mxu1  ;;  %v2728_v17 = vld [vmem:[#allocation2 + $0x38] sm:$0x3f] }
 0x515   :  { %17610 = vmatmul.mubr.msk.bf16.gmra.mrb[36].mxu1 %vm46_vm0, %v24448_v9  ;;  %v21430_v9 = vld [vmem:[%s29487_s3 + $0x490] ss:$8 sps:$4 sm:$0xff]  }
 0x516   :  { %4695 = vmatprep.mubr.bf16.mxu1 %v24404_v49 }
 0x518   :  { %v3912_v27 = vpop.f32.mrb[164].mxu1 }
 0x519   :  { %v3913_v21 = vpop.f32.mrb[165].mxu1  ;;  %v23148_v27 = vld [vmem:[#allocation2 + $0x10] sm:$0xfe] }
 0x51a   :  { %v3914_v8 = vpop.f32.mrb[166].mxu1  ;;  %v5068_v21 = vrot.slane %v23148_v27, 1  ;;  %v21505_v27 = vld [vmem:[%s29489_s5 + $0x2d0] ss:$12 sps:$4 sm:$0xff]  }
 0x51b   :  { %v3915_v35 = vpop.f32.mrb[167].mxu1 }
 0x51c   :  { %v5070_v35 = vsel %vm3445_vm10, %v5068_v21, %v24547_v28  ;;  %v23149_v28 = vld [vmem:[#allocation2 + $0x38] sm:$0x7f]  ;;  %v21508_v21 = vld [vmem:[%s29489_s5 + $0x2e8] ss:$12 sps:$4 sm:$0xff]  }
 0x51d   :  { %17619 = vmatmul.mubr.msk.bf16.vlgmr.msra.gmra.mrb[16].mxu1 %vm46_vm0, %v29508_v1 }
 0x51e   :  { %4844 = vmatpush1.bf16.msra.mxu1 %v21427_v38  ;;  %4705 = vmatprep.mubr.bf16.mxu1 %v24404_v49 }
 0x51f   :  { %4845 = vmatprep.subr.bf16.mxu1 %v21432_v6 }
 0x522   :  { %4846 = vmatpush1.bf16.msra.mxu1 %v21430_v9  ;;  %v5077_v9 = vrot.slane %v23149_v28, 1 }
 0x523   :  { %4847 = vmatprep.subr.bf16.mxu1 %v21435_v10 }
 0x525   :  { %17620 = vmatmul.mubr.msk.bf16.gmra.mrb[20].mxu1 %vm46_vm0, %v29509_v52 }
 0x526   :  { %4715 = vmatprep.mubr.bf16.mxu1 %v24404_v49  ;;  %4848 = vmatpush1.bf16.msra.mxu1 %v21433_v40 }
 0x527   :  { %4849 = vmatprep.subr.bf16.mxu1 %v21438_v26 }
 0x52a   :  { %4850 = vmatpush1.bf16.msra.mxu1 %v21436_v34 }
 0x52b   :  { %4981 = vmatprep.subr.bf16.mxu1 %v21441_v32 }
 0x52d   :  { %17621 = vmatmul.mubr.msk.bf16.gmra.mrb[200].mxu1 %vm46_vm0, %v24754_v45 }
 0x52e   :  { %4721 = vmatprep.mubr.bf16.mxu1 %v24404_v49 }
 0x535   :  { %17622 = vmatmul.mubr.msk.bf16.gmra.mrb[204].mxu1 %vm46_vm0, %v23740_v39  ;;  %v21439_v39 = vld [vmem:[%s29487_s3 + $0x500] ss:$8 sps:$4 sm:$0xff]  }
 0x536   :  { %4727 = vmatprep.mubr.bf16.mxu1 %v24404_v49 }
 0x53d   :  { %17623 = vmatmul.mubr.msk.bf16.gmra.mrb[32].mxu1 %vm46_vm0, %v29510_v14  ;;  %v21463_v14 = vld [vmem:[%s29489_s5 + $0x180] ss:$12 sps:$4 sm:$0xff]  }
 0x53e   :  { %4737 = vmatprep.mubr.bf16.mxu1 %v24404_v49 }
 0x540   :  { %v4087_v20 = vpop.f32.mrb[168].mxu1 }
 0x541   :  { %v4088_v22 = vpop.f32.mrb[169].mxu1  ;;  %v21465_v20 = vld [vmem:[%s29489_s5 + $0x184] ss:$12 sps:$4 sm:$0xff]  }
 0x542   :  { %v4089_v2 = vpop.f32.mrb[170].mxu1  ;;  %6080 = vmatprep.subr.bf16.mxu0 %v21465_v20  ;;  %v21466_v22 = vld [vmem:[%s29489_s5 + $0x198] ss:$12 sps:$4 sm:$0xff]  }
 0x543   :  { %v4090_v23 = vpop.f32.mrb[171].mxu1  ;;  %6081 = vmatpush1.bf16.msra.mxu0 %v21463_v14  ;;  %v21471_v2 = vld [vmem:[%s29489_s5 + $0x1b4] ss:$12 sps:$4 sm:$0xff]  }
 0x544   :  { %v21469_v23 = vld [vmem:[%s29489_s5 + $0x1b0] ss:$12 sps:$4 sm:$0xff]  }
 0x545   :  { %17624 = vmatmul.mubr.msk.bf16.gmra.mrb[36].mxu1 %vm46_vm0, %v29511_v11  ;;  %v21474_v11 = vld [vmem:[%s29489_s5 + $0x1cc] ss:$12 sps:$4 sm:$0xff]  }
 0x546   :  { %4875 = vmatprep.mubr.bf16.mxu1 %v24404_v49 }
 0x548   :  { %v4093_v45 = vpop.f32.mrb[172].mxu1 }
 0x549   :  { %v4094_v60 = vpop.f32.mrb[173].mxu1  ;;  %v21472_v45 = vld [vmem:[%s29489_s5 + $0x1c8] ss:$12 sps:$4 sm:$0xff]  }
 0x54a   :  { %v4095_v44 = vpop.f32.mrb[174].mxu1 }
 0x54b   :  { %v4096_v24 = vpop.f32.mrb[175].mxu1 }
 0x54d   :  { %17633 = vmatmul.mubr.msk.bf16.vlgmr.msra.gmra.mrb[16].mxu1 %vm46_vm0, %v29512_v37  ;;  %v21477_v37 = vld [vmem:[%s29489_s5 + $0x1e4] ss:$12 sps:$4 sm:$0xff]  }
 0x54e   :  { %4982 = vmatpush1.bf16.msra.mxu1 %v21439_v39  ;;  %4885 = vmatprep.mubr.bf16.mxu1 %v24404_v49 }
 0x54f   :  { %4983 = vmatprep.subr.bf16.mxu1 %v21444_v13  ;;  %v21475_v13 = vld [vmem:[%s29489_s5 + $0x1e0] ss:$12 sps:$4 sm:$0xff]  }
 0x552   :  { %4984 = vmatpush1.bf16.msra.mxu1 %v21442_v46 }
 0x553   :  { %4985 = vmatprep.subr.bf16.mxu1 %v21447_v3 }
 0x555   :  { %17634 = vmatmul.mubr.msk.bf16.gmra.mrb[20].mxu1 %vm46_vm0, %v29513_v53  ;;  %v21478_v53 = vld [vmem:[%s29489_s5 + $0x1f8] ss:$12 sps:$4 sm:$0xff]  }
 0x556   :  { %4895 = vmatprep.mubr.bf16.mxu1 %v24404_v49  ;;  %4986 = vmatpush1.bf16.msra.mxu1 %v21445_v0 }
 0x557   :  { %4987 = vmatprep.subr.bf16.mxu1 %v21450_v42 }
 0x55a   :  { %4988 = vmatpush1.bf16.msra.mxu1 %v21448_v15  ;;  %v21480_v15 = vld [vmem:[%s29489_s5 + $0x1fc] ss:$12 sps:$4 sm:$0xff]  }
 0x55b   :  { %5137 = vmatprep.subr.bf16.mxu1 %v21453_v62  ;;  %v21483_v62 = vld [vmem:[%s29489_s5 + $0x214] ss:$12 sps:$4 sm:$0xff]  }
 0x55d   :  { %17635 = vmatmul.mubr.msk.bf16.gmra.mrb[208].mxu1 %vm46_vm0, %v24808_v54 }
 0x55e   :  { %4901 = vmatprep.mubr.bf16.mxu1 %v24404_v49 }
 0x565   :  { %17636 = vmatmul.mubr.msk.bf16.gmra.mrb[212].mxu1 %vm46_vm0, %v23779_v33  ;;  %v21451_v33 = vld [vmem:[%s29487_s3 + $0x580] ss:$8 sps:$4 sm:$0xff]  }
 0x566   :  { %4907 = vmatprep.mubr.bf16.mxu1 %v24404_v49 }
 0x56d   :  { %17637 = vmatmul.mubr.msk.bf16.gmra.mrb[32].mxu1 %vm46_vm0, %v29514_v30  ;;  %v21481_v30 = vld [vmem:[%s29489_s5 + $0x210] ss:$12 sps:$4 sm:$0xff]  }
 0x56e   :  { %4917 = vmatprep.mubr.bf16.mxu1 %v24404_v49 }
 0x570   :  { %v4225_v29 = vpop.f32.mrb[176].mxu1 }
 0x571   :  { %v4226_v4 = vpop.f32.mrb[177].mxu1  ;;  %v21484_v29 = vld [vmem:[%s29489_s5 + $0x228] ss:$12 sps:$4 sm:$0xff]  }
 0x572   :  { %v4227_v12 = vpop.f32.mrb[178].mxu1  ;;  %v21486_v4 = vld [vmem:[%s29489_s5 + $0x22c] ss:$12 sps:$4 sm:$0xff]  }
 0x573   :  { %v4228_v25 = vpop.f32.mrb[179].mxu1  ;;  %v21489_v12 = vld [vmem:[%s29489_s5 + $0x244] ss:$12 sps:$4 sm:$0xff]  }
 0x574   :  { %v21487_v25 = vld [vmem:[%s29489_s5 + $0x240] ss:$12 sps:$4 sm:$0xff]  }
 0x575   :  { %17638 = vmatmul.mubr.msk.bf16.gmra.mrb[36].mxu1 %vm46_vm0, %v29515_v41  ;;  %v21492_v41 = vld [vmem:[%s29489_s5 + $0x25c] ss:$12 sps:$4 sm:$0xff]  }
 0x576   :  { %5013 = vmatprep.mubr.bf16.mxu1 %v24404_v49 }
 0x578   :  { %v4231_v54 = vpop.f32.mrb[180].mxu1 }
 0x579   :  { %v4232_v63 = vpop.f32.mrb[181].mxu1  ;;  %v21490_v54 = vld [vmem:[%s29489_s5 + $0x258] ss:$12 sps:$4 sm:$0xff]  }
 0x57a   :  { %v4233_v31 = vpop.f32.mrb[182].mxu1  ;;  %v21495_v63 = vld [vmem:[%s29489_s5 + $0x274] ss:$12 sps:$4 sm:$0xff]  }
 0x57b   :  { %v4234_v59 = vpop.f32.mrb[183].mxu1  ;;  %v21493_v31 = vld [vmem:[%s29489_s5 + $0x270] ss:$12 sps:$4 sm:$0xff]  }
 0x57d   :  { %17647 = vmatmul.mubr.msk.bf16.vlgmr.msra.gmra.mrb[16].mxu1 %vm46_vm0, %v24496_v5  ;;  %v21462_v5 = vld [vmem:[%s29487_s3 + $0x5b4] ss:$8 sps:$4 sm:$0xff]  }
 0x57e   :  { %5138 = vmatpush1.bf16.msra.mxu1 %v21451_v33  ;;  %5023 = vmatprep.mubr.bf16.mxu1 %v24404_v49  ;;  %v21498_v33 = vld [vmem:[%s29489_s5 + $0x28c] ss:$12 sps:$4 sm:$0xff]  }
 0x57f   :  { %5139 = vmatprep.subr.bf16.mxu1 %v21456_v61 }
 0x582   :  { %5140 = vmatpush1.bf16.msra.mxu1 %v21454_v58  ;;  %v21496_v58 = vld [vmem:[%s29489_s5 + $0x288] ss:$12 sps:$4 sm:$0xff]  }
 0x583   :  { %5141 = vmatprep.subr.bf16.mxu1 %v21459_v7 }
 0x585   :  { %17648 = vmatmul.mubr.msk.bf16.gmra.mrb[20].mxu1 %vm46_vm0, %v24390_v48  ;;  %v23147_v48 = vld [vmem:[#allocation2 + $0x30] sm:$0xff] }
 0x586   :  { %5033 = vmatprep.mubr.bf16.mxu1 %v24404_v49  ;;  %5142 = vmatpush1.bf16.msra.mxu1 %v21457_v47  ;;  %v5075_v6 = vrot.slane %v23147_v48, 1  ;;  %v21501_v47 = vld [vmem:[%s29489_s5 + $0x2a4] ss:$12 sps:$4 sm:$0xff]  }
 0x587   :  { %5143 = vmatprep.subr.bf16.mxu1 %v21462_v5 }
 0x588   :  { %v5076_v1 = vsel %vm3445_vm10, %v24795_v43, %v5075_v6  ;;  %v5078_v10 = vsel %vm3445_vm10, %v5075_v6, %v5077_v9 }
 0x58a   :  { %5144 = vmatpush1.bf16.msra.mxu1 %v21460_v18  ;;  %v21499_v18 = vld [vmem:[%s29489_s5 + $0x2a0] ss:$12 sps:$4 sm:$0xff]  }
 0x58d   :  { %17649 = vmatmul.mubr.msk.bf16.gmra.mrb[216].mxu1 %vm46_vm0, %v24413_v51 }
 0x58e   :  { %5039 = vmatprep.mubr.bf16.mxu1 %v24404_v49 }
 0x595   :  { %17650 = vmatmul.mubr.msk.bf16.gmra.mrb[220].mxu1 %vm46_vm0, %v24435_v19 }
 0x596   :  { %5045 = vmatprep.mubr.bf16.mxu1 %v24404_v49 }
 0x59d   :  { %17651 = vmatmul.mubr.msk.bf16.gmra.mrb[32].mxu1 %vm46_vm0, %v23147_v48 }
 0x59e   :  { %5055 = vmatprep.mubr.bf16.mxu1 %v24404_v49 }
 0x5a0   :  { %v4381_v57 = vpop.f32.mrb[184].mxu1 }
 0x5a1   :  { %v4382_v56 = vpop.f32.mrb[185].mxu1 }
 0x5a2   :  { %v4383_v55 = vpop.f32.mrb[186].mxu1 }
 0x5a3   :  { %v4384_v36 = vpop.f32.mrb[187].mxu1  ;;  %v21502_v55 = vld [vmem:[%s29489_s5 + $0x2b8] ss:$12 sps:$4 sm:$0xff]  }
 0x5a5   :  { %17652 = vmatmul.mubr.msk.bf16.gmra.mrb[36].mxu1 %vm46_vm0, %v2728_v17  ;;  %v21504_v17 = vld [vmem:[%s29489_s5 + $0x2bc] ss:$12 sps:$4 sm:$0xff]  }
 0x5a6   :  { %5169 = vmatprep.mubr.bf16.mxu1 %v24404_v49 }
 0x5a8   :  { %v4387_v51 = vpop.f32.mrb[188].mxu1 }
 0x5a9   :  { %v4388_v19 = vpop.f32.mrb[189].mxu1  ;;  %v21507_v51 = vld [vmem:[%s29489_s5 + $0x2d4] ss:$12 sps:$4 sm:$0xff]  }
 0x5aa   :  { %v4389_v8 = vpop.f32.mrb[190].mxu1  ;;  %v21510_v19 = vld [vmem:[%s29489_s5 + $0x2ec] ss:$12 sps:$4 sm:$0xff]  }
 0x5ab   :  { %v4390_v38 = vpop.f32.mrb[191].mxu1  ;;  %v21511_v8 = vld [vmem:[%s29489_s5 + $0x248] ss:$12 sps:$4 sm:$0xff]  }
 0x5ad   :  { %17661 = vmatmul.mubr.msk.bf16.vlgmr.msra.gmra.mrb[16].mxu1 %vm46_vm0, %v5070_v35 }
 0x5ae   :  { %5179 = vmatprep.mubr.bf16.mxu1 %v24404_v49 }
 0x5b5   :  { %17662 = vmatmul.mubr.msk.bf16.gmra.mrb[20].mxu1 %vm46_vm0, %v24563_v50 }
 0x5b6   :  { %5189 = vmatprep.mubr.bf16.mxu1 %v24404_v49 }
 0x5bd   :  { %17663 = vmatmul.mubr.msk.bf16.gmra.mrb[224].mxu1 %vm46_vm0, %v24800_v16 }
 0x5be   :  { %5195 = vmatprep.mubr.bf16.mxu1 %v24404_v49 }
 0x5c5   :  { %17664 = vmatmul.mubr.msk.bf16.gmra.mrb[228].mxu1 %vm46_vm0, %v5076_v1 }
 0x5c6   :  { %5201 = vmatprep.mubr.bf16.mxu1 %v24404_v49 }
 0x5cd   :  { %17665 = vmatmul.mubr.msk.bf16.gmra.mrb[32].mxu1 %vm46_vm0, %v5078_v10 }
 0x5ce   :  { %5211 = vmatprep.mubr.bf16.mxu1 %v24404_v49  ;;  %v21468_v49 = vld [vmem:[%s29489_s5 + $0x19c] ss:$12 sps:$4 sm:$0xff]  }
 0x5cf   :  { %6082 = vmatprep.subr.bf16.mxu0 %v21468_v49 }
 0x5d0   :  { %v4537_v50 = vpop.f32.mrb[192].mxu1  ;;  %6083 = vmatpush1.bf16.msra.mxu0 %v21466_v22 }
 0x5d1   :  { %v4538_v16 = vpop.f32.mrb[193].mxu1  ;;  %6084 = vmatprep.subr.bf16.mxu0 %v21471_v2 }
 0x5d2   :  { %v4539_v40 = vpop.f32.mrb[194].mxu1  ;;  %v5416_v16 = vlaneseq }
 0x5d3   :  { %v4540_v26 = vpop.f32.mrb[195].mxu1 }
 0x5d4   :  { %6085 = vmatpush1.bf16.msra.mxu0 %v21469_v23  ;;  %v25097_v40 = vshrl.u32 %v5416_v16, 7 }
 0x5d5   :  { %17666 = vmatmul.mubr.msk.bf16.gmra.mrb[36].mxu1 %vm46_vm0, %v5077_v9  ;;  %6086 = vmatprep.subr.bf16.mxu0 %v21474_v11  ;;  %vm5541_vm0 = vsmask.f32 1282 }
 0x5d6   :  { %v25100_v26 = vsub.s32 0, %v25097_v40  ;;  %vm25136_vm4 = vmand %vm666_vm2, %vm5541_vm0 }
 0x5d8   :  { %v4543_v52 = vpop.f32.mrb[196].mxu1  ;;  %6087 = vmatpush1.bf16.msra.mxu0 %v21472_v45 }
 0x5d9   :  { %v4544_v43 = vpop.f32.mrb[197].mxu1  ;;  %6088 = vmatprep.subr.bf16.mxu0 %v21477_v37  ;;  %v5414_v52 = vld [vmem:[%s29488_s4] sm:$0x3] }
 0x5da   :  { %v4545_v34 = vpop.f32.mrb[198].mxu1  ;;  %v25106_v43 = vsub.s32 1, %v25097_v40 }
 0x5db   :  { %v4546_v32 = vpop.f32.mrb[199].mxu1  ;;  %v25109_v34 = vrot.slane %v5414_v52, %v25100_v26 }
 0x5dc   :  { %6089 = vmatpush1.bf16.msra.mxu0 %v21475_v13  ;;  %v25112_v32 = vrot.slane %v5414_v52, %v25106_v43  ;;  %v5502_v52 = vld [vmem:[#allocation3 + $0x8] sm:$0x30] }
 0x5dd   :  { %6090 = vmatprep.subr.bf16.mxu0 %v21480_v15 }
 0x5e0   :  { %6091 = vmatpush1.bf16.msra.mxu0 %v21478_v53 }
 0x5e1   :  { %6092 = vmatprep.subr.bf16.mxu0 %v21483_v62 }
 0x5e4   :  { %6093 = vmatpush1.bf16.msra.mxu0 %v21481_v30 }
 0x5e5   :  { %6094 = vmatprep.subr.bf16.mxu0 %v21486_v4 }
 0x5e8   :  { %6095 = vmatpush1.bf16.msra.mxu0 %v21484_v29 }
 0x5e9   :  { %6096 = vmatprep.subr.bf16.mxu0 %v21489_v12 }
 0x5ec   :  { %6097 = vmatpush1.bf16.msra.mxu0 %v21487_v25 }
 0x5ed   :  { %6098 = vmatprep.subr.bf16.mxu0 %v21492_v41 }
 0x5f0   :  { %6099 = vmatpush1.bf16.msra.mxu0 %v21490_v54 }
 0x5f1   :  { %6100 = vmatprep.subr.bf16.mxu0 %v21495_v63 }
 0x5f4   :  { %6101 = vmatpush1.bf16.msra.mxu0 %v21493_v31 }
 0x5f5   :  { %6102 = vmatprep.subr.bf16.mxu0 %v21498_v33 }
 0x5f8   :  { %6103 = vmatpush1.bf16.msra.mxu0 %v21496_v58 }
 0x5f9   :  { %6104 = vmatprep.subr.bf16.mxu0 %v21501_v47 }
 0x5fc   :  { %6105 = vmatpush1.bf16.msra.mxu0 %v21499_v18 }
 0x5fd   :  { %6106 = vmatprep.subr.bf16.mxu0 %v21504_v17 }
 0x600   :  { %v4717_v60 = vpop.f32.mrb[200].mxu1  ;;  %6107 = vmatpush1.bf16.msra.mxu0 %v21502_v55 }
 0x601   :  { %v4718_v44 = vpop.f32.mrb[201].mxu1  ;;  %6108 = vmatprep.subr.bf16.mxu0 %v21507_v51 }
 0x602   :  { %v4719_v39 = vpop.f32.mrb[202].mxu1 }
 0x603   :  { %v4720_v24 = vpop.f32.mrb[203].mxu1 }
 0x604   :  { %6109 = vmatpush1.bf16.msra.mxu0 %v21505_v27 }
 0x605   :  { %6110 = vmatprep.subr.bf16.mxu0 %v21510_v19 }
 0x608   :  { %v4723_v46 = vpop.f32.mrb[204].mxu1  ;;  %6111 = vmatpush1.bf16.msra.mxu0 %v21508_v21 }
 0x609   :  { %v4724_v3 = vpop.f32.mrb[205].mxu1  ;;  %20052 = vmatprep.subr.bf16.mxu0 %v21511_v8 }
 0x60a   :  { %v4725_v0 = vpop.f32.mrb[206].mxu1 }
 0x60b   :  { %v4726_v42 = vpop.f32.mrb[207].mxu1 }
 0x630   :  { %v4897_v59 = vpop.f32.mrb[208].mxu1 }
 0x631   :  { %v4898_v61 = vpop.f32.mrb[209].mxu1 }
 0x632   :  { %v4899_v7 = vpop.f32.mrb[210].mxu1 }
 0x633   :  { %v4900_v5 = vpop.f32.mrb[211].mxu1 }
 0x638   :  { %v4903_v48 = vpop.f32.mrb[212].mxu1 }
 0x639   :  { %v4904_v57 = vpop.f32.mrb[213].mxu1 }
 0x63a   :  { %v4905_v56 = vpop.f32.mrb[214].mxu1 }
 0x63b   :  { %v4906_v36 = vpop.f32.mrb[215].mxu1 }
 0x660   :  { %v5035_v38 = vpop.f32.mrb[216].mxu1 }
 0x661   :  { %v5036_v35 = vpop.f32.mrb[217].mxu1 }
 0x662   :  { %v5037_v6 = vpop.f32.mrb[218].mxu1 }
 0x663   :  { %v5038_v1 = vpop.f32.mrb[219].mxu1 }
 0x664   :  { %v22740_v1 = vld [vmem:[%s29493_s9 + $0x314] ss:$8 sps:$4 sm:$0xff]  }
 0x668   :  { %v5041_v28 = vpop.f32.mrb[220].mxu1 }
 0x669   :  { %v5042_v9 = vpop.f32.mrb[221].mxu1  ;;  %v5499_v28 = vld [vmem:[#allocation3] sm:$0x30] }
 0x66a   :  { %v5043_v10 = vpop.f32.mrb[222].mxu1 }
 0x66b   :  { %v5044_v50 = vpop.f32.mrb[223].mxu1 }
 0x680   :  { %v5171_v14 = vpop.f32.mrb[16].mxu1 }
 0x681   :  { %v5426_v20 = vadd.f32 %v25109_v34, %v5171_v14  ;;  %v5173_v49 = vpop.f32.mrb[17].mxu1 }
 0x682   :  { %v5427_v22 = vadd.f32 %v25112_v32, %v5173_v49  ;;  %v5175_v2 = vpop.f32.mrb[18].mxu1 }
 0x683   :  { %v5428_v23 = vadd.f32 %v25109_v34, %v5175_v2  ;;  %v5177_v11 = vpop.f32.mrb[19].mxu1  ;;  %v5442_v60 = vmax.f32 %v5426_v20, 0.0 }
 0x684   :  { %v5429_v45 = vadd.f32 %v25112_v32, %v5177_v11  ;;  %v5443_v39 = vmax.f32 %v5427_v22, 0.0 }
 0x685   :  { %v5444_v44 = vmax.f32 %v5428_v23, 0.0 }
 0x686   :  { %v5445_v24 = vmax.f32 %v5429_v45, 0.0 }
 0x687   :  { %v5458_v13 = vmax.f32 %v5442_v60, %v5444_v44 }
 0x688   :  { %v5459_v37 = vmax.f32 %v5443_v39, %v5445_v24  ;;  %v5181_v46 = vpop.f32.mrb[20].mxu1 }
 0x689   :  { %v5462_v3 = vrot.slane %v5458_v13, 1  ;;  %v5430_v0 = vadd.f32 %v25109_v34, %v5181_v46  ;;  %v5183_v42 = vpop.f32.mrb[21].mxu1 }
 0x68a   :  { %v5463_v53 = vrot.slane %v5459_v37, 1  ;;  %v5431_v15 = vadd.f32 %v25112_v32, %v5183_v42  ;;  %v5185_v62 = vpop.f32.mrb[22].mxu1  ;;  %v5543_v42 = vld [vmem:[#allocation3 + $0x10] sm:$0x3] }
 0x68b   :  { %v5466_v30 = vmax.f32 %v5458_v13, %v5462_v3  ;;  %v5432_v29 = vadd.f32 %v25109_v34, %v5185_v62  ;;  %v5187_v4 = vpop.f32.mrb[23].mxu1  ;;  %v5446_v54 = vmax.f32 %v5430_v0, 0.0  ;;  %v22743_v0 = vld [vmem:[%s29493_s9 + $0x324] ss:$8 sps:$4 sm:$0xff]  }
 0x68c   :  { %v5467_v12 = vmax.f32 %v5459_v37, %v5463_v53  ;;  %v5433_v25 = vadd.f32 %v25112_v32, %v5187_v4  ;;  %v5447_v33 = vmax.f32 %v5431_v15, 0.0 }
 0x68d   :  { %v5470_v41 = vrot.slane %v5466_v30, 1  ;;  %v5448_v63 = vmax.f32 %v5432_v29, 0.0 }
 0x68e   :  { %v5471_v31 = vrot.slane %v5467_v12, 1  ;;  %v5449_v59 = vmax.f32 %v5433_v25, 0.0 }
 0x68f   :  { %v5474_v61 = vsel %vm664_vm1, %v5466_v30, %v5470_v41  ;;  %v5505_v58 = vmax.f32 %v5446_v54, %v5448_v63  ;;  %v5546_v30 = vld [vmem:[#allocation3 + $0x18] sm:$0x3] }
 0x690   :  { %v5476_v7 = vpack.c.bf16 %v5474_v61, %v5474_v61  ;;  %v5475_v47 = vsel %vm664_vm1, %v5467_v12, %v5471_v31  ;;  %v5506_v5 = vmax.f32 %v5447_v33, %v5449_v59  ;;  %v5191_v18 = vpop.f32.mrb[224].mxu1 }
 0x691   :  { %v5477_v48 = vpack.c.bf16 %v5475_v47, %v5475_v47  ;;  %v5509_v57 = vrot.slane %v5505_v58, 1  ;;  %v5192_v56 = vpop.f32.mrb[225].mxu1 }
 0x692   :  { %v5479_v55 = vshrl.u32 %v5476_v7, 16  ;;  %v5482_v17 = vshll.u32 %v5476_v7, 16  ;;  %v5510_v36 = vrot.slane %v5506_v5, 1  ;;  %v5193_v51 = vpop.f32.mrb[226].mxu1 }
 0x693   :  { %v5487_v27 = vshrl.u32 %v5477_v48, 16  ;;  %v5490_v21 = vshll.u32 %v5477_v48, 16  ;;  %v5513_v19 = vmax.f32 %v5505_v58, %v5509_v57  ;;  %v5194_v8 = vpop.f32.mrb[227].mxu1 }
 0x694   :  { %v5481_v38 = vrot.slane %v5479_v55, 3  ;;  %v5484_v35 = vrot.slane %v5482_v17, 4  ;;  %v5514_v6 = vmax.f32 %v5506_v5, %v5510_v36 }
 0x695   :  { %v5489_v9 = vrot.slane %v5487_v27, 3  ;;  %v5492_v10 = vrot.slane %v5490_v21, 4  ;;  %v5517_v50 = vrot.slane %v5513_v19, 1 }
 0x696   :  { %v5485_v16 = vor.u32 %v5484_v35, %v5481_v38  ;;  %v5518_v14 = vrot.slane %v5514_v6, 1 }
 0x697   :  { %v5493_v20 = vor.u32 %v5492_v10, %v5489_v9  ;;  %v5521_v49 = vsel %vm664_vm1, %v5513_v19, %v5517_v50 }
 0x698   :  { %v5500_v22 = vsel %vm25125_vm15, %v5485_v16, %v5499_v28  ;;  %v5523_v2 = vpack.c.bf16 %v5521_v49, %v5521_v49  ;;  %v5522_v23 = vsel %vm664_vm1, %v5514_v6, %v5518_v14  ;;  %v5197_v11 = vpop.f32.mrb[228].mxu1 }
 0x699   :  { %5501 = vst [vmem:[#allocation3] sm:$0x30] %v5500_v22  ;;  %v5503_v45 = vsel %vm25125_vm15, %v5493_v20, %v5502_v52  ;;  %v5524_v60 = vpack.c.bf16 %v5522_v23, %v5522_v23  ;;  %v5198_v44 = vpop.f32.mrb[229].mxu1 }
 0x69a   :  { %5504 = vst [vmem:[#allocation3 + $0x8] sm:$0x30] %v5503_v45  ;;  %v5526_v39 = vshrl.u32 %v5523_v2, 16  ;;  %v5199_v24 = vpop.f32.mrb[230].mxu1  ;;  %v5529_v3 = vshll.u32 %v5523_v2, 16 }
 0x69b   :  { %v5533_v13 = vshrl.u32 %v5524_v60, 16  ;;  %v5200_v37 = vpop.f32.mrb[231].mxu1  ;;  %v5536_v15 = vshll.u32 %v5524_v60, 16 }
 0x69c   :  { %v5528_v46 = vrot.slane %v5526_v39, 7 }
 0x69d   :  { %v5535_v53 = vrot.slane %v5533_v13, 7 }
 0x69e   :  { %v5531_v62 = vor.u32 %v5529_v3, %v5528_v46 }
 0x69f   :  { %v5538_v29 = vor.u32 %v5536_v15, %v5535_v53 }
 0x6a0   :  { %v5544_v4 = vsel %vm25136_vm4, %v5531_v62, %v5543_v42  ;;  %v5203_v12 = vpop.f32.mrb[32].mxu1  ;;  %v5635_v59 = vld [vmem:[#allocation3] sm:$0xff] }
 0x6a1   :  { %5545 = vst [vmem:[#allocation3 + $0x10] sm:$0x3] %v5544_v4  ;;  %v5547_v25 = vsel %vm25136_vm4, %v5538_v29, %v5546_v30  ;;  %v5434_v41 = vadd.f32 %v25109_v34, %v5203_v12  ;;  %v5205_v54 = vpop.f32.mrb[33].mxu1  ;;  %v5636_v63 = vld [vmem:[#allocation3 + $0x8] sm:$0xff]  ;;  %v5775_v48 = vshll.u32 %v5635_v59, 16  ;;  %v5773_v49 = vshrl.u32 %v5635_v59, 16 }
 0x6a2   :  { %5548 = vst [vmem:[#allocation3 + $0x18] sm:$0x3] %v5547_v25  ;;  %v5435_v31 = vadd.f32 %v25112_v32, %v5205_v54  ;;  %v5207_v33 = vpop.f32.mrb[34].mxu1  ;;  %v5787_v47 = vshll.u32 %v5636_v63, 16  ;;  %v5785_v50 = vshrl.u32 %v5636_v63, 16 }
 0x6a3   :  { %v5436_v61 = vadd.f32 %v25109_v34, %v5207_v33  ;;  %v5209_v58 = vpop.f32.mrb[35].mxu1  ;;  %v5450_v5 = vmax.f32 %v5434_v41, 0.0  ;;  %v5777_v35 = vrot.slane %v5775_v48, 1  ;;  %v21514_v25 = vld [vmem:[%s29489_s5 + $0x1a0] ss:$12 sps:$4 sm:$0xff]  }
 0x6a4   :  { %v5437_v7 = vadd.f32 %v25112_v32, %v5209_v58  ;;  %v5451_v57 = vmax.f32 %v5435_v31, 0.0  ;;  %v5789_v51 = vrot.slane %v5787_v47, 1  ;;  %v21515_v31 = vld [vmem:[%s29489_s5 + $0x278] ss:$12 sps:$4 sm:$0xff]  }
 0x6a5   :  { %v5452_v18 = vmax.f32 %v5436_v61, 0.0  ;;  %v5778_v24 = vor.u32 %v5777_v35, %v5773_v49  ;;  %v5587_v47 = vld [vmem:[#allocation3 + $0x20] sm:$0x30] }
 0x6a6   :  { %v5453_v56 = vmax.f32 %v5437_v7, 0.0  ;;  %v5790_v11 = vor.u32 %v5789_v51, %v5785_v50  ;;  %v21517_v51 = vld [vmem:[%s29489_s5 + $0x290] ss:$12 sps:$4 sm:$0xff]  }
 0x6a7   :  { %v5549_v55 = vmax.f32 %v5450_v5, %v5452_v18  ;;  %v21518_v50 = vld [vmem:[%s29489_s5 + $0x1d0] ss:$12 sps:$4 sm:$0xff]  }
 0x6a8   :  { %v5550_v17 = vmax.f32 %v5451_v57, %v5453_v56  ;;  %v5213_v36 = vpop.f32.mrb[36].mxu1  ;;  %v25148_v27 = vld [vmem:[#allocation3 + $0x10] sm:$0xff]  ;;  %v21516_v56 = vld [vmem:[%s29489_s5 + $0x1b8] ss:$12 sps:$4 sm:$0xff]  }
 0x6a9   :  { %v5553_v21 = vrot.slane %v5549_v55, 1  ;;  %v5438_v19 = vadd.f32 %v25109_v34, %v5213_v36  ;;  %v5215_v8 = vpop.f32.mrb[37].mxu1  ;;  %v25151_v38 = vld [vmem:[#allocation3 + $0x18] sm:$0xff]  ;;  %v5780_v6 = vshll.u32 %v25148_v27, 16 }
 0x6aa   :  { %v5554_v28 = vrot.slane %v5550_v17, 1  ;;  %v5439_v9 = vadd.f32 %v25112_v32, %v5215_v8  ;;  %v5217_v10 = vpop.f32.mrb[38].mxu1  ;;  %v5792_v16 = vshll.u32 %v25151_v38, 16 }
 0x6ab   :  { %v5557_v52 = vmax.f32 %v5549_v55, %v5553_v21  ;;  %v5440_v14 = vadd.f32 %v25109_v34, %v5217_v10  ;;  %v5219_v20 = vpop.f32.mrb[39].mxu1  ;;  %v25159_v22 = vrot.slane %v5780_v6, 1  ;;  %v5454_v44 = vmax.f32 %v5438_v19, 0.0  ;;  %v21512_v34 = vld [vmem:[%s29489_s5 + $0x188] ss:$12 sps:$4 sm:$0xff]  }
 0x6ac   :  { %v5558_v2 = vmax.f32 %v5550_v17, %v5554_v28  ;;  %v5441_v23 = vadd.f32 %v25112_v32, %v5219_v20  ;;  %v25164_v45 = vrot.slane %v5792_v16, 1  ;;  %v5455_v37 = vmax.f32 %v5439_v9, 0.0  ;;  %v21513_v32 = vld [vmem:[%s29489_s5 + $0x260] ss:$12 sps:$4 sm:$0xff]   ;;  %v21519_v20 = vld [vmem:[%s29489_s5 + $0x2a8] ss:$12 sps:$4 sm:$0xff]  }
 0x6ad   :  { %v5561_v60 = vrot.slane %v5557_v52, 1  ;;  %v5456_v39 = vmax.f32 %v5440_v14, 0.0  ;;  %v25180_v15 = vsel %vm841_vm6, %v5778_v24, %v25159_v22  ;;  %v5590_v17 = vld [vmem:[#allocation3 + $0x28] sm:$0x30]  ;;  %v21520_v24 = vld [vmem:[%s29489_s5 + $0x1e8] ss:$12 sps:$4 sm:$0xff]  }
 0x6ae   :  { %v5562_v13 = vrot.slane %v5558_v2, 1  ;;  %v5457_v46 = vmax.f32 %v5441_v23, 0.0  ;;  %v25171_v3 = vsel %vm841_vm6, %v5790_v11, %v25164_v45 }
 0x6af   :  { %v5565_v42 = vsel %vm664_vm1, %v5557_v52, %v5561_v60  ;;  %v5593_v53 = vmax.f32 %v5454_v44, %v5456_v39  ;;  %6112 = vmatprep.mubr.bf16.mxu0 %v25171_v3  ;;  %v5804_v52 = vshrl.u32 %v25151_v38, 16  ;;  %v5629_v60 = vld [vmem:[#allocation3 + $0x30] sm:$0x3] }
 0x6b0   :  { %v5567_v62 = vpack.c.bf16 %v5565_v42, %v5565_v42  ;;  %v5566_v30 = vsel %vm664_vm1, %v5558_v2, %v5562_v13  ;;  %v5594_v29 = vmax.f32 %v5455_v37, %v5457_v46  ;;  %6113 = vmatmul.mubr.bf16.vlgmr.msra.gmra.mrb[32].mxu0 %v25180_v15  ;;  %v25209_v2 = vld [vmem:[#allocation3 + $0x8] sm:$0xf0]  ;;  %v9056_v13 = vrot.slane %v5792_v16, 5  ;;  %v5632_v46 = vld [vmem:[#allocation3 + $0x38] sm:$0x3] }
 0x6b1   :  { %v5568_v4 = vpack.c.bf16 %v5566_v30, %v5566_v30  ;;  %v5597_v12 = vrot.slane %v5593_v53, 1  ;;  %20053 = vmatpush3.bf16.msra.mxu0 %v21512_v34  ;;  %v9055_v34 = vrot.slane %v5804_v52, 4  ;;  %v9048_v42 = vshrl.u32 %v25209_v2, 16 }
 0x6b2   :  { %v5570_v41 = vshrl.u32 %v5567_v62, 16  ;;  %v5573_v54 = vshll.u32 %v5567_v62, 16  ;;  %v5598_v63 = vrot.slane %v5594_v29, 1  ;;  %20054 = vmatprep.subr.bf16.mxu0 %v21513_v32  ;;  %v21521_v32 = vld [vmem:[%s29489_s5 + $0x2c0] ss:$12 sps:$4 sm:$0xff]   ;;  %v7395_v16 = vshrl.u32 %v25148_v27, 16 }
 0x6b3   :  { %v5578_v33 = vshrl.u32 %v5568_v4, 16  ;;  %v5581_v59 = vshll.u32 %v5568_v4, 16  ;;  %v5601_v61 = vmax.f32 %v5593_v53, %v5597_v12  ;;  %v9051_v53 = vshll.u32 %v25209_v2, 16 }
 0x6b4   :  { %v5572_v58 = vrot.slane %v5570_v41, 3  ;;  %v5575_v7 = vrot.slane %v5573_v54, 4  ;;  %v5602_v5 = vmax.f32 %v5594_v29, %v5598_v63  ;;  %v25221_v30 = vor.u32 %v9056_v13, %v9055_v34  ;;  %v21522_v54 = vld [vmem:[%s29489_s5 + $0x200] ss:$12 sps:$4 sm:$0xff]   ;;  %v21523_v63 = vld [vmem:[%s29489_s5 + $0x2d8] ss:$12 sps:$4 sm:$0xff]  }
 0x6b5   :  { %v5580_v18 = vrot.slane %v5578_v33, 3  ;;  %v5583_v48 = vrot.slane %v5581_v59, 4  ;;  %v5605_v57 = vrot.slane %v5601_v61, 1  ;;  %20055 = vmatpush3.bf16.msra.mxu0 %v21514_v25  ;;  %v25240_v33 = vld [vmem:[#allocation3] sm:$0xf0]  ;;  %v9050_v59 = vrot.slane %v9048_v42, 4 }
 0x6b6   :  { %v5576_v55 = vor.u32 %v5575_v7, %v5572_v58  ;;  %v5606_v36 = vrot.slane %v5602_v5, 1  ;;  %20056 = vmatprep.subr.bf16.mxu0 %v21515_v31  ;;  %v5806_v58 = vor.u32 %v5804_v52, %v25164_v45 }
 0x6b7   :  { %v5584_v21 = vor.u32 %v5583_v48, %v5580_v18  ;;  %v5609_v19 = vsel %vm664_vm1, %v5601_v61, %v5605_v57  ;;  %v9053_v61 = vrot.slane %v9051_v53, 5  ;;  %v9043_v18 = vrot.slane %v7395_v16, 4 }
 0x6b8   :  { %v5588_v8 = vsel %vm25125_vm15, %v5576_v55, %v5587_v47  ;;  %v5611_v35 = vpack.c.bf16 %v5609_v19, %v5609_v19  ;;  %v5610_v28 = vsel %vm664_vm1, %v5602_v5, %v5606_v36  ;;  %v9044_v48 = vrot.slane %v5780_v6, 5  ;;  %v21525_v6 = vld [vmem:[%s29489_s5 + $0x2f0] ss:$12 sps:$4 sm:$0xff]  }
 0x6b9   :  { %5589 = vst [vmem:[#allocation3 + $0x20] sm:$0x30] %v5588_v8  ;;  %v5591_v9 = vsel %vm25125_vm15, %v5584_v21, %v5590_v17  ;;  %v5612_v10 = vpack.c.bf16 %v5610_v28, %v5610_v28  ;;  %20057 = vmatpush3.bf16.msra.mxu0 %v21516_v56  ;;  %v5798_v57 = vor.u32 %v7395_v16, %v25159_v22  ;;  %v21524_v56 = vld [vmem:[%s29489_s5 + $0x218] ss:$12 sps:$4 sm:$0xff]   ;;  %v9036_v55 = vshrl.u32 %v25240_v33, 16 }
 0x6ba   :  { %5592 = vst [vmem:[#allocation3 + $0x28] sm:$0x30] %v5591_v9  ;;  %v5614_v14 = vshrl.u32 %v5611_v35, 16  ;;  %20058 = vmatprep.subr.bf16.mxu0 %v21517_v51  ;;  %v5617_v11 = vshll.u32 %v5611_v35, 16  ;;  %v9039_v17 = vshll.u32 %v25240_v33, 16  ;;  %v9054_v22 = vor.u32 %v9053_v61, %v9050_v59 }
 0x6bb   :  { %v5621_v49 = vshrl.u32 %v5612_v10, 16  ;;  %v5624_v39 = vshll.u32 %v5612_v10, 16  ;;  %v9045_v19 = vor.u32 %v9044_v48, %v9043_v18  ;;  %v21526_v8 = vld [vmem:[%s29489_s5 + $0x230] ss:$12 sps:$4 sm:$0xff]   ;;  %v9038_v35 = vrot.slane %v9036_v55, 4 }
 0x6bc   :  { %v5616_v23 = vrot.slane %v5614_v14, 7  ;;  %v25267_v21 = vsel %vm3756_vm8, %v9054_v22, %v25221_v30  ;;  %v9041_v28 = vrot.slane %v9039_v17, 5  ;;  %v21529_v9 = vld [vmem:[%s29489_s5 + $0x484] ss:$12 sps:$4 sm:$0xff]   ;;  %v21527_v16 = vld [vmem:[%s29489_s5 + $0x480] ss:$12 sps:$4 sm:$0xff]  }
 0x6bd   :  { %v5623_v44 = vrot.slane %v5621_v49, 7  ;;  %20059 = vmatpush3.bf16.msra.mxu0 %v21518_v50  ;;  %v21535_v59 = vld [vmem:[%s29489_s5 + $0x4b4] ss:$12 sps:$4 sm:$0xff]   ;;  %v21538_v61 = vld [vmem:[%s29489_s5 + $0x4cc] ss:$12 sps:$4 sm:$0xff]   ;;  %v6345_v18 = vrot.slane %v25209_v2, 4 }
 0x6be   :  { %v5619_v37 = vor.u32 %v5617_v11, %v5616_v23  ;;  %20060 = vmatprep.subr.bf16.mxu0 %v21519_v20  ;;  %v9042_v50 = vor.u32 %v9041_v28, %v9038_v35  ;;  %v21544_v48 = vld [vmem:[%s29489_s5 + $0x4fc] ss:$12 sps:$4 sm:$0xff]   ;;  %v21547_v2 = vld [vmem:[%s29489_s5 + $0x514] ss:$12 sps:$4 sm:$0xff]   ;;  %v21550_v17 = vld [vmem:[%s29489_s5 + $0x52c] ss:$12 sps:$4 sm:$0xff]  }
 0x6bf   :  { %v5626_v62 = vor.u32 %v5624_v39, %v5623_v44  ;;  %v21545_v55 = vld [vmem:[%s29489_s5 + $0x510] ss:$12 sps:$4 sm:$0xff]   ;;  %v21554_v35 = vld [vmem:[%s29489_s5 + $0x558] ss:$12 sps:$4 sm:$0xff]   ;;  %v21559_v28 = vld [vmem:[%s29489_s5 + $0x574] ss:$12 sps:$4 sm:$0xff]  }
 0x6c0   :  { %v5630_v29 = vsel %vm25136_vm4, %v5619_v37, %v5629_v60  ;;  %v25225_v4 = vld [vmem:[#allocation3 + $0x20] sm:$0xff]  ;;  %v25284_v49 = vsel %vm3756_vm8, %v9042_v50, %v9045_v19  ;;  %v21560_v50 = vld [vmem:[%s29489_s5 + $0x588] ss:$12 sps:$4 sm:$0xff]  }
 0x6c1   :  { %5631 = vst [vmem:[#allocation3 + $0x30] sm:$0x3] %v5630_v29  ;;  %v5633_v12 = vsel %vm25136_vm4, %v5626_v62, %v5632_v46  ;;  %v25230_v25 = vld [vmem:[#allocation3 + $0x28] sm:$0xff]  ;;  %v5800_v41 = vshll.u32 %v25225_v4, 16  ;;  %20061 = vmatpush3.bf16.msra.mxu0 %v21520_v24  ;;  %v5812_v10 = vshrl.u32 %v25225_v4, 16 }
 0x6c2   :  { %5634 = vst [vmem:[#allocation3 + $0x38] sm:$0x3] %v5633_v12  ;;  %v5808_v31 = vshll.u32 %v25230_v25, 16  ;;  %20062 = vmatprep.subr.bf16.mxu0 %v21521_v32  ;;  %v5815_v5 = vshrl.u32 %v25230_v25, 16  ;;  %v21553_v22 = vld [vmem:[%s29489_s5 + $0x544] ss:$12 sps:$4 sm:$0xff]  }
 0x6c3   :  { %v5802_v7 = vrot.slane %v5800_v41, 1  ;;  %v9059_v60 = vrot.slane %v5812_v10, 4  ;;  %v9060_v44 = vrot.slane %v5800_v41, 5  ;;  %v21532_v41 = vld [vmem:[%s29489_s5 + $0x49c] ss:$12 sps:$4 sm:$0xff]  }
 0x6c4   :  { %v5810_v47 = vrot.slane %v5808_v31, 1  ;;  %v9063_v23 = vrot.slane %v5815_v5, 4  ;;  %v9064_v11 = vrot.slane %v5808_v31, 5  ;;  %v21530_v31 = vld [vmem:[%s29489_s5 + $0x498] ss:$12 sps:$4 sm:$0xff]  }
 0x6c5   :  { %20063 = vmatpush3.bf16.msra.mxu0 %v21522_v54  ;;  %v25262_v51 = vsel %vm841_vm6, %v5798_v57, %v5802_v7  ;;  %v25277_v52 = vor.u32 %v5812_v10, %v5802_v7  ;;  %v9061_v13 = vor.u32 %v9060_v44, %v9059_v60  ;;  %v21541_v7 = vld [vmem:[%s29489_s5 + $0x4e4] ss:$12 sps:$4 sm:$0xff]   ;;  %v21562_v10 = vld [vmem:[%s29489_s5 + $0x58c] ss:$12 sps:$4 sm:$0xff]   ;;  %v21568_v60 = vld [vmem:[%s29489_s5 + $0x5bc] ss:$12 sps:$4 sm:$0xff]  }
 0x6c6   :  { %v25253_v45 = vsel %vm841_vm6, %v5806_v58, %v5810_v47  ;;  %v25255_v36 = vor.u32 %v5815_v5, %v5810_v47  ;;  %20064 = vmatprep.subr.bf16.mxu0 %v21523_v63  ;;  %v9065_v39 = vor.u32 %v9064_v11, %v9063_v23  ;;  %v21536_v58 = vld [vmem:[%s29489_s5 + $0x4c8] ss:$12 sps:$4 sm:$0xff]   ;;  %v6346_v47 = vrot.slane %v25151_v38, 4  ;;  %v21539_v5 = vld [vmem:[%s29489_s5 + $0x4e0] ss:$12 sps:$4 sm:$0xff]  }
 0x6c7   :  { %6122 = vmatprep.mubr.bf16.mxu0 %v25253_v45  ;;  %v25297_v62 = vsel %vm3756_vm8, %v9045_v19, %v9061_v13  ;;  %v21551_v19 = vld [vmem:[%s29489_s5 + $0x540] ss:$12 sps:$4 sm:$0xff]   ;;  %v21565_v23 = vld [vmem:[%s29489_s5 + $0x5a4] ss:$12 sps:$4 sm:$0xff]  }
 0x6c8   :  { %6123 = vmatmul.mubr.bf16.gmra.mrb[36].mxu0 %v25262_v51  ;;  %v25281_v20 = vld [vmem:[#allocation3 + $0x30] sm:$0xf]  ;;  %v25294_v32 = vsel %vm3756_vm8, %v25221_v30, %v9065_v39  ;;  %v25345_v57 = vsel %vm1262_vm11, %v6345_v18, %v6346_v47  ;;  %v21563_v11 = vld [vmem:[%s29489_s5 + $0x5a0] ss:$12 sps:$4 sm:$0xff]   ;;  %v21566_v44 = vld [vmem:[%s29489_s5 + $0x5b8] ss:$12 sps:$4 sm:$0xff]  }
 0x6c9   :  { %6128 = vmatprep.mubr.bf16.mxu0 %v25255_v36  ;;  %20065 = vmatpush3.bf16.msra.mxu0 %v21524_v56  ;;  %v25279_v14 = vld [vmem:[#allocation3 + $0x38] sm:$0xf]  ;;  %v9068_v37 = vshrl.u32 %v25281_v20, 16  ;;  %v9071_v46 = vshll.u32 %v25281_v20, 16  ;;  %v21583_v18 = vld [vmem:[%s29489_s5 + $0x5a8] ss:$12 sps:$4 sm:$0xff]  }
 0x6ca   :  { %20066 = vmatprep.subr.bf16.mxu0 %v21525_v6  ;;  %v9077_v24 = vshrl.u32 %v25279_v14, 16  ;;  %v9080_v34 = vshll.u32 %v25279_v14, 16  ;;  %v21542_v56 = vld [vmem:[%s29489_s5 + $0x4f8] ss:$12 sps:$4 sm:$0xff]   ;;  %v21548_v6 = vld [vmem:[%s29489_s5 + $0x528] ss:$12 sps:$4 sm:$0xff]  }
 0x6cb   :  { %v9073_v29 = vrot.slane %v9071_v46, 5  ;;  %v6343_v46 = vrot.slane %v25148_v27, 4 }
 0x6cc   :  { %v9079_v42 = vrot.slane %v9077_v24, 4  ;;  %v9082_v53 = vrot.slane %v9080_v34, 5  ;;  %v21569_v24 = vld [vmem:[%s29489_s5 + $0x5d0] ss:$12 sps:$4 sm:$0xff]   ;;  %v21574_v34 = vld [vmem:[%s29489_s5 + $0x5ec] ss:$12 sps:$4 sm:$0xff]  }
 0x6cd   :  { %20067 = vmatpush3.bf16.msra.mxu0 %v21526_v8  ;;  %v21556_v8 = vld [vmem:[%s29489_s5 + $0x55c] ss:$12 sps:$4 sm:$0xff]  }
 0x6ce   :  { %6618 = vmatprep.subr.bf16.mxu0 %v21529_v9  ;;  %v9083_v12 = vor.u32 %v9082_v53, %v9079_v42  ;;  %v21557_v9 = vld [vmem:[%s29489_s5 + $0x570] ss:$12 sps:$4 sm:$0xff]   ;;  %v6350_v42 = vrot.slane %v25230_v25, 4  ;;  %v6342_v53 = vrot.slane %v25240_v33, 4  ;;  %v21578_v33 = vld [vmem:[%s29489_s5 + $0x4a0] ss:$12 sps:$4 sm:$0xff]  }
 0x6d0   :  { %6129 = vmatmul.mubr.bf16.gmra.mrb[40].mxu0 %v25277_v52  ;;  %v25306_v30 = vsel %vm3756_vm8, %v9065_v39, %v9083_v12  ;;  %v21571_v39 = vld [vmem:[%s29489_s5 + $0x5d4] ss:$12 sps:$4 sm:$0xff]   ;;  %v6351_v12 = vsel %vm1262_vm11, %v6346_v47, %v6350_v42  ;;  %v6267_v47 = vld [vmem:[#allocation3 + $0x30] sm:$0x7] }
 0x6d1   :  { %6171 = vmatprep.mubr.bf16.mxu0 %v25171_v3  ;;  %v9070_v3 = vrot.slane %v9068_v37, 4  ;;  %v21575_v37 = vld [vmem:[%s29489_s5 + $0x548] ss:$12 sps:$4 sm:$0xff]  }
 0x6d3   :  { %v9074_v54 = vor.u32 %v9073_v29, %v9070_v3  ;;  %v21576_v3 = vld [vmem:[%s29489_s5 + $0x488] ss:$12 sps:$4 sm:$0xff]   ;;  %v21577_v29 = vld [vmem:[%s29489_s5 + $0x560] ss:$12 sps:$4 sm:$0xff]  }
 0x6d5   :  { %v25310_v63 = vsel %vm3756_vm8, %v9061_v13, %v9074_v54  ;;  %v21572_v13 = vld [vmem:[%s29489_s5 + $0x5e8] ss:$12 sps:$4 sm:$0xff]   ;;  %v21579_v54 = vld [vmem:[%s29489_s5 + $0x578] ss:$12 sps:$4 sm:$0xff]  }
 0x6d8   :  { %6172 = vmatmul.mubr.bf16.vlgmr.msra.gmra.mrb[44].mxu0 %v25180_v15  ;;  %v21533_v15 = vld [vmem:[%s29489_s5 + $0x4b0] ss:$12 sps:$4 sm:$0xff]  }
 0x6d9   :  { %6619 = vmatpush1.bf16.msra.mxu0 %v21527_v16  ;;  %6179 = vmatprep.mubr.bf16.mxu0 %v25253_v45  ;;  %v6344_v16 = vsel %vm1262_vm11, %v6342_v53, %v6343_v46  ;;  %v21609_v53 = vld [vmem:[%s29489_s5 + $0x810] ss:$12 sps:$4 sm:$0xff]  }
 0x6da   :  { %6620 = vmatprep.subr.bf16.mxu0 %v21532_v41  ;;  %v6268_v41 = vld [vmem:[#allocation3 + $0x38] sm:$0x7] }
 0x6dd   :  { %6621 = vmatpush1.bf16.msra.mxu0 %v21530_v31  ;;  %v6348_v31 = vrot.slane %v25225_v4, 4 }
 0x6de   :  { %6622 = vmatprep.subr.bf16.mxu0 %v21535_v59  ;;  %v6354_v59 = vrot.slane %v6268_v41, 4  ;;  %v21618_v41 = vld [vmem:[%s29489_s5 + $0x858] ss:$12 sps:$4 sm:$0xff]  }
 0x6e0   :  { %6180 = vmatmul.mubr.bf16.gmra.mrb[48].mxu0 %v25262_v51 }
 0x6e1   :  { %6623 = vmatpush1.bf16.msra.mxu0 %v21533_v15  ;;  %6185 = vmatprep.mubr.bf16.mxu0 %v25255_v36  ;;  %v21580_v15 = vld [vmem:[%s29489_s5 + $0x4b8] ss:$12 sps:$4 sm:$0xff]  }
 0x6e2   :  { %6624 = vmatprep.subr.bf16.mxu0 %v21538_v61  ;;  %v21581_v61 = vld [vmem:[%s29489_s5 + $0x590] ss:$12 sps:$4 sm:$0xff]  }
 0x6e5   :  { %6625 = vmatpush1.bf16.msra.mxu0 %v21536_v58  ;;  %v6349_v58 = vsel %vm1262_vm11, %v6343_v46, %v6348_v31  ;;  %v21606_v46 = vld [vmem:[%s29489_s5 + $0x7f8] ss:$12 sps:$4 sm:$0xff]  }
 0x6e6   :  { %6626 = vmatprep.subr.bf16.mxu0 %v21541_v7  ;;  %v6355_v7 = vsel %vm1262_vm11, %v6350_v42, %v6354_v59  ;;  %v21611_v42 = vld [vmem:[%s29489_s5 + $0x814] ss:$12 sps:$4 sm:$0xff]   ;;  %v21626_v59 = vld [vmem:[%s29489_s5 + $0x88c] ss:$12 sps:$4 sm:$0xff]  }
 0x6e8   :  { %6186 = vmatmul.mubr.bf16.gmra.mrb[52].mxu0 %v25277_v52 }
 0x6e9   :  { %6627 = vmatpush1.bf16.msra.mxu0 %v21539_v5  ;;  %6650 = vmatprep.mubr.bf16.mxu0 %v25345_v57  ;;  %v21582_v5 = vld [vmem:[%s29489_s5 + $0x4d0] ss:$12 sps:$4 sm:$0xff]  }
 0x6ea   :  { %6628 = vmatprep.subr.bf16.mxu0 %v21544_v48  ;;  %v6352_v48 = vrot.slane %v6267_v47, 4  ;;  %v21630_v47 = vld [vmem:[%s29489_s5 + $0x8b8] ss:$12 sps:$4 sm:$0xff]  }
 0x6ed   :  { %6629 = vmatpush1.bf16.msra.mxu0 %v21542_v56  ;;  %v21584_v56 = vld [vmem:[%s29489_s5 + $0x4e8] ss:$12 sps:$4 sm:$0xff]  }
 0x6ee   :  { %6630 = vmatprep.subr.bf16.mxu0 %v21547_v2  ;;  %v21585_v2 = vld [vmem:[%s29489_s5 + $0x5c0] ss:$12 sps:$4 sm:$0xff]  }
 0x6f1   :  { %6631 = vmatpush1.bf16.msra.mxu0 %v21545_v55  ;;  %v6353_v55 = vsel %vm1262_vm11, %v6348_v31, %v6352_v48  ;;  %v21621_v31 = vld [vmem:[%s29489_s5 + $0x870] ss:$12 sps:$4 sm:$0xff]   ;;  %v21638_v48 = vld [vmem:[%s29489_s5 + $0x8ec] ss:$12 sps:$4 sm:$0xff]  }
 0x6f2   :  { %6632 = vmatprep.subr.bf16.mxu0 %v21550_v17  ;;  %v21586_v17 = vld [vmem:[%s29489_s5 + $0x500] ss:$12 sps:$4 sm:$0xff]  }
 0x6f5   :  { %6633 = vmatpush1.bf16.msra.mxu0 %v21548_v6  ;;  %v21587_v6 = vld [vmem:[%s29489_s5 + $0x5d8] ss:$12 sps:$4 sm:$0xff]  }
 0x6f6   :  { %6634 = vmatprep.subr.bf16.mxu0 %v21553_v22  ;;  %v21588_v22 = vld [vmem:[%s29489_s5 + $0x518] ss:$12 sps:$4 sm:$0xff]  }
 0x6f9   :  { %6635 = vmatpush1.bf16.msra.mxu0 %v21551_v19  ;;  %v21589_v19 = vld [vmem:[%s29489_s5 + $0x5f0] ss:$12 sps:$4 sm:$0xff]  }
 0x6fa   :  { %6636 = vmatprep.subr.bf16.mxu0 %v21556_v8  ;;  %v21593_v8 = vld [vmem:[%s29489_s5 + $0x784] ss:$12 sps:$4 sm:$0xff]  }
 0x6fd   :  { %6637 = vmatpush1.bf16.msra.mxu0 %v21554_v35  ;;  %v21591_v35 = vld [vmem:[%s29489_s5 + $0x780] ss:$12 sps:$4 sm:$0xff]  }
 0x6fe   :  { %6638 = vmatprep.subr.bf16.mxu0 %v21559_v28  ;;  %v21596_v28 = vld [vmem:[%s29489_s5 + $0x79c] ss:$12 sps:$4 sm:$0xff]  }
 0x701   :  { %6639 = vmatpush1.bf16.msra.mxu0 %v21557_v9  ;;  %v21594_v9 = vld [vmem:[%s29489_s5 + $0x798] ss:$12 sps:$4 sm:$0xff]  }
 0x702   :  { %6640 = vmatprep.subr.bf16.mxu0 %v21562_v10  ;;  %v21599_v10 = vld [vmem:[%s29489_s5 + $0x7b4] ss:$12 sps:$4 sm:$0xff]  }
 0x705   :  { %6641 = vmatpush1.bf16.msra.mxu0 %v21560_v50  ;;  %v21597_v50 = vld [vmem:[%s29489_s5 + $0x7b0] ss:$12 sps:$4 sm:$0xff]  }
 0x706   :  { %6642 = vmatprep.subr.bf16.mxu0 %v21565_v23  ;;  %v21602_v23 = vld [vmem:[%s29489_s5 + $0x7cc] ss:$12 sps:$4 sm:$0xff]  }
 0x709   :  { %6643 = vmatpush1.bf16.msra.mxu0 %v21563_v11  ;;  %v21600_v11 = vld [vmem:[%s29489_s5 + $0x7c8] ss:$12 sps:$4 sm:$0xff]  }
 0x70a   :  { %6644 = vmatprep.subr.bf16.mxu0 %v21568_v60  ;;  %v21605_v60 = vld [vmem:[%s29489_s5 + $0x7e4] ss:$12 sps:$4 sm:$0xff]  }
 0x70d   :  { %6645 = vmatpush1.bf16.msra.mxu0 %v21566_v44  ;;  %v6800_v44 = vld [vmem:[#allocation3 + $0x8] sm:$0xe0] }
 0x70e   :  { %6646 = vmatprep.subr.bf16.mxu0 %v21571_v39  ;;  %v6874_v39 = vrot.slane %v25151_v38, 5  ;;  %v21644_v38 = vld [vmem:[%s29489_s5 + $0x7b8] ss:$12 sps:$4 sm:$0xff]  }
 0x711   :  { %6647 = vmatpush1.bf16.msra.mxu0 %v21569_v24  ;;  %v21603_v24 = vld [vmem:[%s29489_s5 + $0x7e0] ss:$12 sps:$4 sm:$0xff]  }
 0x712   :  { %6648 = vmatprep.subr.bf16.mxu0 %v21574_v34  ;;  %v6873_v34 = vrot.slane %v6800_v44, 5  ;;  %v21648_v44 = vld [vmem:[%s29489_s5 + $0x7e8] ss:$12 sps:$4 sm:$0xff]  }
 0x715   :  { %6649 = vmatpush1.bf16.msra.mxu0 %v21572_v13  ;;  %v21608_v13 = vld [vmem:[%s29489_s5 + $0x7fc] ss:$12 sps:$4 sm:$0xff]  }
 0x716   :  { %20086 = vmatprep.subr.bf16.mxu0 %v21575_v37  ;;  %v25508_v37 = vsel %vm668_vm3, %v6873_v34, %v6874_v39  ;;  %v21651_v34 = vld [vmem:[%s29489_s5 + $0x8d8] ss:$12 sps:$4 sm:$0xff]  }
 0x718   :  { %6651 = vmatmul.mubr.bf16.vlgmr.msra.gmra.mrb[32].mxu0 %v6344_v16 }
 0x719   :  { %6660 = vmatprep.mubr.bf16.mxu0 %v6351_v12  ;;  %20087 = vmatpush3.bf16.msra.mxu0 %v21576_v3  ;;  %v21614_v3 = vld [vmem:[%s29489_s5 + $0x82c] ss:$12 sps:$4 sm:$0xff]  }
 0x71a   :  { %20088 = vmatprep.subr.bf16.mxu0 %v21577_v29  ;;  %v21612_v29 = vld [vmem:[%s29489_s5 + $0x828] ss:$12 sps:$4 sm:$0xff]  }
 0x71d   :  { %20089 = vmatpush3.bf16.msra.mxu0 %v21578_v33  ;;  %v21620_v33 = vld [vmem:[%s29489_s5 + $0x85c] ss:$12 sps:$4 sm:$0xff]  }
 0x71e   :  { %20090 = vmatprep.subr.bf16.mxu0 %v21579_v54  ;;  %v21623_v54 = vld [vmem:[%s29489_s5 + $0x874] ss:$12 sps:$4 sm:$0xff]  }
 0x720   :  { %6661 = vmatmul.mubr.bf16.gmra.mrb[56].mxu0 %v6349_v58 }
 0x721   :  { %6666 = vmatprep.mubr.bf16.mxu0 %v6355_v7  ;;  %20091 = vmatpush3.bf16.msra.mxu0 %v21580_v15  ;;  %v21624_v15 = vld [vmem:[%s29489_s5 + $0x888] ss:$12 sps:$4 sm:$0xff]  }
 0x722   :  { %20092 = vmatprep.subr.bf16.mxu0 %v21581_v61  ;;  %v21629_v61 = vld [vmem:[%s29489_s5 + $0x8a4] ss:$12 sps:$4 sm:$0xff]  }
 0x725   :  { %20093 = vmatpush3.bf16.msra.mxu0 %v21582_v5  ;;  %v21635_v5 = vld [vmem:[%s29489_s5 + $0x8d4] ss:$12 sps:$4 sm:$0xff]  }
 0x726   :  { %20094 = vmatprep.subr.bf16.mxu0 %v21583_v18  ;;  %v21633_v18 = vld [vmem:[%s29489_s5 + $0x8d0] ss:$12 sps:$4 sm:$0xff]  }
 0x728   :  { %6667 = vmatmul.mubr.bf16.gmra.mrb[40].mxu0 %v6353_v55 }
 0x729   :  { %20095 = vmatpush3.bf16.msra.mxu0 %v21584_v56  ;;  %6709 = vmatprep.mubr.bf16.mxu0 %v25345_v57  ;;  %v21590_v57 = vld [vmem:[%s29489_s5 + $0x530] ss:$12 sps:$4 sm:$0xff]   ;;  %v21636_v56 = vld [vmem:[%s29489_s5 + $0x8e8] ss:$12 sps:$4 sm:$0xff]  }
 0x72a   :  { %20096 = vmatprep.subr.bf16.mxu0 %v21585_v2  ;;  %v6799_v2 = vld [vmem:[#allocation3] sm:$0xe0] }
 0x72d   :  { %20097 = vmatpush3.bf16.msra.mxu0 %v21586_v17  ;;  %v6871_v17 = vrot.slane %v25148_v27, 5 }
 0x72e   :  { %20098 = vmatprep.subr.bf16.mxu0 %v21587_v6  ;;  %v6878_v6 = vrot.slane %v25230_v25, 5 }
 0x730   :  { %v6879_v27 = vsel %vm668_vm3, %v6874_v39, %v6878_v6  ;;  %v21649_v39 = vld [vmem:[%s29489_s5 + $0x8c0] ss:$12 sps:$4 sm:$0xff]  }
 0x731   :  { %20099 = vmatpush3.bf16.msra.mxu0 %v21588_v22  ;;  %v6870_v22 = vrot.slane %v6799_v2, 5 }
 0x732   :  { %20100 = vmatprep.subr.bf16.mxu0 %v21589_v19  ;;  %v21640_v19 = vld [vmem:[%s29489_s5 + $0x788] ss:$12 sps:$4 sm:$0xff]  }
 0x735   :  { %20101 = vmatpush3.bf16.msra.mxu0 %v21590_v57  ;;  %v21641_v57 = vld [vmem:[%s29489_s5 + $0x860] ss:$12 sps:$4 sm:$0xff]  }
 0x736   :  { %7146 = vmatprep.subr.bf16.mxu0 %v21593_v8  ;;  %v6872_v8 = vsel %vm668_vm3, %v6870_v22, %v6871_v17 }
 0x738   :  { %6710 = vmatmul.mubr.bf16.vlgmr.msra.gmra.mrb[60].mxu0 %v6344_v16  ;;  %v21617_v16 = vld [vmem:[%s29489_s5 + $0x844] ss:$12 sps:$4 sm:$0xff]  }
 0x739   :  { %6717 = vmatprep.mubr.bf16.mxu0 %v6351_v12  ;;  %7147 = vmatpush1.bf16.msra.mxu0 %v21591_v35  ;;  %v21615_v12 = vld [vmem:[%s29489_s5 + $0x840] ss:$12 sps:$4 sm:$0xff]  }
 0x73a   :  { %7148 = vmatprep.subr.bf16.mxu0 %v21596_v28  ;;  %v21642_v35 = vld [vmem:[%s29489_s5 + $0x7a0] ss:$12 sps:$4 sm:$0xff]   ;;  %v21643_v28 = vld [vmem:[%s29489_s5 + $0x878] ss:$12 sps:$4 sm:$0xff]  }
 0x73d   :  { %7149 = vmatpush1.bf16.msra.mxu0 %v21594_v9  ;;  %v6876_v9 = vrot.slane %v25225_v4, 5  ;;  %v21646_v4 = vld [vmem:[%s29489_s5 + $0x7d0] ss:$12 sps:$4 sm:$0xff]  }
 0x73e   :  { %7150 = vmatprep.subr.bf16.mxu0 %v21599_v10  ;;  %v6882_v10 = vrot.slane %v25279_v14, 5  ;;  %v21647_v14 = vld [vmem:[%s29489_s5 + $0x8a8] ss:$12 sps:$4 sm:$0xff]  }
 0x740   :  { %6718 = vmatmul.mubr.bf16.gmra.mrb[64].mxu0 %v6349_v58  ;;  %v21627_v58 = vld [vmem:[%s29489_s5 + $0x8a0] ss:$12 sps:$4 sm:$0xff]  }
 0x741   :  { %6723 = vmatprep.mubr.bf16.mxu0 %v6355_v7  ;;  %7151 = vmatpush1.bf16.msra.mxu0 %v21597_v50  ;;  %v21632_v7 = vld [vmem:[%s29489_s5 + $0x8bc] ss:$12 sps:$4 sm:$0xff]  }
 0x742   :  { %7152 = vmatprep.subr.bf16.mxu0 %v21602_v23  ;;  %v21645_v50 = vld [vmem:[%s29489_s5 + $0x890] ss:$12 sps:$4 sm:$0xff]   ;;  %v6877_v23 = vsel %vm668_vm3, %v6871_v17, %v6876_v9 }
 0x745   :  { %7153 = vmatpush1.bf16.msra.mxu0 %v21600_v11  ;;  %v6883_v11 = vsel %vm668_vm3, %v6878_v6, %v6882_v10  ;;  %v21678_v6 = vld [vmem:[%s29489_s5 + $0xb2c] ss:$12 sps:$4 sm:$0xff]   ;;  %v21684_v10 = vld [vmem:[%s29489_s5 + $0xb5c] ss:$12 sps:$4 sm:$0xff]  }
 0x746   :  { %7154 = vmatprep.subr.bf16.mxu0 %v21605_v60  ;;  %v6880_v60 = vrot.slane %v25281_v20, 5  ;;  %v21650_v20 = vld [vmem:[%s29489_s5 + $0x800] ss:$12 sps:$4 sm:$0xff]  }
 0x748   :  { %6724 = vmatmul.mubr.bf16.gmra.mrb[68].mxu0 %v6353_v55  ;;  %v21639_v55 = vld [vmem:[%s29489_s5 + $0x848] ss:$12 sps:$4 sm:$0xff]  }
 0x749   :  { %7155 = vmatpush1.bf16.msra.mxu0 %v21603_v24  ;;  %7178 = vmatprep.mubr.bf16.mxu0 %v25508_v37  ;;  %v6881_v24 = vsel %vm668_vm3, %v6876_v9, %v6880_v60  ;;  %v21685_v60 = vld [vmem:[%s29489_s5 + $0xb70] ss:$12 sps:$4 sm:$0xff]  }
 0x74a   :  { %7156 = vmatprep.subr.bf16.mxu0 %v21608_v13  ;;  %v21652_v13 = vld [vmem:[%s29489_s5 + $0x818] ss:$12 sps:$4 sm:$0xff]  }
 0x74d   :  { %7157 = vmatpush1.bf16.msra.mxu0 %v21606_v46  ;;  %v21653_v46 = vld [vmem:[%s29489_s5 + $0x8f0] ss:$12 sps:$4 sm:$0xff]  }
 0x74e   :  { %7158 = vmatprep.subr.bf16.mxu0 %v21611_v42  ;;  %v21657_v42 = vld [vmem:[%s29489_s5 + $0xa84] ss:$12 sps:$4 sm:$0xff]  }
 0x751   :  { %7159 = vmatpush1.bf16.msra.mxu0 %v21609_v53  ;;  %v21655_v53 = vld [vmem:[%s29489_s5 + $0xa80] ss:$12 sps:$4 sm:$0xff]  }
 0x752   :  { %7160 = vmatprep.subr.bf16.mxu0 %v21614_v3  ;;  %v21660_v3 = vld [vmem:[%s29489_s5 + $0xa9c] ss:$12 sps:$4 sm:$0xff]  }
 0x755   :  { %7161 = vmatpush1.bf16.msra.mxu0 %v21612_v29  ;;  %v21658_v29 = vld [vmem:[%s29489_s5 + $0xa98] ss:$12 sps:$4 sm:$0xff]  }
 0x756   :  { %7162 = vmatprep.subr.bf16.mxu0 %v21617_v16  ;;  %v21663_v16 = vld [vmem:[%s29489_s5 + $0xab4] ss:$12 sps:$4 sm:$0xff]  }
 0x759   :  { %7163 = vmatpush1.bf16.msra.mxu0 %v21615_v12 }
 0x75a   :  { %7164 = vmatprep.subr.bf16.mxu0 %v21620_v33 }
 0x75d   :  { %7165 = vmatpush1.bf16.msra.mxu0 %v21618_v41 }
 0x75e   :  { %7166 = vmatprep.subr.bf16.mxu0 %v21623_v54  ;;  %v21661_v54 = vld [vmem:[%s29489_s5 + $0xab0] ss:$12 sps:$4 sm:$0xff]  }
 0x761   :  { %7167 = vmatpush1.bf16.msra.mxu0 %v21621_v31 }
 0x762   :  { %7168 = vmatprep.subr.bf16.mxu0 %v21626_v59  ;;  %v21666_v59 = vld [vmem:[%s29489_s5 + $0xacc] ss:$12 sps:$4 sm:$0xff]  }
 0x765   :  { %7169 = vmatpush1.bf16.msra.mxu0 %v21624_v15  ;;  %v21664_v15 = vld [vmem:[%s29489_s5 + $0xac8] ss:$12 sps:$4 sm:$0xff]  }
 0x766   :  { %7170 = vmatprep.subr.bf16.mxu0 %v21629_v61  ;;  %v21669_v61 = vld [vmem:[%s29489_s5 + $0xae4] ss:$12 sps:$4 sm:$0xff]  }
 0x769   :  { %7171 = vmatpush1.bf16.msra.mxu0 %v21627_v58  ;;  %v21667_v58 = vld [vmem:[%s29489_s5 + $0xae0] ss:$12 sps:$4 sm:$0xff]  }
 0x76a   :  { %7172 = vmatprep.subr.bf16.mxu0 %v21632_v7  ;;  %v21672_v7 = vld [vmem:[%s29489_s5 + $0xafc] ss:$12 sps:$4 sm:$0xff]  }
 0x76d   :  { %7173 = vmatpush1.bf16.msra.mxu0 %v21630_v47  ;;  %v21670_v47 = vld [vmem:[%s29489_s5 + $0xaf8] ss:$12 sps:$4 sm:$0xff]  }
 0x76e   :  { %7174 = vmatprep.subr.bf16.mxu0 %v21635_v5  ;;  %v21675_v5 = vld [vmem:[%s29489_s5 + $0xb14] ss:$12 sps:$4 sm:$0xff]  }
 0x771   :  { %7175 = vmatpush1.bf16.msra.mxu0 %v21633_v18 }
 0x772   :  { %7176 = vmatprep.subr.bf16.mxu0 %v21638_v48 }
 0x775   :  { %7177 = vmatpush1.bf16.msra.mxu0 %v21636_v56 }
 0x776   :  { %20120 = vmatprep.subr.bf16.mxu0 %v21639_v55  ;;  %v21673_v55 = vld [vmem:[%s29489_s5 + $0xb10] ss:$12 sps:$4 sm:$0xff]  }
 0x778   :  { %7179 = vmatmul.mubr.bf16.vlgmr.msra.gmra.mrb[32].mxu0 %v6872_v8 }
 0x779   :  { %7188 = vmatprep.mubr.bf16.mxu0 %v6879_v27  ;;  %20121 = vmatpush3.bf16.msra.mxu0 %v21640_v19  ;;  %v21676_v19 = vld [vmem:[%s29489_s5 + $0xb28] ss:$12 sps:$4 sm:$0xff]  }
 0x77a   :  { %20122 = vmatprep.subr.bf16.mxu0 %v21641_v57  ;;  %v21681_v57 = vld [vmem:[%s29489_s5 + $0xb44] ss:$12 sps:$4 sm:$0xff]  }
 0x77d   :  { %20123 = vmatpush3.bf16.msra.mxu0 %v21642_v35 }
 0x77e   :  { %20124 = vmatprep.subr.bf16.mxu0 %v21643_v28  ;;  %v21679_v28 = vld [vmem:[%s29489_s5 + $0xb40] ss:$12 sps:$4 sm:$0xff]  }
 0x780   :  { %7189 = vmatmul.mubr.bf16.gmra.mrb[72].mxu0 %v6877_v23 }
 0x781   :  { %7194 = vmatprep.mubr.bf16.mxu0 %v6883_v11  ;;  %20125 = vmatpush3.bf16.msra.mxu0 %v21644_v38  ;;  %v21682_v38 = vld [vmem:[%s29489_s5 + $0xb58] ss:$12 sps:$4 sm:$0xff]  }
 0x782   :  { %20126 = vmatprep.subr.bf16.mxu0 %v21645_v50  ;;  %v21687_v50 = vld [vmem:[%s29489_s5 + $0xb74] ss:$12 sps:$4 sm:$0xff]  }
 0x785   :  { %20127 = vmatpush3.bf16.msra.mxu0 %v21646_v4 }
 0x786   :  { %20128 = vmatprep.subr.bf16.mxu0 %v21647_v14 }
 0x788   :  { %7195 = vmatmul.mubr.bf16.gmra.mrb[40].mxu0 %v6881_v24 }
 0x789   :  { %20129 = vmatpush3.bf16.msra.mxu0 %v21648_v44  ;;  %7237 = vmatprep.mubr.bf16.mxu0 %v25508_v37  ;;  %v21654_v37 = vld [vmem:[%s29489_s5 + $0x830] ss:$12 sps:$4 sm:$0xff]  }
 0x78a   :  { %20130 = vmatprep.subr.bf16.mxu0 %v21649_v39  ;;  %v21690_v39 = vld [vmem:[%s29489_s5 + $0xb8c] ss:$12 sps:$4 sm:$0xff]  }
 0x78d   :  { %20131 = vmatpush3.bf16.msra.mxu0 %v21650_v20  ;;  %v21688_v20 = vld [vmem:[%s29489_s5 + $0xb88] ss:$12 sps:$4 sm:$0xff]  }
 0x78e   :  { %20132 = vmatprep.subr.bf16.mxu0 %v21651_v34  ;;  %v21693_v34 = vld [vmem:[%s29489_s5 + $0xba4] ss:$12 sps:$4 sm:$0xff]  }
 0x791   :  { %20133 = vmatpush3.bf16.msra.mxu0 %v21652_v13  ;;  %v21691_v13 = vld [vmem:[%s29489_s5 + $0xba0] ss:$12 sps:$4 sm:$0xff]  }
 0x792   :  { %20134 = vmatprep.subr.bf16.mxu0 %v21653_v46  ;;  %v21696_v46 = vld [vmem:[%s29489_s5 + $0xbbc] ss:$12 sps:$4 sm:$0xff]  }
 0x795   :  { %20135 = vmatpush3.bf16.msra.mxu0 %v21654_v37  ;;  %v21694_v37 = vld [vmem:[%s29489_s5 + $0xbb8] ss:$12 sps:$4 sm:$0xff]  }
 0x796   :  { %7702 = vmatprep.subr.bf16.mxu0 %v21657_v42  ;;  %v21699_v42 = vld [vmem:[%s29489_s5 + $0xbd4] ss:$12 sps:$4 sm:$0xff]  }
 0x798   :  { %7238 = vmatmul.mubr.bf16.vlgmr.msra.gmra.mrb[76].mxu0 %v6872_v8 }
 0x799   :  { %7245 = vmatprep.mubr.bf16.mxu0 %v6879_v27  ;;  %7703 = vmatpush1.bf16.msra.mxu0 %v21655_v53  ;;  %v21697_v53 = vld [vmem:[%s29489_s5 + $0xbd0] ss:$12 sps:$4 sm:$0xff]  }
 0x79a   :  { %7704 = vmatprep.subr.bf16.mxu0 %v21660_v3  ;;  %v25734_v3 = vld [vmem:[#allocation3 + $0x38] sm:$0xff] }
 0x79b   :  { %v6124_v12 = vpop.f32.mrb[36].mxu0 }
 0x79c   :  { %v6125_v33 = vpop.f32.mrb[37].mxu0  ;;  %v21700_v12 = vld [vmem:[%s29489_s5 + $0xbe8] ss:$12 sps:$4 sm:$0xff]  }
 0x79d   :  { %7705 = vmatpush1.bf16.msra.mxu0 %v21658_v29  ;;  %v6126_v41 = vpop.f32.mrb[38].mxu0  ;;  %v21702_v29 = vld [vmem:[%s29489_s5 + $0xbec] ss:$12 sps:$4 sm:$0xff]   ;;  %v21703_v33 = vld [vmem:[%s29489_s5 + $0xb48] ss:$12 sps:$4 sm:$0xff]  }
 0x79e   :  { %v6127_v31 = vpop.f32.mrb[39].mxu0  ;;  %7706 = vmatprep.subr.bf16.mxu0 %v21663_v16  ;;  %v7430_v16 = vshll.u32 %v25734_v3, 16 }
 0x79f   :  { %v21704_v31 = vld [vmem:[%s29489_s5 + $0xa88] ss:$12 sps:$4 sm:$0xff]  }
 0x7a0   :  { %7246 = vmatmul.mubr.bf16.gmra.mrb[80].mxu0 %v6877_v23  ;;  %v7432_v41 = vrot.slane %v7430_v16, 1  ;;  %v21739_v16 = vld [vmem:[%s29489_s5 + $0xc94] ss:$12 sps:$4 sm:$0xff]  }
 0x7a1   :  { %7251 = vmatprep.mubr.bf16.mxu0 %v6883_v11  ;;  %7707 = vmatpush1.bf16.msra.mxu0 %v21661_v54  ;;  %v25746_v54 = vld [vmem:[#allocation3 + $0x30] sm:$0xff] }
 0x7a2   :  { %7708 = vmatprep.subr.bf16.mxu0 %v21666_v59  ;;  %v21705_v59 = vld [vmem:[%s29489_s5 + $0xb60] ss:$12 sps:$4 sm:$0xff]  }
 0x7a5   :  { %7709 = vmatpush1.bf16.msra.mxu0 %v21664_v15  ;;  %v7422_v15 = vshll.u32 %v25746_v54, 16 }
 0x7a6   :  { %7710 = vmatprep.subr.bf16.mxu0 %v21669_v61  ;;  %v7433_v61 = vsel %vm841_vm6, %v25255_v36, %v7432_v41  ;;  %v21709_v36 = vld [vmem:[%s29489_s5 + $0xb90] ss:$12 sps:$4 sm:$0xff]  }
 0x7a8   :  { %7252 = vmatmul.mubr.bf16.gmra.mrb[84].mxu0 %v6881_v24 }
 0x7a9   :  { %7711 = vmatpush1.bf16.msra.mxu0 %v21667_v58  ;;  %7734 = vmatprep.mubr.bf16.mxu0 %v25253_v45  ;;  %v21706_v58 = vld [vmem:[%s29489_s5 + $0xaa0] ss:$12 sps:$4 sm:$0xff]  }
 0x7aa   :  { %7712 = vmatprep.subr.bf16.mxu0 %v21672_v7  ;;  %v21707_v7 = vld [vmem:[%s29489_s5 + $0xb78] ss:$12 sps:$4 sm:$0xff]  }
 0x7ab   :  { %v20068_v18 = vpop.f32.mrb[44].mxu0 }
 0x7ac   :  { %v20069_v48 = vpop.f32.mrb[45].mxu0 }
 0x7ad   :  { %v25675_v56 = vadd.f32 %v20069_v48, %v20068_v18  ;;  %7713 = vmatpush1.bf16.msra.mxu0 %v21670_v47  ;;  %v20071_v2 = vpop.f32.mrb[46].mxu0  ;;  %v7424_v47 = vrot.slane %v7422_v15, 1  ;;  %v21708_v18 = vld [vmem:[%s29489_s5 + $0xab8] ss:$12 sps:$4 sm:$0xff]  }
 0x7ae   :  { %v20072_v17 = vpop.f32.mrb[47].mxu0  ;;  %7714 = vmatprep.subr.bf16.mxu0 %v21675_v5  ;;  %v7437_v5 = vshrl.u32 %v25734_v3, 16 }
 0x7af   :  { %v25683_v22 = vadd.f32 %v20072_v17, %v20071_v2  ;;  %v7425_v48 = vsel %vm841_vm6, %v25277_v52, %v7424_v47  ;;  %v21711_v17 = vld [vmem:[%s29489_s5 + $0xba8] ss:$12 sps:$4 sm:$0xff]  }
 0x7b0   :  { %v7439_v2 = vor.u32 %v7437_v5, %v7432_v41  ;;  %v21712_v52 = vld [vmem:[%s29489_s5 + $0xae8] ss:$12 sps:$4 sm:$0xff]  }
 0x7b1   :  { %7715 = vmatpush1.bf16.msra.mxu0 %v21673_v55  ;;  %v21710_v55 = vld [vmem:[%s29489_s5 + $0xad0] ss:$12 sps:$4 sm:$0xff]  }
 0x7b2   :  { %7716 = vmatprep.subr.bf16.mxu0 %v21678_v6  ;;  %v7434_v6 = vshrl.u32 %v25746_v54, 16 }
 0x7b3   :  { %v20074_v8 = vpop.f32.mrb[48].mxu0 }
 0x7b4   :  { %v20075_v27 = vpop.f32.mrb[49].mxu0  ;;  %v21714_v8 = vld [vmem:[%s29489_s5 + $0xb00] ss:$12 sps:$4 sm:$0xff]  }
 0x7b5   :  { %7717 = vmatpush1.bf16.msra.mxu0 %v21676_v19  ;;  %v20077_v35 = vpop.f32.mrb[50].mxu0  ;;  %v7436_v19 = vor.u32 %v7434_v6, %v7424_v47  ;;  %v21715_v27 = vld [vmem:[%s29489_s5 + $0xbd8] ss:$12 sps:$4 sm:$0xff]   ;;  %v21751_v6 = vld [vmem:[%s29489_s5 + $0xcf4] ss:$12 sps:$4 sm:$0xff]  }
 0x7b6   :  { %v20078_v9 = vpop.f32.mrb[51].mxu0  ;;  %7718 = vmatprep.subr.bf16.mxu0 %v21681_v57  ;;  %v21713_v57 = vld [vmem:[%s29489_s5 + $0xbc0] ss:$12 sps:$4 sm:$0xff]   ;;  %v21716_v35 = vld [vmem:[%s29489_s5 + $0xb18] ss:$12 sps:$4 sm:$0xff]  }
 0x7b7   :  { %v21721_v9 = vld [vmem:[%s29489_s5 + $0xc04] ss:$12 sps:$4 sm:$0xff]  }
 0x7b8   :  { %v21745_v47 = vld [vmem:[%s29489_s5 + $0xcc4] ss:$12 sps:$4 sm:$0xff]  }
 0x7b9   :  { %7719 = vmatpush1.bf16.msra.mxu0 %v21679_v28  ;;  %v21717_v28 = vld [vmem:[%s29489_s5 + $0xbf0] ss:$12 sps:$4 sm:$0xff]  }
 0x7ba   :  { %7720 = vmatprep.subr.bf16.mxu0 %v21684_v10 }
 0x7bb   :  { %v20080_v23 = vpop.f32.mrb[52].mxu0 }
 0x7bc   :  { %v20081_v11 = vpop.f32.mrb[53].mxu0 }
 0x7bd   :  { %v25703_v4 = vadd.f32 %v20081_v11, %v20080_v23  ;;  %7721 = vmatpush1.bf16.msra.mxu0 %v21682_v38  ;;  %v20083_v14 = vpop.f32.mrb[54].mxu0  ;;  %v21719_v23 = vld [vmem:[%s29489_s5 + $0xc00] ss:$12 sps:$4 sm:$0xff]  }
 0x7be   :  { %v20084_v44 = vpop.f32.mrb[55].mxu0  ;;  %7722 = vmatprep.subr.bf16.mxu0 %v21687_v50 }
 0x7bf   :  { %v25711_v24 = vadd.f32 %v20084_v44, %v20083_v14  ;;  %v21724_v14 = vld [vmem:[%s29489_s5 + $0xc1c] ss:$12 sps:$4 sm:$0xff]   ;;  %v21727_v44 = vld [vmem:[%s29489_s5 + $0xc34] ss:$12 sps:$4 sm:$0xff]  }
 0x7c1   :  { %7723 = vmatpush1.bf16.msra.mxu0 %v21685_v60  ;;  %v21722_v60 = vld [vmem:[%s29489_s5 + $0xc18] ss:$12 sps:$4 sm:$0xff]  }
 0x7c2   :  { %7724 = vmatprep.subr.bf16.mxu0 %v21690_v39  ;;  %v21725_v39 = vld [vmem:[%s29489_s5 + $0xc30] ss:$12 sps:$4 sm:$0xff]  }
 0x7c5   :  { %7725 = vmatpush1.bf16.msra.mxu0 %v21688_v20  ;;  %v21728_v20 = vld [vmem:[%s29489_s5 + $0xc48] ss:$12 sps:$4 sm:$0xff]  }
 0x7c6   :  { %7726 = vmatprep.subr.bf16.mxu0 %v21693_v34  ;;  %v21733_v34 = vld [vmem:[%s29489_s5 + $0xc64] ss:$12 sps:$4 sm:$0xff]  }
 0x7c9   :  { %7727 = vmatpush1.bf16.msra.mxu0 %v21691_v13  ;;  %v7817_v13 = vld [vmem:[#allocation3 + $0x18] sm:$0xfe] }
 0x7ca   :  { %7728 = vmatprep.subr.bf16.mxu0 %v21696_v46  ;;  %v25831_v46 = vrot.slane %v25230_v25, 1  ;;  %v21734_v25 = vld [vmem:[%s29489_s5 + $0xc78] ss:$12 sps:$4 sm:$0xff]  }
 0x7cd   :  { %7729 = vmatpush1.bf16.msra.mxu0 %v21694_v37  ;;  %v21731_v37 = vld [vmem:[%s29489_s5 + $0xc60] ss:$12 sps:$4 sm:$0xff]  }
 0x7ce   :  { %7730 = vmatprep.subr.bf16.mxu0 %v21699_v42  ;;  %v7890_v42 = vrot.slane %v7817_v13, 1  ;;  %v7895_v13 = vrot.slane %v25734_v3, 1  ;;  %v21770_v3 = vld [vmem:[%s29489_s5 + $0xc20] ss:$12 sps:$4 sm:$0xff]  }
 0x7d1   :  { %7731 = vmatpush1.bf16.msra.mxu0 %v21697_v53  ;;  %v21736_v53 = vld [vmem:[%s29489_s5 + $0xc7c] ss:$12 sps:$4 sm:$0xff]  }
 0x7d2   :  { %7732 = vmatprep.subr.bf16.mxu0 %v21702_v29  ;;  %v25841_v29 = vsel %vm3445_vm10, %v7890_v42, %v25831_v46  ;;  %v21768_v42 = vld [vmem:[%s29489_s5 + $0xc08] ss:$12 sps:$4 sm:$0xff]  }
 0x7d5   :  { %7733 = vmatpush1.bf16.msra.mxu0 %v21700_v12 }
 0x7d6   :  { %20154 = vmatprep.subr.bf16.mxu0 %v21703_v33 }
 0x7d8   :  { %7735 = vmatmul.mubr.bf16.vlgmr.msra.gmra.mrb[32].mxu0 %v25262_v51 }
 0x7d9   :  { %7744 = vmatprep.mubr.bf16.mxu0 %v7433_v61  ;;  %20155 = vmatpush3.bf16.msra.mxu0 %v21704_v31 }
 0x7da   :  { %20156 = vmatprep.subr.bf16.mxu0 %v21705_v59  ;;  %v21737_v59 = vld [vmem:[%s29489_s5 + $0xc90] ss:$12 sps:$4 sm:$0xff]  }
 0x7dd   :  { %20157 = vmatpush3.bf16.msra.mxu0 %v21706_v58 }
 0x7de   :  { %20158 = vmatprep.subr.bf16.mxu0 %v21707_v7  ;;  %v21740_v7 = vld [vmem:[%s29489_s5 + $0xca8] ss:$12 sps:$4 sm:$0xff]  }
 0x7e0   :  { %7745 = vmatmul.mubr.bf16.gmra.mrb[88].mxu0 %v7425_v48 }
 0x7e1   :  { %7750 = vmatprep.mubr.bf16.mxu0 %v7439_v2  ;;  %20159 = vmatpush3.bf16.msra.mxu0 %v21708_v18 }
 0x7e2   :  { %20160 = vmatprep.subr.bf16.mxu0 %v21709_v36 }
 0x7e5   :  { %20161 = vmatpush3.bf16.msra.mxu0 %v21710_v55  ;;  %v21748_v55 = vld [vmem:[%s29489_s5 + $0xcdc] ss:$12 sps:$4 sm:$0xff]  }
 0x7e6   :  { %20162 = vmatprep.subr.bf16.mxu0 %v21711_v17  ;;  %v21746_v17 = vld [vmem:[%s29489_s5 + $0xcd8] ss:$12 sps:$4 sm:$0xff]  }
 0x7e8   :  { %7751 = vmatmul.mubr.bf16.gmra.mrb[40].mxu0 %v7436_v19 }
 0x7e9   :  { %20163 = vmatpush3.bf16.msra.mxu0 %v21712_v52  ;;  %7793 = vmatprep.mubr.bf16.mxu0 %v25253_v45  ;;  %v21718_v45 = vld [vmem:[%s29489_s5 + $0xb30] ss:$12 sps:$4 sm:$0xff]  }
 0x7ea   :  { %20164 = vmatprep.subr.bf16.mxu0 %v21713_v57 }
 0x7ed   :  { %20165 = vmatpush3.bf16.msra.mxu0 %v21714_v8 }
 0x7ee   :  { %20166 = vmatprep.subr.bf16.mxu0 %v21715_v27  ;;  %v21749_v27 = vld [vmem:[%s29489_s5 + $0xcf0] ss:$12 sps:$4 sm:$0xff]  }
 0x7f1   :  { %20167 = vmatpush3.bf16.msra.mxu0 %v21716_v35 }
 0x7f2   :  { %20168 = vmatprep.subr.bf16.mxu0 %v21717_v28  ;;  %v21754_v28 = vld [vmem:[%s29489_s5 + $0xd0c] ss:$12 sps:$4 sm:$0xff]  }
 0x7f3   :  { %v6662_v10 = vpop.f32.mrb[56].mxu0 }
 0x7f4   :  { %v6663_v38 = vpop.f32.mrb[57].mxu0  ;;  %v21757_v10 = vld [vmem:[%s29489_s5 + $0xd24] ss:$12 sps:$4 sm:$0xff]  }
 0x7f5   :  { %v6664_v50 = vpop.f32.mrb[58].mxu0  ;;  %20169 = vmatpush3.bf16.msra.mxu0 %v21718_v45  ;;  %v21755_v38 = vld [vmem:[%s29489_s5 + $0xd20] ss:$12 sps:$4 sm:$0xff]  }
 0x7f6   :  { %v6665_v11 = vpop.f32.mrb[59].mxu0  ;;  %8159 = vmatprep.subr.bf16.mxu0 %v21721_v9  ;;  %v21752_v9 = vld [vmem:[%s29489_s5 + $0xd08] ss:$12 sps:$4 sm:$0xff]  }
 0x7f7   :  { %v21760_v50 = vld [vmem:[%s29489_s5 + $0xd3c] ss:$12 sps:$4 sm:$0xff]   ;;  %v21763_v11 = vld [vmem:[%s29489_s5 + $0xd54] ss:$12 sps:$4 sm:$0xff]  }
 0x7f8   :  { %7794 = vmatmul.mubr.bf16.vlgmr.msra.gmra.mrb[92].mxu0 %v25262_v51  ;;  %v21730_v51 = vld [vmem:[%s29489_s5 + $0xc4c] ss:$12 sps:$4 sm:$0xff]  }
 0x7f9   :  { %7801 = vmatprep.mubr.bf16.mxu0 %v7433_v61  ;;  %8160 = vmatpush1.bf16.msra.mxu0 %v21719_v23  ;;  %v21742_v61 = vld [vmem:[%s29489_s5 + $0xcac] ss:$12 sps:$4 sm:$0xff]  }
 0x7fa   :  { %8161 = vmatprep.subr.bf16.mxu0 %v21724_v14  ;;  %v21758_v23 = vld [vmem:[%s29489_s5 + $0xd38] ss:$12 sps:$4 sm:$0xff]   ;;  %v21761_v14 = vld [vmem:[%s29489_s5 + $0xd50] ss:$12 sps:$4 sm:$0xff]  }
 0x7fd   :  { %8162 = vmatpush1.bf16.msra.mxu0 %v21722_v60  ;;  %v21766_v60 = vld [vmem:[%s29489_s5 + $0xd6c] ss:$12 sps:$4 sm:$0xff]  }
 0x7fe   :  { %8163 = vmatprep.subr.bf16.mxu0 %v21727_v44  ;;  %v21764_v44 = vld [vmem:[%s29489_s5 + $0xd68] ss:$12 sps:$4 sm:$0xff]  }
 0x800   :  { %7802 = vmatmul.mubr.bf16.gmra.mrb[96].mxu0 %v7425_v48  ;;  %v21743_v48 = vld [vmem:[%s29489_s5 + $0xcc0] ss:$12 sps:$4 sm:$0xff]  }
 0x801   :  { %7807 = vmatprep.mubr.bf16.mxu0 %v7439_v2  ;;  %8164 = vmatpush1.bf16.msra.mxu0 %v21725_v39  ;;  %v7816_v39 = vld [vmem:[#allocation3 + $0x10] sm:$0xfe] }
 0x802   :  { %8165 = vmatprep.subr.bf16.mxu0 %v21730_v51  ;;  %v21767_v51 = vld [vmem:[%s29489_s5 + $0xcc8] ss:$12 sps:$4 sm:$0xff]  }
 0x805   :  { %8166 = vmatpush1.bf16.msra.mxu0 %v21728_v20  ;;  %v23150_v20 = vld [vmem:[#allocation3 + $0x20] sm:$0xff] }
 0x806   :  { %8167 = vmatprep.subr.bf16.mxu0 %v21733_v34  ;;  %v25918_v34 = vrot.slane %v23150_v20, 1 }
 0x808   :  { %7808 = vmatmul.mubr.bf16.gmra.mrb[100].mxu0 %v7436_v19 }
 0x809   :  { %8168 = vmatpush1.bf16.msra.mxu0 %v21731_v37  ;;  %8191 = vmatprep.mubr.bf16.mxu0 %v25841_v29  ;;  %v7887_v37 = vrot.slane %v7816_v39, 1 }
 0x80a   :  { %8169 = vmatprep.subr.bf16.mxu0 %v21736_v53  ;;  %v21769_v53 = vld [vmem:[%s29489_s5 + $0xce0] ss:$12 sps:$4 sm:$0xff]  }
 0x80b   :  { %v20102_v12 = vpop.f32.mrb[60].mxu0 }
 0x80c   :  { %v20103_v33 = vpop.f32.mrb[61].mxu0 }
 0x80d   :  { %v25850_v41 = vadd.f32 %v20103_v33, %v20102_v12  ;;  %v20105_v31 = vpop.f32.mrb[62].mxu0  ;;  %8170 = vmatpush1.bf16.msra.mxu0 %v21734_v25  ;;  %v7889_v25 = vsel %vm3445_vm10, %v7887_v37, %v25918_v34  ;;  %v21771_v12 = vld [vmem:[%s29489_s5 + $0xcf8] ss:$12 sps:$4 sm:$0xff]   ;;  %v7893_v33 = vrot.slane %v25746_v54, 1  ;;  %v21774_v54 = vld [vmem:[%s29489_s5 + $0xc50] ss:$12 sps:$4 sm:$0xff]  }
 0x80e   :  { %v20106_v15 = vpop.f32.mrb[63].mxu0  ;;  %8171 = vmatprep.subr.bf16.mxu0 %v21739_v16  ;;  %v7896_v16 = vsel %vm3445_vm10, %v25831_v46, %v7895_v13 }
 0x80f   :  { %v25858_v58 = vadd.f32 %v20106_v15, %v20105_v31  ;;  %v21772_v31 = vld [vmem:[%s29489_s5 + $0xc38] ss:$12 sps:$4 sm:$0xff]   ;;  %v7894_v15 = vsel %vm3445_vm10, %v25918_v34, %v7893_v33 }
 0x811   :  { %8172 = vmatpush1.bf16.msra.mxu0 %v21737_v59  ;;  %v21773_v59 = vld [vmem:[%s29489_s5 + $0xd10] ss:$12 sps:$4 sm:$0xff]  }
 0x812   :  { %8173 = vmatprep.subr.bf16.mxu0 %v21742_v61  ;;  %v21775_v61 = vld [vmem:[%s29489_s5 + $0xd28] ss:$12 sps:$4 sm:$0xff]  }
 0x813   :  { %v20108_v5 = vpop.f32.mrb[64].mxu0 }
 0x814   :  { %v20109_v18 = vpop.f32.mrb[65].mxu0  ;;  %v21778_v5 = vld [vmem:[%s29489_s5 + $0xc80] ss:$12 sps:$4 sm:$0xff]  }
 0x815   :  { %v20111_v36 = vpop.f32.mrb[66].mxu0  ;;  %8174 = vmatpush1.bf16.msra.mxu0 %v21740_v7  ;;  %v21776_v7 = vld [vmem:[%s29489_s5 + $0xc68] ss:$12 sps:$4 sm:$0xff]   ;;  %v21779_v18 = vld [vmem:[%s29489_s5 + $0xd58] ss:$12 sps:$4 sm:$0xff]  }
 0x816   :  { %v20112_v2 = vpop.f32.mrb[67].mxu0  ;;  %8175 = vmatprep.subr.bf16.mxu0 %v21745_v47  ;;  %v21777_v47 = vld [vmem:[%s29489_s5 + $0xd40] ss:$12 sps:$4 sm:$0xff]   ;;  %v21780_v36 = vld [vmem:[%s29489_s5 + $0xc98] ss:$12 sps:$4 sm:$0xff]  }
 0x817   :  { %v21785_v2 = vld [vmem:[%s29489_s5 + $0x4] ss:$12 sps:$4 sm:$0xff]  }
 0x819   :  { %8176 = vmatpush1.bf16.msra.mxu0 %v21743_v48  ;;  %v21781_v48 = vld [vmem:[%s29489_s5 + $0xd70] ss:$12 sps:$4 sm:$0xff]  }
 0x81a   :  { %8177 = vmatprep.subr.bf16.mxu0 %v21748_v55 }
 0x81b   :  { %v20114_v52 = vpop.f32.mrb[68].mxu0 }
 0x81c   :  { %v20115_v19 = vpop.f32.mrb[69].mxu0 }
 0x81d   :  { %v25878_v57 = vadd.f32 %v20115_v19, %v20114_v52  ;;  %v20117_v8 = vpop.f32.mrb[70].mxu0  ;;  %8178 = vmatpush1.bf16.msra.mxu0 %v21746_v17  ;;  %v21783_v52 = vld [vmem:[%s29489_s5] ss:$12 sps:$4 sm:$0xff]  }
 0x81e   :  { %v20118_v35 = vpop.f32.mrb[71].mxu0  ;;  %8179 = vmatprep.subr.bf16.mxu0 %v21751_v6 }
 0x81f   :  { %v25886_v45 = vadd.f32 %v20118_v35, %v20117_v8  ;;  %v21788_v8 = vld [vmem:[%s29489_s5 + $0x1c] ss:$12 sps:$4 sm:$0xff]   ;;  %v21791_v35 = vld [vmem:[%s29489_s5 + $0x34] ss:$12 sps:$4 sm:$0xff]  }
 0x821   :  { %8180 = vmatpush1.bf16.msra.mxu0 %v21749_v27  ;;  %v21786_v27 = vld [vmem:[%s29489_s5 + $0x18] ss:$12 sps:$4 sm:$0xff]  }
 0x822   :  { %8181 = vmatprep.subr.bf16.mxu0 %v21754_v28  ;;  %v21789_v28 = vld [vmem:[%s29489_s5 + $0x30] ss:$12 sps:$4 sm:$0xff]  }
 0x825   :  { %8182 = vmatpush1.bf16.msra.mxu0 %v21752_v9  ;;  %v21794_v9 = vld [vmem:[%s29489_s5 + $0x4c] ss:$12 sps:$4 sm:$0xff]  }
 0x826   :  { %8183 = vmatprep.subr.bf16.mxu0 %v21757_v10  ;;  %v21792_v10 = vld [vmem:[%s29489_s5 + $0x48] ss:$12 sps:$4 sm:$0xff]  }
 0x829   :  { %8184 = vmatpush1.bf16.msra.mxu0 %v21755_v38  ;;  %v21797_v38 = vld [vmem:[%s29489_s5 + $0x64] ss:$12 sps:$4 sm:$0xff]  }
 0x82a   :  { %8185 = vmatprep.subr.bf16.mxu0 %v21760_v50  ;;  %v21795_v50 = vld [vmem:[%s29489_s5 + $0x60] ss:$12 sps:$4 sm:$0xff]  }
 0x82d   :  { %8186 = vmatpush1.bf16.msra.mxu0 %v21758_v23  ;;  %v21800_v23 = vld [vmem:[%s29489_s5 + $0x7c] ss:$12 sps:$4 sm:$0xff]  }
 0x82e   :  { %8187 = vmatprep.subr.bf16.mxu0 %v21763_v11  ;;  %v26007_v11 = vld [vmem:[#allocation3 + $0x8] sm:$0xff] }
 0x831   :  { %8188 = vmatpush1.bf16.msra.mxu0 %v21761_v14  ;;  %v21798_v14 = vld [vmem:[%s29489_s5 + $0x78] ss:$12 sps:$4 sm:$0xff]  }
 0x832   :  { %8189 = vmatprep.subr.bf16.mxu0 %v21766_v60  ;;  %v21803_v60 = vld [vmem:[%s29489_s5 + $0x94] ss:$12 sps:$4 sm:$0xff]  }
 0x835   :  { %8190 = vmatpush1.bf16.msra.mxu0 %v21764_v44 }
 0x836   :  { %20188 = vmatprep.subr.bf16.mxu0 %v21767_v51 }
 0x838   :  { %8192 = vmatmul.mubr.bf16.vlgmr.msra.gmra.mrb[32].mxu0 %v7889_v25 }
 0x839   :  { %8201 = vmatprep.mubr.bf16.mxu0 %v7896_v16  ;;  %20189 = vmatpush3.bf16.msra.mxu0 %v21768_v42  ;;  %v21806_v42 = vld [vmem:[%s29489_s5 + $0xac] ss:$12 sps:$4 sm:$0xff]  }
 0x83a   :  { %20190 = vmatprep.subr.bf16.mxu0 %v21769_v53 }
 0x83d   :  { %20191 = vmatpush3.bf16.msra.mxu0 %v21770_v3 }
 0x83e   :  { %20192 = vmatprep.subr.bf16.mxu0 %v21771_v12 }
 0x840   :  { %8202 = vmatmul.mubr.bf16.gmra.mrb[104].mxu0 %v7894_v15 }
 0x841   :  { %8207 = vmatprep.mubr.bf16.mxu0 %v7895_v13  ;;  %20193 = vmatpush3.bf16.msra.mxu0 %v21772_v31  ;;  %v21807_v31 = vld [vmem:[%s29489_s5 + $0xc0] ss:$12 sps:$4 sm:$0xff]  }
 0x842   :  { %20194 = vmatprep.subr.bf16.mxu0 %v21773_v59 }
 0x845   :  { %20195 = vmatpush3.bf16.msra.mxu0 %v21774_v54  ;;  %v21810_v54 = vld [vmem:[%s29489_s5 + $0xd8] ss:$12 sps:$4 sm:$0xff]  }
 0x846   :  { %20196 = vmatprep.subr.bf16.mxu0 %v21775_v61  ;;  %v21815_v61 = vld [vmem:[%s29489_s5 + $0xf4] ss:$12 sps:$4 sm:$0xff]  }
 0x848   :  { %8208 = vmatmul.mubr.bf16.gmra.mrb[40].mxu0 %v7893_v33 }
 0x849   :  { %20197 = vmatpush3.bf16.msra.mxu0 %v21776_v7  ;;  %8250 = vmatprep.mubr.bf16.mxu0 %v25841_v29  ;;  %v21782_v29 = vld [vmem:[%s29489_s5 + $0xcb0] ss:$12 sps:$4 sm:$0xff]  }
 0x84a   :  { %20198 = vmatprep.subr.bf16.mxu0 %v21777_v47 }
 0x84d   :  { %20199 = vmatpush3.bf16.msra.mxu0 %v21778_v5 }
 0x84e   :  { %20200 = vmatprep.subr.bf16.mxu0 %v21779_v18 }
 0x851   :  { %20201 = vmatpush3.bf16.msra.mxu0 %v21780_v36  ;;  %v21813_v36 = vld [vmem:[%s29489_s5 + $0xf0] ss:$12 sps:$4 sm:$0xff]  }
 0x852   :  { %20202 = vmatprep.subr.bf16.mxu0 %v21781_v48 }
 0x853   :  { %v7190_v55 = vpop.f32.mrb[72].mxu0 }
 0x854   :  { %v7191_v17 = vpop.f32.mrb[73].mxu0  ;;  %v21816_v55 = vld [vmem:[%s29489_s5 + $0x108] ss:$12 sps:$4 sm:$0xff]  }
 0x855   :  { %v7192_v6 = vpop.f32.mrb[74].mxu0  ;;  %20203 = vmatpush3.bf16.msra.mxu0 %v21782_v29  ;;  %v21818_v29 = vld [vmem:[%s29489_s5 + $0x10c] ss:$12 sps:$4 sm:$0xff]   ;;  %v21821_v17 = vld [vmem:[%s29489_s5 + $0x124] ss:$12 sps:$4 sm:$0xff]  }
 0x856   :  { %v7193_v19 = vpop.f32.mrb[75].mxu0  ;;  %8529 = vmatprep.subr.bf16.mxu0 %v21785_v2  ;;  %v21819_v6 = vld [vmem:[%s29489_s5 + $0x120] ss:$12 sps:$4 sm:$0xff]  }
 0x857   :  { %v21822_v19 = vld [vmem:[%s29489_s5 + $0x138] ss:$12 sps:$4 sm:$0xff]  }
 0x858   :  { %8251 = vmatmul.mubr.bf16.vlgmr.msra.gmra.mrb[108].mxu0 %v7889_v25  ;;  %v21804_v25 = vld [vmem:[%s29489_s5 + $0xa8] ss:$12 sps:$4 sm:$0xff]  }
 0x859   :  { %8258 = vmatprep.mubr.bf16.mxu0 %v7896_v16  ;;  %8530 = vmatpush1.bf16.msra.mxu0 %v21783_v52  ;;  %v21809_v16 = vld [vmem:[%s29489_s5 + $0xc4] ss:$12 sps:$4 sm:$0xff]   ;;  %v21824_v52 = vld [vmem:[%s29489_s5 + $0x13c] ss:$12 sps:$4 sm:$0xff]  }
 0x85a   :  { %8531 = vmatprep.subr.bf16.mxu0 %v21788_v8  ;;  %v21827_v8 = vld [vmem:[%s29489_s5 + $0x154] ss:$12 sps:$4 sm:$0xff]  }
 0x85d   :  { %8532 = vmatpush1.bf16.msra.mxu0 %v21786_v27  ;;  %v21825_v27 = vld [vmem:[%s29489_s5 + $0x150] ss:$12 sps:$4 sm:$0xff]  }
 0x85e   :  { %8533 = vmatprep.subr.bf16.mxu0 %v21791_v35  ;;  %v21830_v35 = vld [vmem:[%s29489_s5 + $0x16c] ss:$12 sps:$4 sm:$0xff]  }
 0x860   :  { %8259 = vmatmul.mubr.bf16.gmra.mrb[112].mxu0 %v7894_v15  ;;  %v21812_v15 = vld [vmem:[%s29489_s5 + $0xdc] ss:$12 sps:$4 sm:$0xff]  }
 0x861   :  { %8264 = vmatprep.mubr.bf16.mxu0 %v7895_v13  ;;  %8534 = vmatpush1.bf16.msra.mxu0 %v21789_v28  ;;  %v21801_v13 = vld [vmem:[%s29489_s5 + $0x90] ss:$12 sps:$4 sm:$0xff]   ;;  %v21828_v28 = vld [vmem:[%s29489_s5 + $0x168] ss:$12 sps:$4 sm:$0xff]  }
 0x862   :  { %8535 = vmatprep.subr.bf16.mxu0 %v21794_v9  ;;  %v21831_v9 = vld [vmem:[%s29489_s5 + $0xc8] ss:$12 sps:$4 sm:$0xff]  }
 0x865   :  { %8536 = vmatpush1.bf16.msra.mxu0 %v21792_v10  ;;  %v21832_v10 = vld [vmem:[%s29489_s5 + $0x8] ss:$12 sps:$4 sm:$0xff]  }
 0x866   :  { %8537 = vmatprep.subr.bf16.mxu0 %v21797_v38  ;;  %v21833_v38 = vld [vmem:[%s29489_s5 + $0xe0] ss:$12 sps:$4 sm:$0xff]  }
 0x868   :  { %8265 = vmatmul.mubr.bf16.gmra.mrb[116].mxu0 %v7893_v33 }
 0x869   :  { %8538 = vmatpush1.bf16.msra.mxu0 %v21795_v50  ;;  %8561 = vmatprep.mubr.bf16.mxu0 %v26007_v11  ;;  %v23152_v50 = vld [vmem:[#allocation3] sm:$0xff] }
 0x86a   :  { %8539 = vmatprep.subr.bf16.mxu0 %v21800_v23  ;;  %v26090_v23 = vld [vmem:[#allocation3 + $0x18] sm:$0xff] }
 0x86b   :  { %v20136_v44 = vpop.f32.mrb[76].mxu0 }
 0x86c   :  { %v20137_v39 = vpop.f32.mrb[77].mxu0 }
 0x86d   :  { %v26016_v51 = vadd.f32 %v20137_v39, %v20136_v44  ;;  %v20139_v20 = vpop.f32.mrb[78].mxu0  ;;  %8540 = vmatpush1.bf16.msra.mxu0 %v21798_v14  ;;  %v21834_v14 = vld [vmem:[%s29489_s5 + $0x20] ss:$12 sps:$4 sm:$0xff]   ;;  %v21836_v44 = vld [vmem:[%s29489_s5 + $0x38] ss:$12 sps:$4 sm:$0xff]  }
 0x86e   :  { %v20140_v37 = vpop.f32.mrb[79].mxu0  ;;  %8541 = vmatprep.subr.bf16.mxu0 %v21803_v60  ;;  %v21835_v60 = vld [vmem:[%s29489_s5 + $0xf8] ss:$12 sps:$4 sm:$0xff]   ;;  %v21837_v39 = vld [vmem:[%s29489_s5 + $0x110] ss:$12 sps:$4 sm:$0xff]  }
 0x86f   :  { %v26024_v53 = vadd.f32 %v20140_v37, %v20139_v20  ;;  %v26105_v20 = vld [vmem:[#allocation3 + $0x10] sm:$0xff] }
 0x870   :  { %v21838_v37 = vld [vmem:[%s29489_s5 + $0x50] ss:$12 sps:$4 sm:$0xff]  }
 0x871   :  { %8542 = vmatpush1.bf16.msra.mxu0 %v21801_v13  ;;  %v5640_v13 = vld [vmem:[#allocation3 + $0x28] sm:$0x7f] }
 0x872   :  { %8543 = vmatprep.subr.bf16.mxu0 %v21806_v42  ;;  %v21839_v42 = vld [vmem:[%s29489_s5 + $0x128] ss:$12 sps:$4 sm:$0xff]  }
 0x873   :  { %v20142_v3 = vpop.f32.mrb[80].mxu0 }
 0x874   :  { %v20143_v12 = vpop.f32.mrb[81].mxu0  ;;  %v5639_v3 = vld [vmem:[#allocation3 + $0x20] sm:$0x7f] }
 0x875   :  { %v20145_v33 = vpop.f32.mrb[82].mxu0  ;;  %8544 = vmatpush1.bf16.msra.mxu0 %v21804_v25  ;;  %v21840_v25 = vld [vmem:[%s29489_s5 + $0x68] ss:$12 sps:$4 sm:$0xff]   ;;  %v21842_v12 = vld [vmem:[%s29489_s5 + $0x80] ss:$12 sps:$4 sm:$0xff]  }
 0x876   :  { %v20146_v59 = vpop.f32.mrb[83].mxu0  ;;  %8545 = vmatprep.subr.bf16.mxu0 %v21809_v16  ;;  %v21841_v16 = vld [vmem:[%s29489_s5 + $0x140] ss:$12 sps:$4 sm:$0xff]   ;;  %v21843_v33 = vld [vmem:[%s29489_s5 + $0x158] ss:$12 sps:$4 sm:$0xff]  }
 0x877   :  { %v21845_v59 = vld [vmem:[%s29489_s5 + $0x170] ss:$12 sps:$4 sm:$0xff]  }
 0x879   :  { %8546 = vmatpush1.bf16.msra.mxu0 %v21807_v31  ;;  %v21844_v31 = vld [vmem:[%s29489_s5 + $0x98] ss:$12 sps:$4 sm:$0xff]  }
 0x87a   :  { %8547 = vmatprep.subr.bf16.mxu0 %v21812_v15  ;;  %v21849_v15 = vld [vmem:[%s29489_s5 + $0x304] ss:$12 sps:$4 sm:$0xff]  }
 0x87b   :  { %v20148_v7 = vpop.f32.mrb[84].mxu0 }
 0x87c   :  { %v20149_v47 = vpop.f32.mrb[85].mxu0 }
 0x87d   :  { %v26044_v5 = vadd.f32 %v20149_v47, %v20148_v7  ;;  %v20151_v18 = vpop.f32.mrb[86].mxu0  ;;  %8548 = vmatpush1.bf16.msra.mxu0 %v21810_v54  ;;  %v21847_v47 = vld [vmem:[%s29489_s5 + $0x300] ss:$12 sps:$4 sm:$0xff]  }
 0x87e   :  { %v20152_v48 = vpop.f32.mrb[87].mxu0  ;;  %8549 = vmatprep.subr.bf16.mxu0 %v21815_v61 }
 0x87f   :  { %v26052_v2 = vadd.f32 %v20152_v48, %v20151_v18  ;;  %v21850_v48 = vld [vmem:[%s29489_s5 + $0x318] ss:$12 sps:$4 sm:$0xff]  }
 0x881   :  { %8550 = vmatpush1.bf16.msra.mxu0 %v21813_v36  ;;  %v21852_v36 = vld [vmem:[%s29489_s5 + $0x31c] ss:$12 sps:$4 sm:$0xff]  }
 0x882   :  { %8551 = vmatprep.subr.bf16.mxu0 %v21818_v29  ;;  %v21855_v29 = vld [vmem:[%s29489_s5 + $0x334] ss:$12 sps:$4 sm:$0xff]  }
 0x885   :  { %8552 = vmatpush1.bf16.msra.mxu0 %v21816_v55  ;;  %v21853_v55 = vld [vmem:[%s29489_s5 + $0x330] ss:$12 sps:$4 sm:$0xff]  }
 0x886   :  { %8553 = vmatprep.subr.bf16.mxu0 %v21821_v17  ;;  %v21858_v17 = vld [vmem:[%s29489_s5 + $0x34c] ss:$12 sps:$4 sm:$0xff]  }
 0x889   :  { %8554 = vmatpush1.bf16.msra.mxu0 %v21819_v6  ;;  %v21856_v6 = vld [vmem:[%s29489_s5 + $0x348] ss:$12 sps:$4 sm:$0xff]  }
 0x88a   :  { %8555 = vmatprep.subr.bf16.mxu0 %v21824_v52  ;;  %v21861_v52 = vld [vmem:[%s29489_s5 + $0x364] ss:$12 sps:$4 sm:$0xff]  }
 0x88d   :  { %8556 = vmatpush1.bf16.msra.mxu0 %v21822_v19  ;;  %v6195_v19 = vld [vmem:[#allocation3 + $0x8] sm:$0xfe] }
 0x88e   :  { %8557 = vmatprep.subr.bf16.mxu0 %v21827_v8  ;;  %v8653_v8 = vrot.slane %v26090_v23, 1 }
 0x891   :  { %8558 = vmatpush1.bf16.msra.mxu0 %v21825_v27  ;;  %v21859_v27 = vld [vmem:[%s29489_s5 + $0x360] ss:$12 sps:$4 sm:$0xff]  }
 0x892   :  { %8559 = vmatprep.subr.bf16.mxu0 %v21830_v35  ;;  %v8652_v35 = vrot.slane %v6195_v19, 1  ;;  %v21888_v19 = vld [vmem:[%s29489_s5 + $0x43c] ss:$12 sps:$4 sm:$0xff]  }
 0x895   :  { %8560 = vmatpush1.bf16.msra.mxu0 %v21828_v28  ;;  %v21864_v28 = vld [vmem:[%s29489_s5 + $0x37c] ss:$12 sps:$4 sm:$0xff]  }
 0x896   :  { %20222 = vmatprep.subr.bf16.mxu0 %v21831_v9  ;;  %v26175_v9 = vsel %vm3445_vm10, %v8652_v35, %v8653_v8  ;;  %v21891_v35 = vld [vmem:[%s29489_s5 + $0x454] ss:$12 sps:$4 sm:$0xff]  }
 0x898   :  { %8562 = vmatmul.mubr.bf16.vlgmr.msra.gmra.mrb[32].mxu0 %v23152_v50 }
 0x899   :  { %8571 = vmatprep.mubr.bf16.mxu0 %v26090_v23  ;;  %20223 = vmatpush3.bf16.msra.mxu0 %v21832_v10  ;;  %v21862_v10 = vld [vmem:[%s29489_s5 + $0x378] ss:$12 sps:$4 sm:$0xff]  }
 0x89a   :  { %20224 = vmatprep.subr.bf16.mxu0 %v21833_v38  ;;  %v21867_v38 = vld [vmem:[%s29489_s5 + $0x394] ss:$12 sps:$4 sm:$0xff]  }
 0x89d   :  { %20225 = vmatpush3.bf16.msra.mxu0 %v21834_v14 }
 0x89e   :  { %20226 = vmatprep.subr.bf16.mxu0 %v21835_v60 }
 0x8a0   :  { %8572 = vmatmul.mubr.bf16.gmra.mrb[120].mxu0 %v26105_v20 }
 0x8a1   :  { %8577 = vmatprep.mubr.bf16.mxu0 %v5640_v13  ;;  %20227 = vmatpush3.bf16.msra.mxu0 %v21836_v44 }
 0x8a2   :  { %20228 = vmatprep.subr.bf16.mxu0 %v21837_v39  ;;  %v21865_v39 = vld [vmem:[%s29489_s5 + $0x390] ss:$12 sps:$4 sm:$0xff]  }
 0x8a5   :  { %20229 = vmatpush3.bf16.msra.mxu0 %v21838_v37  ;;  %v21870_v37 = vld [vmem:[%s29489_s5 + $0x3ac] ss:$12 sps:$4 sm:$0xff]  }
 0x8a6   :  { %20230 = vmatprep.subr.bf16.mxu0 %v21839_v42 }
 0x8a8   :  { %8578 = vmatmul.mubr.bf16.gmra.mrb[40].mxu0 %v5639_v3 }
 0x8a9   :  { %20231 = vmatpush3.bf16.msra.mxu0 %v21840_v25  ;;  %8620 = vmatprep.mubr.bf16.mxu0 %v26007_v11  ;;  %v21846_v11 = vld [vmem:[%s29489_s5 + $0xb0] ss:$12 sps:$4 sm:$0xff]   ;;  %v21868_v25 = vld [vmem:[%s29489_s5 + $0x3a8] ss:$12 sps:$4 sm:$0xff]  }
 0x8aa   :  { %20232 = vmatprep.subr.bf16.mxu0 %v21841_v16  ;;  %v21873_v16 = vld [vmem:[%s29489_s5 + $0x3c4] ss:$12 sps:$4 sm:$0xff]  }
 0x8ad   :  { %20233 = vmatpush3.bf16.msra.mxu0 %v21842_v12 }
 0x8ae   :  { %20234 = vmatprep.subr.bf16.mxu0 %v21843_v33 }
 0x8b1   :  { %20235 = vmatpush3.bf16.msra.mxu0 %v21844_v31  ;;  %v21871_v31 = vld [vmem:[%s29489_s5 + $0x3c0] ss:$12 sps:$4 sm:$0xff]  }
 0x8b2   :  { %20236 = vmatprep.subr.bf16.mxu0 %v21845_v59 }
 0x8b3   :  { %v7746_v54 = vpop.f32.mrb[88].mxu0 }
 0x8b4   :  { %v7747_v61 = vpop.f32.mrb[89].mxu0  ;;  %v21879_v54 = vld [vmem:[%s29489_s5 + $0x3f4] ss:$12 sps:$4 sm:$0xff]  }
 0x8b5   :  { %v7748_v7 = vpop.f32.mrb[90].mxu0  ;;  %20237 = vmatpush3.bf16.msra.mxu0 %v21846_v11  ;;  %v21876_v11 = vld [vmem:[%s29489_s5 + $0x3dc] ss:$12 sps:$4 sm:$0xff]  }
 0x8b6   :  { %v7749_v18 = vpop.f32.mrb[91].mxu0  ;;  %8921 = vmatprep.subr.bf16.mxu0 %v21849_v15  ;;  %v21874_v15 = vld [vmem:[%s29489_s5 + $0x3d8] ss:$12 sps:$4 sm:$0xff]  }
 0x8b8   :  { %8621 = vmatmul.mubr.bf16.vlgmr.msra.gmra.mrb[124].mxu0 %v23152_v50 }
 0x8b9   :  { %8628 = vmatprep.mubr.bf16.mxu0 %v26090_v23  ;;  %8922 = vmatpush1.bf16.msra.mxu0 %v21847_v47 }
 0x8ba   :  { %8923 = vmatprep.subr.bf16.mxu0 %v21852_v36  ;;  %v21877_v36 = vld [vmem:[%s29489_s5 + $0x3f0] ss:$12 sps:$4 sm:$0xff]  }
 0x8bd   :  { %8924 = vmatpush1.bf16.msra.mxu0 %v21850_v48 }
 0x8be   :  { %8925 = vmatprep.subr.bf16.mxu0 %v21855_v29  ;;  %v21882_v29 = vld [vmem:[%s29489_s5 + $0x40c] ss:$12 sps:$4 sm:$0xff]  }
 0x8c0   :  { %8629 = vmatmul.mubr.bf16.gmra.mrb[128].mxu0 %v26105_v20 }
 0x8c1   :  { %8634 = vmatprep.mubr.bf16.mxu0 %v5640_v13  ;;  %8926 = vmatpush1.bf16.msra.mxu0 %v21853_v55 }
 0x8c2   :  { %8927 = vmatprep.subr.bf16.mxu0 %v21858_v17  ;;  %v21880_v17 = vld [vmem:[%s29489_s5 + $0x408] ss:$12 sps:$4 sm:$0xff]  }
 0x8c5   :  { %8928 = vmatpush1.bf16.msra.mxu0 %v21856_v6  ;;  %v21885_v6 = vld [vmem:[%s29489_s5 + $0x424] ss:$12 sps:$4 sm:$0xff]  }
 0x8c6   :  { %8929 = vmatprep.subr.bf16.mxu0 %v21861_v52  ;;  %v21883_v52 = vld [vmem:[%s29489_s5 + $0x420] ss:$12 sps:$4 sm:$0xff]  }
 0x8c8   :  { %8635 = vmatmul.mubr.bf16.gmra.mrb[132].mxu0 %v5639_v3 }
 0x8c9   :  { %8930 = vmatpush1.bf16.msra.mxu0 %v21859_v27  ;;  %8953 = vmatprep.mubr.bf16.mxu0 %v26175_v9  ;;  %v21886_v27 = vld [vmem:[%s29489_s5 + $0x438] ss:$12 sps:$4 sm:$0xff]  }
 0x8ca   :  { %8931 = vmatprep.subr.bf16.mxu0 %v21864_v28  ;;  %v21889_v28 = vld [vmem:[%s29489_s5 + $0x450] ss:$12 sps:$4 sm:$0xff]  }
 0x8cb   :  { %v20170_v50 = vpop.f32.mrb[92].mxu0 }
 0x8cc   :  { %v20171_v14 = vpop.f32.mrb[93].mxu0 }
 0x8cd   :  { %v26184_v60 = vadd.f32 %v20171_v14, %v20170_v50  ;;  %v20173_v44 = vpop.f32.mrb[94].mxu0  ;;  %8932 = vmatpush1.bf16.msra.mxu0 %v21862_v10  ;;  %v21894_v10 = vld [vmem:[%s29489_s5 + $0x46c] ss:$12 sps:$4 sm:$0xff]   ;;  %v6194_v50 = vld [vmem:[#allocation3] sm:$0xfe] }
 0x8ce   :  { %v20174_v13 = vpop.f32.mrb[95].mxu0  ;;  %8933 = vmatprep.subr.bf16.mxu0 %v21867_v38  ;;  %v21892_v38 = vld [vmem:[%s29489_s5 + $0x468] ss:$12 sps:$4 sm:$0xff]  }
 0x8cf   :  { %v26192_v42 = vadd.f32 %v20174_v13, %v20173_v44  ;;  %v21895_v14 = vld [vmem:[%s29489_s5 + $0x3c8] ss:$12 sps:$4 sm:$0xff]   ;;  %v8650_v44 = vrot.slane %v26105_v20, 1 }
 0x8d0   :  { %v21896_v13 = vld [vmem:[%s29489_s5 + $0x308] ss:$12 sps:$4 sm:$0xff]  }
 0x8d1   :  { %8934 = vmatpush1.bf16.msra.mxu0 %v21865_v39  ;;  %v8649_v39 = vrot.slane %v6194_v50, 1  ;;  %v21920_v50 = vld [vmem:[%s29489_s5 + $0x648] ss:$12 sps:$4 sm:$0xff]  }
 0x8d2   :  { %8935 = vmatprep.subr.bf16.mxu0 %v21870_v37  ;;  %v21897_v37 = vld [vmem:[%s29489_s5 + $0x3e0] ss:$12 sps:$4 sm:$0xff]  }
 0x8d3   :  { %v20176_v3 = vpop.f32.mrb[96].mxu0 }
 0x8d4   :  { %v20177_v12 = vpop.f32.mrb[97].mxu0  ;;  %v21898_v3 = vld [vmem:[%s29489_s5 + $0x320] ss:$12 sps:$4 sm:$0xff]  }
 0x8d5   :  { %v20179_v33 = vpop.f32.mrb[98].mxu0  ;;  %8936 = vmatpush1.bf16.msra.mxu0 %v21868_v25  ;;  %v8651_v25 = vsel %vm3445_vm10, %v8649_v39, %v8650_v44  ;;  %v21899_v12 = vld [vmem:[%s29489_s5 + $0x3f8] ss:$12 sps:$4 sm:$0xff]  }
 0x8d6   :  { %v20180_v59 = vpop.f32.mrb[99].mxu0  ;;  %8937 = vmatprep.subr.bf16.mxu0 %v21873_v16  ;;  %v8658_v16 = vsel %vm3445_vm10, %v8653_v8, %v25831_v46  ;;  %v21900_v33 = vld [vmem:[%s29489_s5 + $0x338] ss:$12 sps:$4 sm:$0xff]   ;;  %v21901_v8 = vld [vmem:[%s29489_s5 + $0x410] ss:$12 sps:$4 sm:$0xff]  }
 0x8d7   :  { %v21902_v59 = vld [vmem:[%s29489_s5 + $0x350] ss:$12 sps:$4 sm:$0xff]   ;;  %v21926_v39 = vld [vmem:[%s29489_s5 + $0x678] ss:$12 sps:$4 sm:$0xff]  }
 0x8d9   :  { %8938 = vmatpush1.bf16.msra.mxu0 %v21871_v31  ;;  %v8656_v31 = vsel %vm3445_vm10, %v8650_v44, %v25918_v34  ;;  %v21923_v44 = vld [vmem:[%s29489_s5 + $0x660] ss:$12 sps:$4 sm:$0xff]  }
 0x8da   :  { %8939 = vmatprep.subr.bf16.mxu0 %v21876_v11  ;;  %v21903_v11 = vld [vmem:[%s29489_s5 + $0x428] ss:$12 sps:$4 sm:$0xff]  }
 0x8db   :  { %v20182_v61 = vpop.f32.mrb[100].mxu0 }
 0x8dc   :  { %v20183_v7 = vpop.f32.mrb[101].mxu0 }
 0x8dd   :  { %v26212_v47 = vadd.f32 %v20183_v7, %v20182_v61  ;;  %v20185_v18 = vpop.f32.mrb[102].mxu0  ;;  %8940 = vmatpush1.bf16.msra.mxu0 %v21874_v15  ;;  %v21904_v15 = vld [vmem:[%s29489_s5 + $0x368] ss:$12 sps:$4 sm:$0xff]   ;;  %v21906_v61 = vld [vmem:[%s29489_s5 + $0x380] ss:$12 sps:$4 sm:$0xff]  }
 0x8de   :  { %v20186_v48 = vpop.f32.mrb[103].mxu0  ;;  %8941 = vmatprep.subr.bf16.mxu0 %v21879_v54  ;;  %v21905_v54 = vld [vmem:[%s29489_s5 + $0x440] ss:$12 sps:$4 sm:$0xff]   ;;  %v21907_v7 = vld [vmem:[%s29489_s5 + $0x458] ss:$12 sps:$4 sm:$0xff]  }
 0x8df   :  { %v26220_v55 = vadd.f32 %v20186_v48, %v20185_v18  ;;  %v21908_v18 = vld [vmem:[%s29489_s5 + $0x398] ss:$12 sps:$4 sm:$0xff]  }
 0x8e0   :  { %v21913_v48 = vld [vmem:[%s29489_s5 + $0x604] ss:$12 sps:$4 sm:$0xff]  }
 0x8e1   :  { %8942 = vmatpush1.bf16.msra.mxu0 %v21877_v36  ;;  %v21909_v36 = vld [vmem:[%s29489_s5 + $0x470] ss:$12 sps:$4 sm:$0xff]  }
 0x8e2   :  { %8943 = vmatprep.subr.bf16.mxu0 %v21882_v29 }
 0x8e5   :  { %8944 = vmatpush1.bf16.msra.mxu0 %v21880_v17 }
 0x8e6   :  { %8945 = vmatprep.subr.bf16.mxu0 %v21885_v6 }
 0x8e9   :  { %8946 = vmatpush1.bf16.msra.mxu0 %v21883_v52  ;;  %v21911_v52 = vld [vmem:[%s29489_s5 + $0x600] ss:$12 sps:$4 sm:$0xff]  }
 0x8ea   :  { %8947 = vmatprep.subr.bf16.mxu0 %v21888_v19 }
 0x8ed   :  { %8948 = vmatpush1.bf16.msra.mxu0 %v21886_v27  ;;  %v21916_v27 = vld [vmem:[%s29489_s5 + $0x61c] ss:$12 sps:$4 sm:$0xff]  }
 0x8ee   :  { %8949 = vmatprep.subr.bf16.mxu0 %v21891_v35  ;;  %v21914_v35 = vld [vmem:[%s29489_s5 + $0x618] ss:$12 sps:$4 sm:$0xff]  }
 0x8f1   :  { %8950 = vmatpush1.bf16.msra.mxu0 %v21889_v28  ;;  %v21919_v28 = vld [vmem:[%s29489_s5 + $0x634] ss:$12 sps:$4 sm:$0xff]  }
 0x8f2   :  { %8951 = vmatprep.subr.bf16.mxu0 %v21894_v10  ;;  %v21917_v10 = vld [vmem:[%s29489_s5 + $0x630] ss:$12 sps:$4 sm:$0xff]  }
 0x8f5   :  { %8952 = vmatpush1.bf16.msra.mxu0 %v21892_v38  ;;  %v21922_v38 = vld [vmem:[%s29489_s5 + $0x64c] ss:$12 sps:$4 sm:$0xff]  }
 0x8f6   :  { %20256 = vmatprep.subr.bf16.mxu0 %v21895_v14  ;;  %v21925_v14 = vld [vmem:[%s29489_s5 + $0x664] ss:$12 sps:$4 sm:$0xff]  }
 0x8f8   :  { %8954 = vmatmul.mubr.bf16.vlgmr.msra.gmra.mrb[32].mxu0 %v8651_v25 }
 0x8f9   :  { %8963 = vmatprep.mubr.bf16.mxu0 %v8658_v16  ;;  %20257 = vmatpush3.bf16.msra.mxu0 %v21896_v13  ;;  %v21931_v13 = vld [vmem:[%s29489_s5 + $0x694] ss:$12 sps:$4 sm:$0xff]  }
 0x8fa   :  { %20258 = vmatprep.subr.bf16.mxu0 %v21897_v37 }
 0x8fd   :  { %20259 = vmatpush3.bf16.msra.mxu0 %v21898_v3 }
 0x8fe   :  { %20260 = vmatprep.subr.bf16.mxu0 %v21899_v12 }
 0x900   :  { %8964 = vmatmul.mubr.bf16.gmra.mrb[136].mxu0 %v8656_v31 }
 0x901   :  { %8969 = vmatprep.mubr.bf16.mxu0 %v25831_v46  ;;  %20261 = vmatpush3.bf16.msra.mxu0 %v21900_v33  ;;  %v21934_v33 = vld [vmem:[%s29489_s5 + $0x6ac] ss:$12 sps:$4 sm:$0xff]  }
 0x902   :  { %20262 = vmatprep.subr.bf16.mxu0 %v21901_v8 }
 0x905   :  { %20263 = vmatpush3.bf16.msra.mxu0 %v21902_v59  ;;  %v21937_v59 = vld [vmem:[%s29489_s5 + $0x6c4] ss:$12 sps:$4 sm:$0xff]  }
 0x906   :  { %20264 = vmatprep.subr.bf16.mxu0 %v21903_v11 }
 0x908   :  { %8970 = vmatmul.mubr.bf16.gmra.mrb[40].mxu0 %v25918_v34 }
 0x909   :  { %20265 = vmatpush3.bf16.msra.mxu0 %v21904_v15  ;;  %9012 = vmatprep.mubr.bf16.mxu0 %v26175_v9  ;;  %v21910_v9 = vld [vmem:[%s29489_s5 + $0x3b0] ss:$12 sps:$4 sm:$0xff]  }
 0x90a   :  { %20266 = vmatprep.subr.bf16.mxu0 %v21905_v54 }
 0x90d   :  { %20267 = vmatpush3.bf16.msra.mxu0 %v21906_v61  ;;  %v21935_v61 = vld [vmem:[%s29489_s5 + $0x6c0] ss:$12 sps:$4 sm:$0xff]  }
 0x90e   :  { %20268 = vmatprep.subr.bf16.mxu0 %v21907_v7 }
 0x911   :  { %20269 = vmatpush3.bf16.msra.mxu0 %v21908_v18  ;;  %v21940_v18 = vld [vmem:[%s29489_s5 + $0x6dc] ss:$12 sps:$4 sm:$0xff]  }
 0x912   :  { %20270 = vmatprep.subr.bf16.mxu0 %v21909_v36  ;;  %v21938_v36 = vld [vmem:[%s29489_s5 + $0x6d8] ss:$12 sps:$4 sm:$0xff]  }
 0x913   :  { %v8203_v29 = vpop.f32.mrb[104].mxu0 }
 0x914   :  { %v8204_v17 = vpop.f32.mrb[105].mxu0 }
 0x915   :  { %v8205_v6 = vpop.f32.mrb[106].mxu0  ;;  %20271 = vmatpush3.bf16.msra.mxu0 %v21910_v9  ;;  %v21943_v9 = vld [vmem:[%s29489_s5 + $0x6f4] ss:$12 sps:$4 sm:$0xff]  }
 0x916   :  { %v8206_v19 = vpop.f32.mrb[107].mxu0  ;;  %9347 = vmatprep.subr.bf16.mxu0 %v21913_v48 }
 0x918   :  { %9013 = vmatmul.mubr.bf16.vlgmr.msra.gmra.mrb[140].mxu0 %v8651_v25 }
 0x919   :  { %9020 = vmatprep.mubr.bf16.mxu0 %v8658_v16  ;;  %9348 = vmatpush1.bf16.msra.mxu0 %v21911_v52  ;;  %v21941_v52 = vld [vmem:[%s29489_s5 + $0x6f0] ss:$12 sps:$4 sm:$0xff]  }
 0x91a   :  { %9349 = vmatprep.subr.bf16.mxu0 %v21916_v27  ;;  %v21946_v27 = vld [vmem:[%s29489_s5 + $0x70c] ss:$12 sps:$4 sm:$0xff]  }
 0x91d   :  { %9350 = vmatpush1.bf16.msra.mxu0 %v21914_v35 }
 0x91e   :  { %9351 = vmatprep.subr.bf16.mxu0 %v21919_v28  ;;  %v21944_v28 = vld [vmem:[%s29489_s5 + $0x708] ss:$12 sps:$4 sm:$0xff]  }
 0x920   :  { %9021 = vmatmul.mubr.bf16.gmra.mrb[144].mxu0 %v8656_v31  ;;  %v21932_v31 = vld [vmem:[%s29489_s5 + $0x6a8] ss:$12 sps:$4 sm:$0xff]  }
 0x921   :  { %9026 = vmatprep.mubr.bf16.mxu0 %v25831_v46  ;;  %9352 = vmatpush1.bf16.msra.mxu0 %v21917_v10  ;;  %v21928_v46 = vld [vmem:[%s29489_s5 + $0x67c] ss:$12 sps:$4 sm:$0xff]   ;;  %v21949_v10 = vld [vmem:[%s29489_s5 + $0x724] ss:$12 sps:$4 sm:$0xff]  }
 0x922   :  { %9353 = vmatprep.subr.bf16.mxu0 %v21922_v38  ;;  %v21947_v38 = vld [vmem:[%s29489_s5 + $0x720] ss:$12 sps:$4 sm:$0xff]  }
 0x925   :  { %9354 = vmatpush1.bf16.msra.mxu0 %v21920_v50  ;;  %v21952_v50 = vld [vmem:[%s29489_s5 + $0x73c] ss:$12 sps:$4 sm:$0xff]  }
 0x926   :  { %9355 = vmatprep.subr.bf16.mxu0 %v21925_v14  ;;  %v21950_v14 = vld [vmem:[%s29489_s5 + $0x738] ss:$12 sps:$4 sm:$0xff]  }
 0x928   :  { %9027 = vmatmul.mubr.bf16.gmra.mrb[148].mxu0 %v25918_v34  ;;  %v21929_v34 = vld [vmem:[%s29489_s5 + $0x690] ss:$12 sps:$4 sm:$0xff]  }
 0x929   :  { %9356 = vmatpush1.bf16.msra.mxu0 %v21923_v44  ;;  %9379 = vmatprep.mubr.bf16.mxu0 %v25267_v21  ;;  %v21955_v44 = vld [vmem:[%s29489_s5 + $0x754] ss:$12 sps:$4 sm:$0xff]  }
 0x92a   :  { %9357 = vmatprep.subr.bf16.mxu0 %v21928_v46  ;;  %v21953_v46 = vld [vmem:[%s29489_s5 + $0x750] ss:$12 sps:$4 sm:$0xff]  }
 0x92b   :  { %v20204_v37 = vpop.f32.mrb[108].mxu0 }
 0x92c   :  { %v20205_v25 = vpop.f32.mrb[109].mxu0 }
 0x92d   :  { %v26350_v16 = vadd.f32 %v20205_v25, %v20204_v37  ;;  %v20207_v3 = vpop.f32.mrb[110].mxu0  ;;  %9358 = vmatpush1.bf16.msra.mxu0 %v21926_v39  ;;  %v21958_v39 = vld [vmem:[%s29489_s5 + $0x76c] ss:$12 sps:$4 sm:$0xff]   ;;  %v21959_v37 = vld [vmem:[%s29489_s5 + $0x6c8] ss:$12 sps:$4 sm:$0xff]  }
 0x92e   :  { %v20208_v12 = vpop.f32.mrb[111].mxu0  ;;  %9359 = vmatprep.subr.bf16.mxu0 %v21931_v13  ;;  %v21956_v13 = vld [vmem:[%s29489_s5 + $0x768] ss:$12 sps:$4 sm:$0xff]  }
 0x92f   :  { %v26358_v8 = vadd.f32 %v20208_v12, %v20207_v3  ;;  %v21960_v25 = vld [vmem:[%s29489_s5 + $0x608] ss:$12 sps:$4 sm:$0xff]   ;;  %v21961_v3 = vld [vmem:[%s29489_s5 + $0x6e0] ss:$12 sps:$4 sm:$0xff]   ;;  %v21963_v12 = vld [vmem:[%s29489_s5 + $0x6f8] ss:$12 sps:$4 sm:$0xff]  }
 0x931   :  { %9360 = vmatpush1.bf16.msra.mxu0 %v21929_v34  ;;  %v21962_v34 = vld [vmem:[%s29489_s5 + $0x620] ss:$12 sps:$4 sm:$0xff]  }
 0x932   :  { %9361 = vmatprep.subr.bf16.mxu0 %v21934_v33  ;;  %v21964_v33 = vld [vmem:[%s29489_s5 + $0x638] ss:$12 sps:$4 sm:$0xff]  }
 0x933   :  { %v20210_v11 = vpop.f32.mrb[112].mxu0 }
 0x934   :  { %v20211_v15 = vpop.f32.mrb[113].mxu0  ;;  %v21967_v11 = vld [vmem:[%s29489_s5 + $0x728] ss:$12 sps:$4 sm:$0xff]  }
 0x935   :  { %v20213_v54 = vpop.f32.mrb[114].mxu0  ;;  %9362 = vmatpush1.bf16.msra.mxu0 %v21932_v31  ;;  %v21965_v31 = vld [vmem:[%s29489_s5 + $0x710] ss:$12 sps:$4 sm:$0xff]   ;;  %v21968_v15 = vld [vmem:[%s29489_s5 + $0x668] ss:$12 sps:$4 sm:$0xff]  }
 0x936   :  { %v20214_v7 = vpop.f32.mrb[115].mxu0  ;;  %9363 = vmatprep.subr.bf16.mxu0 %v21937_v59  ;;  %v21966_v59 = vld [vmem:[%s29489_s5 + $0x650] ss:$12 sps:$4 sm:$0xff]   ;;  %v21969_v54 = vld [vmem:[%s29489_s5 + $0x740] ss:$12 sps:$4 sm:$0xff]  }
 0x937   :  { %v21971_v7 = vld [vmem:[%s29489_s5 + $0x758] ss:$12 sps:$4 sm:$0xff]  }
 0x939   :  { %9364 = vmatpush1.bf16.msra.mxu0 %v21935_v61  ;;  %v21970_v61 = vld [vmem:[%s29489_s5 + $0x680] ss:$12 sps:$4 sm:$0xff]  }
 0x93a   :  { %9365 = vmatprep.subr.bf16.mxu0 %v21940_v18  ;;  %v21972_v18 = vld [vmem:[%s29489_s5 + $0x698] ss:$12 sps:$4 sm:$0xff]  }
 0x93b   :  { %v20216_v48 = vpop.f32.mrb[116].mxu0 }
 0x93c   :  { %v20217_v29 = vpop.f32.mrb[117].mxu0 }
 0x93d   :  { %v26378_v17 = vadd.f32 %v20217_v29, %v20216_v48  ;;  %v20219_v6 = vpop.f32.mrb[118].mxu0  ;;  %9366 = vmatpush1.bf16.msra.mxu0 %v21938_v36  ;;  %v21973_v36 = vld [vmem:[%s29489_s5 + $0x770] ss:$12 sps:$4 sm:$0xff]  }
 0x93e   :  { %v20220_v19 = vpop.f32.mrb[119].mxu0  ;;  %9367 = vmatprep.subr.bf16.mxu0 %v21943_v9  ;;  %v21977_v9 = vld [vmem:[%s29489_s5 + $0x904] ss:$12 sps:$4 sm:$0xff]  }
 0x93f   :  { %v26386_v35 = vadd.f32 %v20220_v19, %v20219_v6 }
 0x941   :  { %9368 = vmatpush1.bf16.msra.mxu0 %v21941_v52  ;;  %v21975_v52 = vld [vmem:[%s29489_s5 + $0x900] ss:$12 sps:$4 sm:$0xff]  }
 0x942   :  { %9369 = vmatprep.subr.bf16.mxu0 %v21946_v27  ;;  %v21980_v27 = vld [vmem:[%s29489_s5 + $0x91c] ss:$12 sps:$4 sm:$0xff]  }
 0x945   :  { %9370 = vmatpush1.bf16.msra.mxu0 %v21944_v28  ;;  %v21978_v28 = vld [vmem:[%s29489_s5 + $0x918] ss:$12 sps:$4 sm:$0xff]  }
 0x946   :  { %9371 = vmatprep.subr.bf16.mxu0 %v21949_v10  ;;  %v21983_v10 = vld [vmem:[%s29489_s5 + $0x934] ss:$12 sps:$4 sm:$0xff]  }
 0x949   :  { %9372 = vmatpush1.bf16.msra.mxu0 %v21947_v38  ;;  %v21981_v38 = vld [vmem:[%s29489_s5 + $0x930] ss:$12 sps:$4 sm:$0xff]  }
 0x94a   :  { %9373 = vmatprep.subr.bf16.mxu0 %v21952_v50  ;;  %v21989_v50 = vld [vmem:[%s29489_s5 + $0x964] ss:$12 sps:$4 sm:$0xff]  }
 0x94d   :  { %9374 = vmatpush1.bf16.msra.mxu0 %v21950_v14  ;;  %v21987_v14 = vld [vmem:[%s29489_s5 + $0x960] ss:$12 sps:$4 sm:$0xff]  }
 0x94e   :  { %9375 = vmatprep.subr.bf16.mxu0 %v21955_v44  ;;  %v21995_v44 = vld [vmem:[%s29489_s5 + $0x994] ss:$12 sps:$4 sm:$0xff]  }
 0x951   :  { %9376 = vmatpush1.bf16.msra.mxu0 %v21953_v46 }
 0x952   :  { %9377 = vmatprep.subr.bf16.mxu0 %v21958_v39 }
 0x955   :  { %9378 = vmatpush1.bf16.msra.mxu0 %v21956_v13 }
 0x956   :  { %20290 = vmatprep.subr.bf16.mxu0 %v21959_v37 }
 0x958   :  { %9380 = vmatmul.mubr.bf16.vlgmr.msra.gmra.mrb[32].mxu0 %v25284_v49 }
 0x959   :  { %9389 = vmatprep.mubr.bf16.mxu0 %v25294_v32  ;;  %20291 = vmatpush3.bf16.msra.mxu0 %v21960_v25 }
 0x95a   :  { %20292 = vmatprep.subr.bf16.mxu0 %v21961_v3  ;;  %v21998_v3 = vld [vmem:[%s29489_s5 + $0x9ac] ss:$12 sps:$4 sm:$0xff]  }
 0x95d   :  { %20293 = vmatpush3.bf16.msra.mxu0 %v21962_v34 }
 0x95e   :  { %20294 = vmatprep.subr.bf16.mxu0 %v21963_v12 }
 0x960   :  { %9390 = vmatmul.mubr.bf16.gmra.mrb[152].mxu0 %v25297_v62 }
 0x961   :  { %9395 = vmatprep.mubr.bf16.mxu0 %v25306_v30  ;;  %20295 = vmatpush3.bf16.msra.mxu0 %v21964_v33 }
 0x962   :  { %20296 = vmatprep.subr.bf16.mxu0 %v21965_v31  ;;  %v21996_v31 = vld [vmem:[%s29489_s5 + $0x9a8] ss:$12 sps:$4 sm:$0xff]  }
 0x965   :  { %20297 = vmatpush3.bf16.msra.mxu0 %v21966_v59  ;;  %v22001_v59 = vld [vmem:[%s29489_s5 + $0x9c4] ss:$12 sps:$4 sm:$0xff]  }
 0x966   :  { %20298 = vmatprep.subr.bf16.mxu0 %v21967_v11 }
 0x968   :  { %9396 = vmatmul.mubr.bf16.gmra.mrb[40].mxu0 %v25310_v63 }
 0x969   :  { %20299 = vmatpush3.bf16.msra.mxu0 %v21968_v15  ;;  %9438 = vmatprep.mubr.bf16.mxu0 %v25267_v21  ;;  %v21974_v21 = vld [vmem:[%s29489_s5 + $0x6b0] ss:$12 sps:$4 sm:$0xff]  }
 0x96a   :  { %20300 = vmatprep.subr.bf16.mxu0 %v21969_v54 }
 0x96d   :  { %20301 = vmatpush3.bf16.msra.mxu0 %v21970_v61  ;;  %v22004_v61 = vld [vmem:[%s29489_s5 + $0x9dc] ss:$12 sps:$4 sm:$0xff]  }
 0x96e   :  { %20302 = vmatprep.subr.bf16.mxu0 %v21971_v7  ;;  %v22002_v7 = vld [vmem:[%s29489_s5 + $0x9d8] ss:$12 sps:$4 sm:$0xff]  }
 0x971   :  { %20303 = vmatpush3.bf16.msra.mxu0 %v21972_v18  ;;  %v22007_v18 = vld [vmem:[%s29489_s5 + $0x9f4] ss:$12 sps:$4 sm:$0xff]  }
 0x972   :  { %20304 = vmatprep.subr.bf16.mxu0 %v21973_v36 }
 0x973   :  { %v8573_v48 = vpop.f32.mrb[120].mxu0 }
 0x974   :  { %v8574_v29 = vpop.f32.mrb[121].mxu0 }
 0x975   :  { %v8575_v6 = vpop.f32.mrb[122].mxu0  ;;  %20305 = vmatpush3.bf16.msra.mxu0 %v21974_v21  ;;  %v22005_v29 = vld [vmem:[%s29489_s5 + $0x9f0] ss:$12 sps:$4 sm:$0xff]  }
 0x976   :  { %v8576_v19 = vpop.f32.mrb[123].mxu0  ;;  %9717 = vmatprep.subr.bf16.mxu0 %v21977_v9 }
 0x978   :  { %9439 = vmatmul.mubr.bf16.vlgmr.msra.gmra.mrb[156].mxu0 %v25284_v49  ;;  %v21986_v49 = vld [vmem:[%s29489_s5 + $0x94c] ss:$12 sps:$4 sm:$0xff]  }
 0x979   :  { %9446 = vmatprep.mubr.bf16.mxu0 %v25294_v32  ;;  %9718 = vmatpush1.bf16.msra.mxu0 %v21975_v52  ;;  %v21984_v32 = vld [vmem:[%s29489_s5 + $0x948] ss:$12 sps:$4 sm:$0xff]   ;;  %v22010_v52 = vld [vmem:[%s29489_s5 + $0xa0c] ss:$12 sps:$4 sm:$0xff]  }
 0x97a   :  { %9719 = vmatprep.subr.bf16.mxu0 %v21980_v27 }
 0x97d   :  { %9720 = vmatpush1.bf16.msra.mxu0 %v21978_v28 }
 0x97e   :  { %9721 = vmatprep.subr.bf16.mxu0 %v21983_v10  ;;  %v22008_v10 = vld [vmem:[%s29489_s5 + $0xa08] ss:$12 sps:$4 sm:$0xff]  }
 0x980   :  { %9447 = vmatmul.mubr.bf16.gmra.mrb[160].mxu0 %v25297_v62  ;;  %v21992_v62 = vld [vmem:[%s29489_s5 + $0x97c] ss:$12 sps:$4 sm:$0xff]  }
 0x981   :  { %9452 = vmatprep.mubr.bf16.mxu0 %v25306_v30  ;;  %9722 = vmatpush1.bf16.msra.mxu0 %v21981_v38  ;;  %v21990_v30 = vld [vmem:[%s29489_s5 + $0x978] ss:$12 sps:$4 sm:$0xff]  }
 0x982   :  { %9723 = vmatprep.subr.bf16.mxu0 %v21986_v49  ;;  %v22013_v38 = vld [vmem:[%s29489_s5 + $0xa24] ss:$12 sps:$4 sm:$0xff]  }
 0x983   :  { %v22014_v49 = vld [vmem:[%s29489_s5 + $0xa38] ss:$12 sps:$4 sm:$0xff]  }
 0x985   :  { %9724 = vmatpush1.bf16.msra.mxu0 %v21984_v32  ;;  %v22019_v32 = vld [vmem:[%s29489_s5 + $0xa54] ss:$12 sps:$4 sm:$0xff]  }
 0x986   :  { %9725 = vmatprep.subr.bf16.mxu0 %v21989_v50  ;;  %v22017_v50 = vld [vmem:[%s29489_s5 + $0xa50] ss:$12 sps:$4 sm:$0xff]  }
 0x988   :  { %9453 = vmatmul.mubr.bf16.gmra.mrb[164].mxu0 %v25310_v63  ;;  %v21993_v63 = vld [vmem:[%s29489_s5 + $0x990] ss:$12 sps:$4 sm:$0xff]  }
 0x989   :  { %9726 = vmatpush1.bf16.msra.mxu0 %v21987_v14  ;;  %9749 = vmatprep.mubr.bf16.mxu0 %v26090_v23  ;;  %v22022_v14 = vld [vmem:[%s29489_s5 + $0xa6c] ss:$12 sps:$4 sm:$0xff]  }
 0x98a   :  { %9727 = vmatprep.subr.bf16.mxu0 %v21992_v62  ;;  %v22020_v62 = vld [vmem:[%s29489_s5 + $0xa68] ss:$12 sps:$4 sm:$0xff]  }
 0x98b   :  { %v20238_v46 = vpop.f32.mrb[124].mxu0 }
 0x98c   :  { %v20239_v39 = vpop.f32.mrb[125].mxu0 }
 0x98d   :  { %v20240_v13 = vadd.f32 %v20239_v39, %v20238_v46  ;;  %v20241_v37 = vpop.f32.mrb[126].mxu0  ;;  %9728 = vmatpush1.bf16.msra.mxu0 %v21990_v30  ;;  %v22023_v30 = vld [vmem:[%s29489_s5 + $0x9c8] ss:$12 sps:$4 sm:$0xff]   ;;  %v22025_v46 = vld [vmem:[%s29489_s5 + $0x9e0] ss:$12 sps:$4 sm:$0xff]  }
 0x98e   :  { %v20242_v25 = vpop.f32.mrb[127].mxu0  ;;  %9729 = vmatprep.subr.bf16.mxu0 %v21995_v44  ;;  %v22024_v44 = vld [vmem:[%s29489_s5 + $0x908] ss:$12 sps:$4 sm:$0xff]  }
 0x98f   :  { %v26521_v34 = vadd.f32 %v20240_v13, %v25675_v56  ;;  %v20243_v12 = vadd.f32 %v20242_v25, %v20241_v37  ;;  %v21999_v56 = vld [vmem:[%s29489_s5 + $0x9c0] ss:$12 sps:$4 sm:$0xff]   ;;  %v22027_v37 = vld [vmem:[%s29489_s5 + $0x9f8] ss:$12 sps:$4 sm:$0xff]   ;;  %v22029_v25 = vld [vmem:[%s29489_s5 + $0xa10] ss:$12 sps:$4 sm:$0xff]  }
 0x990   :  { %v23155_v39 = vld [vmem:[#allocation3 + $0x28] sm:$0xff] }
 0x991   :  { %v26524_v33 = vadd.f32 %v20243_v12, %v25683_v22  ;;  %9730 = vmatpush1.bf16.msra.mxu0 %v21993_v63  ;;  %v22026_v13 = vld [vmem:[%s29489_s5 + $0x920] ss:$12 sps:$4 sm:$0xff]   ;;  %v22028_v63 = vld [vmem:[%s29489_s5 + $0x938] ss:$12 sps:$4 sm:$0xff]  }
 0x992   :  { %9731 = vmatprep.subr.bf16.mxu0 %v21998_v3  ;;  %v23156_v3 = vld [vmem:[#allocation3 + $0x20] sm:$0xff]  ;;  %v7261_v12 = vld [vmem:[#allocation3 + $0x38] sm:$0x7f] }
 0x993   :  { %v20244_v11 = vpop.f32.mrb[128].mxu0 }
 0x994   :  { %v20245_v15 = vpop.f32.mrb[129].mxu0  ;;  %v22032_v11 = vld [vmem:[%s29489_s5 + $0x968] ss:$12 sps:$4 sm:$0xff]  }
 0x995   :  { %v20247_v54 = vpop.f32.mrb[130].mxu0  ;;  %9732 = vmatpush1.bf16.msra.mxu0 %v21996_v31  ;;  %v22030_v31 = vld [vmem:[%s29489_s5 + $0x950] ss:$12 sps:$4 sm:$0xff]   ;;  %v22033_v15 = vld [vmem:[%s29489_s5 + $0xa40] ss:$12 sps:$4 sm:$0xff]  }
 0x996   :  { %v20248_v22 = vpop.f32.mrb[131].mxu0  ;;  %9733 = vmatprep.subr.bf16.mxu0 %v22001_v59  ;;  %v22031_v59 = vld [vmem:[%s29489_s5 + $0xa28] ss:$12 sps:$4 sm:$0xff]  }
 0x997   :  { %v7260_v54 = vld [vmem:[#allocation3 + $0x30] sm:$0x7f]  ;;  %v22035_v22 = vld [vmem:[%s29489_s5 + $0xa58] ss:$12 sps:$4 sm:$0xff]  }
 0x999   :  { %9734 = vmatpush1.bf16.msra.mxu0 %v21999_v56  ;;  %v22034_v56 = vld [vmem:[%s29489_s5 + $0x980] ss:$12 sps:$4 sm:$0xff]  }
 0x99a   :  { %9735 = vmatprep.subr.bf16.mxu0 %v22004_v61  ;;  %v22036_v61 = vld [vmem:[%s29489_s5 + $0x998] ss:$12 sps:$4 sm:$0xff]  }
 0x99b   :  { %v20250_v36 = vpop.f32.mrb[132].mxu0 }
 0x99c   :  { %v20251_v21 = vpop.f32.mrb[133].mxu0 }
 0x99d   :  { %v20252_v9 = vadd.f32 %v20251_v21, %v20250_v36  ;;  %v20253_v48 = vpop.f32.mrb[134].mxu0  ;;  %9736 = vmatpush1.bf16.msra.mxu0 %v22002_v7  ;;  %v22037_v7 = vld [vmem:[%s29489_s5 + $0xa70] ss:$12 sps:$4 sm:$0xff]  }
 0x99e   :  { %v20254_v6 = vpop.f32.mrb[135].mxu0  ;;  %9737 = vmatprep.subr.bf16.mxu0 %v22007_v18 }
 0x99f   :  { %v26551_v19 = vadd.f32 %v20252_v9, %v25703_v4  ;;  %v20255_v27 = vadd.f32 %v20254_v6, %v20253_v48  ;;  %v22011_v4 = vld [vmem:[%s29489_s5 + $0xa20] ss:$12 sps:$4 sm:$0xff]   ;;  %v22044_v6 = vld [vmem:[%s29491_s7 + $0x194] ss:$8 sps:$4 sm:$0xff]  }
 0x9a0   :  { %v22039_v48 = vld [vmem:[%s29491_s7 + $0x180] ss:$8 sps:$4 sm:$0xff]  }
 0x9a1   :  { %v26554_v28 = vadd.f32 %v20255_v27, %v25711_v24  ;;  %9738 = vmatpush1.bf16.msra.mxu0 %v22005_v29  ;;  %v22016_v24 = vld [vmem:[%s29489_s5 + $0xa3c] ss:$12 sps:$4 sm:$0xff]   ;;  %v22041_v29 = vld [vmem:[%s29491_s7 + $0x184] ss:$8 sps:$4 sm:$0xff]  }
 0x9a2   :  { %9739 = vmatprep.subr.bf16.mxu0 %v22010_v52  ;;  %v22047_v52 = vld [vmem:[%s29491_s7 + $0x1a4] ss:$8 sps:$4 sm:$0xff]   ;;  %v22045_v27 = vld [vmem:[%s29491_s7 + $0x1a0] ss:$8 sps:$4 sm:$0xff]  }
 0x9a5   :  { %9740 = vmatpush1.bf16.msra.mxu0 %v22008_v10  ;;  %v22050_v10 = vld [vmem:[%s29491_s7 + $0x1b4] ss:$8 sps:$4 sm:$0xff]  }
 0x9a6   :  { %9741 = vmatprep.subr.bf16.mxu0 %v22013_v38 }
 0x9a9   :  { %9742 = vmatpush1.bf16.msra.mxu0 %v22011_v4 }
 0x9aa   :  { %9743 = vmatprep.subr.bf16.mxu0 %v22016_v24 }
 0x9ad   :  { %9744 = vmatpush1.bf16.msra.mxu0 %v22014_v49 }
 0x9ae   :  { %9745 = vmatprep.subr.bf16.mxu0 %v22019_v32  ;;  %v22048_v32 = vld [vmem:[%s29491_s7 + $0x1b0] ss:$8 sps:$4 sm:$0xff]  }
 0x9b1   :  { %9746 = vmatpush1.bf16.msra.mxu0 %v22017_v50 }
 0x9b2   :  { %9747 = vmatprep.subr.bf16.mxu0 %v22022_v14  ;;  %v22053_v14 = vld [vmem:[%s29491_s7 + $0x1c4] ss:$8 sps:$4 sm:$0xff]  }
 0x9b5   :  { %9748 = vmatpush1.bf16.msra.mxu0 %v22020_v62 }
 0x9b6   :  { %20324 = vmatprep.subr.bf16.mxu0 %v22023_v30 }
 0x9b8   :  { %9750 = vmatmul.mubr.bf16.vlgmr.msra.gmra.mrb[32].mxu0 %v26105_v20 }
 0x9b9   :  { %9759 = vmatprep.mubr.bf16.mxu0 %v23155_v39  ;;  %20325 = vmatpush3.bf16.msra.mxu0 %v22024_v44 }
 0x9ba   :  { %20326 = vmatprep.subr.bf16.mxu0 %v22025_v46 }
 0x9bd   :  { %20327 = vmatpush3.bf16.msra.mxu0 %v22026_v13  ;;  %v22056_v13 = vld [vmem:[%s29491_s7 + $0x1d4] ss:$8 sps:$4 sm:$0xff]  }
 0x9be   :  { %20328 = vmatprep.subr.bf16.mxu0 %v22027_v37 }
 0x9c0   :  { %9760 = vmatmul.mubr.bf16.gmra.mrb[168].mxu0 %v23156_v3 }
 0x9c1   :  { %9765 = vmatprep.mubr.bf16.mxu0 %v7261_v12  ;;  %20329 = vmatpush3.bf16.msra.mxu0 %v22028_v63 }
 0x9c2   :  { %20330 = vmatprep.subr.bf16.mxu0 %v22029_v25 }
 0x9c5   :  { %20331 = vmatpush3.bf16.msra.mxu0 %v22030_v31 }
 0x9c6   :  { %20332 = vmatprep.subr.bf16.mxu0 %v22031_v59 }
 0x9c8   :  { %9766 = vmatmul.mubr.bf16.gmra.mrb[40].mxu0 %v7260_v54 }
 0x9c9   :  { %20333 = vmatpush3.bf16.msra.mxu0 %v22032_v11  ;;  %9808 = vmatprep.mubr.bf16.mxu0 %v26090_v23  ;;  %v22038_v23 = vld [vmem:[%s29489_s5 + $0x9b0] ss:$12 sps:$4 sm:$0xff]  }
 0x9ca   :  { %20334 = vmatprep.subr.bf16.mxu0 %v22033_v15 }
 0x9cd   :  { %20335 = vmatpush3.bf16.msra.mxu0 %v22034_v56 }
 0x9ce   :  { %20336 = vmatprep.subr.bf16.mxu0 %v22035_v22  ;;  %v22065_v22 = vld [vmem:[%s29491_s7 + $0x204] ss:$8 sps:$4 sm:$0xff]  }
 0x9d1   :  { %20337 = vmatpush3.bf16.msra.mxu0 %v22036_v61 }
 0x9d2   :  { %20338 = vmatprep.subr.bf16.mxu0 %v22037_v7 }
 0x9d3   :  { %v8965_v18 = vpop.f32.mrb[136].mxu0 }
 0x9d4   :  { %v8966_v36 = vpop.f32.mrb[137].mxu0 }
 0x9d5   :  { %v8967_v21 = vpop.f32.mrb[138].mxu0  ;;  %20339 = vmatpush3.bf16.msra.mxu0 %v22038_v23  ;;  %v22063_v36 = vld [vmem:[%s29491_s7 + $0x200] ss:$8 sps:$4 sm:$0xff]  }
 0x9d6   :  { %v8968_v9 = vpop.f32.mrb[139].mxu0  ;;  %10497 = vmatprep.subr.bf16.mxu0 %v22041_v29  ;;  %v22077_v29 = vld [vmem:[%s29491_s7 + $0x244] ss:$8 sps:$4 sm:$0xff]  }
 0x9d7   :  { %v22074_v9 = vld [vmem:[%s29491_s7 + $0x234] ss:$8 sps:$4 sm:$0xff]  }
 0x9d8   :  { %9809 = vmatmul.mubr.bf16.vlgmr.msra.gmra.mrb[172].mxu0 %v26105_v20  ;;  %v22042_v20 = vld [vmem:[%s29491_s7 + $0x190] ss:$8 sps:$4 sm:$0xff]  }
 0x9d9   :  { %9816 = vmatprep.mubr.bf16.mxu0 %v23155_v39  ;;  %10498 = vmatpush1.bf16.msra.mxu0 %v22039_v48  ;;  %v22051_v39 = vld [vmem:[%s29491_s7 + $0x1c0] ss:$8 sps:$4 sm:$0xff]   ;;  %v22072_v48 = vld [vmem:[%s29491_s7 + $0x230] ss:$8 sps:$4 sm:$0xff]  }
 0x9da   :  { %10499 = vmatprep.subr.bf16.mxu0 %v22044_v6  ;;  %v22075_v6 = vld [vmem:[%s29491_s7 + $0x240] ss:$8 sps:$4 sm:$0xff]  }
 0x9dd   :  { %10500 = vmatpush1.bf16.msra.mxu0 %v22042_v20  ;;  %v22078_v20 = vld [vmem:[%s29491_s7 + $0x250] ss:$8 sps:$4 sm:$0xff]  }
 0x9de   :  { %10501 = vmatprep.subr.bf16.mxu0 %v22047_v52  ;;  %v22080_v52 = vld [vmem:[%s29491_s7 + $0x254] ss:$8 sps:$4 sm:$0xff]  }
 0x9e0   :  { %9817 = vmatmul.mubr.bf16.gmra.mrb[176].mxu0 %v23156_v3  ;;  %v22059_v3 = vld [vmem:[%s29491_s7 + $0x1e4] ss:$8 sps:$4 sm:$0xff]  }
 0x9e1   :  { %9822 = vmatprep.mubr.bf16.mxu0 %v7261_v12  ;;  %10502 = vmatpush1.bf16.msra.mxu0 %v22045_v27  ;;  %v22062_v12 = vld [vmem:[%s29491_s7 + $0x1f4] ss:$8 sps:$4 sm:$0xff]   ;;  %v22083_v27 = vld [vmem:[%s29491_s7 + $0x264] ss:$8 sps:$4 sm:$0xff]  }
 0x9e2   :  { %10503 = vmatprep.subr.bf16.mxu0 %v22050_v10  ;;  %v22081_v10 = vld [vmem:[%s29491_s7 + $0x260] ss:$8 sps:$4 sm:$0xff]  }
 0x9e5   :  { %10504 = vmatpush1.bf16.msra.mxu0 %v22048_v32 }
 0x9e6   :  { %10505 = vmatprep.subr.bf16.mxu0 %v22053_v14  ;;  %v22089_v14 = vld [vmem:[%s29491_s7 + $0x284] ss:$8 sps:$4 sm:$0xff]  }
 0x9e8   :  { %9823 = vmatmul.mubr.bf16.gmra.mrb[180].mxu0 %v7260_v54  ;;  %v22060_v54 = vld [vmem:[%s29491_s7 + $0x1f0] ss:$8 sps:$4 sm:$0xff]  }
 0x9e9   :  { %10506 = vmatpush1.bf16.msra.mxu0 %v22051_v39 }
 0x9ea   :  { %10507 = vmatprep.subr.bf16.mxu0 %v22056_v13 }
 0x9eb   :  { %v20272_v38 = vpop.f32.mrb[140].mxu0 }
 0x9ec   :  { %v20273_v4 = vpop.f32.mrb[141].mxu0 }
 0x9ed   :  { %v20274_v24 = vadd.f32 %v20273_v4, %v20272_v38  ;;  %v20275_v49 = vpop.f32.mrb[142].mxu0  ;;  %v22086_v38 = vld [vmem:[%s29491_s7 + $0x274] ss:$8 sps:$4 sm:$0xff]  }
 0x9ee   :  { %v20276_v50 = vpop.f32.mrb[143].mxu0 }
 0x9ef   :  { %v9015_v62 = vadd.f32 %v20274_v24, %v25850_v41  ;;  %v20277_v30 = vadd.f32 %v20276_v50, %v20275_v49  ;;  %v22084_v24 = vld [vmem:[%s29491_s7 + $0x270] ss:$8 sps:$4 sm:$0xff]  }
 0x9f1   :  { %v26663_v44 = vadd.f32 %v9015_v62, %v26521_v34  ;;  %v9018_v46 = vadd.f32 %v20277_v30, %v25858_v58  ;;  %v22054_v58 = vld [vmem:[%s29491_s7 + $0x1d0] ss:$8 sps:$4 sm:$0xff]  }
 0x9f2   :  { %10508 = vmatpush1.bf16.msra.mxu0 %v22054_v58 }
 0x9f3   :  { %v26673_v37 = vadd.f32 %v9018_v46, %v26524_v33  ;;  %v20278_v41 = vpop.f32.mrb[144].mxu0  ;;  %v22057_v33 = vld [vmem:[%s29491_s7 + $0x1e0] ss:$8 sps:$4 sm:$0xff]   ;;  %10509 = vmatprep.subr.bf16.mxu0 %v22059_v3 }
 0x9f4   :  { %v20279_v63 = vpop.f32.mrb[145].mxu0 }
 0x9f5   :  { %v20281_v25 = vpop.f32.mrb[146].mxu0 }
 0x9f6   :  { %v20282_v34 = vpop.f32.mrb[147].mxu0  ;;  %10510 = vmatpush1.bf16.msra.mxu0 %v22057_v33 }
 0x9f7   :  { %10511 = vmatprep.subr.bf16.mxu0 %v22062_v12 }
 0x9fa   :  { %10512 = vmatpush1.bf16.msra.mxu0 %v22060_v54 }
 0x9fb   :  { %v20284_v31 = vpop.f32.mrb[148].mxu0  ;;  %10513 = vmatprep.subr.bf16.mxu0 %v22065_v22 }
 0x9fc   :  { %v20285_v59 = vpop.f32.mrb[149].mxu0 }
 0x9fd   :  { %v20286_v11 = vadd.f32 %v20285_v59, %v20284_v31  ;;  %v20287_v15 = vpop.f32.mrb[150].mxu0 }
 0x9fe   :  { %v20288_v56 = vpop.f32.mrb[151].mxu0  ;;  %10514 = vmatpush1.bf16.msra.mxu0 %v22063_v36 }
 0x9ff   :  { %v9029_v61 = vadd.f32 %v20286_v11, %v25878_v57  ;;  %v20289_v7 = vadd.f32 %v20288_v56, %v20287_v15  ;;  %v22066_v57 = vld [vmem:[%s29491_s7 + $0x210] ss:$8 sps:$4 sm:$0xff]  }
 0xa01   :  { %v26695_v23 = vadd.f32 %v9029_v61, %v26551_v19  ;;  %v9032_v18 = vadd.f32 %v20289_v7, %v25886_v45  ;;  %v22068_v19 = vld [vmem:[%s29491_s7 + $0x214] ss:$8 sps:$4 sm:$0xff]   ;;  %v22071_v45 = vld [vmem:[%s29491_s7 + $0x224] ss:$8 sps:$4 sm:$0xff]  }
 0xa02   :  { %10515 = vmatprep.subr.bf16.mxu0 %v22068_v19 }
 0xa03   :  { %v26702_v21 = vadd.f32 %v9032_v18, %v26554_v28  ;;  %10516 = vmatpush1.bf16.msra.mxu0 %v22066_v57  ;;  %v22069_v28 = vld [vmem:[%s29491_s7 + $0x220] ss:$8 sps:$4 sm:$0xff]  }
 0xa04   :  { %10517 = vmatprep.subr.bf16.mxu0 %v22071_v45 }
 0xa07   :  { %10518 = vmatpush1.bf16.msra.mxu0 %v22069_v28 }
 0xa08   :  { %10519 = vmatprep.subr.bf16.mxu0 %v22074_v9 }
 0xa0b   :  { %10520 = vmatpush1.bf16.msra.mxu0 %v22072_v48 }
 0xa0c   :  { %10521 = vmatprep.subr.bf16.mxu0 %v22077_v29 }
 0xa0f   :  { %10522 = vmatpush1.bf16.msra.mxu0 %v22075_v6 }
 0xa10   :  { %10523 = vmatprep.subr.bf16.mxu0 %v22080_v52 }
 0xa13   :  { %10524 = vmatpush1.bf16.msra.mxu0 %v22078_v20 }
 0xa14   :  { %10525 = vmatprep.subr.bf16.mxu0 %v22083_v27 }
 0xa17   :  { %10526 = vmatpush1.bf16.msra.mxu0 %v22081_v10 }
 0xa18   :  { %10527 = vmatprep.subr.bf16.mxu0 %v22086_v38 }
 0xa1b   :  { %10528 = vmatpush1.bf16.msra.mxu0 %v22084_v24 }
 0xa1c   :  { %10556 = vmatprep.subr.bf16.mxu0 %v22089_v14 }
 0xa33   :  { %v9391_v4 = vpop.f32.mrb[152].mxu0 }
 0xa34   :  { %v9392_v49 = vpop.f32.mrb[153].mxu0 }
 0xa35   :  { %v9393_v32 = vpop.f32.mrb[154].mxu0 }
 0xa36   :  { %v9394_v50 = vpop.f32.mrb[155].mxu0 }
 0xa4b   :  { %v20306_v62 = vpop.f32.mrb[156].mxu0 }
 0xa4c   :  { %v20307_v30 = vpop.f32.mrb[157].mxu0 }
 0xa4d   :  { %v20308_v46 = vadd.f32 %v20307_v30, %v20306_v62  ;;  %v20309_v39 = vpop.f32.mrb[158].mxu0  ;;  %v9950_v30 = vld [vmem:[#allocation4] sm:$0x30] }
 0xa4e   :  { %v20310_v13 = vpop.f32.mrb[159].mxu0 }
 0xa4f   :  { %v26750_v41 = vadd.f32 %v20308_v46, %v26016_v51  ;;  %v20311_v63 = vadd.f32 %v20310_v13, %v20309_v39 }
 0xa51   :  { %v26753_v25 = vadd.f32 %v20311_v63, %v26024_v53  ;;  %v26764_v53 = vld [vmem:[%s29490_s6] sm:$0x7]  ;;  %s17068_s6 = sshll.u32 %s23200_s24, 4  ;;  %s17069_s6 = int_to_ptr.vmem [resolvable:$true] %s17068_s6 }
 0xa52   :  { %v9884_v22 = vrot.slane %v26764_v53, %v25100_v26  ;;  %v9888_v61 = vrot.slane %v26764_v53, %v25106_v43  ;;  %s23175_s25 = scalar_lea.vmem %s17069_s6, 32  ;;  %p23180_p1 = scmp.lt.s32.totalorder %s17069_s6, %s17069_s6 }
 0xa53   :  { %v20312_v58 = vpop.f32.mrb[160].mxu0  ;;  %p23176_p0 = scmp.ne.s32.totalorder %s17069_s6, %s23175_s25  ;;  %p23181_p2 = scmp.lt.s32.totalorder %s23175_s25, %s23175_s25 }
 0xa54   :  { %v20313_v34 = vpop.f32.mrb[161].mxu0 }
 0xa55   :  { %v20315_v3 = vpop.f32.mrb[162].mxu0  ;;  %v9953_v34 = vld [vmem:[#allocation4 + $0x8] sm:$0x30]  ;;  %p23182_p3 = por %p23181_p2, %p23180_p1 }
 0xa56   :  { %v20316_v33 = vpop.f32.mrb[163].mxu0 }
 0xa57   :  { %p23183_p4 = pnand %p23182_p3, %p23176_p0 }
 0xa5b   :  { %v20318_v12 = vpop.f32.mrb[164].mxu0 }
 0xa5c   :  { %v20319_v31 = vpop.f32.mrb[165].mxu0 }
 0xa5d   :  { %v20320_v59 = vadd.f32 %v20319_v31, %v20318_v12  ;;  %v20321_v11 = vpop.f32.mrb[166].mxu0 }
 0xa5e   :  { %v20322_v15 = vpop.f32.mrb[167].mxu0 }
 0xa5f   :  { %v26756_v54 = vadd.f32 %v20320_v59, %v26044_v5  ;;  %v20323_v56 = vadd.f32 %v20322_v15, %v20321_v11  ;;  %v9986_v59 = vld [vmem:[#allocation4 + $0x18] sm:$0x3] }
 0xa61   :  { %v26759_v51 = vadd.f32 %v20323_v56, %v26052_v2 }
 0xa8b   :  { %v9751_v7 = vpop.f32.mrb[32].mxu0 }
 0xa8c   :  { %v9896_v18 = vadd.f32 %v9884_v22, %v9751_v7  ;;  %v9753_v36 = vpop.f32.mrb[33].mxu0 }
 0xa8d   :  { %v9897_v5 = vadd.f32 %v9888_v61, %v9753_v36  ;;  %v9755_v57 = vpop.f32.mrb[34].mxu0 }
 0xa8e   :  { %v9908_v19 = vmax.f32 %v9896_v18, 0.0  ;;  %v9899_v45 = vadd.f32 %v9884_v22, %v9755_v57  ;;  %v9757_v2 = vpop.f32.mrb[35].mxu0  ;;  %v9989_v18 = vld [vmem:[#allocation4 + $0x20] sm:$0x3] }
 0xa8f   :  { %v9909_v28 = vmax.f32 %v9897_v5, 0.0  ;;  %v9900_v9 = vadd.f32 %v9888_v61, %v9757_v2 }
 0xa90   :  { %v9920_v48 = vpack.c.bf16 %v9908_v19, %v9908_v19  ;;  %v9911_v29 = vmax.f32 %v9899_v45, 0.0 }
 0xa91   :  { %v9921_v6 = vpack.c.bf16 %v9909_v28, %v9909_v28  ;;  %v9912_v20 = vmax.f32 %v9900_v9, 0.0 }
 0xa92   :  { %v9924_v52 = vshrl.u32 %v9920_v48, 16  ;;  %v9927_v27 = vshll.u32 %v9920_v48, 16  ;;  %v9959_v10 = vpack.c.bf16 %v9911_v29, %v9911_v29 }
 0xa93   :  { %v9932_v38 = vshrl.u32 %v9921_v6, 16  ;;  %v9935_v4 = vshll.u32 %v9921_v6, 16  ;;  %v9960_v24 = vpack.c.bf16 %v9912_v20, %v9912_v20  ;;  %v9761_v49 = vpop.f32.mrb[168].mxu0 }
 0xa94   :  { %v9926_v32 = vrot.slane %v9924_v52, 3  ;;  %v9929_v50 = vrot.slane %v9927_v27, 4  ;;  %v9963_v14 = vshrl.u32 %v9959_v10, 16  ;;  %v9762_v62 = vpop.f32.mrb[169].mxu0  ;;  %v9966_v33 = vshll.u32 %v9959_v10, 16 }
 0xa95   :  { %v9934_v46 = vrot.slane %v9932_v38, 3  ;;  %v9937_v39 = vrot.slane %v9935_v4, 4  ;;  %v9970_v13 = vshrl.u32 %v9960_v24, 16  ;;  %v9763_v63 = vpop.f32.mrb[170].mxu0  ;;  %v9973_v15 = vshll.u32 %v9960_v24, 16 }
 0xa96   :  { %v9930_v58 = vor.u32 %v9929_v50, %v9926_v32  ;;  %v9965_v3 = vrot.slane %v9963_v14, 7  ;;  %v9764_v12 = vpop.f32.mrb[171].mxu0 }
 0xa97   :  { %v9938_v31 = vor.u32 %v9937_v39, %v9934_v46  ;;  %v9972_v11 = vrot.slane %v9970_v13, 7 }
 0xa98   :  { %v9951_v56 = vsel %vm25125_vm15, %v9930_v58, %v9950_v30  ;;  %v9968_v7 = vor.u32 %v9966_v33, %v9965_v3 }
 0xa99   :  { %9952 = vst [vmem:[#allocation4] sm:$0x30] %v9951_v56  ;;  %v9954_v36 = vsel %vm25125_vm15, %v9938_v31, %v9953_v34  ;;  %v9975_v5 = vor.u32 %v9973_v15, %v9972_v11 }
 0xa9a   :  { %9955 = vst [vmem:[#allocation4 + $0x8] sm:$0x30] %v9954_v36  ;;  %v9987_v57 = vsel %vm25136_vm4, %v9968_v7, %v9986_v59  ;;  %v10025_v59 = vld [vmem:[#allocation4 + $0x30] sm:$0x30]  ;;  %v10028_v36 = vld [vmem:[#allocation4 + $0x38] sm:$0x30] }
 0xa9b   :  { %9988 = vst [vmem:[#allocation4 + $0x18] sm:$0x3] %v9987_v57  ;;  %v9990_v19 = vsel %vm25136_vm4, %v9975_v5, %v9989_v18  ;;  %v9767_v45 = vpop.f32.mrb[40].mxu0 }
 0xa9c   :  { %9991 = vst [vmem:[#allocation4 + $0x20] sm:$0x3] %v9990_v19  ;;  %v9902_v2 = vadd.f32 %v9884_v22, %v9767_v45  ;;  %v9769_v28 = vpop.f32.mrb[41].mxu0 }
 0xa9d   :  { %v9903_v9 = vadd.f32 %v9888_v61, %v9769_v28  ;;  %v9771_v48 = vpop.f32.mrb[42].mxu0 }
 0xa9e   :  { %v9914_v29 = vmax.f32 %v9902_v2, 0.0  ;;  %v9905_v6 = vadd.f32 %v9884_v22, %v9771_v48  ;;  %v9773_v20 = vpop.f32.mrb[43].mxu0  ;;  %v10061_v2 = vld [vmem:[#allocation4 + $0x48] sm:$0x3] }
 0xa9f   :  { %v9915_v52 = vmax.f32 %v9903_v9, 0.0  ;;  %v9906_v27 = vadd.f32 %v9888_v61, %v9773_v20  ;;  %v10064_v20 = vld [vmem:[#allocation4 + $0x50] sm:$0x3] }
 0xaa0   :  { %v9995_v10 = vpack.c.bf16 %v9914_v29, %v9914_v29  ;;  %v9917_v38 = vmax.f32 %v9905_v6, 0.0  ;;  %v10070_v4 = vld [vmem:[#allocation4] sm:$0xff] }
 0xaa1   :  { %v9996_v24 = vpack.c.bf16 %v9915_v52, %v9915_v52  ;;  %v9918_v49 = vmax.f32 %v9906_v27, 0.0  ;;  %v10071_v32 = vld [vmem:[#allocation4 + $0x8] sm:$0xff]  ;;  %v10180_v50 = vshrl.u32 %v10070_v4, 16  ;;  %v10182_v14 = vshll.u32 %v10070_v4, 16 }
 0xaa2   :  { %v9999_v62 = vshrl.u32 %v9995_v10, 16  ;;  %v10002_v30 = vshll.u32 %v9995_v10, 16  ;;  %v10034_v46 = vpack.c.bf16 %v9917_v38, %v9917_v38  ;;  %v10192_v39 = vshrl.u32 %v10071_v32, 16  ;;  %v26780_v31 = vld [vmem:[#allocation4 + $0x18] sm:$0xff] }
 0xaa3   :  { %v10007_v13 = vshrl.u32 %v9996_v24, 16  ;;  %v10010_v63 = vshll.u32 %v9996_v24, 16  ;;  %v10035_v58 = vpack.c.bf16 %v9918_v49, %v9918_v49  ;;  %v26778_v34 = vld [vmem:[#allocation4 + $0x20] sm:$0xff]  ;;  %v10194_v22 = vshll.u32 %v10071_v32, 16 }
 0xaa4   :  { %v10001_v3 = vrot.slane %v9999_v62, 3  ;;  %v10004_v61 = vrot.slane %v10002_v30, 4  ;;  %v10038_v33 = vshrl.u32 %v10034_v46, 16  ;;  %v10041_v12 = vshll.u32 %v10034_v46, 16  ;;  %v22087_v49 = vld [vmem:[%s29491_s7 + $0x280] ss:$8 sps:$4 sm:$0xff]  }
 0xaa5   :  { %v10009_v11 = vrot.slane %v10007_v13, 3  ;;  %v10012_v15 = vrot.slane %v10010_v63, 4  ;;  %v10045_v56 = vshrl.u32 %v10035_v58, 16  ;;  %v10048_v7 = vshll.u32 %v10035_v58, 16  ;;  %v22092_v62 = vld [vmem:[%s29491_s7 + $0x294] ss:$8 sps:$4 sm:$0xff]  }
 0xaa6   :  { %v10005_v18 = vor.u32 %v10004_v61, %v10001_v3  ;;  %v10040_v5 = vrot.slane %v10038_v33, 7  ;;  %v10196_v57 = vrot.slane %v10194_v22, 1  ;;  %v10199_v19 = vshll.u32 %v26778_v34, 16  ;;  %v22090_v58 = vld [vmem:[%s29491_s7 + $0x290] ss:$8 sps:$4 sm:$0xff]  }
 0xaa7   :  { %v10013_v45 = vor.u32 %v10012_v15, %v10009_v11  ;;  %v10047_v28 = vrot.slane %v10045_v56, 7  ;;  %v10184_v9 = vrot.slane %v10182_v14, 1  ;;  %v10187_v48 = vshll.u32 %v26780_v31, 16  ;;  %v22095_v61 = vld [vmem:[%s29491_s7 + $0x2a4] ss:$8 sps:$4 sm:$0xff]  }
 0xaa8   :  { %v10026_v29 = vsel %vm25125_vm15, %v10005_v18, %v10025_v59  ;;  %v10043_v6 = vor.u32 %v10041_v12, %v10040_v5  ;;  %v10197_v52 = vor.u32 %v10196_v57, %v10192_v39  ;;  %v10201_v27 = vrot.slane %v10199_v19, 1 }
 0xaa9   :  { %10027 = vst [vmem:[#allocation4 + $0x30] sm:$0x30] %v10026_v29  ;;  %v10029_v10 = vsel %vm25125_vm15, %v10013_v45, %v10028_v36  ;;  %v10050_v38 = vor.u32 %v10048_v7, %v10047_v28  ;;  %v10185_v4 = vor.u32 %v10184_v9, %v10180_v50  ;;  %v10189_v24 = vrot.slane %v10187_v48, 1  ;;  %v22093_v7 = vld [vmem:[%s29491_s7 + $0x2a0] ss:$8 sps:$4 sm:$0xff]  }
 0xaaa   :  { %10030 = vst [vmem:[#allocation4 + $0x38] sm:$0x30] %v10029_v10  ;;  %v10062_v32 = vsel %vm25136_vm4, %v10043_v6, %v10061_v2  ;;  %v10202_v14 = vsel %vm841_vm6, %v10197_v52, %v10201_v27  ;;  %v9891_v22 = vsub.s32 2, %v25097_v40  ;;  %v10215_v45 = vshrl.u32 %v26780_v31, 16  ;;  %v22096_v52 = vld [vmem:[%s29491_s7 + $0x2b0] ss:$8 sps:$4 sm:$0xff]  }
 0xaab   :  { %10063 = vst [vmem:[#allocation4 + $0x48] sm:$0x3] %v10062_v32  ;;  %v10065_v50 = vsel %vm25136_vm4, %v10050_v38, %v10064_v20  ;;  %10529 = vmatprep.mubr.bf16.mxu0 %v10202_v14  ;;  %v10190_v30 = vsel %vm841_vm6, %v10185_v4, %v10189_v24  ;;  %v20340_v46 = vpop.f32.mrb[172].mxu0  ;;  %v22099_v14 = vld [vmem:[%s29491_s7 + $0x2c0] ss:$8 sps:$4 sm:$0xff]  }
 0xaac   :  { %10066 = vst [vmem:[#allocation4 + $0x50] sm:$0x3] %v10065_v50  ;;  %10530 = vmatmul.mubr.bf16.vlgmr.msra.gmra.mrb[184].mxu0 %v10190_v30  ;;  %v20341_v39 = vpop.f32.mrb[173].mxu0  ;;  %v26823_v18 = vrot.slane %v26764_v53, %v9891_v22  ;;  %v10217_v20 = vor.u32 %v10215_v45, %v10189_v24 }
 0xaad   :  { %v20342_v13 = vadd.f32 %v20341_v39, %v20340_v46  ;;  %v20343_v63 = vpop.f32.mrb[174].mxu0  ;;  %10557 = vmatpush1.bf16.msra.mxu0 %v22087_v49 }
 0xaae   :  { %v20344_v3 = vpop.f32.mrb[175].mxu0  ;;  %10558 = vmatprep.subr.bf16.mxu0 %v22092_v62 }
 0xaaf   :  { %v9811_v33 = vadd.f32 %v20342_v13, %v26184_v60  ;;  %v20345_v12 = vadd.f32 %v20344_v3, %v20343_v63  ;;  %v10223_v60 = vshrl.u32 %v26778_v34, 16 }
 0xab0   :  { %v26812_v59 = vld [vmem:[#allocation4 + $0x30] sm:$0xff] }
 0xab1   :  { %v9845_v11 = vadd.f32 %v9811_v33, %v26750_v41  ;;  %v9814_v15 = vadd.f32 %v20345_v12, %v26192_v42  ;;  %v26816_v56 = vld [vmem:[#allocation4 + $0x38] sm:$0xff]  ;;  %10559 = vmatpush1.bf16.msra.mxu0 %v22090_v58  ;;  %v10219_v40 = vshll.u32 %v26812_v59, 16  ;;  %v10225_v28 = vor.u32 %v10223_v60, %v10201_v27 }
 0xab2   :  { %v10227_v36 = vshll.u32 %v26816_v56, 16  ;;  %10560 = vmatprep.subr.bf16.mxu0 %v22095_v61  ;;  %v22098_v42 = vld [vmem:[%s29491_s7 + $0x2b4] ss:$8 sps:$4 sm:$0xff]   ;;  %v10242_v29 = vshrl.u32 %v26816_v56, 16  ;;  %v10239_v39 = vshrl.u32 %v26812_v59, 16 }
 0xab3   :  { %v9857_v41 = vadd.f32 %v9845_v11, %v26663_v44  ;;  %v9848_v5 = vadd.f32 %v9814_v15, %v26753_v25  ;;  %v20346_v57 = vpop.f32.mrb[176].mxu0  ;;  %v10221_v53 = vrot.slane %v10219_v40, 1  ;;  %v22102_v61 = vld [vmem:[%s29491_s7 + $0x2d0] ss:$8 sps:$4 sm:$0xff]   ;;  %v22107_v11 = vld [vmem:[%s29491_s7 + $0x2e4] ss:$8 sps:$4 sm:$0xff]  }
 0xab4   :  { %v20347_v2 = vpop.f32.mrb[177].mxu0  ;;  %v10229_v9 = vrot.slane %v10227_v36, 1 }
 0xab5   :  { %v9869_v6 = vadd.f32 %v26350_v16, %v9857_v41  ;;  %v9860_v44 = vadd.f32 %v9848_v5, %v26673_v37  ;;  %v20349_v25 = vpop.f32.mrb[178].mxu0  ;;  %10561 = vmatpush1.bf16.msra.mxu0 %v22093_v7  ;;  %v22101_v16 = vld [vmem:[%s29491_s7 + $0x2c4] ss:$8 sps:$4 sm:$0xff]   ;;  %v26861_v24 = vsel %vm841_vm6, %v10217_v20, %v10221_v53  ;;  %v26878_v12 = vor.u32 %v10239_v39, %v10221_v53  ;;  %v9956_v41 = vld [vmem:[#allocation4 + $0x10] sm:$0x30] }
 0xab6   :  { %v20350_v10 = vpop.f32.mrb[179].mxu0  ;;  %v26848_v27 = vsel %vm841_vm6, %v10225_v28, %v10229_v9  ;;  %v26852_v38 = vor.u32 %v10242_v29, %v10229_v9  ;;  %10562 = vmatprep.subr.bf16.mxu0 %v22098_v42  ;;  %v22105_v53 = vld [vmem:[%s29491_s7 + $0x2e0] ss:$8 sps:$4 sm:$0xff]   ;;  %v22110_v20 = vld [vmem:[%s29491_s7 + $0x2f4] ss:$8 sps:$4 sm:$0xff]  }
 0xab7   :  { %v9898_v37 = vadd.f32 %v26823_v18, %v9869_v6  ;;  %v9872_v4 = vadd.f32 %v26358_v8, %v9860_v44  ;;  %10539 = vmatprep.mubr.bf16.mxu0 %v26848_v27  ;;  %v22104_v8 = vld [vmem:[%s29491_s7 + $0x2d4] ss:$8 sps:$4 sm:$0xff]   ;;  %v9992_v44 = vld [vmem:[#allocation4 + $0x28] sm:$0x3] }
 0xab8   :  { %10540 = vmatmul.mubr.bf16.gmra.mrb[188].mxu0 %v26861_v24  ;;  %v26888_v6 = vld [vmem:[#allocation4 + $0x10] sm:$0xff] }
 0xab9   :  { %v9910_v49 = vmax.f32 %v9898_v37, 0.0  ;;  %v9901_v32 = vadd.f32 %v26823_v18, %v9872_v4  ;;  %10545 = vmatprep.mubr.bf16.mxu0 %v26852_v38  ;;  %10563 = vmatpush1.bf16.msra.mxu0 %v22096_v52 }
 0xaba   :  { %10564 = vmatprep.subr.bf16.mxu0 %v22101_v16 }
 0xabb   :  { %v9922_v62 = vpack.c.bf16 %v9910_v49, %v9910_v49  ;;  %v9913_v50 = vmax.f32 %v9901_v32, 0.0  ;;  %v20352_v30 = vpop.f32.mrb[180].mxu0 }
 0xabc   :  { %v20353_v46 = vpop.f32.mrb[181].mxu0 }
 0xabd   :  { %v9940_v13 = vshrl.u32 %v9922_v62, 16  ;;  %v9943_v63 = vshll.u32 %v9922_v62, 16  ;;  %v9961_v58 = vpack.c.bf16 %v9913_v50, %v9913_v50  ;;  %v20354_v22 = vadd.f32 %v20353_v46, %v20352_v30  ;;  %v20355_v3 = vpop.f32.mrb[182].mxu0  ;;  %10565 = vmatpush1.bf16.msra.mxu0 %v22099_v14 }
 0xabe   :  { %v20356_v33 = vpop.f32.mrb[183].mxu0  ;;  %10566 = vmatprep.subr.bf16.mxu0 %v22104_v8 }
 0xabf   :  { %v9942_v15 = vrot.slane %v9940_v13, 3  ;;  %v9945_v7 = vrot.slane %v9943_v63, 4  ;;  %v9977_v42 = vshrl.u32 %v9961_v58, 16  ;;  %v9825_v5 = vadd.f32 %v20354_v22, %v26212_v47 }
 0xac0   :  { %v20357_v57 = vadd.f32 %v20356_v33, %v20355_v3  ;;  %10546 = vmatmul.mubr.bf16.gmra.mrb[192].mxu0 %v26878_v12  ;;  %v9980_v9 = vshll.u32 %v9961_v58, 16 }
 0xac1   :  { %v9946_v2 = vor.u32 %v9945_v7, %v9942_v15  ;;  %v9979_v28 = vrot.slane %v9977_v42, 7  ;;  %10567 = vmatpush1.bf16.msra.mxu0 %v22102_v61  ;;  %10588 = vmatprep.mubr.bf16.mxu0 %v26888_v6  ;;  %v9851_v25 = vadd.f32 %v9825_v5, %v26756_v54  ;;  %v26916_v61 = vld [vmem:[#allocation4 + $0x8] sm:$0xf0]  ;;  %v22111_v15 = vld [vmem:[%s29491_s7 + $0x480] ss:$8 sps:$4 sm:$0xff]  }
 0xac2   :  { %v9828_v47 = vadd.f32 %v20357_v57, %v26220_v55  ;;  %10568 = vmatprep.subr.bf16.mxu0 %v22107_v11  ;;  %v22108_v55 = vld [vmem:[%s29491_s7 + $0x2f0] ss:$8 sps:$4 sm:$0xff]  }
 0xac3   :  { %v9957_v52 = vsel %vm25125_vm15, %v9946_v2, %v9956_v41  ;;  %v9982_v10 = vor.u32 %v9980_v9, %v9979_v28  ;;  %v9863_v16 = vadd.f32 %v9851_v25, %v26695_v23  ;;  %v22113_v23 = vld [vmem:[%s29491_s7 + $0x484] ss:$8 sps:$4 sm:$0xff]   ;;  %v22116_v2 = vld [vmem:[%s29491_s7 + $0x494] ss:$8 sps:$4 sm:$0xff]   ;;  %v13368_v28 = vshrl.u32 %v26916_v61, 16 }
 0xac4   :  { %9958 = vst [vmem:[#allocation4 + $0x10] sm:$0x30] %v9957_v52  ;;  %v9854_v37 = vadd.f32 %v9828_v47, %v26759_v51  ;;  %v10067_v9 = vld [vmem:[#allocation4 + $0x58] sm:$0x3]  ;;  %v26930_v47 = vld [vmem:[#allocation4] sm:$0xf0] }
 0xac5   :  { %v9993_v4 = vsel %vm25136_vm4, %v9982_v10, %v9992_v44  ;;  %10569 = vmatpush1.bf16.msra.mxu0 %v22105_v53  ;;  %v9875_v54 = vadd.f32 %v26378_v17, %v9863_v16  ;;  %v22119_v10 = vld [vmem:[%s29491_s7 + $0x4a4] ss:$8 sps:$4 sm:$0xff]   ;;  %v13370_v16 = vrot.slane %v13368_v28, 4  ;;  %v22123_v28 = vld [vmem:[%s29491_s7 + $0x4c0] ss:$8 sps:$4 sm:$0xff]  }
 0xac6   :  { %9994 = vst [vmem:[#allocation4 + $0x28] sm:$0x3] %v9993_v4  ;;  %v9866_v49 = vadd.f32 %v9854_v37, %v26702_v21  ;;  %10570 = vmatprep.subr.bf16.mxu0 %v22110_v20  ;;  %v22114_v20 = vld [vmem:[%s29491_s7 + $0x490] ss:$8 sps:$4 sm:$0xff]   ;;  %v13371_v37 = vshll.u32 %v26916_v61, 16  ;;  %v13375_v4 = vrot.slane %v10223_v60, 4 }
 0xac7   :  { %v9904_v51 = vadd.f32 %v26823_v18, %v9875_v54  ;;  %v13356_v54 = vshrl.u32 %v26930_v47, 16  ;;  %v22117_v60 = vld [vmem:[%s29491_s7 + $0x4a0] ss:$8 sps:$4 sm:$0xff]  }
 0xac8   :  { %v9878_v32 = vadd.f32 %v26386_v35, %v9866_v49  ;;  %v13359_v49 = vshll.u32 %v26930_v47, 16 }
 0xac9   :  { %10571 = vmatpush1.bf16.msra.mxu0 %v22108_v55  ;;  %v9916_v14 = vmax.f32 %v9904_v51, 0.0  ;;  %v13376_v55 = vrot.slane %v10199_v19, 5  ;;  %v13363_v51 = vrot.slane %v10215_v45, 4 }
 0xaca   :  { %v9907_v8 = vadd.f32 %v26823_v18, %v9878_v32  ;;  %11010 = vmatprep.subr.bf16.mxu0 %v22113_v23  ;;  %v10031_v18 = vld [vmem:[#allocation4 + $0x40] sm:$0x30]  ;;  %v13373_v23 = vrot.slane %v13371_v37, 5  ;;  %v13364_v32 = vrot.slane %v10187_v48, 5  ;;  %v13396_v48 = vrot.slane %v10227_v36, 5 }
 0xacb   :  { %v10072_v62 = vld [vmem:[#allocation4 + $0x10] sm:$0xff]  ;;  %v9997_v50 = vpack.c.bf16 %v9916_v14, %v9916_v14  ;;  %v13395_v14 = vrot.slane %v10242_v29, 4  ;;  %v13377_v19 = vor.u32 %v13376_v55, %v13375_v4  ;;  %v13391_v29 = vrot.slane %v10239_v39, 4  ;;  %v22131_v37 = vld [vmem:[%s29491_s7 + $0x4e4] ss:$8 sps:$4 sm:$0xff]  }
 0xacc   :  { %v9919_v30 = vmax.f32 %v9907_v8, 0.0  ;;  %v10206_v17 = vshll.u32 %v10072_v62, 16  ;;  %v10204_v22 = vshrl.u32 %v10072_v62, 16  ;;  %v13358_v8 = vrot.slane %v13356_v54, 4  ;;  %v22120_v36 = vld [vmem:[%s29491_s7 + $0x4b0] ss:$8 sps:$4 sm:$0xff]  }
 0xacd   :  { %v26913_v46 = vld [vmem:[#allocation4 + $0x28] sm:$0xff]  ;;  %v10015_v21 = vshrl.u32 %v9997_v50, 16  ;;  %v10018_v13 = vshll.u32 %v9997_v50, 16  ;;  %v13361_v62 = vrot.slane %v13359_v49, 5  ;;  %v22122_v50 = vld [vmem:[%s29491_s7 + $0x4b4] ss:$8 sps:$4 sm:$0xff]   ;;  %v13374_v45 = vor.u32 %v13373_v23, %v13370_v16 }
 0xace   :  { %v10036_v63 = vpack.c.bf16 %v9919_v30, %v9919_v30  ;;  %v10208_v58 = vrot.slane %v10206_v17, 1  ;;  %v10211_v3 = vshll.u32 %v26913_v46, 16  ;;  %v13365_v30 = vor.u32 %v13364_v32, %v13363_v51  ;;  %v22126_v16 = vld [vmem:[%s29491_s7 + $0x4d0] ss:$8 sps:$4 sm:$0xff]  }
 0xacf   :  { %v10017_v35 = vrot.slane %v10015_v21, 3  ;;  %v10020_v33 = vrot.slane %v10018_v13, 4  ;;  %v13392_v17 = vrot.slane %v10219_v40, 5  ;;  %v26968_v13 = vld [vmem:[#allocation4 + $0x50] sm:$0xf]  ;;  %v10743_v4 = vrot.slane %v26916_v61, 4 }
 0xad0   :  { %v10052_v11 = vshrl.u32 %v10036_v63, 16  ;;  %v10209_v7 = vor.u32 %v10208_v58, %v10204_v22  ;;  %v10213_v42 = vrot.slane %v10211_v3, 1  ;;  %v10055_v57 = vshll.u32 %v10036_v63, 16  ;;  %v22125_v40 = vld [vmem:[%s29491_s7 + $0x4c4] ss:$8 sps:$4 sm:$0xff]  }
 0xad1   :  { %v10021_v41 = vor.u32 %v10020_v33, %v10017_v35  ;;  %v26971_v63 = vsel %vm3756_vm8, %v13374_v45, %v13377_v19  ;;  %v13362_v58 = vor.u32 %v13361_v62, %v13358_v8  ;;  %v13397_v22 = vor.u32 %v13396_v48, %v13395_v14  ;;  %v26981_v33 = vld [vmem:[#allocation4 + $0x48] sm:$0xf] }
 0xad2   :  { %v10054_v5 = vrot.slane %v10052_v11, 7  ;;  %v10214_v53 = vsel %vm841_vm6, %v10209_v7, %v10213_v42  ;;  %v10231_v35 = vshrl.u32 %v26913_v46, 16  ;;  %v10744_v55 = vrot.slane %v26778_v34, 4 }
 0xad3   :  { %v10032_v44 = vsel %vm25125_vm15, %v10021_v41, %v10031_v18  ;;  %10589 = vmatmul.mubr.bf16.vlgmr.msra.gmra.mrb[184].mxu0 %v10214_v53  ;;  %v26984_v11 = vsel %vm3756_vm8, %v13362_v58, %v13365_v30  ;;  %v26987_v18 = vsel %vm3756_vm8, %v13377_v19, %v13397_v22  ;;  %v13407_v53 = vshll.u32 %v26981_v33, 16 }
 0xad4   :  { %v10057_v25 = vor.u32 %v10055_v57, %v10054_v5  ;;  %10033 = vst [vmem:[#allocation4 + $0x40] sm:$0x30] %v10032_v44  ;;  %11011 = vmatpush1.bf16.msra.mxu0 %v22111_v15  ;;  %10598 = vmatprep.mubr.bf16.mxu0 %v26888_v6  ;;  %v13393_v15 = vor.u32 %v13392_v17, %v13391_v29  ;;  %v13413_v5 = vshrl.u32 %v26968_v13, 16  ;;  %v13416_v57 = vshll.u32 %v26968_v13, 16  ;;  %v27004_v44 = vld [vmem:[#allocation4 + $0x10] sm:$0xf0] }
 0xad5   :  { %11012 = vmatprep.subr.bf16.mxu0 %v22116_v2  ;;  %v10233_v7 = vor.u32 %v10231_v35, %v10213_v42  ;;  %v22128_v42 = vld [vmem:[%s29491_s7 + $0x4d4] ss:$8 sps:$4 sm:$0xff]   ;;  %v13409_v32 = vrot.slane %v13407_v53, 5  ;;  %v13380_v14 = vshrl.u32 %v27004_v44, 16  ;;  %v13387_v8 = vrot.slane %v10231_v35, 4 }
 0xad6   :  { %v10068_v52 = vsel %vm25136_vm4, %v10057_v25, %v10067_v9  ;;  %v13404_v9 = vshrl.u32 %v26981_v33, 16  ;;  %v13388_v61 = vrot.slane %v10211_v3, 5  ;;  %v22129_v29 = vld [vmem:[%s29491_s7 + $0x4e0] ss:$8 sps:$4 sm:$0xff]   ;;  %v10745_v17 = vsel %vm1262_vm11, %v10743_v4, %v10744_v55  ;;  %v22134_v3 = vld [vmem:[%s29491_s7 + $0x4f4] ss:$8 sps:$4 sm:$0xff]  }
 0xad7   :  { %10069 = vst [vmem:[#allocation4 + $0x58] sm:$0x3] %v10068_v52  ;;  %v13415_v52 = vrot.slane %v13413_v5, 4  ;;  %v13382_v45 = vrot.slane %v13380_v14, 4  ;;  %v22135_v53 = vld [vmem:[%s29491_s7 + $0x500] ss:$8 sps:$4 sm:$0xff]  }
 0xad8   :  { %11013 = vmatpush1.bf16.msra.mxu0 %v22114_v20  ;;  %v27008_v20 = vsel %vm3756_vm8, %v13365_v30, %v13393_v15  ;;  %v13406_v49 = vrot.slane %v13404_v9, 4  ;;  %v13389_v58 = vor.u32 %v13388_v61, %v13387_v8  ;;  %v22144_v4 = vld [vmem:[%s29491_s7 + $0x530] ss:$8 sps:$4 sm:$0xff]   ;;  %v22153_v8 = vld [vmem:[%s29491_s7 + $0x560] ss:$8 sps:$4 sm:$0xff]  }
 0xad9   :  { %11014 = vmatprep.subr.bf16.mxu0 %v22119_v10  ;;  %v13418_v10 = vrot.slane %v13416_v57, 5  ;;  %v22150_v14 = vld [vmem:[%s29491_s7 + $0x550] ss:$8 sps:$4 sm:$0xff]   ;;  %v22158_v61 = vld [vmem:[%s29491_s7 + $0x574] ss:$8 sps:$4 sm:$0xff]  }
 0xadb   :  { %v26966_v21 = vld [vmem:[#allocation4 + $0x40] sm:$0xff]  ;;  %v13419_v54 = vor.u32 %v13418_v10, %v13415_v52  ;;  %v22138_v52 = vld [vmem:[%s29491_s7 + $0x510] ss:$8 sps:$4 sm:$0xff]  }
 0xadc   :  { %11015 = vmatpush1.bf16.msra.mxu0 %v22117_v60  ;;  %v10235_v39 = vshll.u32 %v26966_v21, 16  ;;  %v11782_v25 = vshrl.u32 %v26966_v21, 16  ;;  %v13383_v60 = vshll.u32 %v27004_v44, 16  ;;  %v22143_v10 = vld [vmem:[%s29491_s7 + $0x524] ss:$8 sps:$4 sm:$0xff]  }
 0xadd   :  { %11016 = vmatprep.subr.bf16.mxu0 %v22122_v50  ;;  %v27025_v19 = vsel %vm3756_vm8, %v13397_v22, %v13419_v54  ;;  %v13410_v50 = vor.u32 %v13409_v32, %v13406_v49  ;;  %v22149_v54 = vld [vmem:[%s29491_s7 + $0x544] ss:$8 sps:$4 sm:$0xff]   ;;  %v22147_v49 = vld [vmem:[%s29491_s7 + $0x540] ss:$8 sps:$4 sm:$0xff]   ;;  %v22152_v32 = vld [vmem:[%s29491_s7 + $0x554] ss:$8 sps:$4 sm:$0xff]  }
 0xade   :  { %v10237_v41 = vrot.slane %v10235_v39, 1  ;;  %v27020_v51 = vld [vmem:[#allocation4 + $0x58] sm:$0xf]  ;;  %v13399_v62 = vrot.slane %v11782_v25, 4  ;;  %v13385_v30 = vrot.slane %v13383_v60, 5  ;;  %v13400_v48 = vrot.slane %v10235_v39, 5 }
 0xadf   :  { %v13422_v22 = vshrl.u32 %v27020_v51, 16  ;;  %v27042_v35 = vsel %vm3756_vm8, %v13393_v15, %v13410_v50  ;;  %v22137_v15 = vld [vmem:[%s29491_s7 + $0x504] ss:$8 sps:$4 sm:$0xff]  }
 0xae0   :  { %11017 = vmatpush1.bf16.msra.mxu0 %v22120_v36  ;;  %v26992_v2 = vsel %vm841_vm6, %v10233_v7, %v10237_v41  ;;  %v27018_v23 = vor.u32 %v11782_v25, %v10237_v41  ;;  %v13425_v36 = vshll.u32 %v27020_v51, 16  ;;  %v13386_v39 = vor.u32 %v13385_v30, %v13382_v45  ;;  %v22140_v25 = vld [vmem:[%s29491_s7 + $0x514] ss:$8 sps:$4 sm:$0xff]   ;;  %v22155_v60 = vld [vmem:[%s29491_s7 + $0x564] ss:$8 sps:$4 sm:$0xff]  }
 0xae1   :  { %10599 = vmatmul.mubr.bf16.gmra.mrb[196].mxu0 %v26992_v2  ;;  %11018 = vmatprep.subr.bf16.mxu0 %v22125_v40  ;;  %v13401_v40 = vor.u32 %v13400_v48, %v13399_v62  ;;  %v13424_v7 = vrot.slane %v13422_v22, 4  ;;  %v22156_v62 = vld [vmem:[%s29491_s7 + $0x570] ss:$8 sps:$4 sm:$0xff]   ;;  %v22161_v50 = vld [vmem:[%s29491_s7 + $0x584] ss:$8 sps:$4 sm:$0xff]   ;;  %v10741_v45 = vrot.slane %v26780_v31, 4 }
 0xae2   :  { %10604 = vmatprep.mubr.bf16.mxu0 %v26888_v6  ;;  %v13427_v41 = vrot.slane %v13425_v36, 5  ;;  %v27045_v5 = vsel %vm3756_vm8, %v13386_v39, %v13389_v58  ;;  %v10751_v30 = vrot.slane %v26816_v56, 4  ;;  %v10740_v48 = vrot.slane %v26930_v47, 4  ;;  %v22162_v47 = vld [vmem:[%s29491_s7 + $0x590] ss:$8 sps:$4 sm:$0xff]  }
 0xae3   :  { %v27048_v57 = vsel %vm3756_vm8, %v13389_v58, %v13401_v40  ;;  %v10677_v36 = vld [vmem:[#allocation4 + $0x50] sm:$0x7]  ;;  %v10749_v39 = vrot.slane %v26812_v59, 4 }
 0xae4   :  { %11019 = vmatpush1.bf16.msra.mxu0 %v22123_v28  ;;  %v22132_v28 = vld [vmem:[%s29491_s7 + $0x4f0] ss:$8 sps:$4 sm:$0xff]   ;;  %v13428_v9 = vor.u32 %v13427_v41, %v13424_v7  ;;  %v10742_v58 = vsel %vm1262_vm11, %v10740_v48, %v10741_v45  ;;  %v10752_v22 = vsel %vm1262_vm11, %v10744_v55, %v10751_v30  ;;  %v22165_v55 = vld [vmem:[%s29491_s7 + $0x5a0] ss:$8 sps:$4 sm:$0xff]   ;;  %v22170_v7 = vld [vmem:[%s29491_s7 + $0x5b4] ss:$8 sps:$4 sm:$0xff]  }
 0xae5   :  { %11020 = vmatprep.subr.bf16.mxu0 %v22128_v42  ;;  %v10750_v41 = vsel %vm1262_vm11, %v10741_v45, %v10749_v39  ;;  %v22186_v45 = vld [vmem:[%s29491_s7 + $0x790] ss:$8 sps:$4 sm:$0xff]   ;;  %v22189_v48 = vld [vmem:[%s29491_s7 + $0x7a0] ss:$8 sps:$4 sm:$0xff]  }
 0xae6   :  { %v27057_v42 = vsel %vm3756_vm8, %v13401_v40, %v13428_v9  ;;  %v10757_v40 = vrot.slane %v10677_v36, 4  ;;  %v10676_v9 = vld [vmem:[#allocation4 + $0x48] sm:$0x7] }
 0xae8   :  { %11021 = vmatpush1.bf16.msra.mxu0 %v22126_v16  ;;  %v22141_v16 = vld [vmem:[%s29491_s7 + $0x520] ss:$8 sps:$4 sm:$0xff]  }
 0xae9   :  { %10605 = vmatmul.mubr.bf16.gmra.mrb[192].mxu0 %v27018_v23  ;;  %11022 = vmatprep.subr.bf16.mxu0 %v22131_v37  ;;  %v22146_v37 = vld [vmem:[%s29491_s7 + $0x534] ss:$8 sps:$4 sm:$0xff]  }
 0xaea   :  { %11042 = vmatprep.mubr.bf16.mxu0 %v10745_v17  ;;  %v22164_v17 = vld [vmem:[%s29491_s7 + $0x594] ss:$8 sps:$4 sm:$0xff]  }
 0xaec   :  { %11023 = vmatpush1.bf16.msra.mxu0 %v22129_v29  ;;  %v22159_v29 = vld [vmem:[%s29491_s7 + $0x580] ss:$8 sps:$4 sm:$0xff]  }
 0xaed   :  { %11024 = vmatprep.subr.bf16.mxu0 %v22134_v3  ;;  %v22167_v3 = vld [vmem:[%s29491_s7 + $0x5a4] ss:$8 sps:$4 sm:$0xff]  }
 0xaf0   :  { %11025 = vmatpush1.bf16.msra.mxu0 %v22132_v28  ;;  %v10758_v28 = vsel %vm1262_vm11, %v10751_v30, %v10757_v40  ;;  %v10753_v30 = vrot.slane %v26966_v21, 4  ;;  %v22195_v40 = vld [vmem:[%s29491_s7 + $0x7c0] ss:$8 sps:$4 sm:$0xff]  }
 0xaf1   :  { %11026 = vmatprep.subr.bf16.mxu0 %v22137_v15  ;;  %v22168_v15 = vld [vmem:[%s29491_s7 + $0x5b0] ss:$8 sps:$4 sm:$0xff]  }
 0xaf4   :  { %11027 = vmatpush1.bf16.msra.mxu0 %v22135_v53  ;;  %v22173_v53 = vld [vmem:[%s29491_s7 + $0x5c4] ss:$8 sps:$4 sm:$0xff]  }
 0xaf5   :  { %11028 = vmatprep.subr.bf16.mxu0 %v22140_v25  ;;  %v10755_v25 = vrot.slane %v10676_v9, 4  ;;  %v22198_v9 = vld [vmem:[%s29491_s7 + $0x7d0] ss:$8 sps:$4 sm:$0xff]  }
 0xaf8   :  { %11029 = vmatpush1.bf16.msra.mxu0 %v22138_v52  ;;  %v22171_v52 = vld [vmem:[%s29491_s7 + $0x5c0] ss:$8 sps:$4 sm:$0xff]  }
 0xaf9   :  { %11030 = vmatprep.subr.bf16.mxu0 %v22143_v10  ;;  %v22176_v10 = vld [vmem:[%s29491_s7 + $0x5d4] ss:$8 sps:$4 sm:$0xff]  }
 0xafc   :  { %11031 = vmatpush1.bf16.msra.mxu0 %v22141_v16  ;;  %v10756_v16 = vsel %vm1262_vm11, %v10749_v39, %v10755_v25  ;;  %v11242_v39 = vrot.slane %v26778_v34, 5  ;;  %v22206_v25 = vld [vmem:[%s29491_s7 + $0x7f4] ss:$8 sps:$4 sm:$0xff]   ;;  %v22237_v34 = vld [vmem:[%s29491_s7 + $0x8a0] ss:$8 sps:$4 sm:$0xff]  }
 0xafd   :  { %11032 = vmatprep.subr.bf16.mxu0 %v22146_v37  ;;  %v22174_v37 = vld [vmem:[%s29491_s7 + $0x5d0] ss:$8 sps:$4 sm:$0xff]  }
 0xb00   :  { %11033 = vmatpush1.bf16.msra.mxu0 %v22144_v4  ;;  %v22179_v4 = vld [vmem:[%s29491_s7 + $0x5e4] ss:$8 sps:$4 sm:$0xff]  }
 0xb01   :  { %11034 = vmatprep.subr.bf16.mxu0 %v22149_v54  ;;  %v22177_v54 = vld [vmem:[%s29491_s7 + $0x5e0] ss:$8 sps:$4 sm:$0xff]  }
 0xb04   :  { %11035 = vmatpush1.bf16.msra.mxu0 %v22147_v49  ;;  %v22182_v49 = vld [vmem:[%s29491_s7 + $0x5f4] ss:$8 sps:$4 sm:$0xff]  }
 0xb05   :  { %11036 = vmatprep.subr.bf16.mxu0 %v22152_v32  ;;  %v22180_v32 = vld [vmem:[%s29491_s7 + $0x5f0] ss:$8 sps:$4 sm:$0xff]  }
 0xb08   :  { %11037 = vmatpush1.bf16.msra.mxu0 %v22150_v14  ;;  %v22185_v14 = vld [vmem:[%s29491_s7 + $0x784] ss:$8 sps:$4 sm:$0xff]  }
 0xb09   :  { %11038 = vmatprep.subr.bf16.mxu0 %v22155_v60  ;;  %v10747_v60 = vrot.slane %v26913_v46, 4 }
 0xb0c   :  { %11039 = vmatpush1.bf16.msra.mxu0 %v22153_v8  ;;  %v10746_v8 = vrot.slane %v27004_v44, 4  ;;  %v22191_v44 = vld [vmem:[%s29491_s7 + $0x7a4] ss:$8 sps:$4 sm:$0xff]  }
 0xb0d   :  { %11040 = vmatprep.subr.bf16.mxu0 %v22158_v61  ;;  %v22183_v61 = vld [vmem:[%s29491_s7 + $0x780] ss:$8 sps:$4 sm:$0xff]  }
 0xb10   :  { %11041 = vmatpush1.bf16.msra.mxu0 %v22156_v62  ;;  %v22188_v62 = vld [vmem:[%s29491_s7 + $0x794] ss:$8 sps:$4 sm:$0xff]  }
 0xb11   :  { %11069 = vmatprep.subr.bf16.mxu0 %v22161_v50  ;;  %v10748_v50 = vsel %vm1262_vm11, %v10746_v8, %v10747_v60  ;;  %v22219_v8 = vld [vmem:[%s29491_s7 + $0x840] ss:$8 sps:$4 sm:$0xff]  }
 0xb13   :  { %11043 = vmatmul.mubr.bf16.vlgmr.msra.gmra.mrb[184].mxu0 %v10742_v58  ;;  %v10678_v58 = vld [vmem:[#allocation4 + $0x58] sm:$0x7] }
 0xb14   :  { %11052 = vmatprep.mubr.bf16.mxu0 %v10752_v22  ;;  %11070 = vmatpush1.bf16.msra.mxu0 %v22159_v29  ;;  %v22194_v29 = vld [vmem:[%s29491_s7 + $0x7b4] ss:$8 sps:$4 sm:$0xff]   ;;  %v22192_v22 = vld [vmem:[%s29491_s7 + $0x7b0] ss:$8 sps:$4 sm:$0xff]   ;;  %v10759_v36 = vrot.slane %v10678_v58, 4  ;;  %v11249_v58 = vrot.slane %v26816_v56, 5 }
 0xb15   :  { %11071 = vmatprep.subr.bf16.mxu0 %v22164_v17  ;;  %v10754_v17 = vsel %vm1262_vm11, %v10747_v60, %v10753_v30  ;;  %v22221_v60 = vld [vmem:[%s29491_s7 + $0x844] ss:$8 sps:$4 sm:$0xff]   ;;  %v22234_v56 = vld [vmem:[%s29491_s7 + $0x890] ss:$8 sps:$4 sm:$0xff]  }
 0xb18   :  { %11072 = vmatpush1.bf16.msra.mxu0 %v22162_v47  ;;  %v22197_v47 = vld [vmem:[%s29491_s7 + $0x7c4] ss:$8 sps:$4 sm:$0xff]  }
 0xb19   :  { %11073 = vmatprep.subr.bf16.mxu0 %v22167_v3  ;;  %v11181_v3 = vld [vmem:[#allocation4 + $0x8] sm:$0xe0] }
 0xb1b   :  { %11053 = vmatmul.mubr.bf16.gmra.mrb[200].mxu0 %v10750_v41  ;;  %v10760_v41 = vsel %vm1262_vm11, %v10753_v30, %v10759_v36  ;;  %v22228_v30 = vld [vmem:[%s29491_s7 + $0x870] ss:$8 sps:$4 sm:$0xff]   ;;  %v22236_v36 = vld [vmem:[%s29491_s7 + $0x894] ss:$8 sps:$4 sm:$0xff]  }
 0xb1c   :  { %11058 = vmatprep.mubr.bf16.mxu0 %v10758_v28  ;;  %11074 = vmatpush1.bf16.msra.mxu0 %v22165_v55  ;;  %v11241_v55 = vrot.slane %v11181_v3, 5 }
 0xb1d   :  { %11075 = vmatprep.subr.bf16.mxu0 %v22170_v7  ;;  %v22200_v7 = vld [vmem:[%s29491_s7 + $0x7d4] ss:$8 sps:$4 sm:$0xff]  }
 0xb1e   :  { %v11243_v28 = vsel %vm668_vm3, %v11241_v55, %v11242_v39  ;;  %v11247_v55 = vrot.slane %v26812_v59, 5  ;;  %v22240_v59 = vld [vmem:[%s29491_s7 + $0x8b0] ss:$8 sps:$4 sm:$0xff]  }
 0xb20   :  { %11076 = vmatpush1.bf16.msra.mxu0 %v22168_v15  ;;  %v22203_v15 = vld [vmem:[%s29491_s7 + $0x7e4] ss:$8 sps:$4 sm:$0xff]  }
 0xb21   :  { %11077 = vmatprep.subr.bf16.mxu0 %v22173_v53  ;;  %v22201_v53 = vld [vmem:[%s29491_s7 + $0x7e0] ss:$8 sps:$4 sm:$0xff]  }
 0xb23   :  { %11059 = vmatmul.mubr.bf16.gmra.mrb[192].mxu0 %v10756_v16  ;;  %v22207_v16 = vld [vmem:[%s29491_s7 + $0x800] ss:$8 sps:$4 sm:$0xff]  }
 0xb24   :  { %11078 = vmatpush1.bf16.msra.mxu0 %v22171_v52  ;;  %11101 = vmatprep.mubr.bf16.mxu0 %v26888_v6  ;;  %v22204_v52 = vld [vmem:[%s29491_s7 + $0x7f0] ss:$8 sps:$4 sm:$0xff]  }
 0xb25   :  { %11079 = vmatprep.subr.bf16.mxu0 %v22176_v10  ;;  %v22209_v10 = vld [vmem:[%s29491_s7 + $0x804] ss:$8 sps:$4 sm:$0xff]  }
 0xb28   :  { %11080 = vmatpush1.bf16.msra.mxu0 %v22174_v37  ;;  %v22212_v37 = vld [vmem:[%s29491_s7 + $0x814] ss:$8 sps:$4 sm:$0xff]  }
 0xb29   :  { %11081 = vmatprep.subr.bf16.mxu0 %v22179_v4  ;;  %v22210_v4 = vld [vmem:[%s29491_s7 + $0x810] ss:$8 sps:$4 sm:$0xff]  }
 0xb2c   :  { %11082 = vmatpush1.bf16.msra.mxu0 %v22177_v54  ;;  %v22215_v54 = vld [vmem:[%s29491_s7 + $0x824] ss:$8 sps:$4 sm:$0xff]  }
 0xb2d   :  { %11083 = vmatprep.subr.bf16.mxu0 %v22182_v49  ;;  %v22213_v49 = vld [vmem:[%s29491_s7 + $0x820] ss:$8 sps:$4 sm:$0xff]  }
 0xb30   :  { %11084 = vmatpush1.bf16.msra.mxu0 %v22180_v32  ;;  %v22218_v32 = vld [vmem:[%s29491_s7 + $0x834] ss:$8 sps:$4 sm:$0xff]  }
 0xb31   :  { %11508 = vmatprep.subr.bf16.mxu0 %v22185_v14  ;;  %v22216_v14 = vld [vmem:[%s29491_s7 + $0x830] ss:$8 sps:$4 sm:$0xff]  }
 0xb33   :  { %11102 = vmatmul.mubr.bf16.vlgmr.msra.gmra.mrb[184].mxu0 %v10748_v50  ;;  %v22227_v50 = vld [vmem:[%s29491_s7 + $0x864] ss:$8 sps:$4 sm:$0xff]  }
 0xb34   :  { %11509 = vmatpush1.bf16.msra.mxu0 %v22183_v61  ;;  %11111 = vmatprep.mubr.bf16.mxu0 %v26888_v6  ;;  %v22224_v61 = vld [vmem:[%s29491_s7 + $0x854] ss:$8 sps:$4 sm:$0xff]  }
 0xb35   :  { %11510 = vmatprep.subr.bf16.mxu0 %v22188_v62  ;;  %v22222_v62 = vld [vmem:[%s29491_s7 + $0x850] ss:$8 sps:$4 sm:$0xff]  }
 0xb38   :  { %11511 = vmatpush1.bf16.msra.mxu0 %v22186_v45  ;;  %v22225_v45 = vld [vmem:[%s29491_s7 + $0x860] ss:$8 sps:$4 sm:$0xff]  }
 0xb39   :  { %11512 = vmatprep.subr.bf16.mxu0 %v22191_v44  ;;  %v22230_v44 = vld [vmem:[%s29491_s7 + $0x874] ss:$8 sps:$4 sm:$0xff]  }
 0xb3b   :  { %11112 = vmatmul.mubr.bf16.gmra.mrb[204].mxu0 %v10754_v17  ;;  %v11239_v17 = vrot.slane %v26780_v31, 5  ;;  %v11250_v31 = vsel %vm668_vm3, %v11242_v39, %v11249_v58  ;;  %v22242_v39 = vld [vmem:[%s29491_s7 + $0x8b4] ss:$8 sps:$4 sm:$0xff]  }
 0xb3c   :  { %11513 = vmatpush1.bf16.msra.mxu0 %v22189_v48  ;;  %11117 = vmatprep.mubr.bf16.mxu0 %v26888_v6  ;;  %v11180_v48 = vld [vmem:[#allocation4] sm:$0xe0] }
 0xb3d   :  { %11514 = vmatprep.subr.bf16.mxu0 %v22194_v29  ;;  %v22233_v29 = vld [vmem:[%s29491_s7 + $0x884] ss:$8 sps:$4 sm:$0xff]  }
 0xb40   :  { %11515 = vmatpush1.bf16.msra.mxu0 %v22192_v22  ;;  %v11238_v22 = vrot.slane %v11180_v48, 5  ;;  %v22261_v48 = vld [vmem:[%s29491_s7 + $0xaa0] ss:$8 sps:$4 sm:$0xff]  }
 0xb41   :  { %11516 = vmatprep.subr.bf16.mxu0 %v22197_v47  ;;  %v22231_v47 = vld [vmem:[%s29491_s7 + $0x880] ss:$8 sps:$4 sm:$0xff]  }
 0xb42   :  { %v11240_v3 = vsel %vm668_vm3, %v11238_v22, %v11239_v17  ;;  %v11257_v22 = vrot.slane %v27020_v51, 5  ;;  %v22275_v51 = vld [vmem:[%s29491_s7 + $0xae4] ss:$8 sps:$4 sm:$0xff]  }
 0xb43   :  { %11118 = vmatmul.mubr.bf16.gmra.mrb[192].mxu0 %v10760_v41  ;;  %v11248_v41 = vsel %vm668_vm3, %v11239_v17, %v11247_v55 }
 0xb44   :  { %11517 = vmatpush1.bf16.msra.mxu0 %v22195_v40  ;;  %11540 = vmatprep.mubr.bf16.mxu0 %v11243_v28  ;;  %v22239_v40 = vld [vmem:[%s29491_s7 + $0x8a4] ss:$8 sps:$4 sm:$0xff]  }
 0xb45   :  { %11518 = vmatprep.subr.bf16.mxu0 %v22200_v7  ;;  %v11255_v7 = vrot.slane %v26968_v13, 5  ;;  %v22245_v13 = vld [vmem:[%s29491_s7 + $0x8c4] ss:$8 sps:$4 sm:$0xff]  }
 0xb47   :  { %v11256_v28 = vsel %vm668_vm3, %v11249_v58, %v11255_v7  ;;  %v22264_v58 = vld [vmem:[%s29491_s7 + $0xab0] ss:$8 sps:$4 sm:$0xff]   ;;  %v22284_v7 = vld [vmem:[%s29491_s7 + $0xb14] ss:$8 sps:$4 sm:$0xff]  }
 0xb48   :  { %11519 = vmatpush1.bf16.msra.mxu0 %v22198_v9  ;;  %v11253_v9 = vrot.slane %v26981_v33, 5  ;;  %v22251_v33 = vld [vmem:[%s29491_s7 + $0x8e4] ss:$8 sps:$4 sm:$0xff]  }
 0xb49   :  { %11520 = vmatprep.subr.bf16.mxu0 %v22203_v15  ;;  %v22243_v15 = vld [vmem:[%s29491_s7 + $0x8c0] ss:$8 sps:$4 sm:$0xff]  }
 0xb4c   :  { %11521 = vmatpush1.bf16.msra.mxu0 %v22201_v53  ;;  %v22248_v53 = vld [vmem:[%s29491_s7 + $0x8d4] ss:$8 sps:$4 sm:$0xff]  }
 0xb4d   :  { %11522 = vmatprep.subr.bf16.mxu0 %v22206_v25  ;;  %v11254_v25 = vsel %vm668_vm3, %v11247_v55, %v11253_v9  ;;  %v22279_v55 = vld [vmem:[%s29491_s7 + $0xb00] ss:$8 sps:$4 sm:$0xff]  }
 0xb4e   :  { %v22285_v9 = vld [vmem:[%s29491_s7 + $0xb20] ss:$8 sps:$4 sm:$0xff]  }
 0xb50   :  { %11523 = vmatpush1.bf16.msra.mxu0 %v22204_v52  ;;  %v22246_v52 = vld [vmem:[%s29491_s7 + $0x8d0] ss:$8 sps:$4 sm:$0xff]  }
 0xb51   :  { %11524 = vmatprep.subr.bf16.mxu0 %v22209_v10  ;;  %v22249_v10 = vld [vmem:[%s29491_s7 + $0x8e0] ss:$8 sps:$4 sm:$0xff]  }
 0xb54   :  { %11525 = vmatpush1.bf16.msra.mxu0 %v22207_v16  ;;  %v22254_v16 = vld [vmem:[%s29491_s7 + $0x8f4] ss:$8 sps:$4 sm:$0xff]  }
 0xb55   :  { %11526 = vmatprep.subr.bf16.mxu0 %v22212_v37 }
 0xb58   :  { %11527 = vmatpush1.bf16.msra.mxu0 %v22210_v4 }
 0xb59   :  { %11528 = vmatprep.subr.bf16.mxu0 %v22215_v54 }
 0xb5c   :  { %11529 = vmatpush1.bf16.msra.mxu0 %v22213_v49  ;;  %v22252_v49 = vld [vmem:[%s29491_s7 + $0x8f0] ss:$8 sps:$4 sm:$0xff]  }
 0xb5d   :  { %11530 = vmatprep.subr.bf16.mxu0 %v22218_v32 }
 0xb60   :  { %11531 = vmatpush1.bf16.msra.mxu0 %v22216_v14  ;;  %v11182_v14 = vld [vmem:[#allocation4 + $0x10] sm:$0xe0] }
 0xb61   :  { %11532 = vmatprep.subr.bf16.mxu0 %v22221_v60  ;;  %v22257_v60 = vld [vmem:[%s29491_s7 + $0xa84] ss:$8 sps:$4 sm:$0xff]  }
 0xb64   :  { %11533 = vmatpush1.bf16.msra.mxu0 %v22219_v8  ;;  %v11245_v8 = vrot.slane %v26913_v46, 5  ;;  %v22263_v46 = vld [vmem:[%s29491_s7 + $0xaa4] ss:$8 sps:$4 sm:$0xff]  }
 0xb65   :  { %11534 = vmatprep.subr.bf16.mxu0 %v22224_v61  ;;  %v11244_v61 = vrot.slane %v11182_v14, 5  ;;  %v22305_v14 = vld [vmem:[%s29491_s7 + $0xb84] ss:$8 sps:$4 sm:$0xff]  }
 0xb68   :  { %11535 = vmatpush1.bf16.msra.mxu0 %v22222_v62  ;;  %v22255_v62 = vld [vmem:[%s29491_s7 + $0xa80] ss:$8 sps:$4 sm:$0xff]  }
 0xb69   :  { %11536 = vmatprep.subr.bf16.mxu0 %v22227_v50  ;;  %v22260_v50 = vld [vmem:[%s29491_s7 + $0xa94] ss:$8 sps:$4 sm:$0xff]  }
 0xb6c   :  { %11537 = vmatpush1.bf16.msra.mxu0 %v22225_v45  ;;  %v11246_v45 = vsel %vm668_vm3, %v11244_v61, %v11245_v8  ;;  %v22303_v61 = vld [vmem:[%s29491_s7 + $0xb80] ss:$8 sps:$4 sm:$0xff]  }
 0xb6d   :  { %11538 = vmatprep.subr.bf16.mxu0 %v22230_v44  ;;  %v22258_v44 = vld [vmem:[%s29491_s7 + $0xa90] ss:$8 sps:$4 sm:$0xff]  }
 0xb70   :  { %11539 = vmatpush1.bf16.msra.mxu0 %v22228_v30  ;;  %v11251_v30 = vrot.slane %v26966_v21, 5  ;;  %v22269_v21 = vld [vmem:[%s29491_s7 + $0xac4] ss:$8 sps:$4 sm:$0xff]  }
 0xb71   :  { %11567 = vmatprep.subr.bf16.mxu0 %v22233_v29  ;;  %v22266_v29 = vld [vmem:[%s29491_s7 + $0xab4] ss:$8 sps:$4 sm:$0xff]  }
 0xb72   :  { %v11252_v17 = vsel %vm668_vm3, %v11245_v8, %v11251_v30  ;;  %v27444_v8 = vld [vmem:[#allocation4 + $0x48] sm:$0xff] }
 0xb73   :  { %11541 = vmatmul.mubr.bf16.vlgmr.msra.gmra.mrb[184].mxu0 %v11240_v3  ;;  %v11258_v3 = vsel %vm668_vm3, %v11251_v30, %v11257_v22  ;;  %v11790_v22 = vshrl.u32 %v27444_v8, 16 }
 0xb74   :  { %11550 = vmatprep.mubr.bf16.mxu0 %v11250_v31  ;;  %11568 = vmatpush1.bf16.msra.mxu0 %v22231_v47  ;;  %v22267_v47 = vld [vmem:[%s29491_s7 + $0xac0] ss:$8 sps:$4 sm:$0xff]  }
 0xb75   :  { %11569 = vmatprep.subr.bf16.mxu0 %v22236_v36  ;;  %v22272_v36 = vld [vmem:[%s29491_s7 + $0xad4] ss:$8 sps:$4 sm:$0xff]   ;;  %v22273_v31 = vld [vmem:[%s29491_s7 + $0xae0] ss:$8 sps:$4 sm:$0xff]  }
 0xb78   :  { %11570 = vmatpush1.bf16.msra.mxu0 %v22234_v56  ;;  %v22278_v56 = vld [vmem:[%s29491_s7 + $0xaf4] ss:$8 sps:$4 sm:$0xff]  }
 0xb79   :  { %11571 = vmatprep.subr.bf16.mxu0 %v22239_v40  ;;  %v22281_v40 = vld [vmem:[%s29491_s7 + $0xb04] ss:$8 sps:$4 sm:$0xff]  }
 0xb7b   :  { %11551 = vmatmul.mubr.bf16.gmra.mrb[208].mxu0 %v11248_v41 }
 0xb7c   :  { %11556 = vmatprep.mubr.bf16.mxu0 %v11256_v28  ;;  %11572 = vmatpush1.bf16.msra.mxu0 %v22237_v34  ;;  %v22287_v28 = vld [vmem:[%s29491_s7 + $0xb24] ss:$8 sps:$4 sm:$0xff]  }
 0xb7d   :  { %11573 = vmatprep.subr.bf16.mxu0 %v22242_v39  ;;  %v22282_v39 = vld [vmem:[%s29491_s7 + $0xb10] ss:$8 sps:$4 sm:$0xff]  }
 0xb80   :  { %11574 = vmatpush1.bf16.msra.mxu0 %v22240_v59 }
 0xb81   :  { %11575 = vmatprep.subr.bf16.mxu0 %v22245_v13 }
 0xb83   :  { %11557 = vmatmul.mubr.bf16.gmra.mrb[192].mxu0 %v11254_v25  ;;  %v22293_v25 = vld [vmem:[%s29491_s7 + $0xb44] ss:$8 sps:$4 sm:$0xff]  }
 0xb84   :  { %11576 = vmatpush1.bf16.msra.mxu0 %v22243_v15  ;;  %11599 = vmatprep.mubr.bf16.mxu0 %v26888_v6  ;;  %v22290_v15 = vld [vmem:[%s29491_s7 + $0xb34] ss:$8 sps:$4 sm:$0xff]  }
 0xb85   :  { %11577 = vmatprep.subr.bf16.mxu0 %v22248_v53  ;;  %v22288_v53 = vld [vmem:[%s29491_s7 + $0xb30] ss:$8 sps:$4 sm:$0xff]  }
 0xb88   :  { %11578 = vmatpush1.bf16.msra.mxu0 %v22246_v52  ;;  %v22291_v52 = vld [vmem:[%s29491_s7 + $0xb40] ss:$8 sps:$4 sm:$0xff]  }
 0xb89   :  { %11579 = vmatprep.subr.bf16.mxu0 %v22251_v33  ;;  %v22296_v33 = vld [vmem:[%s29491_s7 + $0xb54] ss:$8 sps:$4 sm:$0xff]  }
 0xb8b   :  { %v10541_v37 = vpop.f32.mrb[188].mxu0 }
 0xb8c   :  { %v10542_v4 = vpop.f32.mrb[189].mxu0  ;;  %11580 = vmatpush1.bf16.msra.mxu0 %v22249_v10  ;;  %v22294_v10 = vld [vmem:[%s29491_s7 + $0xb50] ss:$8 sps:$4 sm:$0xff]   ;;  %v22297_v37 = vld [vmem:[%s29491_s7 + $0xb60] ss:$8 sps:$4 sm:$0xff]  }
 0xb8d   :  { %v10543_v54 = vpop.f32.mrb[190].mxu0  ;;  %11581 = vmatprep.subr.bf16.mxu0 %v22254_v16  ;;  %v22299_v16 = vld [vmem:[%s29491_s7 + $0xb64] ss:$8 sps:$4 sm:$0xff]   ;;  %v27432_v4 = vld [vmem:[#allocation4 + $0x50] sm:$0xff] }
 0xb8e   :  { %v10544_v32 = vpop.f32.mrb[191].mxu0  ;;  %v22302_v54 = vld [vmem:[%s29491_s7 + $0xb74] ss:$8 sps:$4 sm:$0xff]  }
 0xb8f   :  { %v22300_v32 = vld [vmem:[%s29491_s7 + $0xb70] ss:$8 sps:$4 sm:$0xff]  }
 0xb90   :  { %11582 = vmatpush1.bf16.msra.mxu0 %v22252_v49  ;;  %v11778_v49 = vshll.u32 %v27432_v4, 16 }
 0xb91   :  { %12048 = vmatprep.subr.bf16.mxu0 %v22257_v60 }
 0xb92   :  { %v11780_v60 = vrot.slane %v11778_v49, 1 }
 0xb93   :  { %11600 = vmatmul.mubr.bf16.vlgmr.msra.gmra.mrb[184].mxu0 %v11246_v45 }
 0xb94   :  { %12049 = vmatpush1.bf16.msra.mxu0 %v22255_v62  ;;  %11609 = vmatprep.mubr.bf16.mxu0 %v26888_v6  ;;  %v22308_v62 = vld [vmem:[%s29491_s7 + $0xb94] ss:$8 sps:$4 sm:$0xff]   ;;  %v11781_v45 = vsel %vm841_vm6, %v26852_v38, %v11780_v60 }
 0xb95   :  { %12050 = vmatprep.subr.bf16.mxu0 %v22260_v50  ;;  %v11770_v50 = vshll.u32 %v27444_v8, 16  ;;  %v22314_v38 = vld [vmem:[%s29491_s7 + $0xbb4] ss:$8 sps:$4 sm:$0xff]  }
 0xb97   :  { %v11772_v30 = vrot.slane %v11770_v50, 1  ;;  %v22347_v50 = vld [vmem:[%s29491_s7 + $0xc64] ss:$8 sps:$4 sm:$0xff]  }
 0xb98   :  { %12051 = vmatpush1.bf16.msra.mxu0 %v22258_v44  ;;  %v22306_v44 = vld [vmem:[%s29491_s7 + $0xb90] ss:$8 sps:$4 sm:$0xff]  }
 0xb99   :  { %12052 = vmatprep.subr.bf16.mxu0 %v22263_v46  ;;  %v22311_v46 = vld [vmem:[%s29491_s7 + $0xba4] ss:$8 sps:$4 sm:$0xff]  }
 0xb9b   :  { %11610 = vmatmul.mubr.bf16.gmra.mrb[212].mxu0 %v11252_v17 }
 0xb9c   :  { %12053 = vmatpush1.bf16.msra.mxu0 %v22261_v48  ;;  %11615 = vmatprep.mubr.bf16.mxu0 %v26888_v6  ;;  %v22270_v6 = vld [vmem:[%s29491_s7 + $0xad0] ss:$8 sps:$4 sm:$0xff]   ;;  %v11793_v48 = vshrl.u32 %v27432_v4, 16 }
 0xb9d   :  { %12054 = vmatprep.subr.bf16.mxu0 %v22266_v29  ;;  %v11773_v29 = vsel %vm841_vm6, %v26878_v12, %v11772_v30  ;;  %v22315_v12 = vld [vmem:[%s29491_s7 + $0xbc0] ss:$8 sps:$4 sm:$0xff]  }
 0xb9e   :  { %v11795_v17 = vor.u32 %v11793_v48, %v11780_v60  ;;  %v22344_v60 = vld [vmem:[%s29491_s7 + $0xc54] ss:$8 sps:$4 sm:$0xff]  }
 0xba0   :  { %12055 = vmatpush1.bf16.msra.mxu0 %v22264_v58  ;;  %v22312_v58 = vld [vmem:[%s29491_s7 + $0xbb0] ss:$8 sps:$4 sm:$0xff]  }
 0xba1   :  { %12056 = vmatprep.subr.bf16.mxu0 %v22269_v21  ;;  %v22317_v21 = vld [vmem:[%s29491_s7 + $0xbc4] ss:$8 sps:$4 sm:$0xff]  }
 0xba3   :  { %11616 = vmatmul.mubr.bf16.gmra.mrb[192].mxu0 %v11258_v3  ;;  %v22318_v3 = vld [vmem:[%s29491_s7 + $0xbd0] ss:$8 sps:$4 sm:$0xff]  }
 0xba4   :  { %12057 = vmatpush1.bf16.msra.mxu0 %v22267_v47  ;;  %12080 = vmatprep.mubr.bf16.mxu0 %v26848_v27  ;;  %v22276_v27 = vld [vmem:[%s29491_s7 + $0xaf0] ss:$8 sps:$4 sm:$0xff]   ;;  %v11792_v47 = vor.u32 %v11790_v22, %v11772_v30  ;;  %v22353_v30 = vld [vmem:[%s29491_s7 + $0xc84] ss:$8 sps:$4 sm:$0xff]  }
 0xba5   :  { %12058 = vmatprep.subr.bf16.mxu0 %v22272_v36  ;;  %v22320_v36 = vld [vmem:[%s29491_s7 + $0xbd4] ss:$8 sps:$4 sm:$0xff]   ;;  %v22359_v22 = vld [vmem:[%s29491_s7 + $0xca4] ss:$8 sps:$4 sm:$0xff]  }
 0xba8   :  { %12059 = vmatpush1.bf16.msra.mxu0 %v22270_v6  ;;  %v27487_v6 = vld [vmem:[#allocation5] sm:$0xff] }
 0xba9   :  { %12060 = vmatprep.subr.bf16.mxu0 %v22275_v51  ;;  %v22323_v51 = vld [vmem:[%s29491_s7 + $0xbe4] ss:$8 sps:$4 sm:$0xff]  }
 0xbac   :  { %12061 = vmatpush1.bf16.msra.mxu0 %v22273_v31  ;;  %v22321_v31 = vld [vmem:[%s29491_s7 + $0xbe0] ss:$8 sps:$4 sm:$0xff]  }
 0xbad   :  { %12062 = vmatprep.subr.bf16.mxu0 %v22278_v56  ;;  %v22326_v56 = vld [vmem:[%s29491_s7 + $0xbf4] ss:$8 sps:$4 sm:$0xff]  }
 0xbb0   :  { %12063 = vmatpush1.bf16.msra.mxu0 %v22276_v27  ;;  %v22324_v27 = vld [vmem:[%s29491_s7 + $0xbf0] ss:$8 sps:$4 sm:$0xff]  }
 0xbb1   :  { %12064 = vmatprep.subr.bf16.mxu0 %v22281_v40  ;;  %v22329_v40 = vld [vmem:[%s29491_s7 + $0xc04] ss:$8 sps:$4 sm:$0xff]  }
 0xbb4   :  { %12065 = vmatpush1.bf16.msra.mxu0 %v22279_v55  ;;  %v10600_v34 = vpop.f32.mrb[196].mxu0 }
 0xbb5   :  { %v10601_v41 = vpop.f32.mrb[197].mxu0  ;;  %12066 = vmatprep.subr.bf16.mxu0 %v22284_v7  ;;  %v27505_v34 = vld [vmem:[#allocation4 + $0x58] sm:$0xff] }
 0xbb6   :  { %v10602_v59 = vpop.f32.mrb[198].mxu0  ;;  %v22327_v41 = vld [vmem:[%s29491_s7 + $0xc00] ss:$8 sps:$4 sm:$0xff]  }
 0xbb7   :  { %v10603_v13 = vpop.f32.mrb[199].mxu0  ;;  %v22332_v59 = vld [vmem:[%s29491_s7 + $0xc14] ss:$8 sps:$4 sm:$0xff]  }
 0xbb8   :  { %12067 = vmatpush1.bf16.msra.mxu0 %v22282_v39  ;;  %v11786_v13 = vshll.u32 %v27505_v34, 16 }
 0xbb9   :  { %12068 = vmatprep.subr.bf16.mxu0 %v22287_v28 }
 0xbbc   :  { %12069 = vmatpush1.bf16.msra.mxu0 %v22285_v9  ;;  %v22330_v9 = vld [vmem:[%s29491_s7 + $0xc10] ss:$8 sps:$4 sm:$0xff]  }
 0xbbd   :  { %12070 = vmatprep.subr.bf16.mxu0 %v22290_v15  ;;  %v22335_v15 = vld [vmem:[%s29491_s7 + $0xc24] ss:$8 sps:$4 sm:$0xff]  }
 0xbc0   :  { %12071 = vmatpush1.bf16.msra.mxu0 %v22288_v53  ;;  %v11788_v53 = vrot.slane %v11786_v13, 1  ;;  %v12235_v13 = vrot.slane %v27432_v4, 1  ;;  %v22378_v4 = vld [vmem:[%s29491_s7 + $0xd10] ss:$8 sps:$4 sm:$0xff]  }
 0xbc1   :  { %12072 = vmatprep.subr.bf16.mxu0 %v22293_v25  ;;  %v22333_v25 = vld [vmem:[%s29491_s7 + $0xc20] ss:$8 sps:$4 sm:$0xff]  }
 0xbc4   :  { %12073 = vmatpush1.bf16.msra.mxu0 %v22291_v52  ;;  %v11789_v52 = vsel %vm841_vm6, %v27018_v23, %v11788_v53  ;;  %v22339_v23 = vld [vmem:[%s29491_s7 + $0xc40] ss:$8 sps:$4 sm:$0xff]  }
 0xbc5   :  { %12074 = vmatprep.subr.bf16.mxu0 %v22296_v33  ;;  %v22336_v33 = vld [vmem:[%s29491_s7 + $0xc30] ss:$8 sps:$4 sm:$0xff]  }
 0xbc8   :  { %12075 = vmatpush1.bf16.msra.mxu0 %v22294_v10  ;;  %v22341_v10 = vld [vmem:[%s29491_s7 + $0xc44] ss:$8 sps:$4 sm:$0xff]  }
 0xbc9   :  { %12076 = vmatprep.subr.bf16.mxu0 %v22299_v16  ;;  %v12167_v16 = vld [vmem:[#allocation4 + $0x20] sm:$0xfe] }
 0xbcc   :  { %12077 = vmatpush1.bf16.msra.mxu0 %v22297_v37  ;;  %v11796_v37 = vshrl.u32 %v27505_v34, 16 }
 0xbcd   :  { %12078 = vmatprep.subr.bf16.mxu0 %v22302_v54  ;;  %v23159_v54 = vld [vmem:[#allocation4 + $0x38] sm:$0xff] }
 0xbce   :  { %v27538_v49 = vrot.slane %v23159_v54, 1  ;;  %v22389_v54 = vld [vmem:[%s29491_s7 + $0xd44] ss:$8 sps:$4 sm:$0xff]  }
 0xbd0   :  { %12079 = vmatpush1.bf16.msra.mxu0 %v22300_v32  ;;  %v11798_v32 = vor.u32 %v11796_v37, %v11788_v53  ;;  %v22380_v53 = vld [vmem:[%s29491_s7 + $0xd14] ss:$8 sps:$4 sm:$0xff]  }
 0xbd1   :  { %12107 = vmatprep.subr.bf16.mxu0 %v22305_v14  ;;  %v12227_v14 = vrot.slane %v12167_v16, 1  ;;  %v22386_v16 = vld [vmem:[%s29491_s7 + $0xd34] ss:$8 sps:$4 sm:$0xff]  }
 0xbd3   :  { %12081 = vmatmul.mubr.bf16.vlgmr.msra.gmra.mrb[184].mxu0 %v26861_v24  ;;  %v22309_v24 = vld [vmem:[%s29491_s7 + $0xba0] ss:$8 sps:$4 sm:$0xff]  }
 0xbd4   :  { %12090 = vmatprep.mubr.bf16.mxu0 %v11781_v45  ;;  %12108 = vmatpush1.bf16.msra.mxu0 %v22303_v61  ;;  %v12229_v61 = vsel %vm3445_vm10, %v12227_v14, %v27538_v49  ;;  %v22345_v45 = vld [vmem:[%s29491_s7 + $0xc60] ss:$8 sps:$4 sm:$0xff]   ;;  %v22390_v14 = vld [vmem:[%s29491_s7 + $0xd50] ss:$8 sps:$4 sm:$0xff]  }
 0xbd5   :  { %12109 = vmatprep.subr.bf16.mxu0 %v22308_v62  ;;  %v22342_v62 = vld [vmem:[%s29491_s7 + $0xc50] ss:$8 sps:$4 sm:$0xff]  }
 0xbd8   :  { %12110 = vmatpush1.bf16.msra.mxu0 %v22306_v44  ;;  %v22350_v44 = vld [vmem:[%s29491_s7 + $0xc74] ss:$8 sps:$4 sm:$0xff]  }
 0xbd9   :  { %12111 = vmatprep.subr.bf16.mxu0 %v22311_v46  ;;  %v22348_v46 = vld [vmem:[%s29491_s7 + $0xc70] ss:$8 sps:$4 sm:$0xff]  }
 0xbdb   :  { %12091 = vmatmul.mubr.bf16.gmra.mrb[216].mxu0 %v11773_v29  ;;  %v22351_v29 = vld [vmem:[%s29491_s7 + $0xc80] ss:$8 sps:$4 sm:$0xff]  }
 0xbdc   :  { %12096 = vmatprep.mubr.bf16.mxu0 %v11795_v17  ;;  %12112 = vmatpush1.bf16.msra.mxu0 %v22309_v24 }
 0xbdd   :  { %12113 = vmatprep.subr.bf16.mxu0 %v22314_v38 }
 0xbe0   :  { %12114 = vmatpush1.bf16.msra.mxu0 %v22312_v58  ;;  %v22356_v58 = vld [vmem:[%s29491_s7 + $0xc94] ss:$8 sps:$4 sm:$0xff]  }
 0xbe1   :  { %12115 = vmatprep.subr.bf16.mxu0 %v22317_v21  ;;  %v22354_v21 = vld [vmem:[%s29491_s7 + $0xc90] ss:$8 sps:$4 sm:$0xff]  }
 0xbe3   :  { %12097 = vmatmul.mubr.bf16.gmra.mrb[192].mxu0 %v11792_v47  ;;  %v22362_v47 = vld [vmem:[%s29491_s7 + $0xcb4] ss:$8 sps:$4 sm:$0xff]  }
 0xbe4   :  { %12116 = vmatpush1.bf16.msra.mxu0 %v22315_v12  ;;  %12139 = vmatprep.mubr.bf16.mxu0 %v27487_v6  ;;  %v22357_v12 = vld [vmem:[%s29491_s7 + $0xca0] ss:$8 sps:$4 sm:$0xff]  }
 0xbe5   :  { %12117 = vmatprep.subr.bf16.mxu0 %v22320_v36  ;;  %v22360_v36 = vld [vmem:[%s29491_s7 + $0xcb0] ss:$8 sps:$4 sm:$0xff]  }
 0xbe8   :  { %12118 = vmatpush1.bf16.msra.mxu0 %v22318_v3  ;;  %v22365_v3 = vld [vmem:[%s29491_s7 + $0xcc4] ss:$8 sps:$4 sm:$0xff]  }
 0xbe9   :  { %12119 = vmatprep.subr.bf16.mxu0 %v22323_v51  ;;  %v22363_v51 = vld [vmem:[%s29491_s7 + $0xcc0] ss:$8 sps:$4 sm:$0xff]  }
 0xbec   :  { %12120 = vmatpush1.bf16.msra.mxu0 %v22321_v31  ;;  %v22368_v31 = vld [vmem:[%s29491_s7 + $0xcd4] ss:$8 sps:$4 sm:$0xff]  }
 0xbed   :  { %12121 = vmatprep.subr.bf16.mxu0 %v22326_v56  ;;  %v22366_v56 = vld [vmem:[%s29491_s7 + $0xcd0] ss:$8 sps:$4 sm:$0xff]  }
 0xbee   :  { %v11054_v55 = vpop.f32.mrb[200].mxu0 }
 0xbef   :  { %v11055_v7 = vpop.f32.mrb[201].mxu0  ;;  %v22374_v55 = vld [vmem:[%s29491_s7 + $0xcf4] ss:$8 sps:$4 sm:$0xff]  }
 0xbf0   :  { %v11056_v39 = vpop.f32.mrb[202].mxu0  ;;  %12122 = vmatpush1.bf16.msra.mxu0 %v22324_v27  ;;  %v22371_v27 = vld [vmem:[%s29491_s7 + $0xce4] ss:$8 sps:$4 sm:$0xff]   ;;  %v22372_v7 = vld [vmem:[%s29491_s7 + $0xcf0] ss:$8 sps:$4 sm:$0xff]  }
 0xbf1   :  { %v11057_v28 = vpop.f32.mrb[203].mxu0  ;;  %12488 = vmatprep.subr.bf16.mxu0 %v22329_v40  ;;  %v22369_v40 = vld [vmem:[%s29491_s7 + $0xce0] ss:$8 sps:$4 sm:$0xff]   ;;  %v12166_v39 = vld [vmem:[#allocation4 + $0x18] sm:$0xfe] }
 0xbf2   :  { %v27614_v28 = vld [vmem:[#allocation4 + $0x30] sm:$0xff] }
 0xbf3   :  { %12140 = vmatmul.mubr.bf16.vlgmr.msra.gmra.mrb[184].mxu0 %v26992_v2  ;;  %v22338_v2 = vld [vmem:[%s29491_s7 + $0xc34] ss:$8 sps:$4 sm:$0xff]  }
 0xbf4   :  { %12489 = vmatpush1.bf16.msra.mxu0 %v22327_v41  ;;  %12149 = vmatprep.mubr.bf16.mxu0 %v27487_v6  ;;  %v22377_v41 = vld [vmem:[%s29491_s7 + $0xd04] ss:$8 sps:$4 sm:$0xff]  }
 0xbf5   :  { %12490 = vmatprep.subr.bf16.mxu0 %v22332_v59  ;;  %v27617_v59 = vrot.slane %v27614_v28, 1 }
 0xbf8   :  { %12491 = vmatpush1.bf16.msra.mxu0 %v22330_v9  ;;  %v12224_v9 = vrot.slane %v12166_v39, 1  ;;  %v22419_v39 = vld [vmem:[%s29491_s7 + $0x64] ss:$8 sps:$4 sm:$0xff]  }
 0xbf9   :  { %12492 = vmatprep.subr.bf16.mxu0 %v22335_v15  ;;  %v22375_v15 = vld [vmem:[%s29491_s7 + $0xd00] ss:$8 sps:$4 sm:$0xff]  }
 0xbfb   :  { %12150 = vmatmul.mubr.bf16.gmra.mrb[220].mxu0 %v11789_v52  ;;  %v22383_v52 = vld [vmem:[%s29491_s7 + $0xd24] ss:$8 sps:$4 sm:$0xff]  }
 0xbfc   :  { %12493 = vmatpush1.bf16.msra.mxu0 %v22333_v25  ;;  %12155 = vmatprep.mubr.bf16.mxu0 %v27487_v6  ;;  %v12226_v25 = vsel %vm3445_vm10, %v12224_v9, %v27617_v59  ;;  %v22420_v9 = vld [vmem:[%s29491_s7 + $0x70] ss:$8 sps:$4 sm:$0xff]  }
 0xbfd   :  { %12494 = vmatprep.subr.bf16.mxu0 %v22338_v2  ;;  %v12236_v2 = vsel %vm3445_vm10, %v27538_v49, %v12235_v13 }
 0xc00   :  { %12495 = vmatpush1.bf16.msra.mxu0 %v22336_v33  ;;  %v12233_v33 = vrot.slane %v27444_v8, 1  ;;  %v22384_v8 = vld [vmem:[%s29491_s7 + $0xd30] ss:$8 sps:$4 sm:$0xff]  }
 0xc01   :  { %12496 = vmatprep.subr.bf16.mxu0 %v22341_v10  ;;  %v22381_v10 = vld [vmem:[%s29491_s7 + $0xd20] ss:$8 sps:$4 sm:$0xff]  }
 0xc02   :  { %v12234_v37 = vsel %vm3445_vm10, %v27617_v59, %v12233_v33 }
 0xc03   :  { %12156 = vmatmul.mubr.bf16.gmra.mrb[192].mxu0 %v11798_v32  ;;  %v22392_v32 = vld [vmem:[%s29491_s7 + $0xd54] ss:$8 sps:$4 sm:$0xff]  }
 0xc04   :  { %12497 = vmatpush1.bf16.msra.mxu0 %v22339_v23  ;;  %12520 = vmatprep.mubr.bf16.mxu0 %v12229_v61  ;;  %v22387_v23 = vld [vmem:[%s29491_s7 + $0xd40] ss:$8 sps:$4 sm:$0xff]  }
 0xc05   :  { %12498 = vmatprep.subr.bf16.mxu0 %v22344_v60  ;;  %v22395_v60 = vld [vmem:[%s29491_s7 + $0xd64] ss:$8 sps:$4 sm:$0xff]   ;;  %v22393_v61 = vld [vmem:[%s29491_s7 + $0xd60] ss:$8 sps:$4 sm:$0xff]  }
 0xc08   :  { %12499 = vmatpush1.bf16.msra.mxu0 %v22342_v62  ;;  %v22398_v62 = vld [vmem:[%s29491_s7 + $0xd74] ss:$8 sps:$4 sm:$0xff]  }
 0xc09   :  { %12500 = vmatprep.subr.bf16.mxu0 %v22347_v50  ;;  %v22396_v50 = vld [vmem:[%s29491_s7 + $0xd70] ss:$8 sps:$4 sm:$0xff]  }
 0xc0c   :  { %12501 = vmatpush1.bf16.msra.mxu0 %v22345_v45  ;;  %v12168_v45 = vld [vmem:[#allocation4 + $0x28] sm:$0xfe] }
 0xc0d   :  { %12502 = vmatprep.subr.bf16.mxu0 %v22350_v44  ;;  %v22401_v44 = vld [vmem:[%s29491_s7 + $0x4] ss:$8 sps:$4 sm:$0xff]  }
 0xc0e   :  { %v11113_v24 = vpop.f32.mrb[204].mxu0 }
 0xc0f   :  { %v11114_v48 = vpop.f32.mrb[205].mxu0 }
 0xc10   :  { %v11115_v38 = vpop.f32.mrb[206].mxu0  ;;  %12503 = vmatpush1.bf16.msra.mxu0 %v22348_v46 }
 0xc11   :  { %v11116_v17 = vpop.f32.mrb[207].mxu0  ;;  %12504 = vmatprep.subr.bf16.mxu0 %v22353_v30  ;;  %v27676_v30 = vld [vmem:[#allocation4 + $0x40] sm:$0xff] }
 0xc12   :  { %v27679_v24 = vrot.slane %v27676_v30, 1  ;;  %v22399_v17 = vld [vmem:[%s29491_s7] ss:$8 sps:$4 sm:$0xff]  }
 0xc14   :  { %12505 = vmatpush1.bf16.msra.mxu0 %v22351_v29  ;;  %v12230_v29 = vrot.slane %v12168_v45, 1  ;;  %v22444_v45 = vld [vmem:[%s29491_s7 + $0xf0] ss:$8 sps:$4 sm:$0xff]  }
 0xc15   :  { %12506 = vmatprep.subr.bf16.mxu0 %v22356_v58 }
 0xc18   :  { %12507 = vmatpush1.bf16.msra.mxu0 %v22354_v21  ;;  %v22404_v21 = vld [vmem:[%s29491_s7 + $0x14] ss:$8 sps:$4 sm:$0xff]  }
 0xc19   :  { %12508 = vmatprep.subr.bf16.mxu0 %v22359_v22  ;;  %v12232_v22 = vsel %vm3445_vm10, %v12230_v29, %v27679_v24  ;;  %v27790_v29 = vld [vmem:[#allocation4 + $0x20] sm:$0xff] }
 0xc1c   :  { %12509 = vmatpush1.bf16.msra.mxu0 %v22357_v12  ;;  %v22402_v12 = vld [vmem:[%s29491_s7 + $0x10] ss:$8 sps:$4 sm:$0xff]  }
 0xc1d   :  { %12510 = vmatprep.subr.bf16.mxu0 %v22362_v47  ;;  %v22407_v47 = vld [vmem:[%s29491_s7 + $0x24] ss:$8 sps:$4 sm:$0xff]  }
 0xc20   :  { %12511 = vmatpush1.bf16.msra.mxu0 %v22360_v36  ;;  %v12237_v36 = vrot.slane %v27505_v34, 1  ;;  %v22413_v34 = vld [vmem:[%s29491_s7 + $0x44] ss:$8 sps:$4 sm:$0xff]  }
 0xc21   :  { %12512 = vmatprep.subr.bf16.mxu0 %v22365_v3  ;;  %v22405_v3 = vld [vmem:[%s29491_s7 + $0x20] ss:$8 sps:$4 sm:$0xff]  }
 0xc24   :  { %12513 = vmatpush1.bf16.msra.mxu0 %v22363_v51  ;;  %v22410_v51 = vld [vmem:[%s29491_s7 + $0x34] ss:$8 sps:$4 sm:$0xff]  }
 0xc25   :  { %12514 = vmatprep.subr.bf16.mxu0 %v22368_v31  ;;  %v12238_v31 = vsel %vm3445_vm10, %v27679_v24, %v12237_v36 }
 0xc28   :  { %12515 = vmatpush1.bf16.msra.mxu0 %v22366_v56  ;;  %v22408_v56 = vld [vmem:[%s29491_s7 + $0x30] ss:$8 sps:$4 sm:$0xff]  }
 0xc29   :  { %12516 = vmatprep.subr.bf16.mxu0 %v22371_v27  ;;  %v22411_v27 = vld [vmem:[%s29491_s7 + $0x40] ss:$8 sps:$4 sm:$0xff]  }
 0xc2c   :  { %12517 = vmatpush1.bf16.msra.mxu0 %v22369_v40  ;;  %v22416_v40 = vld [vmem:[%s29491_s7 + $0x54] ss:$8 sps:$4 sm:$0xff]  }
 0xc2d   :  { %12518 = vmatprep.subr.bf16.mxu0 %v22374_v55  ;;  %v23162_v55 = vld [vmem:[#allocation4 + $0x8] sm:$0xff] }
 0xc30   :  { %12519 = vmatpush1.bf16.msra.mxu0 %v22372_v7  ;;  %v22414_v7 = vld [vmem:[%s29491_s7 + $0x50] ss:$8 sps:$4 sm:$0xff]  }
 0xc31   :  { %12547 = vmatprep.subr.bf16.mxu0 %v22377_v41  ;;  %v22417_v41 = vld [vmem:[%s29491_s7 + $0x60] ss:$8 sps:$4 sm:$0xff]  }
 0xc33   :  { %12521 = vmatmul.mubr.bf16.vlgmr.msra.gmra.mrb[184].mxu0 %v12226_v25 }
 0xc34   :  { %12530 = vmatprep.mubr.bf16.mxu0 %v12236_v2  ;;  %12548 = vmatpush1.bf16.msra.mxu0 %v22375_v15  ;;  %v22425_v15 = vld [vmem:[%s29491_s7 + $0x84] ss:$8 sps:$4 sm:$0xff]  }
 0xc35   :  { %12549 = vmatprep.subr.bf16.mxu0 %v22380_v53 }
 0xc38   :  { %12550 = vmatpush1.bf16.msra.mxu0 %v22378_v4  ;;  %v22423_v4 = vld [vmem:[%s29491_s7 + $0x80] ss:$8 sps:$4 sm:$0xff]  }
 0xc39   :  { %12551 = vmatprep.subr.bf16.mxu0 %v22383_v52 }
 0xc3b   :  { %12531 = vmatmul.mubr.bf16.gmra.mrb[224].mxu0 %v12234_v37  ;;  %v22429_v37 = vld [vmem:[%s29491_s7 + $0xa0] ss:$8 sps:$4 sm:$0xff]  }
 0xc3c   :  { %12536 = vmatprep.mubr.bf16.mxu0 %v12235_v13  ;;  %12552 = vmatpush1.bf16.msra.mxu0 %v22381_v10  ;;  %v22422_v13 = vld [vmem:[%s29491_s7 + $0x74] ss:$8 sps:$4 sm:$0xff]   ;;  %v22426_v10 = vld [vmem:[%s29491_s7 + $0x90] ss:$8 sps:$4 sm:$0xff]  }
 0xc3d   :  { %12553 = vmatprep.subr.bf16.mxu0 %v22386_v16  ;;  %v22431_v16 = vld [vmem:[%s29491_s7 + $0xa4] ss:$8 sps:$4 sm:$0xff]  }
 0xc40   :  { %12554 = vmatpush1.bf16.msra.mxu0 %v22384_v8  ;;  %v22434_v8 = vld [vmem:[%s29491_s7 + $0xb4] ss:$8 sps:$4 sm:$0xff]  }
 0xc41   :  { %12555 = vmatprep.subr.bf16.mxu0 %v22389_v54  ;;  %v22432_v54 = vld [vmem:[%s29491_s7 + $0xb0] ss:$8 sps:$4 sm:$0xff]  }
 0xc43   :  { %12537 = vmatmul.mubr.bf16.gmra.mrb[192].mxu0 %v12233_v33  ;;  %v22428_v33 = vld [vmem:[%s29491_s7 + $0x94] ss:$8 sps:$4 sm:$0xff]  }
 0xc44   :  { %12556 = vmatpush1.bf16.msra.mxu0 %v22387_v23  ;;  %12579 = vmatprep.mubr.bf16.mxu0 %v27487_v6  ;;  %v22437_v23 = vld [vmem:[%s29491_s7 + $0xc4] ss:$8 sps:$4 sm:$0xff]  }
 0xc45   :  { %12557 = vmatprep.subr.bf16.mxu0 %v22392_v32  ;;  %v22435_v32 = vld [vmem:[%s29491_s7 + $0xc0] ss:$8 sps:$4 sm:$0xff]  }
 0xc48   :  { %12558 = vmatpush1.bf16.msra.mxu0 %v22390_v14  ;;  %v22440_v14 = vld [vmem:[%s29491_s7 + $0xd4] ss:$8 sps:$4 sm:$0xff]  }
 0xc49   :  { %12559 = vmatprep.subr.bf16.mxu0 %v22395_v60  ;;  %v22438_v60 = vld [vmem:[%s29491_s7 + $0xd0] ss:$8 sps:$4 sm:$0xff]  }
 0xc4c   :  { %12560 = vmatpush1.bf16.msra.mxu0 %v22393_v61  ;;  %v22443_v61 = vld [vmem:[%s29491_s7 + $0xe4] ss:$8 sps:$4 sm:$0xff]  }
 0xc4d   :  { %12561 = vmatprep.subr.bf16.mxu0 %v22398_v62  ;;  %v22441_v62 = vld [vmem:[%s29491_s7 + $0xe0] ss:$8 sps:$4 sm:$0xff]  }
 0xc4e   :  { %v11552_v46 = vpop.f32.mrb[208].mxu0 }
 0xc4f   :  { %v11553_v48 = vpop.f32.mrb[209].mxu0  ;;  %v22447_v46 = vld [vmem:[%s29491_s7 + $0x100] ss:$8 sps:$4 sm:$0xff]  }
 0xc50   :  { %v11554_v38 = vpop.f32.mrb[210].mxu0  ;;  %12562 = vmatpush1.bf16.msra.mxu0 %v22396_v50  ;;  %v22446_v50 = vld [vmem:[%s29491_s7 + $0xf4] ss:$8 sps:$4 sm:$0xff]  }
 0xc51   :  { %v11555_v58 = vpop.f32.mrb[211].mxu0  ;;  %12846 = vmatprep.subr.bf16.mxu0 %v22401_v44  ;;  %v22449_v44 = vld [vmem:[%s29491_s7 + $0x104] ss:$8 sps:$4 sm:$0xff]   ;;  %v22452_v48 = vld [vmem:[%s29491_s7 + $0x114] ss:$8 sps:$4 sm:$0xff]  }
 0xc52   :  { %v23163_v38 = vld [vmem:[#allocation4] sm:$0xff] }
 0xc53   :  { %12580 = vmatmul.mubr.bf16.vlgmr.msra.gmra.mrb[184].mxu0 %v12232_v22  ;;  %v22455_v58 = vld [vmem:[%s29491_s7 + $0x124] ss:$8 sps:$4 sm:$0xff]   ;;  %v22458_v22 = vld [vmem:[%s29491_s7 + $0x134] ss:$8 sps:$4 sm:$0xff]  }
 0xc54   :  { %12847 = vmatpush1.bf16.msra.mxu0 %v22399_v17  ;;  %12589 = vmatprep.mubr.bf16.mxu0 %v27487_v6  ;;  %v22450_v17 = vld [vmem:[%s29491_s7 + $0x110] ss:$8 sps:$4 sm:$0xff]  }
 0xc55   :  { %12848 = vmatprep.subr.bf16.mxu0 %v22404_v21  ;;  %v22453_v21 = vld [vmem:[%s29491_s7 + $0x120] ss:$8 sps:$4 sm:$0xff]  }
 0xc58   :  { %12849 = vmatpush1.bf16.msra.mxu0 %v22402_v12  ;;  %v27805_v12 = vld [vmem:[#allocation4 + $0x18] sm:$0xff] }
 0xc59   :  { %12850 = vmatprep.subr.bf16.mxu0 %v22407_v47  ;;  %v10077_v47 = vld [vmem:[#allocation4 + $0x38] sm:$0x7f] }
 0xc5b   :  { %12590 = vmatmul.mubr.bf16.gmra.mrb[228].mxu0 %v12238_v31  ;;  %v22464_v31 = vld [vmem:[%s29491_s7 + $0x154] ss:$8 sps:$4 sm:$0xff]  }
 0xc5c   :  { %12851 = vmatpush1.bf16.msra.mxu0 %v22405_v3  ;;  %12595 = vmatprep.mubr.bf16.mxu0 %v27487_v6  ;;  %v22461_v3 = vld [vmem:[%s29491_s7 + $0x144] ss:$8 sps:$4 sm:$0xff]  }
 0xc5d   :  { %12852 = vmatprep.subr.bf16.mxu0 %v22410_v51  ;;  %v22459_v51 = vld [vmem:[%s29491_s7 + $0x140] ss:$8 sps:$4 sm:$0xff]  }
 0xc60   :  { %12853 = vmatpush1.bf16.msra.mxu0 %v22408_v56  ;;  %v10076_v56 = vld [vmem:[#allocation4 + $0x30] sm:$0x7f] }
 0xc61   :  { %12854 = vmatprep.subr.bf16.mxu0 %v22413_v34  ;;  %v22462_v34 = vld [vmem:[%s29491_s7 + $0x150] ss:$8 sps:$4 sm:$0xff]  }
 0xc63   :  { %12596 = vmatmul.mubr.bf16.gmra.mrb[192].mxu0 %v12237_v36  ;;  %v22456_v36 = vld [vmem:[%s29491_s7 + $0x130] ss:$8 sps:$4 sm:$0xff]  }
 0xc64   :  { %12855 = vmatpush1.bf16.msra.mxu0 %v22411_v27  ;;  %12878 = vmatprep.mubr.bf16.mxu0 %v23162_v55  ;;  %v22467_v27 = vld [vmem:[%s29491_s7 + $0x164] ss:$8 sps:$4 sm:$0xff]   ;;  %v22470_v55 = vld [vmem:[%s29491_s7 + $0x174] ss:$8 sps:$4 sm:$0xff]  }
 0xc65   :  { %12856 = vmatprep.subr.bf16.mxu0 %v22416_v40  ;;  %v22465_v40 = vld [vmem:[%s29491_s7 + $0x160] ss:$8 sps:$4 sm:$0xff]  }
 0xc68   :  { %12857 = vmatpush1.bf16.msra.mxu0 %v22414_v7  ;;  %v22468_v7 = vld [vmem:[%s29491_s7 + $0x170] ss:$8 sps:$4 sm:$0xff]  }
 0xc69   :  { %12858 = vmatprep.subr.bf16.mxu0 %v22419_v39  ;;  %v22473_v39 = vld [vmem:[%s29491_s7 + $0x304] ss:$8 sps:$4 sm:$0xff]  }
 0xc6c   :  { %12859 = vmatpush1.bf16.msra.mxu0 %v22417_v41 }
 0xc6d   :  { %12860 = vmatprep.subr.bf16.mxu0 %v22422_v13 }
 0xc6e   :  { %v11611_v53 = vpop.f32.mrb[212].mxu0 }
 0xc6f   :  { %v11612_v25 = vpop.f32.mrb[213].mxu0 }
 0xc70   :  { %v11613_v2 = vpop.f32.mrb[214].mxu0  ;;  %12861 = vmatpush1.bf16.msra.mxu0 %v22420_v9  ;;  %v22476_v25 = vld [vmem:[%s29491_s7 + $0x314] ss:$8 sps:$4 sm:$0xff]  }
 0xc71   :  { %v11614_v52 = vpop.f32.mrb[215].mxu0  ;;  %12862 = vmatprep.subr.bf16.mxu0 %v22425_v15  ;;  %v22471_v15 = vld [vmem:[%s29491_s7 + $0x300] ss:$8 sps:$4 sm:$0xff]   ;;  %v23166_v2 = vld [vmem:[#allocation4 + $0x10] sm:$0xff] }
 0xc72   :  { %v22479_v52 = vld [vmem:[%s29491_s7 + $0x324] ss:$8 sps:$4 sm:$0xff]  }
 0xc74   :  { %12863 = vmatpush1.bf16.msra.mxu0 %v22423_v4  ;;  %v22474_v4 = vld [vmem:[%s29491_s7 + $0x310] ss:$8 sps:$4 sm:$0xff]  }
 0xc75   :  { %12864 = vmatprep.subr.bf16.mxu0 %v22428_v33  ;;  %v22477_v33 = vld [vmem:[%s29491_s7 + $0x320] ss:$8 sps:$4 sm:$0xff]  }
 0xc78   :  { %12865 = vmatpush1.bf16.msra.mxu0 %v22426_v10  ;;  %v22482_v10 = vld [vmem:[%s29491_s7 + $0x334] ss:$8 sps:$4 sm:$0xff]  }
 0xc79   :  { %12866 = vmatprep.subr.bf16.mxu0 %v22431_v16  ;;  %v27858_v16 = vld [vmem:[#allocation4 + $0x28] sm:$0xff] }
 0xc7c   :  { %12867 = vmatpush1.bf16.msra.mxu0 %v22429_v37  ;;  %v22480_v37 = vld [vmem:[%s29491_s7 + $0x330] ss:$8 sps:$4 sm:$0xff]  }
 0xc7d   :  { %12868 = vmatprep.subr.bf16.mxu0 %v22434_v8  ;;  %v22485_v8 = vld [vmem:[%s29491_s7 + $0x344] ss:$8 sps:$4 sm:$0xff]  }
 0xc80   :  { %12869 = vmatpush1.bf16.msra.mxu0 %v22432_v54  ;;  %v10616_v54 = vld [vmem:[#allocation4 + $0x8] sm:$0xfe] }
 0xc81   :  { %12870 = vmatprep.subr.bf16.mxu0 %v22437_v23  ;;  %v12977_v23 = vrot.slane %v27790_v29, 1 }
 0xc84   :  { %12871 = vmatpush1.bf16.msra.mxu0 %v22435_v32  ;;  %v22483_v32 = vld [vmem:[%s29491_s7 + $0x340] ss:$8 sps:$4 sm:$0xff]  }
 0xc85   :  { %12872 = vmatprep.subr.bf16.mxu0 %v22440_v14  ;;  %v12976_v14 = vrot.slane %v10616_v54, 1  ;;  %v22525_v54 = vld [vmem:[%s29491_s7 + $0x420] ss:$8 sps:$4 sm:$0xff]  }
 0xc88   :  { %12873 = vmatpush1.bf16.msra.mxu0 %v22438_v60  ;;  %v22488_v60 = vld [vmem:[%s29491_s7 + $0x354] ss:$8 sps:$4 sm:$0xff]  }
 0xc89   :  { %12874 = vmatprep.subr.bf16.mxu0 %v22443_v61  ;;  %v10078_v61 = vld [vmem:[#allocation4 + $0x40] sm:$0x7f] }
 0xc8c   :  { %12875 = vmatpush1.bf16.msra.mxu0 %v22441_v62  ;;  %v12978_v62 = vsel %vm3445_vm10, %v12976_v14, %v12977_v23  ;;  %v22528_v14 = vld [vmem:[%s29491_s7 + $0x430] ss:$8 sps:$4 sm:$0xff]  }
 0xc8d   :  { %12876 = vmatprep.subr.bf16.mxu0 %v22446_v50  ;;  %v22486_v50 = vld [vmem:[%s29491_s7 + $0x350] ss:$8 sps:$4 sm:$0xff]  }
 0xc90   :  { %12877 = vmatpush1.bf16.msra.mxu0 %v22444_v45  ;;  %v22491_v45 = vld [vmem:[%s29491_s7 + $0x364] ss:$8 sps:$4 sm:$0xff]  }
 0xc91   :  { %12905 = vmatprep.subr.bf16.mxu0 %v22449_v44  ;;  %v22489_v44 = vld [vmem:[%s29491_s7 + $0x360] ss:$8 sps:$4 sm:$0xff]  }
 0xc93   :  { %12879 = vmatmul.mubr.bf16.vlgmr.msra.gmra.mrb[184].mxu0 %v23163_v38  ;;  %v22497_v38 = vld [vmem:[%s29491_s7 + $0x384] ss:$8 sps:$4 sm:$0xff]  }
 0xc94   :  { %12888 = vmatprep.mubr.bf16.mxu0 %v27790_v29  ;;  %12906 = vmatpush1.bf16.msra.mxu0 %v22447_v46  ;;  %v22494_v46 = vld [vmem:[%s29491_s7 + $0x374] ss:$8 sps:$4 sm:$0xff]  }
 0xc95   :  { %12907 = vmatprep.subr.bf16.mxu0 %v22452_v48  ;;  %v22492_v48 = vld [vmem:[%s29491_s7 + $0x370] ss:$8 sps:$4 sm:$0xff]  }
 0xc98   :  { %12908 = vmatpush1.bf16.msra.mxu0 %v22450_v17 }
 0xc99   :  { %12909 = vmatprep.subr.bf16.mxu0 %v22455_v58 }
 0xc9b   :  { %12889 = vmatmul.mubr.bf16.gmra.mrb[232].mxu0 %v27805_v12 }
 0xc9c   :  { %12894 = vmatprep.mubr.bf16.mxu0 %v10077_v47  ;;  %12910 = vmatpush1.bf16.msra.mxu0 %v22453_v21 }
 0xc9d   :  { %12911 = vmatprep.subr.bf16.mxu0 %v22458_v22  ;;  %v22495_v22 = vld [vmem:[%s29491_s7 + $0x380] ss:$8 sps:$4 sm:$0xff]  }
 0xca0   :  { %12912 = vmatpush1.bf16.msra.mxu0 %v22456_v36  ;;  %v22500_v36 = vld [vmem:[%s29491_s7 + $0x394] ss:$8 sps:$4 sm:$0xff]  }
 0xca1   :  { %12913 = vmatprep.subr.bf16.mxu0 %v22461_v3  ;;  %v22498_v3 = vld [vmem:[%s29491_s7 + $0x390] ss:$8 sps:$4 sm:$0xff]  }
 0xca3   :  { %12895 = vmatmul.mubr.bf16.gmra.mrb[192].mxu0 %v10076_v56  ;;  %v22506_v56 = vld [vmem:[%s29491_s7 + $0x3b4] ss:$8 sps:$4 sm:$0xff]  }
 0xca4   :  { %12914 = vmatpush1.bf16.msra.mxu0 %v22459_v51  ;;  %12937 = vmatprep.mubr.bf16.mxu0 %v27487_v6  ;;  %v22503_v51 = vld [vmem:[%s29491_s7 + $0x3a4] ss:$8 sps:$4 sm:$0xff]  }
 0xca5   :  { %12915 = vmatprep.subr.bf16.mxu0 %v22464_v31  ;;  %v22501_v31 = vld [vmem:[%s29491_s7 + $0x3a0] ss:$8 sps:$4 sm:$0xff]  }
 0xca8   :  { %12916 = vmatpush1.bf16.msra.mxu0 %v22462_v34  ;;  %v22504_v34 = vld [vmem:[%s29491_s7 + $0x3b0] ss:$8 sps:$4 sm:$0xff]  }
 0xca9   :  { %12917 = vmatprep.subr.bf16.mxu0 %v22467_v27  ;;  %v22509_v27 = vld [vmem:[%s29491_s7 + $0x3c4] ss:$8 sps:$4 sm:$0xff]  }
 0xcac   :  { %12918 = vmatpush1.bf16.msra.mxu0 %v22465_v40  ;;  %v22507_v40 = vld [vmem:[%s29491_s7 + $0x3c0] ss:$8 sps:$4 sm:$0xff]  }
 0xcad   :  { %12919 = vmatprep.subr.bf16.mxu0 %v22470_v55  ;;  %v22512_v55 = vld [vmem:[%s29491_s7 + $0x3d4] ss:$8 sps:$4 sm:$0xff]  }
 0xcae   :  { %v12092_v41 = vpop.f32.mrb[216].mxu0 }
 0xcaf   :  { %v12093_v13 = vpop.f32.mrb[217].mxu0  ;;  %v22513_v41 = vld [vmem:[%s29491_s7 + $0x3e0] ss:$8 sps:$4 sm:$0xff]  }
 0xcb0   :  { %v12094_v9 = vpop.f32.mrb[218].mxu0  ;;  %12920 = vmatpush1.bf16.msra.mxu0 %v22468_v7  ;;  %v22510_v7 = vld [vmem:[%s29491_s7 + $0x3d0] ss:$8 sps:$4 sm:$0xff]   ;;  %v22518_v13 = vld [vmem:[%s29491_s7 + $0x3f4] ss:$8 sps:$4 sm:$0xff]  }
 0xcb1   :  { %v12095_v53 = vpop.f32.mrb[219].mxu0  ;;  %13237 = vmatprep.subr.bf16.mxu0 %v22473_v39  ;;  %v22515_v39 = vld [vmem:[%s29491_s7 + $0x3e4] ss:$8 sps:$4 sm:$0xff]   ;;  %v22516_v9 = vld [vmem:[%s29491_s7 + $0x3f0] ss:$8 sps:$4 sm:$0xff]  }
 0xcb2   :  { %v22521_v53 = vld [vmem:[%s29491_s7 + $0x404] ss:$8 sps:$4 sm:$0xff]  }
 0xcb3   :  { %12938 = vmatmul.mubr.bf16.vlgmr.msra.gmra.mrb[184].mxu0 %v23166_v2 }
 0xcb4   :  { %13238 = vmatpush1.bf16.msra.mxu0 %v22471_v15  ;;  %12947 = vmatprep.mubr.bf16.mxu0 %v27487_v6  ;;  %v10615_v15 = vld [vmem:[#allocation4] sm:$0xfe] }
 0xcb5   :  { %13239 = vmatprep.subr.bf16.mxu0 %v22476_v25  ;;  %v12974_v25 = vrot.slane %v27805_v12, 1  ;;  %v12973_v2 = vrot.slane %v10615_v15, 1  ;;  %v22561_v15 = vld [vmem:[%s29491_s7 + $0x660] ss:$8 sps:$4 sm:$0xff]  }
 0xcb8   :  { %13240 = vmatpush1.bf16.msra.mxu0 %v22474_v4  ;;  %v22519_v4 = vld [vmem:[%s29491_s7 + $0x400] ss:$8 sps:$4 sm:$0xff]  }
 0xcb9   :  { %13241 = vmatprep.subr.bf16.mxu0 %v22479_v52  ;;  %v22524_v52 = vld [vmem:[%s29491_s7 + $0x414] ss:$8 sps:$4 sm:$0xff]  }
 0xcbb   :  { %12948 = vmatmul.mubr.bf16.gmra.mrb[236].mxu0 %v27858_v16 }
 0xcbc   :  { %13242 = vmatpush1.bf16.msra.mxu0 %v22477_v33  ;;  %12953 = vmatprep.mubr.bf16.mxu0 %v27487_v6  ;;  %v12975_v33 = vsel %vm3445_vm10, %v12973_v2, %v12974_v25 }
 0xcbd   :  { %13243 = vmatprep.subr.bf16.mxu0 %v22482_v10  ;;  %v12985_v10 = vsel %vm3445_vm10, %v12977_v23, %v27538_v49  ;;  %v22530_v23 = vld [vmem:[%s29491_s7 + $0x434] ss:$8 sps:$4 sm:$0xff]  }
 0xcc0   :  { %13244 = vmatpush1.bf16.msra.mxu0 %v22480_v37  ;;  %v22522_v37 = vld [vmem:[%s29491_s7 + $0x410] ss:$8 sps:$4 sm:$0xff]  }
 0xcc1   :  { %13245 = vmatprep.subr.bf16.mxu0 %v22485_v8  ;;  %v22527_v8 = vld [vmem:[%s29491_s7 + $0x424] ss:$8 sps:$4 sm:$0xff]  }
 0xcc3   :  { %12954 = vmatmul.mubr.bf16.gmra.mrb[192].mxu0 %v10078_v61  ;;  %v22531_v61 = vld [vmem:[%s29491_s7 + $0x440] ss:$8 sps:$4 sm:$0xff]  }
 0xcc4   :  { %13246 = vmatpush1.bf16.msra.mxu0 %v22483_v32  ;;  %13269 = vmatprep.mubr.bf16.mxu0 %v12978_v62  ;;  %v12983_v32 = vsel %vm3445_vm10, %v12974_v25, %v27617_v59  ;;  %v22534_v62 = vld [vmem:[%s29491_s7 + $0x450] ss:$8 sps:$4 sm:$0xff]  }
 0xcc5   :  { %13247 = vmatprep.subr.bf16.mxu0 %v22488_v60  ;;  %v22533_v60 = vld [vmem:[%s29491_s7 + $0x444] ss:$8 sps:$4 sm:$0xff]  }
 0xcc8   :  { %13248 = vmatpush1.bf16.msra.mxu0 %v22486_v50  ;;  %v22539_v50 = vld [vmem:[%s29491_s7 + $0x464] ss:$8 sps:$4 sm:$0xff]  }
 0xcc9   :  { %13249 = vmatprep.subr.bf16.mxu0 %v22491_v45  ;;  %v22537_v45 = vld [vmem:[%s29491_s7 + $0x460] ss:$8 sps:$4 sm:$0xff]  }
 0xccc   :  { %13250 = vmatpush1.bf16.msra.mxu0 %v22489_v44  ;;  %v22540_v44 = vld [vmem:[%s29491_s7 + $0x470] ss:$8 sps:$4 sm:$0xff]  }
 0xccd   :  { %13251 = vmatprep.subr.bf16.mxu0 %v22494_v46  ;;  %v10617_v46 = vld [vmem:[#allocation4 + $0x10] sm:$0xfe] }
 0xcce   :  { %v12151_v17 = vpop.f32.mrb[220].mxu0 }
 0xccf   :  { %v12152_v58 = vpop.f32.mrb[221].mxu0  ;;  %v12980_v17 = vrot.slane %v27858_v16, 1 }
 0xcd0   :  { %v12153_v21 = vpop.f32.mrb[222].mxu0  ;;  %13252 = vmatpush1.bf16.msra.mxu0 %v22492_v48  ;;  %v22545_v48 = vld [vmem:[%s29491_s7 + $0x604] ss:$8 sps:$4 sm:$0xff]  }
 0xcd1   :  { %v12154_v47 = vpop.f32.mrb[223].mxu0  ;;  %13253 = vmatprep.subr.bf16.mxu0 %v22497_v38 }
 0xcd2   :  { %v22543_v47 = vld [vmem:[%s29491_s7 + $0x600] ss:$8 sps:$4 sm:$0xff]  }
 0xcd4   :  { %13254 = vmatpush1.bf16.msra.mxu0 %v22495_v22  ;;  %v12979_v22 = vrot.slane %v10617_v46, 1  ;;  %v22591_v46 = vld [vmem:[%s29491_s7 + $0x700] ss:$8 sps:$4 sm:$0xff]  }
 0xcd5   :  { %13255 = vmatprep.subr.bf16.mxu0 %v22500_v36 }
 0xcd8   :  { %13256 = vmatpush1.bf16.msra.mxu0 %v22498_v3  ;;  %v22548_v3 = vld [vmem:[%s29491_s7 + $0x614] ss:$8 sps:$4 sm:$0xff]  }
 0xcd9   :  { %13257 = vmatprep.subr.bf16.mxu0 %v22503_v51  ;;  %v12981_v51 = vsel %vm3445_vm10, %v12979_v22, %v12980_v17  ;;  %v22603_v22 = vld [vmem:[%s29491_s7 + $0x740] ss:$8 sps:$4 sm:$0xff]  }
 0xcdc   :  { %13258 = vmatpush1.bf16.msra.mxu0 %v22501_v31  ;;  %v22546_v31 = vld [vmem:[%s29491_s7 + $0x610] ss:$8 sps:$4 sm:$0xff]  }
 0xcdd   :  { %13259 = vmatprep.subr.bf16.mxu0 %v22506_v56  ;;  %v22551_v56 = vld [vmem:[%s29491_s7 + $0x624] ss:$8 sps:$4 sm:$0xff]  }
 0xce0   :  { %13260 = vmatpush1.bf16.msra.mxu0 %v22504_v34  ;;  %v22549_v34 = vld [vmem:[%s29491_s7 + $0x620] ss:$8 sps:$4 sm:$0xff]  }
 0xce1   :  { %13261 = vmatprep.subr.bf16.mxu0 %v22509_v27  ;;  %v22554_v27 = vld [vmem:[%s29491_s7 + $0x634] ss:$8 sps:$4 sm:$0xff]  }
 0xce4   :  { %13262 = vmatpush1.bf16.msra.mxu0 %v22507_v40  ;;  %v12987_v40 = vsel %vm3445_vm10, %v12980_v17, %v27679_v24  ;;  %v22599_v17 = vld [vmem:[%s29491_s7 + $0x724] ss:$8 sps:$4 sm:$0xff]  }
 0xce5   :  { %13263 = vmatprep.subr.bf16.mxu0 %v22512_v55  ;;  %v22552_v55 = vld [vmem:[%s29491_s7 + $0x630] ss:$8 sps:$4 sm:$0xff]  }
 0xce8   :  { %13264 = vmatpush1.bf16.msra.mxu0 %v22510_v7  ;;  %v22557_v7 = vld [vmem:[%s29491_s7 + $0x644] ss:$8 sps:$4 sm:$0xff]  }
 0xce9   :  { %13265 = vmatprep.subr.bf16.mxu0 %v22515_v39  ;;  %v22555_v39 = vld [vmem:[%s29491_s7 + $0x640] ss:$8 sps:$4 sm:$0xff]  }
 0xcec   :  { %13266 = vmatpush1.bf16.msra.mxu0 %v22513_v41  ;;  %v22560_v41 = vld [vmem:[%s29491_s7 + $0x654] ss:$8 sps:$4 sm:$0xff]  }
 0xced   :  { %13267 = vmatprep.subr.bf16.mxu0 %v22518_v13  ;;  %v22558_v13 = vld [vmem:[%s29491_s7 + $0x650] ss:$8 sps:$4 sm:$0xff]  }
 0xcf0   :  { %13268 = vmatpush1.bf16.msra.mxu0 %v22516_v9  ;;  %v22563_v9 = vld [vmem:[%s29491_s7 + $0x664] ss:$8 sps:$4 sm:$0xff]  }
 0xcf1   :  { %13296 = vmatprep.subr.bf16.mxu0 %v22521_v53  ;;  %v22569_v53 = vld [vmem:[%s29491_s7 + $0x684] ss:$8 sps:$4 sm:$0xff]  }
 0xcf3   :  { %13270 = vmatmul.mubr.bf16.vlgmr.msra.gmra.mrb[184].mxu0 %v12975_v33 }
 0xcf4   :  { %13279 = vmatprep.mubr.bf16.mxu0 %v12985_v10  ;;  %13297 = vmatpush1.bf16.msra.mxu0 %v22519_v4  ;;  %v22572_v10 = vld [vmem:[%s29491_s7 + $0x694] ss:$8 sps:$4 sm:$0xff]  }
 0xcf5   :  { %13298 = vmatprep.subr.bf16.mxu0 %v22524_v52  ;;  %v22567_v52 = vld [vmem:[%s29491_s7 + $0x680] ss:$8 sps:$4 sm:$0xff]  }
 0xcf8   :  { %13299 = vmatpush1.bf16.msra.mxu0 %v22522_v37  ;;  %v22570_v37 = vld [vmem:[%s29491_s7 + $0x690] ss:$8 sps:$4 sm:$0xff]  }
 0xcf9   :  { %13300 = vmatprep.subr.bf16.mxu0 %v22527_v8  ;;  %v22575_v8 = vld [vmem:[%s29491_s7 + $0x6a4] ss:$8 sps:$4 sm:$0xff]  }
 0xcfb   :  { %13280 = vmatmul.mubr.bf16.gmra.mrb[240].mxu0 %v12983_v32  ;;  %v22576_v32 = vld [vmem:[%s29491_s7 + $0x6b0] ss:$8 sps:$4 sm:$0xff]  }
 0xcfc   :  { %13285 = vmatprep.mubr.bf16.mxu0 %v27538_v49  ;;  %13301 = vmatpush1.bf16.msra.mxu0 %v22525_v54  ;;  %v22536_v49 = vld [vmem:[%s29491_s7 + $0x454] ss:$8 sps:$4 sm:$0xff]   ;;  %v22573_v54 = vld [vmem:[%s29491_s7 + $0x6a0] ss:$8 sps:$4 sm:$0xff]  }
 0xcfd   :  { %13302 = vmatprep.subr.bf16.mxu0 %v22530_v23  ;;  %v22578_v23 = vld [vmem:[%s29491_s7 + $0x6b4] ss:$8 sps:$4 sm:$0xff]  }
 0xd00   :  { %13303 = vmatpush1.bf16.msra.mxu0 %v22528_v14  ;;  %v22581_v14 = vld [vmem:[%s29491_s7 + $0x6c4] ss:$8 sps:$4 sm:$0xff]  }
 0xd01   :  { %13304 = vmatprep.subr.bf16.mxu0 %v22533_v60  ;;  %v22579_v60 = vld [vmem:[%s29491_s7 + $0x6c0] ss:$8 sps:$4 sm:$0xff]  }
 0xd03   :  { %13286 = vmatmul.mubr.bf16.gmra.mrb[192].mxu0 %v27617_v59  ;;  %v22542_v59 = vld [vmem:[%s29491_s7 + $0x474] ss:$8 sps:$4 sm:$0xff]  }
 0xd04   :  { %13305 = vmatpush1.bf16.msra.mxu0 %v22531_v61  ;;  %13328 = vmatprep.mubr.bf16.mxu0 %v27487_v6  ;;  %v22584_v61 = vld [vmem:[%s29491_s7 + $0x6d4] ss:$8 sps:$4 sm:$0xff]  }
 0xd05   :  { %13306 = vmatprep.subr.bf16.mxu0 %v22536_v49  ;;  %v22582_v49 = vld [vmem:[%s29491_s7 + $0x6d0] ss:$8 sps:$4 sm:$0xff]  }
 0xd08   :  { %13307 = vmatpush1.bf16.msra.mxu0 %v22534_v62  ;;  %v22587_v62 = vld [vmem:[%s29491_s7 + $0x6e4] ss:$8 sps:$4 sm:$0xff]  }
 0xd09   :  { %13308 = vmatprep.subr.bf16.mxu0 %v22539_v50  ;;  %v22585_v50 = vld [vmem:[%s29491_s7 + $0x6e0] ss:$8 sps:$4 sm:$0xff]  }
 0xd0c   :  { %13309 = vmatpush1.bf16.msra.mxu0 %v22537_v45  ;;  %v22590_v45 = vld [vmem:[%s29491_s7 + $0x6f4] ss:$8 sps:$4 sm:$0xff]  }
 0xd0d   :  { %13310 = vmatprep.subr.bf16.mxu0 %v22542_v59  ;;  %v22588_v59 = vld [vmem:[%s29491_s7 + $0x6f0] ss:$8 sps:$4 sm:$0xff]  }
 0xd0e   :  { %v12532_v38 = vpop.f32.mrb[224].mxu0 }
 0xd0f   :  { %v12533_v58 = vpop.f32.mrb[225].mxu0  ;;  %v22594_v38 = vld [vmem:[%s29491_s7 + $0x710] ss:$8 sps:$4 sm:$0xff]  }
 0xd10   :  { %v12534_v21 = vpop.f32.mrb[226].mxu0  ;;  %13311 = vmatpush1.bf16.msra.mxu0 %v22540_v44  ;;  %v22593_v44 = vld [vmem:[%s29491_s7 + $0x704] ss:$8 sps:$4 sm:$0xff]   ;;  %v22597_v58 = vld [vmem:[%s29491_s7 + $0x720] ss:$8 sps:$4 sm:$0xff]  }
 0xd11   :  { %v12535_v36 = vpop.f32.mrb[227].mxu0  ;;  %13679 = vmatprep.subr.bf16.mxu0 %v22545_v48  ;;  %v22596_v48 = vld [vmem:[%s29491_s7 + $0x714] ss:$8 sps:$4 sm:$0xff]   ;;  %v22605_v21 = vld [vmem:[%s29491_s7 + $0x744] ss:$8 sps:$4 sm:$0xff]  }
 0xd12   :  { %v22609_v36 = vld [vmem:[%s29491_s7 + $0x760] ss:$8 sps:$4 sm:$0xff]  }
 0xd13   :  { %13329 = vmatmul.mubr.bf16.vlgmr.msra.gmra.mrb[184].mxu0 %v12981_v51 }
 0xd14   :  { %13680 = vmatpush1.bf16.msra.mxu0 %v22543_v47  ;;  %13338 = vmatprep.mubr.bf16.mxu0 %v27487_v6  ;;  %v22611_v47 = vld [vmem:[%s29491_s7 + $0x764] ss:$8 sps:$4 sm:$0xff]  }
 0xd15   :  { %13681 = vmatprep.subr.bf16.mxu0 %v22548_v3  ;;  %v22617_v3 = vld [vmem:[%s29491_s7 + $0x904] ss:$8 sps:$4 sm:$0xff]  }
 0xd18   :  { %13682 = vmatpush1.bf16.msra.mxu0 %v22546_v31 }
 0xd19   :  { %13683 = vmatprep.subr.bf16.mxu0 %v22551_v56 }
 0xd1b   :  { %13339 = vmatmul.mubr.bf16.gmra.mrb[244].mxu0 %v12987_v40  ;;  %v22620_v40 = vld [vmem:[%s29491_s7 + $0x914] ss:$8 sps:$4 sm:$0xff]  }
 0xd1c   :  { %13684 = vmatpush1.bf16.msra.mxu0 %v22549_v34  ;;  %13344 = vmatprep.mubr.bf16.mxu0 %v27487_v6  ;;  %v22615_v34 = vld [vmem:[%s29491_s7 + $0x900] ss:$8 sps:$4 sm:$0xff]  }
 0xd1d   :  { %13685 = vmatprep.subr.bf16.mxu0 %v22554_v27 }
 0xd20   :  { %13686 = vmatpush1.bf16.msra.mxu0 %v22552_v55  ;;  %v22618_v55 = vld [vmem:[%s29491_s7 + $0x910] ss:$8 sps:$4 sm:$0xff]  }
 0xd21   :  { %13687 = vmatprep.subr.bf16.mxu0 %v22557_v7  ;;  %v28171_v7 = vld [vmem:[#allocation5] sm:$0xff] }
 0xd23   :  { %13345 = vmatmul.mubr.bf16.gmra.mrb[192].mxu0 %v27679_v24  ;;  %v22566_v24 = vld [vmem:[%s29491_s7 + $0x674] ss:$8 sps:$4 sm:$0xff]  }
 0xd24   :  { %13688 = vmatpush1.bf16.msra.mxu0 %v22555_v39  ;;  %13711 = vmatprep.mubr.bf16.mxu0 %v26971_v63  ;;  %v22564_v63 = vld [vmem:[%s29491_s7 + $0x670] ss:$8 sps:$4 sm:$0xff]   ;;  %v22623_v39 = vld [vmem:[%s29491_s7 + $0x924] ss:$8 sps:$4 sm:$0xff]  }
 0xd25   :  { %13689 = vmatprep.subr.bf16.mxu0 %v22560_v41  ;;  %v22621_v41 = vld [vmem:[%s29491_s7 + $0x920] ss:$8 sps:$4 sm:$0xff]  }
 0xd28   :  { %13690 = vmatpush1.bf16.msra.mxu0 %v22558_v13  ;;  %v22624_v13 = vld [vmem:[%s29491_s7 + $0x930] ss:$8 sps:$4 sm:$0xff]  }
 0xd29   :  { %13691 = vmatprep.subr.bf16.mxu0 %v22563_v9  ;;  %v22629_v9 = vld [vmem:[%s29491_s7 + $0x944] ss:$8 sps:$4 sm:$0xff]  }
 0xd2c   :  { %13692 = vmatpush1.bf16.msra.mxu0 %v22561_v15  ;;  %v22627_v15 = vld [vmem:[%s29491_s7 + $0x940] ss:$8 sps:$4 sm:$0xff]  }
 0xd2d   :  { %13693 = vmatprep.subr.bf16.mxu0 %v22566_v24  ;;  %v22630_v24 = vld [vmem:[%s29491_s7 + $0x950] ss:$8 sps:$4 sm:$0xff]  }
 0xd2e   :  { %v12591_v25 = vpop.f32.mrb[228].mxu0 }
 0xd2f   :  { %v12592_v2 = vpop.f32.mrb[229].mxu0  ;;  %v22641_v25 = vld [vmem:[%s29491_s7 + $0x984] ss:$8 sps:$4 sm:$0xff]  }
 0xd30   :  { %v12593_v4 = vpop.f32.mrb[230].mxu0  ;;  %13694 = vmatpush1.bf16.msra.mxu0 %v22564_v63  ;;  %v22635_v63 = vld [vmem:[%s29491_s7 + $0x964] ss:$8 sps:$4 sm:$0xff]  }
 0xd31   :  { %v12594_v33 = vpop.f32.mrb[231].mxu0  ;;  %13695 = vmatprep.subr.bf16.mxu0 %v22569_v53  ;;  %v22633_v53 = vld [vmem:[%s29491_s7 + $0x960] ss:$8 sps:$4 sm:$0xff]  }
 0xd32   :  { %v22639_v33 = vld [vmem:[%s29491_s7 + $0x980] ss:$8 sps:$4 sm:$0xff]  }
 0xd34   :  { %13696 = vmatpush1.bf16.msra.mxu0 %v22567_v52 }
 0xd35   :  { %13697 = vmatprep.subr.bf16.mxu0 %v22572_v10 }
 0xd38   :  { %13698 = vmatpush1.bf16.msra.mxu0 %v22570_v37  ;;  %v22644_v37 = vld [vmem:[%s29491_s7 + $0x994] ss:$8 sps:$4 sm:$0xff]  }
 0xd39   :  { %13699 = vmatprep.subr.bf16.mxu0 %v22575_v8  ;;  %v22642_v8 = vld [vmem:[%s29491_s7 + $0x990] ss:$8 sps:$4 sm:$0xff]  }
 0xd3c   :  { %13700 = vmatpush1.bf16.msra.mxu0 %v22573_v54  ;;  %v22647_v54 = vld [vmem:[%s29491_s7 + $0x9a4] ss:$8 sps:$4 sm:$0xff]  }
 0xd3d   :  { %13701 = vmatprep.subr.bf16.mxu0 %v22578_v23  ;;  %v22645_v23 = vld [vmem:[%s29491_s7 + $0x9a0] ss:$8 sps:$4 sm:$0xff]  }
 0xd40   :  { %13702 = vmatpush1.bf16.msra.mxu0 %v22576_v32  ;;  %v22650_v32 = vld [vmem:[%s29491_s7 + $0x9b4] ss:$8 sps:$4 sm:$0xff]  }
 0xd41   :  { %13703 = vmatprep.subr.bf16.mxu0 %v22581_v14  ;;  %v22648_v14 = vld [vmem:[%s29491_s7 + $0x9b0] ss:$8 sps:$4 sm:$0xff]  }
 0xd44   :  { %13704 = vmatpush1.bf16.msra.mxu0 %v22579_v60  ;;  %v22653_v60 = vld [vmem:[%s29491_s7 + $0x9c4] ss:$8 sps:$4 sm:$0xff]  }
 0xd45   :  { %13705 = vmatprep.subr.bf16.mxu0 %v22584_v61  ;;  %v22651_v61 = vld [vmem:[%s29491_s7 + $0x9c0] ss:$8 sps:$4 sm:$0xff]  }
 0xd48   :  { %13706 = vmatpush1.bf16.msra.mxu0 %v22582_v49  ;;  %v22656_v49 = vld [vmem:[%s29491_s7 + $0x9d4] ss:$8 sps:$4 sm:$0xff]  }
 0xd49   :  { %13707 = vmatprep.subr.bf16.mxu0 %v22587_v62  ;;  %v22654_v62 = vld [vmem:[%s29491_s7 + $0x9d0] ss:$8 sps:$4 sm:$0xff]  }
 0xd4c   :  { %13708 = vmatpush1.bf16.msra.mxu0 %v22585_v50  ;;  %v22659_v50 = vld [vmem:[%s29491_s7 + $0x9e4] ss:$8 sps:$4 sm:$0xff]  }
 0xd4d   :  { %13709 = vmatprep.subr.bf16.mxu0 %v22590_v45  ;;  %v22657_v45 = vld [vmem:[%s29491_s7 + $0x9e0] ss:$8 sps:$4 sm:$0xff]  }
 0xd50   :  { %13710 = vmatpush1.bf16.msra.mxu0 %v22588_v59  ;;  %v22662_v59 = vld [vmem:[%s29491_s7 + $0x9f4] ss:$8 sps:$4 sm:$0xff]  }
 0xd51   :  { %13738 = vmatprep.subr.bf16.mxu0 %v22593_v44  ;;  %v22660_v44 = vld [vmem:[%s29491_s7 + $0x9f0] ss:$8 sps:$4 sm:$0xff]  }
 0xd53   :  { %13712 = vmatmul.mubr.bf16.vlgmr.msra.gmra.mrb[184].mxu0 %v26984_v11  ;;  %v22602_v11 = vld [vmem:[%s29491_s7 + $0x734] ss:$8 sps:$4 sm:$0xff]  }
 0xd54   :  { %13721 = vmatprep.mubr.bf16.mxu0 %v26987_v18  ;;  %13739 = vmatpush1.bf16.msra.mxu0 %v22591_v46  ;;  %v22600_v18 = vld [vmem:[%s29491_s7 + $0x730] ss:$8 sps:$4 sm:$0xff]   ;;  %v22665_v46 = vld [vmem:[%s29491_s7 + $0xa04] ss:$8 sps:$4 sm:$0xff]  }
 0xd55   :  { %13740 = vmatprep.subr.bf16.mxu0 %v22596_v48  ;;  %v22663_v48 = vld [vmem:[%s29491_s7 + $0xa00] ss:$8 sps:$4 sm:$0xff]  }
 0xd58   :  { %13741 = vmatpush1.bf16.msra.mxu0 %v22594_v38  ;;  %v22668_v38 = vld [vmem:[%s29491_s7 + $0xa14] ss:$8 sps:$4 sm:$0xff]  }
 0xd59   :  { %13742 = vmatprep.subr.bf16.mxu0 %v22599_v17  ;;  %v23169_v17 = vld [vmem:[#allocation4 + $0x38] sm:$0xff] }
 0xd5b   :  { %13722 = vmatmul.mubr.bf16.gmra.mrb[248].mxu0 %v27008_v20  ;;  %v22608_v20 = vld [vmem:[%s29491_s7 + $0x754] ss:$8 sps:$4 sm:$0xff]  }
 0xd5c   :  { %13727 = vmatprep.mubr.bf16.mxu0 %v27025_v19  ;;  %13743 = vmatpush1.bf16.msra.mxu0 %v22597_v58  ;;  %v22606_v19 = vld [vmem:[%s29491_s7 + $0x750] ss:$8 sps:$4 sm:$0xff]  }
 0xd5d   :  { %13744 = vmatprep.subr.bf16.mxu0 %v22602_v11  ;;  %v22666_v58 = vld [vmem:[%s29491_s7 + $0xa10] ss:$8 sps:$4 sm:$0xff]   ;;  %v22671_v11 = vld [vmem:[%s29491_s7 + $0xa24] ss:$8 sps:$4 sm:$0xff]  }
 0xd60   :  { %13745 = vmatpush1.bf16.msra.mxu0 %v22600_v18  ;;  %v22669_v18 = vld [vmem:[%s29491_s7 + $0xa20] ss:$8 sps:$4 sm:$0xff]  }
 0xd61   :  { %13746 = vmatprep.subr.bf16.mxu0 %v22605_v21  ;;  %v11627_v21 = vld [vmem:[#allocation4 + $0x50] sm:$0x7f] }
 0xd63   :  { %13728 = vmatmul.mubr.bf16.gmra.mrb[192].mxu0 %v27042_v35  ;;  %v22614_v35 = vld [vmem:[%s29491_s7 + $0x774] ss:$8 sps:$4 sm:$0xff]  }
 0xd64   :  { %13747 = vmatpush1.bf16.msra.mxu0 %v22603_v22  ;;  %13770 = vmatprep.mubr.bf16.mxu0 %v27487_v6  ;;  %v22612_v6 = vld [vmem:[%s29491_s7 + $0x770] ss:$8 sps:$4 sm:$0xff]  }
 0xd65   :  { %13748 = vmatprep.subr.bf16.mxu0 %v22608_v20  ;;  %v22672_v22 = vld [vmem:[%s29491_s7 + $0xa30] ss:$8 sps:$4 sm:$0xff]   ;;  %v22677_v20 = vld [vmem:[%s29491_s7 + $0xa44] ss:$8 sps:$4 sm:$0xff]  }
 0xd68   :  { %13749 = vmatpush1.bf16.msra.mxu0 %v22606_v19  ;;  %v22675_v19 = vld [vmem:[%s29491_s7 + $0xa40] ss:$8 sps:$4 sm:$0xff]  }
 0xd69   :  { %13750 = vmatprep.subr.bf16.mxu0 %v22611_v47  ;;  %v11626_v47 = vld [vmem:[#allocation4 + $0x48] sm:$0x7f] }
 0xd6c   :  { %13751 = vmatpush1.bf16.msra.mxu0 %v22609_v36  ;;  %v22678_v36 = vld [vmem:[%s29491_s7 + $0xa50] ss:$8 sps:$4 sm:$0xff]  }
 0xd6d   :  { %13752 = vmatprep.subr.bf16.mxu0 %v22614_v35  ;;  %v22683_v35 = vld [vmem:[%s29491_s7 + $0xa64] ss:$8 sps:$4 sm:$0xff]  }
 0xd6e   :  { %v12890_v51 = vpop.f32.mrb[232].mxu0 }
 0xd6f   :  { %v12891_v31 = vpop.f32.mrb[233].mxu0  ;;  %v22684_v51 = vld [vmem:[%s29491_s7 + $0xa70] ss:$8 sps:$4 sm:$0xff]  }
 0xd70   :  { %v12892_v56 = vpop.f32.mrb[234].mxu0  ;;  %13753 = vmatpush1.bf16.msra.mxu0 %v22612_v6  ;;  %v22681_v6 = vld [vmem:[%s29491_s7 + $0xa60] ss:$8 sps:$4 sm:$0xff]  }
 0xd71   :  { %v12893_v27 = vpop.f32.mrb[235].mxu0  ;;  %14037 = vmatprep.subr.bf16.mxu0 %v22617_v3  ;;  %v22686_v3 = vld [vmem:[%s29491_s7 + $0xa74] ss:$8 sps:$4 sm:$0xff]  }
 0xd73   :  { %13771 = vmatmul.mubr.bf16.vlgmr.msra.gmra.mrb[184].mxu0 %v27045_v5  ;;  %v22626_v5 = vld [vmem:[%s29491_s7 + $0x934] ss:$8 sps:$4 sm:$0xff]  }
 0xd74   :  { %14038 = vmatpush1.bf16.msra.mxu0 %v22615_v34  ;;  %13780 = vmatprep.mubr.bf16.mxu0 %v28171_v7 }
 0xd75   :  { %14039 = vmatprep.subr.bf16.mxu0 %v22620_v40  ;;  %v22687_v40 = vld [vmem:[%s29493_s9 + $0x100] ss:$8 sps:$4 sm:$0xff]  }
 0xd78   :  { %14040 = vmatpush1.bf16.msra.mxu0 %v22618_v55  ;;  %v22689_v55 = vld [vmem:[%s29493_s9 + $0x104] ss:$8 sps:$4 sm:$0xff]  }
 0xd79   :  { %14041 = vmatprep.subr.bf16.mxu0 %v22623_v39  ;;  %v22692_v39 = vld [vmem:[%s29493_s9 + $0x114] ss:$8 sps:$4 sm:$0xff]   ;;  %14600 = vmatprep.subr.bf16.mxu1 %v22689_v55 }
 0xd7a   :  { %14601 = vmatpush1.bf16.msra.mxu1 %v22687_v40 }
 0xd7b   :  { %13781 = vmatmul.mubr.bf16.gmra.mrb[252].mxu0 %v27048_v57  ;;  %v22632_v57 = vld [vmem:[%s29491_s7 + $0x954] ss:$8 sps:$4 sm:$0xff]   ;;  %14602 = vmatprep.subr.bf16.mxu1 %v22692_v39 }
 0xd7c   :  { %14042 = vmatpush1.bf16.msra.mxu0 %v22621_v41  ;;  %13786 = vmatprep.mubr.bf16.mxu0 %v28171_v7  ;;  %v22690_v41 = vld [vmem:[%s29493_s9 + $0x110] ss:$8 sps:$4 sm:$0xff]  }
 0xd7d   :  { %14043 = vmatprep.subr.bf16.mxu0 %v22626_v5  ;;  %v22695_v5 = vld [vmem:[%s29493_s9 + $0x124] ss:$8 sps:$4 sm:$0xff]  }
 0xd7e   :  { %14603 = vmatpush1.bf16.msra.mxu1 %v22690_v41 }
 0xd7f   :  { %14604 = vmatprep.subr.bf16.mxu1 %v22695_v5 }
 0xd80   :  { %14044 = vmatpush1.bf16.msra.mxu0 %v22624_v13  ;;  %v22693_v13 = vld [vmem:[%s29493_s9 + $0x120] ss:$8 sps:$4 sm:$0xff]  }
 0xd81   :  { %14045 = vmatprep.subr.bf16.mxu0 %v22629_v9 }
 0xd82   :  { %14605 = vmatpush1.bf16.msra.mxu1 %v22693_v13 }
 0xd83   :  { %13787 = vmatmul.mubr.bf16.gmra.mrb[192].mxu0 %v27057_v42  ;;  %v22638_v42 = vld [vmem:[%s29491_s7 + $0x974] ss:$8 sps:$4 sm:$0xff]  }
 0xd84   :  { %14046 = vmatpush1.bf16.msra.mxu0 %v22627_v15  ;;  %14069 = vmatprep.mubr.bf16.mxu0 %v27790_v29  ;;  %v22636_v29 = vld [vmem:[%s29491_s7 + $0x970] ss:$8 sps:$4 sm:$0xff]  }
 0xd85   :  { %14047 = vmatprep.subr.bf16.mxu0 %v22632_v57 }
 0xd88   :  { %14048 = vmatpush1.bf16.msra.mxu0 %v22630_v24 }
 0xd89   :  { %14049 = vmatprep.subr.bf16.mxu0 %v22635_v63  ;;  %v22696_v63 = vld [vmem:[%s29493_s9 + $0x130] ss:$8 sps:$4 sm:$0xff]  }
 0xd8c   :  { %14050 = vmatpush1.bf16.msra.mxu0 %v22633_v53  ;;  %v22698_v53 = vld [vmem:[%s29493_s9 + $0x134] ss:$8 sps:$4 sm:$0xff]  }
 0xd8d   :  { %14051 = vmatprep.subr.bf16.mxu0 %v22638_v42  ;;  %14606 = vmatprep.subr.bf16.mxu1 %v22698_v53  ;;  %v22704_v42 = vld [vmem:[%s29493_s9 + $0x154] ss:$8 sps:$4 sm:$0xff]  }
 0xd8e   :  { %v12949_v2 = vpop.f32.mrb[236].mxu0  ;;  %14607 = vmatpush1.bf16.msra.mxu1 %v22696_v63 }
 0xd8f   :  { %v12950_v4 = vpop.f32.mrb[237].mxu0  ;;  %v22705_v2 = vld [vmem:[%s29493_s9 + $0x160] ss:$8 sps:$4 sm:$0xff]  }
 0xd90   :  { %v12951_v52 = vpop.f32.mrb[238].mxu0  ;;  %14052 = vmatpush1.bf16.msra.mxu0 %v22636_v29  ;;  %v22702_v29 = vld [vmem:[%s29493_s9 + $0x150] ss:$8 sps:$4 sm:$0xff]   ;;  %v22710_v4 = vld [vmem:[%s29493_s9 + $0x174] ss:$8 sps:$4 sm:$0xff]  }
 0xd91   :  { %v12952_v10 = vpop.f32.mrb[239].mxu0  ;;  %14053 = vmatprep.subr.bf16.mxu0 %v22641_v25  ;;  %v22707_v25 = vld [vmem:[%s29493_s9 + $0x164] ss:$8 sps:$4 sm:$0xff]   ;;  %v22708_v52 = vld [vmem:[%s29493_s9 + $0x170] ss:$8 sps:$4 sm:$0xff]  }
 0xd92   :  { %v22711_v10 = vld [vmem:[%s29493_s9 + $0x180] ss:$8 sps:$4 sm:$0xff]  }
 0xd94   :  { %14054 = vmatpush1.bf16.msra.mxu0 %v22639_v33  ;;  %v22713_v33 = vld [vmem:[%s29493_s9 + $0x184] ss:$8 sps:$4 sm:$0xff]  }
 0xd95   :  { %14055 = vmatprep.subr.bf16.mxu0 %v22644_v37 }
 0xd98   :  { %14056 = vmatpush1.bf16.msra.mxu0 %v22642_v8 }
 0xd99   :  { %14057 = vmatprep.subr.bf16.mxu0 %v22647_v54 }
 0xd9c   :  { %14058 = vmatpush1.bf16.msra.mxu0 %v22645_v23 }
 0xd9d   :  { %14059 = vmatprep.subr.bf16.mxu0 %v22650_v32  ;;  %v22714_v32 = vld [vmem:[%s29493_s9 + $0x190] ss:$8 sps:$4 sm:$0xff]  }
 0xda0   :  { %14060 = vmatpush1.bf16.msra.mxu0 %v22648_v14  ;;  %v22716_v14 = vld [vmem:[%s29493_s9 + $0x194] ss:$8 sps:$4 sm:$0xff]  }
 0xda1   :  { %14061 = vmatprep.subr.bf16.mxu0 %v22653_v60  ;;  %v22719_v60 = vld [vmem:[%s29493_s9 + $0x1a4] ss:$8 sps:$4 sm:$0xff]  }
 0xda4   :  { %14062 = vmatpush1.bf16.msra.mxu0 %v22651_v61  ;;  %v22717_v61 = vld [vmem:[%s29493_s9 + $0x1a0] ss:$8 sps:$4 sm:$0xff]  }
 0xda5   :  { %14063 = vmatprep.subr.bf16.mxu0 %v22656_v49  ;;  %v22722_v49 = vld [vmem:[%s29493_s9 + $0x1b4] ss:$8 sps:$4 sm:$0xff]  }
 0xda8   :  { %14064 = vmatpush1.bf16.msra.mxu0 %v22654_v62  ;;  %v22720_v62 = vld [vmem:[%s29493_s9 + $0x1b0] ss:$8 sps:$4 sm:$0xff]  }
 0xda9   :  { %14065 = vmatprep.subr.bf16.mxu0 %v22659_v50  ;;  %v22725_v50 = vld [vmem:[%s29493_s9 + $0x1c4] ss:$8 sps:$4 sm:$0xff]  }
 0xdac   :  { %14066 = vmatpush1.bf16.msra.mxu0 %v22657_v45  ;;  %v22723_v45 = vld [vmem:[%s29493_s9 + $0x1c0] ss:$8 sps:$4 sm:$0xff]  }
 0xdad   :  { %14067 = vmatprep.subr.bf16.mxu0 %v22662_v59  ;;  %v22726_v59 = vld [vmem:[%s29493_s9 + $0x1d0] ss:$8 sps:$4 sm:$0xff]  }
 0xdb0   :  { %14068 = vmatpush1.bf16.msra.mxu0 %v22660_v44  ;;  %v22728_v44 = vld [vmem:[%s29493_s9 + $0x1d4] ss:$8 sps:$4 sm:$0xff]  }
 0xdb1   :  { %14096 = vmatprep.subr.bf16.mxu0 %v22665_v46  ;;  %v22731_v46 = vld [vmem:[%s29493_s9 + $0x1e4] ss:$8 sps:$4 sm:$0xff]  }
 0xdb3   :  { %14070 = vmatmul.mubr.bf16.vlgmr.msra.gmra.mrb[184].mxu0 %v27805_v12  ;;  %v22674_v12 = vld [vmem:[%s29491_s7 + $0xa34] ss:$8 sps:$4 sm:$0xff]  }
 0xdb4   :  { %14079 = vmatprep.mubr.bf16.mxu0 %v23169_v17  ;;  %14097 = vmatpush1.bf16.msra.mxu0 %v22663_v48  ;;  %v22729_v48 = vld [vmem:[%s29493_s9 + $0x1e0] ss:$8 sps:$4 sm:$0xff]   ;;  %v22732_v17 = vld [vmem:[%s29493_s9 + $0x1f0] ss:$8 sps:$4 sm:$0xff]  }
 0xdb5   :  { %14098 = vmatprep.subr.bf16.mxu0 %v22668_v38  ;;  %v22734_v38 = vld [vmem:[%s29493_s9 + $0x1f4] ss:$8 sps:$4 sm:$0xff]  }
 0xdb8   :  { %14099 = vmatpush1.bf16.msra.mxu0 %v22666_v58 }
 0xdb9   :  { %14100 = vmatprep.subr.bf16.mxu0 %v22671_v11  ;;  %v22737_v11 = vld [vmem:[%s29493_s9 + $0x304] ss:$8 sps:$4 sm:$0xff]  }
 0xdbb   :  { %14080 = vmatmul.mubr.bf16.gmra.mrb[0].mxu0 %v27614_v28  ;;  %v22680_v28 = vld [vmem:[%s29491_s7 + $0xa54] ss:$8 sps:$4 sm:$0xff]  }
 0xdbc   :  { %14085 = vmatprep.mubr.bf16.mxu0 %v11627_v21  ;;  %14101 = vmatpush1.bf16.msra.mxu0 %v22669_v18 }
 0xdbd   :  { %14102 = vmatprep.subr.bf16.mxu0 %v22674_v12 }
 0xdc0   :  { %14103 = vmatpush1.bf16.msra.mxu0 %v22672_v22 }
 0xdc1   :  { %14104 = vmatprep.subr.bf16.mxu0 %v22677_v20 }
 0xdc3   :  { %14086 = vmatmul.mubr.bf16.gmra.mrb[192].mxu0 %v11626_v47  ;;  %v14187_v47 = vld [vmem:[%s29492_s8] sm:$0x3] }
 0xdc4   :  { %14105 = vmatpush1.bf16.msra.mxu0 %v22675_v19  ;;  %14128 = vmatprep.mubr.bf16.mxu0 %v28171_v7 }
 0xdc5   :  { %14106 = vmatprep.subr.bf16.mxu0 %v22680_v28 }
 0xdc8   :  { %14107 = vmatpush1.bf16.msra.mxu0 %v22678_v36  ;;  %v14192_v36 = vrot.slane %v14187_v47, %v25100_v26 }
 0xdc9   :  { %14108 = vmatprep.subr.bf16.mxu0 %v22683_v35  ;;  %v14196_v35 = vrot.slane %v14187_v47, %v25106_v43 }
 0xdcc   :  { %14109 = vmatpush1.bf16.msra.mxu0 %v22681_v6 }
 0xdcd   :  { %14110 = vmatprep.subr.bf16.mxu0 %v22686_v3 }
 0xdce   :  { %v13281_v31 = vpop.f32.mrb[240].mxu0 }
 0xdcf   :  { %v13282_v56 = vpop.f32.mrb[241].mxu0 }
 0xdd0   :  { %v13283_v34 = vpop.f32.mrb[242].mxu0  ;;  %14111 = vmatpush1.bf16.msra.mxu0 %v22684_v51 }
 0xdd1   :  { %v13284_v27 = vpop.f32.mrb[243].mxu0 }
 0xdd3   :  { %14129 = vmatmul.mubr.bf16.vlgmr.msra.gmra.mrb[184].mxu0 %v27858_v16  ;;  %v11628_v16 = vld [vmem:[#allocation4 + $0x58] sm:$0x7f] }
 0xdd4   :  { %14138 = vmatprep.mubr.bf16.mxu0 %v28171_v7 }
 0xddb   :  { %14139 = vmatmul.mubr.bf16.gmra.mrb[4].mxu0 %v27676_v30  ;;  %v22701_v30 = vld [vmem:[%s29493_s9 + $0x144] ss:$8 sps:$4 sm:$0xff]  }
 0xddc   :  { %14144 = vmatprep.mubr.bf16.mxu0 %v28171_v7  ;;  %v22699_v7 = vld [vmem:[%s29493_s9 + $0x140] ss:$8 sps:$4 sm:$0xff]   ;;  %14608 = vmatprep.subr.bf16.mxu1 %v22701_v30 }
 0xddd   :  { %14609 = vmatpush1.bf16.msra.mxu1 %v22699_v7 }
 0xdde   :  { %14610 = vmatprep.subr.bf16.mxu1 %v22704_v42 }
 0xde1   :  { %14611 = vmatpush1.bf16.msra.mxu1 %v22702_v29 }
 0xde2   :  { %14612 = vmatprep.subr.bf16.mxu1 %v22707_v25 }
 0xde3   :  { %14145 = vmatmul.mubr.bf16.gmra.mrb[192].mxu0 %v11628_v16 }
 0xde5   :  { %14613 = vmatpush1.bf16.msra.mxu1 %v22705_v2  ;;  %v14235_v2 = vld [vmem:[#allocation5] sm:$0x30] }
 0xde6   :  { %14614 = vmatprep.subr.bf16.mxu1 %v22710_v4 }
 0xde9   :  { %14615 = vmatpush1.bf16.msra.mxu1 %v22708_v52 }
 0xdea   :  { %14616 = vmatprep.subr.bf16.mxu1 %v22713_v33 }
 0xded   :  { %14617 = vmatpush1.bf16.msra.mxu1 %v22711_v10 }
 0xdee   :  { %v13340_v9 = vpop.f32.mrb[244].mxu0  ;;  %14618 = vmatprep.subr.bf16.mxu1 %v22716_v14 }
 0xdef   :  { %v13341_v15 = vpop.f32.mrb[245].mxu0 }
 0xdf0   :  { %v13342_v57 = vpop.f32.mrb[246].mxu0 }
 0xdf1   :  { %v13343_v24 = vpop.f32.mrb[247].mxu0  ;;  %14619 = vmatpush1.bf16.msra.mxu1 %v22714_v32 }
 0xdf2   :  { %14620 = vmatprep.subr.bf16.mxu1 %v22719_v60  ;;  %v14259_v60 = vld [vmem:[#allocation5 + $0x10] sm:$0x3] }
 0xdf5   :  { %14621 = vmatpush1.bf16.msra.mxu1 %v22717_v61 }
 0xdf6   :  { %14622 = vmatprep.subr.bf16.mxu1 %v22722_v49 }
 0xdf9   :  { %14623 = vmatpush1.bf16.msra.mxu1 %v22720_v62 }
 0xdfa   :  { %14624 = vmatprep.subr.bf16.mxu1 %v22725_v50 }
 0xdfd   :  { %14625 = vmatpush1.bf16.msra.mxu1 %v22723_v45  ;;  %v14262_v45 = vld [vmem:[#allocation5 + $0x18] sm:$0x3] }
 0xdfe   :  { %14626 = vmatprep.subr.bf16.mxu1 %v22728_v44 }
 0xe01   :  { %14627 = vmatpush1.bf16.msra.mxu1 %v22726_v59 }
 0xe02   :  { %14628 = vmatprep.subr.bf16.mxu1 %v22731_v46 }
 0xe05   :  { %14629 = vmatpush1.bf16.msra.mxu1 %v22729_v48 }
 0xe06   :  { %14630 = vmatprep.subr.bf16.mxu1 %v22734_v38 }
 0xe09   :  { %14631 = vmatpush1.bf16.msra.mxu1 %v22732_v17 }
 0xe0a   :  { %14923 = vmatprep.subr.bf16.mxu1 %v22737_v11 }
 0xe2e   :  { %v13723_v37 = vpop.f32.mrb[248].mxu0 }
 0xe2f   :  { %v13724_v8 = vpop.f32.mrb[249].mxu0 }
 0xe30   :  { %v13725_v54 = vpop.f32.mrb[250].mxu0  ;;  %v14238_v8 = vld [vmem:[#allocation5 + $0x8] sm:$0x30] }
 0xe31   :  { %v13726_v23 = vpop.f32.mrb[251].mxu0 }
 0xe4e   :  { %v13782_v58 = vpop.f32.mrb[252].mxu0 }
 0xe4f   :  { %v13783_v18 = vpop.f32.mrb[253].mxu0 }
 0xe50   :  { %v13784_v12 = vpop.f32.mrb[254].mxu0 }
 0xe51   :  { %v13785_v21 = vpop.f32.mrb[255].mxu0 }
 0xe8e   :  { %v14081_v22 = vpop.f32.mrb[0].mxu0 }
 0xe8f   :  { %v14082_v20 = vpop.f32.mrb[1].mxu0 }
 0xe90   :  { %v14083_v19 = vpop.f32.mrb[2].mxu0 }
 0xe91   :  { %v14084_v28 = vpop.f32.mrb[3].mxu0 }
 0xea6   :  { %v14130_v6 = vpop.f32.mrb[184].mxu0 }
 0xea7   :  { %v14199_v3 = vadd.f32 %v14192_v36, %v14130_v6  ;;  %v14132_v51 = vpop.f32.mrb[185].mxu0 }
 0xea8   :  { %v14200_v31 = vadd.f32 %v14196_v35, %v14132_v51  ;;  %v14134_v56 = vpop.f32.mrb[186].mxu0 }
 0xea9   :  { %v14207_v34 = vmax.f32 %v14199_v3, 0.0  ;;  %v14201_v27 = vadd.f32 %v14192_v36, %v14134_v56  ;;  %v14136_v40 = vpop.f32.mrb[187].mxu0 }
 0xeaa   :  { %v14208_v55 = vmax.f32 %v14200_v31, 0.0  ;;  %v14202_v39 = vadd.f32 %v14196_v35, %v14136_v40 }
 0xeab   :  { %v14215_v41 = vpack.c.bf16 %v14207_v34, %v14207_v34  ;;  %v14209_v5 = vmax.f32 %v14201_v27, 0.0 }
 0xeac   :  { %v14216_v13 = vpack.c.bf16 %v14208_v55, %v14208_v55  ;;  %v14210_v16 = vmax.f32 %v14202_v39, 0.0 }
 0xead   :  { %v14218_v9 = vshrl.u32 %v14215_v41, 16  ;;  %v14221_v15 = vshll.u32 %v14215_v41, 16  ;;  %v14241_v57 = vpack.c.bf16 %v14209_v5, %v14209_v5 }
 0xeae   :  { %v14226_v24 = vshrl.u32 %v14216_v13, 16  ;;  %v14229_v63 = vshll.u32 %v14216_v13, 16  ;;  %v14242_v53 = vpack.c.bf16 %v14210_v16, %v14210_v16  ;;  %v14140_v30 = vpop.f32.mrb[4].mxu0 }
 0xeaf   :  { %v14220_v7 = vrot.slane %v14218_v9, 3  ;;  %v14223_v42 = vrot.slane %v14221_v15, 4  ;;  %v14244_v29 = vshrl.u32 %v14241_v57, 16  ;;  %v14141_v25 = vpop.f32.mrb[5].mxu0  ;;  %v14247_v23 = vshll.u32 %v14241_v57, 16 }
 0xeb0   :  { %v14228_v4 = vrot.slane %v14226_v24, 3  ;;  %v14231_v52 = vrot.slane %v14229_v63, 4  ;;  %v14251_v33 = vshrl.u32 %v14242_v53, 16  ;;  %v14142_v10 = vpop.f32.mrb[6].mxu0  ;;  %v14254_v49 = vshll.u32 %v14242_v53, 16 }
 0xeb1   :  { %v14224_v37 = vor.u32 %v14223_v42, %v14220_v7  ;;  %v14246_v54 = vrot.slane %v14244_v29, 7  ;;  %v14143_v32 = vpop.f32.mrb[7].mxu0  ;;  %v14285_v63 = vld [vmem:[#allocation5 + $0x20] sm:$0x30]  ;;  %v14288_v25 = vld [vmem:[#allocation5 + $0x28] sm:$0x30] }
 0xeb2   :  { %v14232_v14 = vor.u32 %v14231_v52, %v14228_v4  ;;  %v14253_v61 = vrot.slane %v14251_v33, 7  ;;  %v14309_v10 = vld [vmem:[#allocation5 + $0x30] sm:$0x3] }
 0xeb3   :  { %v14236_v62 = vsel %vm25125_vm15, %v14224_v37, %v14235_v2  ;;  %v14249_v50 = vor.u32 %v14247_v23, %v14246_v54 }
 0xeb4   :  { %14237 = vst [vmem:[#allocation5] sm:$0x30] %v14236_v62  ;;  %v14239_v59 = vsel %vm25125_vm15, %v14232_v14, %v14238_v8  ;;  %v14256_v44 = vor.u32 %v14254_v49, %v14253_v61  ;;  %v14312_v14 = vld [vmem:[#allocation5 + $0x38] sm:$0x3] }
 0xeb5   :  { %14240 = vst [vmem:[#allocation5 + $0x8] sm:$0x30] %v14239_v59  ;;  %v14260_v46 = vsel %vm25136_vm4, %v14249_v50, %v14259_v60  ;;  %v22735_v50 = vld [vmem:[%s29493_s9 + $0x300] ss:$8 sps:$4 sm:$0xff]  }
 0xeb6   :  { %14261 = vst [vmem:[#allocation5 + $0x10] sm:$0x3] %v14260_v46  ;;  %v14263_v48 = vsel %vm25136_vm4, %v14256_v44, %v14262_v45  ;;  %v14146_v38 = vpop.f32.mrb[192].mxu0 }
 0xeb7   :  { %14264 = vst [vmem:[#allocation5 + $0x18] sm:$0x3] %v14263_v48  ;;  %v14203_v17 = vadd.f32 %v14192_v36, %v14146_v38  ;;  %v14148_v58 = vpop.f32.mrb[193].mxu0 }
 0xeb8   :  { %v14204_v11 = vadd.f32 %v14196_v35, %v14148_v58  ;;  %v14150_v18 = vpop.f32.mrb[194].mxu0 }
 0xeb9   :  { %v14211_v12 = vmax.f32 %v14203_v17, 0.0  ;;  %v14205_v21 = vadd.f32 %v14192_v36, %v14150_v18  ;;  %v14152_v22 = vpop.f32.mrb[195].mxu0 }
 0xeba   :  { %v14212_v20 = vmax.f32 %v14204_v11, 0.0  ;;  %v14206_v19 = vadd.f32 %v14196_v35, %v14152_v22  ;;  %v22738_v11 = vld [vmem:[%s29493_s9 + $0x310] ss:$8 sps:$4 sm:$0xff]   ;;  %v22741_v22 = vld [vmem:[%s29493_s9 + $0x320] ss:$8 sps:$4 sm:$0xff]  }
 0xebb   :  { %v14265_v28 = vpack.c.bf16 %v14211_v12, %v14211_v12  ;;  %v14213_v47 = vmax.f32 %v14205_v21, 0.0  ;;  %v14315_v6 = vld [vmem:[#allocation5] sm:$0xff] }
 0xebc   :  { %v14266_v3 = vpack.c.bf16 %v14212_v20, %v14212_v20  ;;  %v14214_v51 = vmax.f32 %v14206_v19, 0.0  ;;  %v28429_v31 = vld [vmem:[#allocation5 + $0x8] sm:$0xff]  ;;  %v14389_v56 = vshrl.u32 %v14315_v6, 16  ;;  %v14391_v34 = vshll.u32 %v14315_v6, 16 }
 0xebd   :  { %v14268_v27 = vshrl.u32 %v14265_v28, 16  ;;  %v14271_v40 = vshll.u32 %v14265_v28, 16  ;;  %v14291_v55 = vpack.c.bf16 %v14213_v47, %v14213_v47  ;;  %v14401_v39 = vshrl.u32 %v28429_v31, 16  ;;  %v28435_v24 = vld [vmem:[#allocation5 + $0x10] sm:$0xff] }
 0xebe   :  { %v14276_v41 = vshrl.u32 %v14266_v3, 16  ;;  %v14279_v5 = vshll.u32 %v14266_v3, 16  ;;  %v14292_v36 = vpack.c.bf16 %v14214_v51, %v14214_v51  ;;  %v28432_v13 = vld [vmem:[#allocation5 + $0x18] sm:$0xff]  ;;  %v14403_v35 = vshll.u32 %v28429_v31, 16 }
 0xebf   :  { %v14270_v16 = vrot.slane %v14268_v27, 3  ;;  %v14273_v9 = vrot.slane %v14271_v40, 4  ;;  %v14294_v15 = vshrl.u32 %v14291_v55, 16  ;;  %v14297_v57 = vshll.u32 %v14291_v55, 16  ;;  %v22746_v28 = vld [vmem:[%s29493_s9 + $0x334] ss:$8 sps:$4 sm:$0xff]  }
 0xec0   :  { %v14278_v53 = vrot.slane %v14276_v41, 3  ;;  %v14281_v30 = vrot.slane %v14279_v5, 4  ;;  %v14301_v7 = vshrl.u32 %v14292_v36, 16  ;;  %v14304_v42 = vshll.u32 %v14292_v36, 16  ;;  %v22749_v55 = vld [vmem:[%s29493_s9 + $0x344] ss:$8 sps:$4 sm:$0xff]  }
 0xec1   :  { %v14274_v29 = vor.u32 %v14273_v9, %v14270_v16  ;;  %v14296_v2 = vrot.slane %v14294_v15, 7  ;;  %v14405_v4 = vrot.slane %v14403_v35, 1  ;;  %v14408_v52 = vshll.u32 %v28432_v13, 16  ;;  %v14695_v41 = vld [vmem:[#allocation5 + $0x8] sm:$0xf0] }
 0xec2   :  { %v14282_v33 = vor.u32 %v14281_v30, %v14278_v53  ;;  %v14303_v37 = vrot.slane %v14301_v7, 7  ;;  %v14393_v8 = vrot.slane %v14391_v34, 1  ;;  %v14396_v54 = vshll.u32 %v28435_v24, 16  ;;  %v22744_v34 = vld [vmem:[%s29493_s9 + $0x330] ss:$8 sps:$4 sm:$0xff]  }
 0xec3   :  { %v14286_v23 = vsel %vm25125_vm15, %v14274_v29, %v14285_v63  ;;  %v14299_v32 = vor.u32 %v14297_v57, %v14296_v2  ;;  %v14406_v60 = vor.u32 %v14405_v4, %v14401_v39  ;;  %v14410_v61 = vrot.slane %v14408_v52, 1  ;;  %v22747_v36 = vld [vmem:[%s29493_s9 + $0x340] ss:$8 sps:$4 sm:$0xff]   ;;  %v22752_v9 = vld [vmem:[%s29493_s9 + $0x354] ss:$8 sps:$4 sm:$0xff]  }
 0xec4   :  { %14287 = vst [vmem:[#allocation5 + $0x20] sm:$0x30] %v14286_v23  ;;  %v14289_v49 = vsel %vm25125_vm15, %v14282_v33, %v14288_v25  ;;  %v14306_v62 = vor.u32 %v14304_v42, %v14303_v37  ;;  %v14394_v45 = vor.u32 %v14393_v8, %v14389_v56  ;;  %v14398_v59 = vrot.slane %v14396_v54, 1  ;;  %v28505_v63 = vld [vmem:[#allocation5] sm:$0xf0] }
 0xec5   :  { %14290 = vst [vmem:[#allocation5 + $0x28] sm:$0x30] %v14289_v49  ;;  %v14310_v44 = vsel %vm25136_vm4, %v14299_v32, %v14309_v10  ;;  %v14411_v46 = vsel %vm841_vm6, %v14406_v60, %v14410_v61  ;;  %v14420_v17 = vshrl.u32 %v28432_v13, 16  ;;  %v14412_v58 = vshrl.u32 %v28435_v24, 16  ;;  %v22750_v53 = vld [vmem:[%s29493_s9 + $0x350] ss:$8 sps:$4 sm:$0xff]  }
 0xec6   :  { %14311 = vst [vmem:[#allocation5 + $0x30] sm:$0x3] %v14310_v44  ;;  %v14313_v48 = vsel %vm25136_vm4, %v14306_v62, %v14312_v14  ;;  %14632 = vmatprep.mubr.bf16.mxu1 %v14411_v46  ;;  %v14399_v38 = vsel %vm841_vm6, %v14394_v45, %v14398_v59  ;;  %v14747_v35 = vrot.slane %v28432_v13, 4  ;;  %v14746_v15 = vrot.slane %v14695_v41, 4  ;;  %v22755_v42 = vld [vmem:[%s29493_s9 + $0x364] ss:$8 sps:$4 sm:$0xff]  }
 0xec7   :  { %14314 = vst [vmem:[#allocation5 + $0x38] sm:$0x3] %v14313_v48  ;;  %14633 = vmatmul.mubr.bf16.vlgmr.msra.gmra.mrb[232].mxu1 %v14399_v38  ;;  %v15383_v18 = vor.u32 %v14420_v17, %v14410_v61  ;;  %v15371_v12 = vor.u32 %v14412_v58, %v14398_v59  ;;  %v16383_v29 = vshrl.u32 %v14695_v41, 16  ;;  %v16386_v25 = vshll.u32 %v14695_v41, 16  ;;  %v22758_v45 = vld [vmem:[%s29493_s9 + $0x374] ss:$8 sps:$4 sm:$0xff]  }
 0xec8   :  { %14924 = vmatpush1.bf16.msra.mxu1 %v22735_v50  ;;  %v14748_v30 = vsel %vm1262_vm11, %v14746_v15, %v14747_v35  ;;  %v16390_v2 = vrot.slane %v14420_v17, 4  ;;  %v16391_v33 = vrot.slane %v14408_v52, 5  ;;  %v16371_v10 = vshrl.u32 %v28505_v63, 16  ;;  %v22753_v52 = vld [vmem:[%s29493_s9 + $0x360] ss:$8 sps:$4 sm:$0xff]  }
 0xec9   :  { %14925 = vmatprep.subr.bf16.mxu1 %v22740_v1  ;;  %v16374_v37 = vshll.u32 %v28505_v63, 16  ;;  %v16378_v8 = vrot.slane %v14412_v58, 4  ;;  %v16385_v32 = vrot.slane %v16383_v29, 4  ;;  %v16388_v14 = vrot.slane %v16386_v25, 5  ;;  %v22764_v41 = vld [vmem:[%s29493_s9 + $0x394] ss:$8 sps:$4 sm:$0xff]  }
 0xeca   :  { %v16379_v60 = vrot.slane %v14396_v54, 5  ;;  %v16392_v49 = vor.u32 %v16391_v33, %v16390_v2  ;;  %v16373_v62 = vrot.slane %v16371_v10, 4  ;;  %v22770_v15 = vld [vmem:[%s29493_s9 + $0x3b4] ss:$8 sps:$4 sm:$0xff]   ;;  %v22774_v29 = vld [vmem:[%s29493_s9 + $0x3d0] ss:$8 sps:$4 sm:$0xff]  }
 0xecb   :  { %v28467_v21 = vld [vmem:[#allocation5 + $0x20] sm:$0xff]  ;;  %v16376_v50 = vrot.slane %v16374_v37, 5  ;;  %v16389_v59 = vor.u32 %v16388_v14, %v16385_v32  ;;  %v22782_v33 = vld [vmem:[%s29493_s9 + $0x3f4] ss:$8 sps:$4 sm:$0xff]   ;;  %v22780_v10 = vld [vmem:[%s29493_s9 + $0x3f0] ss:$8 sps:$4 sm:$0xff]  }
 0xecc   :  { %14926 = vmatpush1.bf16.msra.mxu1 %v22738_v11  ;;  %v28472_v20 = vld [vmem:[#allocation5 + $0x28] sm:$0xff]  ;;  %v14416_v19 = vshll.u32 %v28467_v21, 16  ;;  %v14428_v56 = vshrl.u32 %v28467_v21, 16  ;;  %v16380_v44 = vor.u32 %v16379_v60, %v16378_v8  ;;  %v14744_v8 = vrot.slane %v28435_v24, 4 }
 0xecd   :  { %14927 = vmatprep.subr.bf16.mxu1 %v22743_v0  ;;  %v14424_v47 = vshll.u32 %v28472_v20, 16  ;;  %v14431_v51 = vshrl.u32 %v28472_v20, 16  ;;  %v28525_v23 = vld [vmem:[#allocation5 + $0x30] sm:$0xf]  ;;  %v16377_v1 = vor.u32 %v16376_v50, %v16373_v62  ;;  %v28540_v58 = vsel %vm3756_vm8, %v16389_v59, %v16392_v49  ;;  %v22779_v25 = vld [vmem:[%s29493_s9 + $0x3e4] ss:$8 sps:$4 sm:$0xff]  }
 0xece   :  { %v14418_v6 = vrot.slane %v14416_v19, 1  ;;  %v16394_v5 = vrot.slane %v14428_v56, 4  ;;  %v16395_v16 = vrot.slane %v14416_v19, 5  ;;  %v28518_v4 = vld [vmem:[#allocation5 + $0x38] sm:$0xf]  ;;  %v16403_v38 = vshrl.u32 %v28525_v23, 16 }
 0xecf   :  { %v14426_v3 = vrot.slane %v14424_v47, 1  ;;  %v16398_v61 = vrot.slane %v14431_v51, 4  ;;  %v16399_v46 = vrot.slane %v14424_v47, 5  ;;  %v16412_v54 = vshrl.u32 %v28518_v4, 16  ;;  %v22761_v47 = vld [vmem:[%s29493_s9 + $0x384] ss:$8 sps:$4 sm:$0xff]  }
 0xed0   :  { %14928 = vmatpush1.bf16.msra.mxu1 %v22741_v22  ;;  %v28494_v39 = vsel %vm841_vm6, %v15371_v12, %v14418_v6  ;;  %v16396_v57 = vor.u32 %v16395_v16, %v16394_v5  ;;  %v28513_v7 = vor.u32 %v14428_v56, %v14418_v6  ;;  %v16415_v48 = vshll.u32 %v28518_v4, 16  ;;  %v22756_v12 = vld [vmem:[%s29493_s9 + $0x370] ss:$8 sps:$4 sm:$0xff]   ;;  %v22767_v16 = vld [vmem:[%s29493_s9 + $0x3a4] ss:$8 sps:$4 sm:$0xff]  }
 0xed1   :  { %14929 = vmatprep.subr.bf16.mxu1 %v22746_v28  ;;  %v28485_v27 = vsel %vm841_vm6, %v15383_v18, %v14426_v3  ;;  %v28487_v40 = vor.u32 %v14431_v51, %v14426_v3  ;;  %v16406_v17 = vshll.u32 %v28525_v23, 16  ;;  %v16400_v11 = vor.u32 %v16399_v46, %v16398_v61  ;;  %v22777_v2 = vld [vmem:[%s29493_s9 + $0x3e0] ss:$8 sps:$4 sm:$0xff]   ;;  %v22785_v37 = vld [vmem:[%s29493_s9 + $0x504] ss:$8 sps:$4 sm:$0xff]  }
 0xed2   :  { %14642 = vmatprep.mubr.bf16.mxu1 %v28485_v27  ;;  %v28543_v0 = vsel %vm3756_vm8, %v16380_v44, %v16396_v57  ;;  %v16414_v18 = vrot.slane %v16412_v54, 4  ;;  %v28549_v22 = vsel %vm3756_vm8, %v16377_v1, %v16380_v44  ;;  %v16417_v19 = vrot.slane %v16415_v48, 5  ;;  %v22783_v60 = vld [vmem:[%s29493_s9 + $0x500] ss:$8 sps:$4 sm:$0xff]   ;;  %v22788_v61 = vld [vmem:[%s29493_s9 + $0x514] ss:$8 sps:$4 sm:$0xff]  }
 0xed3   :  { %14643 = vmatmul.mubr.bf16.gmra.mrb[236].mxu1 %v28494_v39  ;;  %v16405_v28 = vrot.slane %v16403_v38, 4  ;;  %v28555_v6 = vsel %vm3756_vm8, %v16392_v49, %v16400_v11  ;;  %v16408_v3 = vrot.slane %v16406_v17, 5  ;;  %v14751_v32 = vrot.slane %v28472_v20, 4  ;;  %v14701_v62 = vld [vmem:[#allocation5 + $0x38] sm:$0x7] }
 0xed4   :  { %14930 = vmatpush1.bf16.msra.mxu1 %v22744_v34  ;;  %14648 = vmatprep.mubr.bf16.mxu1 %v28487_v40  ;;  %v16418_v51 = vor.u32 %v16417_v19, %v16414_v18  ;;  %v22759_v34 = vld [vmem:[%s29493_s9 + $0x380] ss:$8 sps:$4 sm:$0xff]   ;;  %v14743_v14 = vrot.slane %v28505_v63, 4  ;;  %v22786_v63 = vld [vmem:[%s29493_s9 + $0x510] ss:$8 sps:$4 sm:$0xff]   ;;  %v14755_v59 = vrot.slane %v14701_v62, 4 }
 0xed5   :  { %14931 = vmatprep.subr.bf16.mxu1 %v22749_v55  ;;  %v16409_v56 = vor.u32 %v16408_v3, %v16405_v28  ;;  %v14752_v49 = vsel %vm1262_vm11, %v14747_v35, %v14751_v32  ;;  %v22791_v50 = vld [vmem:[%s29493_s9 + $0x524] ss:$8 sps:$4 sm:$0xff]   ;;  %v22789_v35 = vld [vmem:[%s29493_s9 + $0x520] ss:$8 sps:$4 sm:$0xff]   ;;  %v22794_v44 = vld [vmem:[%s29493_s9 + $0x534] ss:$8 sps:$4 sm:$0xff]  }
 0xed6   :  { %v28561_v55 = vsel %vm3756_vm8, %v16400_v11, %v16418_v51  ;;  %v14756_v54 = vsel %vm1262_vm11, %v14751_v32, %v14755_v59  ;;  %v14700_v1 = vld [vmem:[#allocation5 + $0x30] sm:$0x7]  ;;  %v22797_v38 = vld [vmem:[%s29493_s9 + $0x544] ss:$8 sps:$4 sm:$0xff]   ;;  %v15060_v18 = vrot.slane %v28432_v13, 5 }
 0xed7   :  { %v28567_v5 = vsel %vm3756_vm8, %v16396_v57, %v16409_v56  ;;  %v22768_v57 = vld [vmem:[%s29493_s9 + $0x3b0] ss:$8 sps:$4 sm:$0xff]   ;;  %v14753_v17 = vrot.slane %v14700_v1, 4  ;;  %v15018_v11 = vld [vmem:[#allocation5 + $0x8] sm:$0xe0] }
 0xed8   :  { %14932 = vmatpush1.bf16.msra.mxu1 %v22747_v36  ;;  %v22762_v36 = vld [vmem:[%s29493_s9 + $0x390] ss:$8 sps:$4 sm:$0xff]   ;;  %v15059_v19 = vrot.slane %v15018_v11, 5  ;;  %v22800_v28 = vld [vmem:[%s29493_s9 + $0x554] ss:$8 sps:$4 sm:$0xff]  }
 0xed9   :  { %14933 = vmatprep.subr.bf16.mxu1 %v22752_v9  ;;  %v22765_v9 = vld [vmem:[%s29493_s9 + $0x3a0] ss:$8 sps:$4 sm:$0xff]   ;;  %v22792_v48 = vld [vmem:[%s29493_s9 + $0x530] ss:$8 sps:$4 sm:$0xff]   ;;  %v22803_v56 = vld [vmem:[%s29493_s9 + $0x564] ss:$8 sps:$4 sm:$0xff]  }
 0xeda   :  { %v15061_v3 = vsel %vm668_vm3, %v15059_v19, %v15060_v18  ;;  %v22798_v51 = vld [vmem:[%s29493_s9 + $0x550] ss:$8 sps:$4 sm:$0xff]   ;;  %v22830_v32 = vld [vmem:[%s29493_s9 + $0x5f4] ss:$8 sps:$4 sm:$0xff]   ;;  %v22831_v62 = vld [vmem:[%s29493_s9 + $0x700] ss:$8 sps:$4 sm:$0xff]  }
 0xedb   :  { %14649 = vmatmul.mubr.bf16.gmra.mrb[240].mxu1 %v28513_v7  ;;  %v22834_v59 = vld [vmem:[%s29493_s9 + $0x710] ss:$8 sps:$4 sm:$0xff]   ;;  %v22837_v13 = vld [vmem:[%s29493_s9 + $0x720] ss:$8 sps:$4 sm:$0xff]   ;;  %v22851_v19 = vld [vmem:[%s29493_s9 + $0x764] ss:$8 sps:$4 sm:$0xff]  }
 0xedc   :  { %14934 = vmatpush1.bf16.msra.mxu1 %v22750_v53  ;;  %14955 = vmatprep.mubr.bf16.mxu1 %v14748_v30  ;;  %v22773_v53 = vld [vmem:[%s29493_s9 + $0x3c4] ss:$8 sps:$4 sm:$0xff]   ;;  %v22771_v30 = vld [vmem:[%s29493_s9 + $0x3c0] ss:$8 sps:$4 sm:$0xff]  }
 0xedd   :  { %14935 = vmatprep.subr.bf16.mxu1 %v22755_v42  ;;  %v22776_v42 = vld [vmem:[%s29493_s9 + $0x3d4] ss:$8 sps:$4 sm:$0xff]   ;;  %v22843_v11 = vld [vmem:[%s29493_s9 + $0x740] ss:$8 sps:$4 sm:$0xff]  }
 0xee0   :  { %14936 = vmatpush1.bf16.msra.mxu1 %v22753_v52  ;;  %v14745_v52 = vsel %vm1262_vm11, %v14743_v14, %v14744_v8  ;;  %v22828_v14 = vld [vmem:[%s29493_s9 + $0x5f0] ss:$8 sps:$4 sm:$0xff]  }
 0xee1   :  { %14937 = vmatprep.subr.bf16.mxu1 %v22758_v45  ;;  %v14749_v45 = vrot.slane %v28467_v21, 4 }
 0xee3   :  { %v14750_v46 = vsel %vm1262_vm11, %v14744_v8, %v14749_v45  ;;  %v22825_v8 = vld [vmem:[%s29493_s9 + $0x5e0] ss:$8 sps:$4 sm:$0xff]  }
 0xee4   :  { %14938 = vmatpush1.bf16.msra.mxu1 %v22756_v12  ;;  %v22795_v12 = vld [vmem:[%s29493_s9 + $0x540] ss:$8 sps:$4 sm:$0xff]  }
 0xee5   :  { %14939 = vmatprep.subr.bf16.mxu1 %v22761_v47  ;;  %v14754_v47 = vsel %vm1262_vm11, %v14749_v45, %v14753_v17  ;;  %v15066_v17 = vrot.slane %v28525_v23, 5  ;;  %v22846_v23 = vld [vmem:[%s29493_s9 + $0x750] ss:$8 sps:$4 sm:$0xff]  }
 0xee8   :  { %14940 = vmatpush1.bf16.msra.mxu1 %v22759_v34  ;;  %v22801_v34 = vld [vmem:[%s29493_s9 + $0x560] ss:$8 sps:$4 sm:$0xff]  }
 0xee9   :  { %14941 = vmatprep.subr.bf16.mxu1 %v22764_v41  ;;  %v22806_v41 = vld [vmem:[%s29493_s9 + $0x574] ss:$8 sps:$4 sm:$0xff]  }
 0xeec   :  { %14942 = vmatpush1.bf16.msra.mxu1 %v22762_v36  ;;  %v22804_v36 = vld [vmem:[%s29493_s9 + $0x570] ss:$8 sps:$4 sm:$0xff]  }
 0xeed   :  { %14943 = vmatprep.subr.bf16.mxu1 %v22767_v16  ;;  %v22809_v16 = vld [vmem:[%s29493_s9 + $0x584] ss:$8 sps:$4 sm:$0xff]  }
 0xef0   :  { %14944 = vmatpush1.bf16.msra.mxu1 %v22765_v9  ;;  %v22807_v9 = vld [vmem:[%s29493_s9 + $0x580] ss:$8 sps:$4 sm:$0xff]  }
 0xef1   :  { %14945 = vmatprep.subr.bf16.mxu1 %v22770_v15  ;;  %v22812_v15 = vld [vmem:[%s29493_s9 + $0x594] ss:$8 sps:$4 sm:$0xff]  }
 0xef4   :  { %14946 = vmatpush1.bf16.msra.mxu1 %v22768_v57  ;;  %v22810_v57 = vld [vmem:[%s29493_s9 + $0x590] ss:$8 sps:$4 sm:$0xff]  }
 0xef5   :  { %14947 = vmatprep.subr.bf16.mxu1 %v22773_v53  ;;  %v22815_v53 = vld [vmem:[%s29493_s9 + $0x5a4] ss:$8 sps:$4 sm:$0xff]  }
 0xef8   :  { %14948 = vmatpush1.bf16.msra.mxu1 %v22771_v30  ;;  %v22813_v30 = vld [vmem:[%s29493_s9 + $0x5a0] ss:$8 sps:$4 sm:$0xff]  }
 0xef9   :  { %14949 = vmatprep.subr.bf16.mxu1 %v22776_v42  ;;  %v22818_v42 = vld [vmem:[%s29493_s9 + $0x5b4] ss:$8 sps:$4 sm:$0xff]  }
 0xefc   :  { %14950 = vmatpush1.bf16.msra.mxu1 %v22774_v29  ;;  %v22816_v29 = vld [vmem:[%s29493_s9 + $0x5b0] ss:$8 sps:$4 sm:$0xff]  }
 0xefd   :  { %14951 = vmatprep.subr.bf16.mxu1 %v22779_v25  ;;  %v22821_v25 = vld [vmem:[%s29493_s9 + $0x5c4] ss:$8 sps:$4 sm:$0xff]  }
 0xf00   :  { %14952 = vmatpush1.bf16.msra.mxu1 %v22777_v2  ;;  %v22819_v2 = vld [vmem:[%s29493_s9 + $0x5c0] ss:$8 sps:$4 sm:$0xff]  }
 0xf01   :  { %14953 = vmatprep.subr.bf16.mxu1 %v22782_v33  ;;  %v22824_v33 = vld [vmem:[%s29493_s9 + $0x5d4] ss:$8 sps:$4 sm:$0xff]  }
 0xf04   :  { %14954 = vmatpush1.bf16.msra.mxu1 %v22780_v10  ;;  %v22822_v10 = vld [vmem:[%s29493_s9 + $0x5d0] ss:$8 sps:$4 sm:$0xff]  }
 0xf05   :  { %15236 = vmatprep.subr.bf16.mxu1 %v22785_v37  ;;  %v22827_v37 = vld [vmem:[%s29493_s9 + $0x5e4] ss:$8 sps:$4 sm:$0xff]  }
 0xf07   :  { %14956 = vmatmul.mubr.bf16.vlgmr.msra.gmra.mrb[232].mxu1 %v14745_v52  ;;  %v15057_v52 = vrot.slane %v28435_v24, 5 }
 0xf08   :  { %14965 = vmatprep.mubr.bf16.mxu1 %v14752_v49  ;;  %15237 = vmatpush1.bf16.msra.mxu1 %v22783_v60  ;;  %v15017_v60 = vld [vmem:[#allocation5] sm:$0xe0]  ;;  %v15064_v49 = vrot.slane %v28472_v20, 5 }
 0xf09   :  { %15238 = vmatprep.subr.bf16.mxu1 %v22788_v61  ;;  %v22833_v61 = vld [vmem:[%s29493_s9 + $0x704] ss:$8 sps:$4 sm:$0xff]  }
 0xf0a   :  { %v15065_v24 = vsel %vm668_vm3, %v15060_v18, %v15064_v49  ;;  %v22848_v18 = vld [vmem:[%s29493_s9 + $0x754] ss:$8 sps:$4 sm:$0xff]  }
 0xf0c   :  { %15239 = vmatpush1.bf16.msra.mxu1 %v22786_v63  ;;  %v15056_v63 = vrot.slane %v15017_v60, 5  ;;  %v22884_v60 = vld [vmem:[%s29493_s9 + $0x814] ss:$8 sps:$4 sm:$0xff]  }
 0xf0d   :  { %15240 = vmatprep.subr.bf16.mxu1 %v22791_v50  ;;  %v22836_v50 = vld [vmem:[%s29493_s9 + $0x714] ss:$8 sps:$4 sm:$0xff]  }
 0xf0e   :  { %v15058_v45 = vsel %vm668_vm3, %v15056_v63, %v15057_v52  ;;  %v22887_v63 = vld [vmem:[%s29493_s9 + $0x824] ss:$8 sps:$4 sm:$0xff]  }
 0xf0f   :  { %14966 = vmatmul.mubr.bf16.gmra.mrb[244].mxu1 %v14750_v46  ;;  %v15068_v46 = vrot.slane %v28518_v4, 5  ;;  %v22840_v4 = vld [vmem:[%s29493_s9 + $0x730] ss:$8 sps:$4 sm:$0xff]  }
 0xf10   :  { %14971 = vmatprep.mubr.bf16.mxu1 %v14756_v54  ;;  %15241 = vmatpush1.bf16.msra.mxu1 %v22789_v35  ;;  %v22839_v35 = vld [vmem:[%s29493_s9 + $0x724] ss:$8 sps:$4 sm:$0xff]   ;;  %v22842_v54 = vld [vmem:[%s29493_s9 + $0x734] ss:$8 sps:$4 sm:$0xff]  }
 0xf11   :  { %15242 = vmatprep.subr.bf16.mxu1 %v22794_v44  ;;  %v15062_v44 = vrot.slane %v28467_v21, 5 }
 0xf13   :  { %v15063_v1 = vsel %vm668_vm3, %v15057_v52, %v15062_v44 }
 0xf14   :  { %15243 = vmatpush1.bf16.msra.mxu1 %v22792_v48  ;;  %v15069_v48 = vsel %vm668_vm3, %v15064_v49, %v15068_v46  ;;  %v22882_v49 = vld [vmem:[%s29493_s9 + $0x810] ss:$8 sps:$4 sm:$0xff]  }
 0xf15   :  { %15244 = vmatprep.subr.bf16.mxu1 %v22797_v38  ;;  %v22845_v38 = vld [vmem:[%s29493_s9 + $0x744] ss:$8 sps:$4 sm:$0xff]  }
 0xf17   :  { %14972 = vmatmul.mubr.bf16.gmra.mrb[240].mxu1 %v14754_v47  ;;  %v22854_v47 = vld [vmem:[%s29493_s9 + $0x774] ss:$8 sps:$4 sm:$0xff]  }
 0xf18   :  { %15245 = vmatpush1.bf16.msra.mxu1 %v22795_v12  ;;  %15268 = vmatprep.mubr.bf16.mxu1 %v15061_v3  ;;  %v15067_v12 = vsel %vm668_vm3, %v15062_v44, %v15066_v17  ;;  %v22857_v3 = vld [vmem:[%s29493_s9 + $0x784] ss:$8 sps:$4 sm:$0xff]   ;;  %v15637_v44 = vld [vmem:[#allocation5 + $0x18] sm:$0xfe]  ;;  %v22897_v17 = vld [vmem:[%s29493_s9 + $0x860] ss:$8 sps:$4 sm:$0xff]  }
 0xf19   :  { %15246 = vmatprep.subr.bf16.mxu1 %v22800_v28  ;;  %v22849_v28 = vld [vmem:[%s29493_s9 + $0x760] ss:$8 sps:$4 sm:$0xff]  }
 0xf1c   :  { %15247 = vmatpush1.bf16.msra.mxu1 %v22798_v51  ;;  %v22855_v51 = vld [vmem:[%s29493_s9 + $0x780] ss:$8 sps:$4 sm:$0xff]  }
 0xf1d   :  { %15248 = vmatprep.subr.bf16.mxu1 %v22803_v56  ;;  %v22860_v56 = vld [vmem:[%s29493_s9 + $0x794] ss:$8 sps:$4 sm:$0xff]  }
 0xf20   :  { %15249 = vmatpush1.bf16.msra.mxu1 %v22801_v34  ;;  %v22858_v34 = vld [vmem:[%s29493_s9 + $0x790] ss:$8 sps:$4 sm:$0xff]  }
 0xf21   :  { %15250 = vmatprep.subr.bf16.mxu1 %v22806_v41  ;;  %v22863_v41 = vld [vmem:[%s29493_s9 + $0x7a4] ss:$8 sps:$4 sm:$0xff]  }
 0xf24   :  { %15251 = vmatpush1.bf16.msra.mxu1 %v22804_v36  ;;  %v22861_v36 = vld [vmem:[%s29493_s9 + $0x7a0] ss:$8 sps:$4 sm:$0xff]  }
 0xf25   :  { %15252 = vmatprep.subr.bf16.mxu1 %v22809_v16  ;;  %v22866_v16 = vld [vmem:[%s29493_s9 + $0x7b4] ss:$8 sps:$4 sm:$0xff]  }
 0xf28   :  { %15253 = vmatpush1.bf16.msra.mxu1 %v22807_v9  ;;  %v22864_v9 = vld [vmem:[%s29493_s9 + $0x7b0] ss:$8 sps:$4 sm:$0xff]  }
 0xf29   :  { %15254 = vmatprep.subr.bf16.mxu1 %v22812_v15  ;;  %v22869_v15 = vld [vmem:[%s29493_s9 + $0x7c4] ss:$8 sps:$4 sm:$0xff]  }
 0xf2c   :  { %15255 = vmatpush1.bf16.msra.mxu1 %v22810_v57  ;;  %v22867_v57 = vld [vmem:[%s29493_s9 + $0x7c0] ss:$8 sps:$4 sm:$0xff]  }
 0xf2d   :  { %15256 = vmatprep.subr.bf16.mxu1 %v22815_v53  ;;  %v22872_v53 = vld [vmem:[%s29493_s9 + $0x7d4] ss:$8 sps:$4 sm:$0xff]  }
 0xf30   :  { %15257 = vmatpush1.bf16.msra.mxu1 %v22813_v30  ;;  %v22870_v30 = vld [vmem:[%s29493_s9 + $0x7d0] ss:$8 sps:$4 sm:$0xff]  }
 0xf31   :  { %15258 = vmatprep.subr.bf16.mxu1 %v22818_v42  ;;  %v22875_v42 = vld [vmem:[%s29493_s9 + $0x7e4] ss:$8 sps:$4 sm:$0xff]  }
 0xf34   :  { %15259 = vmatpush1.bf16.msra.mxu1 %v22816_v29  ;;  %v22873_v29 = vld [vmem:[%s29493_s9 + $0x7e0] ss:$8 sps:$4 sm:$0xff]  }
 0xf35   :  { %15260 = vmatprep.subr.bf16.mxu1 %v22821_v25  ;;  %v28822_v25 = vld [vmem:[#allocation5 + $0x38] sm:$0xff] }
 0xf38   :  { %15261 = vmatpush1.bf16.msra.mxu1 %v22819_v2  ;;  %v22878_v2 = vld [vmem:[%s29493_s9 + $0x7f4] ss:$8 sps:$4 sm:$0xff]  }
 0xf39   :  { %15262 = vmatprep.subr.bf16.mxu1 %v22824_v33  ;;  %v15401_v33 = vshll.u32 %v28822_v25, 16 }
 0xf3c   :  { %15263 = vmatpush1.bf16.msra.mxu1 %v22822_v10  ;;  %v22876_v10 = vld [vmem:[%s29493_s9 + $0x7f0] ss:$8 sps:$4 sm:$0xff]  }
 0xf3d   :  { %15264 = vmatprep.subr.bf16.mxu1 %v22827_v37  ;;  %v22881_v37 = vld [vmem:[%s29493_s9 + $0x804] ss:$8 sps:$4 sm:$0xff]  }
 0xf40   :  { %15265 = vmatpush1.bf16.msra.mxu1 %v22825_v8  ;;  %v15403_v8 = vrot.slane %v15401_v33, 1  ;;  %v22929_v33 = vld [vmem:[%s29493_s9 + $0x4] ss:$8 sps:$4 sm:$0xff]  }
 0xf41   :  { %15266 = vmatprep.subr.bf16.mxu1 %v22830_v32  ;;  %v28834_v32 = vld [vmem:[#allocation5 + $0x30] sm:$0xff] }
 0xf42   :  { %v15404_v52 = vsel %vm841_vm6, %v28487_v40, %v15403_v8  ;;  %v22890_v40 = vld [vmem:[%s29493_s9 + $0x834] ss:$8 sps:$4 sm:$0xff]   ;;  %v15405_v46 = vshrl.u32 %v28834_v32, 16 }
 0xf44   :  { %15267 = vmatpush1.bf16.msra.mxu1 %v22828_v14  ;;  %v22879_v14 = vld [vmem:[%s29493_s9 + $0x800] ss:$8 sps:$4 sm:$0xff]  }
 0xf45   :  { %15577 = vmatprep.subr.bf16.mxu1 %v22833_v61  ;;  %v15393_v61 = vshll.u32 %v28834_v32, 16 }
 0xf47   :  { %15269 = vmatmul.mubr.bf16.vlgmr.msra.gmra.mrb[232].mxu1 %v15058_v45 }
 0xf48   :  { %15278 = vmatprep.mubr.bf16.mxu1 %v15065_v24  ;;  %15578 = vmatpush1.bf16.msra.mxu1 %v22831_v62  ;;  %v15395_v62 = vrot.slane %v15393_v61, 1 }
 0xf49   :  { %15579 = vmatprep.subr.bf16.mxu1 %v22836_v50  ;;  %v15408_v50 = vshrl.u32 %v28822_v25, 16 }
 0xf4a   :  { %v15396_v45 = vsel %vm841_vm6, %v28513_v7, %v15395_v62  ;;  %v22891_v7 = vld [vmem:[%s29493_s9 + $0x840] ss:$8 sps:$4 sm:$0xff]  }
 0xf4b   :  { %v15410_v24 = vor.u32 %v15408_v50, %v15403_v8  ;;  %v22941_v50 = vld [vmem:[%s29493_s9 + $0x44] ss:$8 sps:$4 sm:$0xff]  }
 0xf4c   :  { %15580 = vmatpush1.bf16.msra.mxu1 %v22834_v59  ;;  %v22888_v59 = vld [vmem:[%s29493_s9 + $0x830] ss:$8 sps:$4 sm:$0xff]  }
 0xf4d   :  { %15581 = vmatprep.subr.bf16.mxu1 %v22839_v35  ;;  %v22893_v35 = vld [vmem:[%s29493_s9 + $0x844] ss:$8 sps:$4 sm:$0xff]  }
 0xf4f   :  { %15279 = vmatmul.mubr.bf16.gmra.mrb[248].mxu1 %v15063_v1  ;;  %v15678_v1 = vrot.slane %v15637_v44, 1  ;;  %v22950_v44 = vld [vmem:[%s29493_s9 + $0x74] ss:$8 sps:$4 sm:$0xff]  }
 0xf50   :  { %15284 = vmatprep.mubr.bf16.mxu1 %v15069_v48  ;;  %15582 = vmatpush1.bf16.msra.mxu1 %v22837_v13  ;;  %v28869_v13 = vrot.slane %v28472_v20, 1  ;;  %v22896_v48 = vld [vmem:[%s29493_s9 + $0x854] ss:$8 sps:$4 sm:$0xff]   ;;  %v22894_v20 = vld [vmem:[%s29493_s9 + $0x850] ss:$8 sps:$4 sm:$0xff]  }
 0xf51   :  { %15583 = vmatprep.subr.bf16.mxu1 %v22842_v54  ;;  %v15407_v54 = vor.u32 %v15405_v46, %v15395_v62  ;;  %v22938_v62 = vld [vmem:[%s29493_s9 + $0x34] ss:$8 sps:$4 sm:$0xff]   ;;  %v22953_v46 = vld [vmem:[%s29493_s9 + $0x84] ss:$8 sps:$4 sm:$0xff]  }
 0xf54   :  { %15584 = vmatpush1.bf16.msra.mxu1 %v22840_v4  ;;  %v15680_v4 = vsel %vm3445_vm10, %v15678_v1, %v28869_v13 }
 0xf55   :  { %15585 = vmatprep.subr.bf16.mxu1 %v22845_v38  ;;  %v22899_v38 = vld [vmem:[%s29493_s9 + $0x864] ss:$8 sps:$4 sm:$0xff]  }
 0xf57   :  { %15285 = vmatmul.mubr.bf16.gmra.mrb[240].mxu1 %v15067_v12  ;;  %v22905_v12 = vld [vmem:[%s29493_s9 + $0x884] ss:$8 sps:$4 sm:$0xff]  }
 0xf58   :  { %15586 = vmatpush1.bf16.msra.mxu1 %v22843_v11  ;;  %15609 = vmatprep.mubr.bf16.mxu1 %v28485_v27  ;;  %v22852_v27 = vld [vmem:[%s29493_s9 + $0x770] ss:$8 sps:$4 sm:$0xff]   ;;  %v22902_v11 = vld [vmem:[%s29493_s9 + $0x874] ss:$8 sps:$4 sm:$0xff]  }
 0xf59   :  { %15587 = vmatprep.subr.bf16.mxu1 %v22848_v18  ;;  %v22900_v18 = vld [vmem:[%s29493_s9 + $0x870] ss:$8 sps:$4 sm:$0xff]  }
 0xf5c   :  { %15588 = vmatpush1.bf16.msra.mxu1 %v22846_v23  ;;  %v22903_v23 = vld [vmem:[%s29493_s9 + $0x880] ss:$8 sps:$4 sm:$0xff]  }
 0xf5d   :  { %15589 = vmatprep.subr.bf16.mxu1 %v22851_v19  ;;  %v22908_v19 = vld [vmem:[%s29493_s9 + $0x894] ss:$8 sps:$4 sm:$0xff]  }
 0xf60   :  { %15590 = vmatpush1.bf16.msra.mxu1 %v22849_v28 }
 0xf61   :  { %15591 = vmatprep.subr.bf16.mxu1 %v22854_v47 }
 0xf64   :  { %15592 = vmatpush1.bf16.msra.mxu1 %v22852_v27 }
 0xf65   :  { %15593 = vmatprep.subr.bf16.mxu1 %v22857_v3  ;;  %v22906_v3 = vld [vmem:[%s29493_s9 + $0x890] ss:$8 sps:$4 sm:$0xff]  }
 0xf68   :  { %15594 = vmatpush1.bf16.msra.mxu1 %v22855_v51 }
 0xf69   :  { %15595 = vmatprep.subr.bf16.mxu1 %v22860_v56  ;;  %v22911_v56 = vld [vmem:[%s29493_s9 + $0x8a4] ss:$8 sps:$4 sm:$0xff]  }
 0xf6c   :  { %15596 = vmatpush1.bf16.msra.mxu1 %v22858_v34  ;;  %v22909_v34 = vld [vmem:[%s29493_s9 + $0x8a0] ss:$8 sps:$4 sm:$0xff]  }
 0xf6d   :  { %15597 = vmatprep.subr.bf16.mxu1 %v22863_v41  ;;  %v22914_v41 = vld [vmem:[%s29493_s9 + $0x8b4] ss:$8 sps:$4 sm:$0xff]  }
 0xf70   :  { %15598 = vmatpush1.bf16.msra.mxu1 %v22861_v36  ;;  %v22912_v36 = vld [vmem:[%s29493_s9 + $0x8b0] ss:$8 sps:$4 sm:$0xff]  }
 0xf71   :  { %15599 = vmatprep.subr.bf16.mxu1 %v22866_v16  ;;  %v22917_v16 = vld [vmem:[%s29493_s9 + $0x8c4] ss:$8 sps:$4 sm:$0xff]  }
 0xf74   :  { %15600 = vmatpush1.bf16.msra.mxu1 %v22864_v9  ;;  %v22915_v9 = vld [vmem:[%s29493_s9 + $0x8c0] ss:$8 sps:$4 sm:$0xff]  }
 0xf75   :  { %15601 = vmatprep.subr.bf16.mxu1 %v22869_v15  ;;  %v22920_v15 = vld [vmem:[%s29493_s9 + $0x8d4] ss:$8 sps:$4 sm:$0xff]  }
 0xf78   :  { %15602 = vmatpush1.bf16.msra.mxu1 %v22867_v57  ;;  %v22918_v57 = vld [vmem:[%s29493_s9 + $0x8d0] ss:$8 sps:$4 sm:$0xff]  }
 0xf79   :  { %15603 = vmatprep.subr.bf16.mxu1 %v22872_v53  ;;  %v22923_v53 = vld [vmem:[%s29493_s9 + $0x8e4] ss:$8 sps:$4 sm:$0xff]  }
 0xf7c   :  { %15604 = vmatpush1.bf16.msra.mxu1 %v22870_v30  ;;  %v22921_v30 = vld [vmem:[%s29493_s9 + $0x8e0] ss:$8 sps:$4 sm:$0xff]  }
 0xf7d   :  { %15605 = vmatprep.subr.bf16.mxu1 %v22875_v42  ;;  %v22926_v42 = vld [vmem:[%s29493_s9 + $0x8f4] ss:$8 sps:$4 sm:$0xff]  }
 0xf80   :  { %15606 = vmatpush1.bf16.msra.mxu1 %v22873_v29  ;;  %v22924_v29 = vld [vmem:[%s29493_s9 + $0x8f0] ss:$8 sps:$4 sm:$0xff]  }
 0xf81   :  { %15607 = vmatprep.subr.bf16.mxu1 %v22878_v2  ;;  %v15636_v2 = vld [vmem:[#allocation5 + $0x10] sm:$0xfe] }
 0xf82   :  { %v15675_v8 = vrot.slane %v15636_v2, 1  ;;  %v22984_v2 = vld [vmem:[%s29493_s9 + $0x230] ss:$8 sps:$4 sm:$0xff]  }
 0xf84   :  { %15608 = vmatpush1.bf16.msra.mxu1 %v22876_v10  ;;  %v28946_v10 = vrot.slane %v28467_v21, 1 }
 0xf85   :  { %15851 = vmatprep.subr.bf16.mxu1 %v22881_v37  ;;  %v15683_v37 = vrot.slane %v28822_v25, 1  ;;  %v22930_v25 = vld [vmem:[%s29493_s9 + $0x10] ss:$8 sps:$4 sm:$0xff]  }
 0xf86   :  { %v15677_v61 = vsel %vm3445_vm10, %v15675_v8, %v28946_v10 }
 0xf87   :  { %15610 = vmatmul.mubr.bf16.vlgmr.msra.gmra.mrb[232].mxu1 %v28494_v39  ;;  %v22885_v39 = vld [vmem:[%s29493_s9 + $0x820] ss:$8 sps:$4 sm:$0xff]   ;;  %v15684_v21 = vsel %vm3445_vm10, %v28869_v13, %v15683_v37 }
 0xf88   :  { %15619 = vmatprep.mubr.bf16.mxu1 %v15404_v52  ;;  %15852 = vmatpush1.bf16.msra.mxu1 %v22879_v14  ;;  %v22927_v14 = vld [vmem:[%s29493_s9] ss:$8 sps:$4 sm:$0xff]   ;;  %v22935_v52 = vld [vmem:[%s29493_s9 + $0x24] ss:$8 sps:$4 sm:$0xff]  }
 0xf89   :  { %15853 = vmatprep.subr.bf16.mxu1 %v22884_v60  ;;  %v22932_v60 = vld [vmem:[%s29493_s9 + $0x14] ss:$8 sps:$4 sm:$0xff]  }
 0xf8c   :  { %15854 = vmatpush1.bf16.msra.mxu1 %v22882_v49  ;;  %v15681_v49 = vrot.slane %v28834_v32, 1  ;;  %v22936_v32 = vld [vmem:[%s29493_s9 + $0x30] ss:$8 sps:$4 sm:$0xff]  }
 0xf8d   :  { %15855 = vmatprep.subr.bf16.mxu1 %v22887_v63  ;;  %v22933_v63 = vld [vmem:[%s29493_s9 + $0x20] ss:$8 sps:$4 sm:$0xff]  }
 0xf8f   :  { %15620 = vmatmul.mubr.bf16.gmra.mrb[252].mxu1 %v15396_v45  ;;  %v22944_v45 = vld [vmem:[%s29493_s9 + $0x54] ss:$8 sps:$4 sm:$0xff]  }
 0xf90   :  { %15625 = vmatprep.mubr.bf16.mxu1 %v15410_v24  ;;  %15856 = vmatpush1.bf16.msra.mxu1 %v22885_v39  ;;  %v15682_v39 = vsel %vm3445_vm10, %v28946_v10, %v15681_v49  ;;  %v22942_v24 = vld [vmem:[%s29493_s9 + $0x50] ss:$8 sps:$4 sm:$0xff]  }
 0xf91   :  { %15857 = vmatprep.subr.bf16.mxu1 %v22890_v40  ;;  %v22939_v40 = vld [vmem:[%s29493_s9 + $0x40] ss:$8 sps:$4 sm:$0xff]  }
 0xf94   :  { %15858 = vmatpush1.bf16.msra.mxu1 %v22888_v59  ;;  %v22947_v59 = vld [vmem:[%s29493_s9 + $0x64] ss:$8 sps:$4 sm:$0xff]  }
 0xf95   :  { %15859 = vmatprep.subr.bf16.mxu1 %v22893_v35  ;;  %v22945_v35 = vld [vmem:[%s29493_s9 + $0x60] ss:$8 sps:$4 sm:$0xff]  }
 0xf97   :  { %15626 = vmatmul.mubr.bf16.gmra.mrb[240].mxu1 %v15407_v54 }
 0xf98   :  { %15860 = vmatpush1.bf16.msra.mxu1 %v22891_v7  ;;  %15883 = vmatprep.mubr.bf16.mxu1 %v15680_v4 }
 0xf99   :  { %15861 = vmatprep.subr.bf16.mxu1 %v22896_v48  ;;  %v22951_v48 = vld [vmem:[%s29493_s9 + $0x80] ss:$8 sps:$4 sm:$0xff]  }
 0xf9c   :  { %15862 = vmatpush1.bf16.msra.mxu1 %v22894_v20  ;;  %v22956_v20 = vld [vmem:[%s29493_s9 + $0x94] ss:$8 sps:$4 sm:$0xff]  }
 0xf9d   :  { %15863 = vmatprep.subr.bf16.mxu1 %v22899_v38  ;;  %v22954_v38 = vld [vmem:[%s29493_s9 + $0x90] ss:$8 sps:$4 sm:$0xff]  }
 0xfa0   :  { %15864 = vmatpush1.bf16.msra.mxu1 %v22897_v17  ;;  %v22959_v17 = vld [vmem:[%s29493_s9 + $0xa4] ss:$8 sps:$4 sm:$0xff]  }
 0xfa1   :  { %15865 = vmatprep.subr.bf16.mxu1 %v22902_v11  ;;  %v22957_v11 = vld [vmem:[%s29493_s9 + $0xa0] ss:$8 sps:$4 sm:$0xff]  }
 0xfa4   :  { %15866 = vmatpush1.bf16.msra.mxu1 %v22900_v18  ;;  %v22962_v18 = vld [vmem:[%s29493_s9 + $0xb4] ss:$8 sps:$4 sm:$0xff]  }
 0xfa5   :  { %15867 = vmatprep.subr.bf16.mxu1 %v22905_v12  ;;  %v22960_v12 = vld [vmem:[%s29493_s9 + $0xb0] ss:$8 sps:$4 sm:$0xff]  }
 0xfa6   :  { %v14644_v28 = vpop.f32.mrb[236].mxu1 }
 0xfa7   :  { %v14645_v47 = vpop.f32.mrb[237].mxu1  ;;  %v22968_v28 = vld [vmem:[%s29493_s9 + $0xd4] ss:$8 sps:$4 sm:$0xff]  }
 0xfa8   :  { %15868 = vmatpush1.bf16.msra.mxu1 %v22903_v23  ;;  %v14646_v27 = vpop.f32.mrb[238].mxu1  ;;  %v22965_v23 = vld [vmem:[%s29493_s9 + $0xc4] ss:$8 sps:$4 sm:$0xff]   ;;  %v22966_v47 = vld [vmem:[%s29493_s9 + $0xd0] ss:$8 sps:$4 sm:$0xff]  }
 0xfa9   :  { %15869 = vmatprep.subr.bf16.mxu1 %v22908_v19  ;;  %v14647_v51 = vpop.f32.mrb[239].mxu1  ;;  %v22963_v19 = vld [vmem:[%s29493_s9 + $0xc0] ss:$8 sps:$4 sm:$0xff]   ;;  %v22971_v27 = vld [vmem:[%s29493_s9 + $0xe4] ss:$8 sps:$4 sm:$0xff]  }
 0xfaa   :  { %v22974_v51 = vld [vmem:[%s29493_s9 + $0xf4] ss:$8 sps:$4 sm:$0xff]  }
 0xfac   :  { %15870 = vmatpush1.bf16.msra.mxu1 %v22906_v3  ;;  %v22969_v3 = vld [vmem:[%s29493_s9 + $0xe0] ss:$8 sps:$4 sm:$0xff]  }
 0xfad   :  { %15871 = vmatprep.subr.bf16.mxu1 %v22911_v56  ;;  %v22972_v56 = vld [vmem:[%s29493_s9 + $0xf0] ss:$8 sps:$4 sm:$0xff]  }
 0xfb0   :  { %15872 = vmatpush1.bf16.msra.mxu1 %v22909_v34  ;;  %v22977_v34 = vld [vmem:[%s29493_s9 + $0x204] ss:$8 sps:$4 sm:$0xff]  }
 0xfb1   :  { %15873 = vmatprep.subr.bf16.mxu1 %v22914_v41  ;;  %v22975_v41 = vld [vmem:[%s29493_s9 + $0x200] ss:$8 sps:$4 sm:$0xff]  }
 0xfb4   :  { %15874 = vmatpush1.bf16.msra.mxu1 %v22912_v36  ;;  %v22980_v36 = vld [vmem:[%s29493_s9 + $0x214] ss:$8 sps:$4 sm:$0xff]  }
 0xfb5   :  { %15875 = vmatprep.subr.bf16.mxu1 %v22917_v16  ;;  %v23170_v16 = vld [vmem:[#allocation5] sm:$0xff] }
 0xfb8   :  { %15876 = vmatpush1.bf16.msra.mxu1 %v22915_v9  ;;  %v29059_v9 = vld [vmem:[#allocation5 + $0x18] sm:$0xff] }
 0xfb9   :  { %15877 = vmatprep.subr.bf16.mxu1 %v22920_v15  ;;  %v22978_v15 = vld [vmem:[%s29493_s9 + $0x210] ss:$8 sps:$4 sm:$0xff]   ;;  %v16139_v8 = vrot.slane %v29059_v9, 1 }
 0xfbc   :  { %15878 = vmatpush1.bf16.msra.mxu1 %v22918_v57  ;;  %v22983_v57 = vld [vmem:[%s29493_s9 + $0x224] ss:$8 sps:$4 sm:$0xff]  }
 0xfbd   :  { %15879 = vmatprep.subr.bf16.mxu1 %v22923_v53  ;;  %v22981_v53 = vld [vmem:[%s29493_s9 + $0x220] ss:$8 sps:$4 sm:$0xff]  }
 0xfc0   :  { %15880 = vmatpush1.bf16.msra.mxu1 %v22921_v30  ;;  %v22986_v30 = vld [vmem:[%s29493_s9 + $0x234] ss:$8 sps:$4 sm:$0xff]  }
 0xfc1   :  { %15881 = vmatprep.subr.bf16.mxu1 %v22926_v42  ;;  %v29074_v42 = vld [vmem:[#allocation5 + $0x10] sm:$0xff] }
 0xfc4   :  { %15882 = vmatpush1.bf16.msra.mxu1 %v22924_v29  ;;  %v14320_v29 = vld [vmem:[#allocation5 + $0x28] sm:$0x7f] }
 0xfc5   :  { %16070 = vmatprep.subr.bf16.mxu1 %v22929_v33  ;;  %v22989_v33 = vld [vmem:[%s29493_s9 + $0x244] ss:$8 sps:$4 sm:$0xff]  }
 0xfc7   :  { %15884 = vmatmul.mubr.bf16.vlgmr.msra.gmra.mrb[232].mxu1 %v15677_v61  ;;  %v22992_v61 = vld [vmem:[%s29493_s9 + $0x254] ss:$8 sps:$4 sm:$0xff]  }
 0xfc8   :  { %15893 = vmatprep.mubr.bf16.mxu1 %v15684_v21  ;;  %16071 = vmatpush1.bf16.msra.mxu1 %v22927_v14  ;;  %v22987_v14 = vld [vmem:[%s29493_s9 + $0x240] ss:$8 sps:$4 sm:$0xff]  }
 0xfc9   :  { %16072 = vmatprep.subr.bf16.mxu1 %v22932_v60  ;;  %v14319_v21 = vld [vmem:[#allocation5 + $0x20] sm:$0x7f] }
 0xfcc   :  { %16073 = vmatpush1.bf16.msra.mxu1 %v22930_v25 }
 0xfcd   :  { %16074 = vmatprep.subr.bf16.mxu1 %v22935_v52  ;;  %v22990_v52 = vld [vmem:[%s29493_s9 + $0x250] ss:$8 sps:$4 sm:$0xff]  }
 0xfcf   :  { %15894 = vmatmul.mubr.bf16.gmra.mrb[0].mxu1 %v15682_v39  ;;  %v22996_v39 = vld [vmem:[%s29493_s9 + $0x270] ss:$8 sps:$4 sm:$0xff]  }
 0xfd0   :  { %15899 = vmatprep.mubr.bf16.mxu1 %v15683_v37  ;;  %16075 = vmatpush1.bf16.msra.mxu1 %v22933_v63  ;;  %v14660_v37 = vld [vmem:[#allocation5 + $0x8] sm:$0xfe] }
 0xfd1   :  { %16076 = vmatprep.subr.bf16.mxu1 %v22938_v62  ;;  %v16138_v60 = vrot.slane %v14660_v37, 1  ;;  %v22993_v63 = vld [vmem:[%s29493_s9 + $0x260] ss:$8 sps:$4 sm:$0xff]   ;;  %v22998_v62 = vld [vmem:[%s29493_s9 + $0x274] ss:$8 sps:$4 sm:$0xff]  }
 0xfd3   :  { %v16140_v25 = vsel %vm3445_vm10, %v16138_v60, %v16139_v8  ;;  %v23047_v60 = vld [vmem:[%s29493_s9 + $0x480] ss:$8 sps:$4 sm:$0xff]  }
 0xfd4   :  { %16077 = vmatpush1.bf16.msra.mxu1 %v22936_v32  ;;  %v23001_v32 = vld [vmem:[%s29493_s9 + $0x284] ss:$8 sps:$4 sm:$0xff]  }
 0xfd5   :  { %16078 = vmatprep.subr.bf16.mxu1 %v22941_v50 }
 0xfd7   :  { %15900 = vmatmul.mubr.bf16.gmra.mrb[240].mxu1 %v15681_v49  ;;  %v22995_v49 = vld [vmem:[%s29493_s9 + $0x264] ss:$8 sps:$4 sm:$0xff]  }
 0xfd8   :  { %16079 = vmatpush1.bf16.msra.mxu1 %v22939_v40  ;;  %16102 = vmatprep.mubr.bf16.mxu1 %v28429_v31  ;;  %v22948_v31 = vld [vmem:[%s29493_s9 + $0x70] ss:$8 sps:$4 sm:$0xff]  }
 0xfd9   :  { %16080 = vmatprep.subr.bf16.mxu1 %v22944_v45 }
 0xfdc   :  { %16081 = vmatpush1.bf16.msra.mxu1 %v22942_v24  ;;  %v22999_v24 = vld [vmem:[%s29493_s9 + $0x280] ss:$8 sps:$4 sm:$0xff]  }
 0xfdd   :  { %16082 = vmatprep.subr.bf16.mxu1 %v22947_v59 }
 0xfe0   :  { %16083 = vmatpush1.bf16.msra.mxu1 %v22945_v35  ;;  %v23004_v35 = vld [vmem:[%s29493_s9 + $0x294] ss:$8 sps:$4 sm:$0xff]  }
 0xfe1   :  { %16084 = vmatprep.subr.bf16.mxu1 %v22950_v44  ;;  %v23002_v44 = vld [vmem:[%s29493_s9 + $0x290] ss:$8 sps:$4 sm:$0xff]  }
 0xfe2   :  { %v14967_v7 = vpop.f32.mrb[244].mxu1 }
 0xfe3   :  { %v14968_v54 = vpop.f32.mrb[245].mxu1  ;;  %v23010_v7 = vld [vmem:[%s29493_s9 + $0x2b4] ss:$8 sps:$4 sm:$0xff]  }
 0xfe4   :  { %v14969_v1 = vpop.f32.mrb[246].mxu1  ;;  %16085 = vmatpush1.bf16.msra.mxu1 %v22948_v31  ;;  %v23007_v31 = vld [vmem:[%s29493_s9 + $0x2a4] ss:$8 sps:$4 sm:$0xff]   ;;  %v23008_v54 = vld [vmem:[%s29493_s9 + $0x2b0] ss:$8 sps:$4 sm:$0xff]  }
 0xfe5   :  { %v14970_v4 = vpop.f32.mrb[247].mxu1  ;;  %16086 = vmatprep.subr.bf16.mxu1 %v22953_v46  ;;  %v23005_v46 = vld [vmem:[%s29493_s9 + $0x2a0] ss:$8 sps:$4 sm:$0xff]   ;;  %v23013_v1 = vld [vmem:[%s29493_s9 + $0x2c4] ss:$8 sps:$4 sm:$0xff]  }
 0xfe6   :  { %v23016_v4 = vld [vmem:[%s29493_s9 + $0x2d4] ss:$8 sps:$4 sm:$0xff]  }
 0xfe8   :  { %16087 = vmatpush1.bf16.msra.mxu1 %v22951_v48  ;;  %v23011_v48 = vld [vmem:[%s29493_s9 + $0x2c0] ss:$8 sps:$4 sm:$0xff]  }
 0xfe9   :  { %16088 = vmatprep.subr.bf16.mxu1 %v22956_v20  ;;  %v23014_v20 = vld [vmem:[%s29493_s9 + $0x2d0] ss:$8 sps:$4 sm:$0xff]  }
 0xfec   :  { %16089 = vmatpush1.bf16.msra.mxu1 %v22954_v38  ;;  %v23019_v38 = vld [vmem:[%s29493_s9 + $0x2e4] ss:$8 sps:$4 sm:$0xff]  }
 0xfed   :  { %16090 = vmatprep.subr.bf16.mxu1 %v22959_v17  ;;  %v23017_v17 = vld [vmem:[%s29493_s9 + $0x2e0] ss:$8 sps:$4 sm:$0xff]  }
 0xff0   :  { %16091 = vmatpush1.bf16.msra.mxu1 %v22957_v11  ;;  %v23022_v11 = vld [vmem:[%s29493_s9 + $0x2f4] ss:$8 sps:$4 sm:$0xff]  }
 0xff1   :  { %16092 = vmatprep.subr.bf16.mxu1 %v22962_v18  ;;  %v23020_v18 = vld [vmem:[%s29493_s9 + $0x2f0] ss:$8 sps:$4 sm:$0xff]  }
 0xff4   :  { %16093 = vmatpush1.bf16.msra.mxu1 %v22960_v12  ;;  %v14659_v12 = vld [vmem:[#allocation5] sm:$0xfe] }
 0xff5   :  { %16094 = vmatprep.subr.bf16.mxu1 %v22965_v23  ;;  %v23025_v23 = vld [vmem:[%s29493_s9 + $0x404] ss:$8 sps:$4 sm:$0xff]  }
 0xff8   :  { %16095 = vmatpush1.bf16.msra.mxu1 %v22963_v19  ;;  %v16136_v19 = vrot.slane %v29074_v42, 1 }
 0xff9   :  { %16096 = vmatprep.subr.bf16.mxu1 %v22968_v28  ;;  %v16135_v28 = vrot.slane %v14659_v12, 1 }
 0xffc   :  { %16097 = vmatpush1.bf16.msra.mxu1 %v22966_v47  ;;  %v23023_v47 = vld [vmem:[%s29493_s9 + $0x400] ss:$8 sps:$4 sm:$0xff]  }
 0xffd   :  { %16098 = vmatprep.subr.bf16.mxu1 %v22971_v27  ;;  %v23028_v27 = vld [vmem:[%s29493_s9 + $0x414] ss:$8 sps:$4 sm:$0xff]  }
0x1000   :  { %16099 = vmatpush1.bf16.msra.mxu1 %v22969_v3  ;;  %v16137_v3 = vsel %vm3445_vm10, %v16135_v28, %v16136_v19  ;;  %v23100_v28 = vld [vmem:[%s29493_s9 + $0x694] ss:$8 sps:$4 sm:$0xff]  }
0x1001   :  { %16100 = vmatprep.subr.bf16.mxu1 %v22974_v51  ;;  %v16144_v51 = vsel %vm3445_vm10, %v16139_v8, %v28869_v13 }
0x1004   :  { %16101 = vmatpush1.bf16.msra.mxu1 %v22972_v56  ;;  %v23026_v56 = vld [vmem:[%s29493_s9 + $0x410] ss:$8 sps:$4 sm:$0xff]  }
0x1005   :  { %16311 = vmatprep.subr.bf16.mxu1 %v22977_v34  ;;  %v23031_v34 = vld [vmem:[%s29493_s9 + $0x424] ss:$8 sps:$4 sm:$0xff]  }
0x1007   :  { %16103 = vmatmul.mubr.bf16.vlgmr.msra.gmra.mrb[232].mxu1 %v23170_v16  ;;  %v16142_v16 = vsel %vm3445_vm10, %v16136_v19, %v28946_v10 }
0x1008   :  { %16112 = vmatprep.mubr.bf16.mxu1 %v29059_v9  ;;  %16312 = vmatpush1.bf16.msra.mxu1 %v22975_v41  ;;  %v23029_v41 = vld [vmem:[%s29493_s9 + $0x420] ss:$8 sps:$4 sm:$0xff]  }
0x1009   :  { %16313 = vmatprep.subr.bf16.mxu1 %v22980_v36  ;;  %v23034_v36 = vld [vmem:[%s29493_s9 + $0x434] ss:$8 sps:$4 sm:$0xff]  }
0x100c   :  { %16314 = vmatpush1.bf16.msra.mxu1 %v22978_v15  ;;  %v23032_v15 = vld [vmem:[%s29493_s9 + $0x430] ss:$8 sps:$4 sm:$0xff]  }
0x100d   :  { %16315 = vmatprep.subr.bf16.mxu1 %v22983_v57  ;;  %v23037_v57 = vld [vmem:[%s29493_s9 + $0x444] ss:$8 sps:$4 sm:$0xff]  }
0x100f   :  { %16113 = vmatmul.mubr.bf16.gmra.mrb[4].mxu1 %v29074_v42 }
0x1010   :  { %16118 = vmatprep.mubr.bf16.mxu1 %v14320_v29  ;;  %16316 = vmatpush1.bf16.msra.mxu1 %v22981_v53  ;;  %v23035_v53 = vld [vmem:[%s29493_s9 + $0x440] ss:$8 sps:$4 sm:$0xff]   ;;  %v23043_v29 = vld [vmem:[%s29493_s9 + $0x464] ss:$8 sps:$4 sm:$0xff]  }
0x1011   :  { %16317 = vmatprep.subr.bf16.mxu1 %v22986_v30  ;;  %v23038_v30 = vld [vmem:[%s29493_s9 + $0x450] ss:$8 sps:$4 sm:$0xff]  }
0x1014   :  { %16318 = vmatpush1.bf16.msra.mxu1 %v22984_v2  ;;  %v23041_v2 = vld [vmem:[%s29493_s9 + $0x460] ss:$8 sps:$4 sm:$0xff]  }
0x1015   :  { %16319 = vmatprep.subr.bf16.mxu1 %v22989_v33  ;;  %v23049_v33 = vld [vmem:[%s29493_s9 + $0x484] ss:$8 sps:$4 sm:$0xff]  }
0x1017   :  { %16119 = vmatmul.mubr.bf16.gmra.mrb[240].mxu1 %v14319_v21  ;;  %v23052_v21 = vld [vmem:[%s29493_s9 + $0x494] ss:$8 sps:$4 sm:$0xff]  }
0x1018   :  { %16320 = vmatpush1.bf16.msra.mxu1 %v22987_v14  ;;  %16343 = vmatprep.mubr.bf16.mxu1 %v16140_v25  ;;  %v23050_v25 = vld [vmem:[%s29493_s9 + $0x490] ss:$8 sps:$4 sm:$0xff]  }
0x1019   :  { %16321 = vmatprep.subr.bf16.mxu1 %v22992_v61 }
0x101c   :  { %16322 = vmatpush1.bf16.msra.mxu1 %v22990_v52  ;;  %v23055_v52 = vld [vmem:[%s29493_s9 + $0x4a4] ss:$8 sps:$4 sm:$0xff]  }
0x101d   :  { %16323 = vmatprep.subr.bf16.mxu1 %v22995_v49  ;;  %v23053_v49 = vld [vmem:[%s29493_s9 + $0x4a0] ss:$8 sps:$4 sm:$0xff]  }
0x1020   :  { %16324 = vmatpush1.bf16.msra.mxu1 %v22993_v63  ;;  %v23058_v63 = vld [vmem:[%s29493_s9 + $0x4b4] ss:$8 sps:$4 sm:$0xff]  }
0x1021   :  { %16325 = vmatprep.subr.bf16.mxu1 %v22998_v62  ;;  %v23056_v62 = vld [vmem:[%s29493_s9 + $0x4b0] ss:$8 sps:$4 sm:$0xff]  }
0x1022   :  { %v15280_v50 = vpop.f32.mrb[248].mxu1 }
0x1023   :  { %v15281_v40 = vpop.f32.mrb[249].mxu1  ;;  %v23064_v50 = vld [vmem:[%s29493_s9 + $0x4d4] ss:$8 sps:$4 sm:$0xff]  }
0x1024   :  { %v15282_v45 = vpop.f32.mrb[250].mxu1  ;;  %16326 = vmatpush1.bf16.msra.mxu1 %v22996_v39  ;;  %v23061_v39 = vld [vmem:[%s29493_s9 + $0x4c4] ss:$8 sps:$4 sm:$0xff]   ;;  %v23062_v40 = vld [vmem:[%s29493_s9 + $0x4d0] ss:$8 sps:$4 sm:$0xff]  }
0x1025   :  { %v15283_v59 = vpop.f32.mrb[251].mxu1  ;;  %16327 = vmatprep.subr.bf16.mxu1 %v23001_v32  ;;  %v23059_v32 = vld [vmem:[%s29493_s9 + $0x4c0] ss:$8 sps:$4 sm:$0xff]   ;;  %v23067_v45 = vld [vmem:[%s29493_s9 + $0x4e4] ss:$8 sps:$4 sm:$0xff]  }
0x1026   :  { %v23070_v59 = vld [vmem:[%s29493_s9 + $0x4f4] ss:$8 sps:$4 sm:$0xff]  }
0x1028   :  { %16328 = vmatpush1.bf16.msra.mxu1 %v22999_v24  ;;  %v23065_v24 = vld [vmem:[%s29493_s9 + $0x4e0] ss:$8 sps:$4 sm:$0xff]  }
0x1029   :  { %16329 = vmatprep.subr.bf16.mxu1 %v23004_v35  ;;  %v23068_v35 = vld [vmem:[%s29493_s9 + $0x4f0] ss:$8 sps:$4 sm:$0xff]  }
0x102c   :  { %16330 = vmatpush1.bf16.msra.mxu1 %v23002_v44  ;;  %v23073_v44 = vld [vmem:[%s29493_s9 + $0x604] ss:$8 sps:$4 sm:$0xff]  }
0x102d   :  { %16331 = vmatprep.subr.bf16.mxu1 %v23007_v31  ;;  %v23071_v31 = vld [vmem:[%s29493_s9 + $0x600] ss:$8 sps:$4 sm:$0xff]  }
0x1030   :  { %16332 = vmatpush1.bf16.msra.mxu1 %v23005_v46  ;;  %v23076_v46 = vld [vmem:[%s29493_s9 + $0x614] ss:$8 sps:$4 sm:$0xff]  }
0x1031   :  { %16333 = vmatprep.subr.bf16.mxu1 %v23010_v7  ;;  %v23074_v7 = vld [vmem:[%s29493_s9 + $0x610] ss:$8 sps:$4 sm:$0xff]  }
0x1034   :  { %16334 = vmatpush1.bf16.msra.mxu1 %v23008_v54  ;;  %v23079_v54 = vld [vmem:[%s29493_s9 + $0x624] ss:$8 sps:$4 sm:$0xff]  }
0x1035   :  { %16335 = vmatprep.subr.bf16.mxu1 %v23013_v1  ;;  %v23077_v1 = vld [vmem:[%s29493_s9 + $0x620] ss:$8 sps:$4 sm:$0xff]  }
0x1038   :  { %16336 = vmatpush1.bf16.msra.mxu1 %v23011_v48  ;;  %v23085_v48 = vld [vmem:[%s29493_s9 + $0x644] ss:$8 sps:$4 sm:$0xff]  }
0x1039   :  { %16337 = vmatprep.subr.bf16.mxu1 %v23016_v4  ;;  %v23083_v4 = vld [vmem:[%s29493_s9 + $0x640] ss:$8 sps:$4 sm:$0xff]  }
0x103c   :  { %16338 = vmatpush1.bf16.msra.mxu1 %v23014_v20  ;;  %v23091_v20 = vld [vmem:[%s29493_s9 + $0x664] ss:$8 sps:$4 sm:$0xff]  }
0x103d   :  { %16339 = vmatprep.subr.bf16.mxu1 %v23019_v38  ;;  %v23089_v38 = vld [vmem:[%s29493_s9 + $0x660] ss:$8 sps:$4 sm:$0xff]  }
0x1040   :  { %16340 = vmatpush1.bf16.msra.mxu1 %v23017_v17  ;;  %v23097_v17 = vld [vmem:[%s29493_s9 + $0x684] ss:$8 sps:$4 sm:$0xff]  }
0x1041   :  { %16341 = vmatprep.subr.bf16.mxu1 %v23022_v11 }
0x1044   :  { %16342 = vmatpush1.bf16.msra.mxu1 %v23020_v18 }
0x1045   :  { %16586 = vmatprep.subr.bf16.mxu1 %v23025_v23  ;;  %v23095_v23 = vld [vmem:[%s29493_s9 + $0x680] ss:$8 sps:$4 sm:$0xff]  }
0x1047   :  { %16344 = vmatmul.mubr.bf16.vlgmr.msra.gmra.mrb[232].mxu1 %v16137_v3  ;;  %v23101_v3 = vld [vmem:[%s29493_s9 + $0x6a0] ss:$8 sps:$4 sm:$0xff]  }
0x1048   :  { %16353 = vmatprep.mubr.bf16.mxu1 %v16144_v51  ;;  %16587 = vmatpush1.bf16.msra.mxu1 %v23023_v47  ;;  %v23098_v47 = vld [vmem:[%s29493_s9 + $0x690] ss:$8 sps:$4 sm:$0xff]   ;;  %v23106_v51 = vld [vmem:[%s29493_s9 + $0x6b4] ss:$8 sps:$4 sm:$0xff]  }
0x1049   :  { %16588 = vmatprep.subr.bf16.mxu1 %v23028_v27  ;;  %v23103_v27 = vld [vmem:[%s29493_s9 + $0x6a4] ss:$8 sps:$4 sm:$0xff]  }
0x104c   :  { %16589 = vmatpush1.bf16.msra.mxu1 %v23026_v56  ;;  %v23104_v56 = vld [vmem:[%s29493_s9 + $0x6b0] ss:$8 sps:$4 sm:$0xff]  }
0x104d   :  { %16590 = vmatprep.subr.bf16.mxu1 %v23031_v34  ;;  %v23109_v34 = vld [vmem:[%s29493_s9 + $0x6c4] ss:$8 sps:$4 sm:$0xff]  }
0x104f   :  { %16354 = vmatmul.mubr.bf16.gmra.mrb[8].mxu1 %v16142_v16  ;;  %v23110_v16 = vld [vmem:[%s29493_s9 + $0x6d0] ss:$8 sps:$4 sm:$0xff]  }
0x1050   :  { %16359 = vmatprep.mubr.bf16.mxu1 %v28869_v13  ;;  %16591 = vmatpush1.bf16.msra.mxu1 %v23029_v41  ;;  %v23040_v13 = vld [vmem:[%s29493_s9 + $0x454] ss:$8 sps:$4 sm:$0xff]   ;;  %v23107_v41 = vld [vmem:[%s29493_s9 + $0x6c0] ss:$8 sps:$4 sm:$0xff]  }
0x1051   :  { %16592 = vmatprep.subr.bf16.mxu1 %v23034_v36  ;;  %v23112_v36 = vld [vmem:[%s29493_s9 + $0x6d4] ss:$8 sps:$4 sm:$0xff]  }
0x1054   :  { %16593 = vmatpush1.bf16.msra.mxu1 %v23032_v15  ;;  %v23115_v15 = vld [vmem:[%s29493_s9 + $0x6e4] ss:$8 sps:$4 sm:$0xff]  }
0x1055   :  { %16594 = vmatprep.subr.bf16.mxu1 %v23037_v57  ;;  %v23113_v57 = vld [vmem:[%s29493_s9 + $0x6e0] ss:$8 sps:$4 sm:$0xff]  }
0x1057   :  { %16360 = vmatmul.mubr.bf16.gmra.mrb[240].mxu1 %v28946_v10  ;;  %v23046_v10 = vld [vmem:[%s29493_s9 + $0x474] ss:$8 sps:$4 sm:$0xff]  }
0x1058   :  { %16595 = vmatpush1.bf16.msra.mxu1 %v23035_v53  ;;  %16618 = vmatprep.mubr.bf16.mxu1 %v28540_v58  ;;  %v23044_v58 = vld [vmem:[%s29493_s9 + $0x470] ss:$8 sps:$4 sm:$0xff]   ;;  %v23118_v53 = vld [vmem:[%s29493_s9 + $0x6f4] ss:$8 sps:$4 sm:$0xff]  }
0x1059   :  { %16596 = vmatprep.subr.bf16.mxu1 %v23040_v13  ;;  %v23116_v13 = vld [vmem:[%s29493_s9 + $0x6f0] ss:$8 sps:$4 sm:$0xff]  }
0x105c   :  { %16597 = vmatpush1.bf16.msra.mxu1 %v23038_v30  ;;  %v23173_v30 = vld [vmem:[#allocation5 + $0x28] sm:$0xff] }
0x105d   :  { %16598 = vmatprep.subr.bf16.mxu1 %v23043_v29  ;;  %v23174_v29 = vld [vmem:[#allocation5 + $0x20] sm:$0xff] }
0x1060   :  { %16599 = vmatpush1.bf16.msra.mxu1 %v23041_v2  ;;  %v15296_v2 = vld [vmem:[#allocation5 + $0x38] sm:$0x7f] }
0x1061   :  { %16600 = vmatprep.subr.bf16.mxu1 %v23046_v10  ;;  %v15295_v10 = vld [vmem:[#allocation5 + $0x30] sm:$0x7f] }
0x1062   :  { %v15621_v37 = vpop.f32.mrb[252].mxu1 }
0x1063   :  { %v15622_v8 = vpop.f32.mrb[253].mxu1 }
0x1064   :  { %v15623_v14 = vpop.f32.mrb[254].mxu1  ;;  %16601 = vmatpush1.bf16.msra.mxu1 %v23044_v58 }
0x1065   :  { %v15624_v61 = vpop.f32.mrb[255].mxu1  ;;  %16602 = vmatprep.subr.bf16.mxu1 %v23049_v33 }
0x1068   :  { %16603 = vmatpush1.bf16.msra.mxu1 %v23047_v60 }
0x1069   :  { %16604 = vmatprep.subr.bf16.mxu1 %v23052_v21 }
0x106c   :  { %16605 = vmatpush1.bf16.msra.mxu1 %v23050_v25  ;;  %v16969_v25 = vld [vmem:[%s29495_s11 + $0x88] sm:$0xff] }
0x106d   :  { %16606 = vmatprep.subr.bf16.mxu1 %v23055_v52 }
0x1070   :  { %16607 = vmatpush1.bf16.msra.mxu1 %v23053_v49  ;;  %v16952_v49 = vld [vmem:[%s29495_s11] sm:$0xff] }
0x1071   :  { %16608 = vmatprep.subr.bf16.mxu1 %v23058_v63  ;;  %v16953_v63 = vld [vmem:[%s29495_s11 + $0x8] sm:$0xff] }
0x1074   :  { %16609 = vmatpush1.bf16.msra.mxu1 %v23056_v62  ;;  %v16970_v62 = vld [vmem:[%s29495_s11 + $0x90] sm:$0xff] }
0x1075   :  { %16610 = vmatprep.subr.bf16.mxu1 %v23061_v39  ;;  %v20427_v39 = vpack.c.bf16 %v16953_v63, %v16952_v49 }
0x1078   :  { %16611 = vmatpush1.bf16.msra.mxu1 %v23059_v32  ;;  %v16971_v32 = vld [vmem:[%s29495_s11 + $0x98] sm:$0xff] }
0x1079   :  { %16612 = vmatprep.subr.bf16.mxu1 %v23064_v50  ;;  %v16954_v50 = vld [vmem:[%s29495_s11 + $0x10] sm:$0xff] }
0x107c   :  { %16613 = vmatpush1.bf16.msra.mxu1 %v23062_v40  ;;  %v16955_v40 = vld [vmem:[%s29495_s11 + $0x18] sm:$0xff] }
0x107d   :  { %16614 = vmatprep.subr.bf16.mxu1 %v23067_v45  ;;  %v20429_v45 = vpack.c.bf16 %v16971_v32, %v16970_v62 }
0x1080   :  { %16615 = vmatpush1.bf16.msra.mxu1 %v23065_v24  ;;  %v16972_v24 = vld [vmem:[%s29495_s11 + $0xa0] sm:$0xff] }
0x1081   :  { %16616 = vmatprep.subr.bf16.mxu1 %v23070_v59  ;;  %v16973_v59 = vld [vmem:[%s29495_s11 + $0xa8] sm:$0xff] }
0x1084   :  { %16617 = vmatpush1.bf16.msra.mxu1 %v23068_v35  ;;  %v20431_v35 = vpack.c.bf16 %v16955_v40, %v16954_v50 }
0x1085   :  { %16805 = vmatprep.subr.bf16.mxu1 %v23073_v44  ;;  %v20433_v44 = vpack.c.bf16 %v16973_v59, %v16972_v24 }
0x1087   :  { %16619 = vmatmul.mubr.bf16.vlgmr.msra.gmra.mrb[232].mxu1 %v28549_v22  ;;  %v23082_v22 = vld [vmem:[%s29493_s9 + $0x634] ss:$8 sps:$4 sm:$0xff]  }
0x1088   :  { %16628 = vmatprep.mubr.bf16.mxu1 %v28555_v6  ;;  %16806 = vmatpush1.bf16.msra.mxu1 %v23071_v31  ;;  %v23080_v6 = vld [vmem:[%s29493_s9 + $0x630] ss:$8 sps:$4 sm:$0xff]   ;;  %v16956_v31 = vld [vmem:[%s29495_s11 + $0x20] sm:$0xff] }
0x1089   :  { %16807 = vmatprep.subr.bf16.mxu1 %v23076_v46  ;;  %v16957_v46 = vld [vmem:[%s29495_s11 + $0x28] sm:$0xff] }
0x108c   :  { %16808 = vmatpush1.bf16.msra.mxu1 %v23074_v7  ;;  %v16974_v7 = vld [vmem:[%s29495_s11 + $0xb0] sm:$0xff] }
0x108d   :  { %16809 = vmatprep.subr.bf16.mxu1 %v23079_v54  ;;  %v16975_v54 = vld [vmem:[%s29495_s11 + $0xb8] sm:$0xff] }
0x108f   :  { %16629 = vmatmul.mubr.bf16.gmra.mrb[12].mxu1 %v28543_v0  ;;  %v23088_v0 = vld [vmem:[%s29493_s9 + $0x654] ss:$8 sps:$4 sm:$0xff]  }
0x1090   :  { %16634 = vmatprep.mubr.bf16.mxu1 %v28561_v55  ;;  %16810 = vmatpush1.bf16.msra.mxu1 %v23077_v1  ;;  %v23086_v55 = vld [vmem:[%s29493_s9 + $0x650] ss:$8 sps:$4 sm:$0xff]   ;;  %v20435_v1 = vpack.c.bf16 %v16957_v46, %v16956_v31 }
0x1091   :  { %16811 = vmatprep.subr.bf16.mxu1 %v23082_v22  ;;  %v20437_v22 = vpack.c.bf16 %v16975_v54, %v16974_v7 }
0x1094   :  { %16812 = vmatpush1.bf16.msra.mxu1 %v23080_v6  ;;  %v16958_v6 = vld [vmem:[%s29495_s11 + $0x30] sm:$0xff] }
0x1095   :  { %16813 = vmatprep.subr.bf16.mxu1 %v23085_v48  ;;  %v16959_v48 = vld [vmem:[%s29495_s11 + $0x38] sm:$0xff] }
0x1097   :  { %16635 = vmatmul.mubr.bf16.gmra.mrb[240].mxu1 %v28567_v5  ;;  %v23094_v5 = vld [vmem:[%s29493_s9 + $0x674] ss:$8 sps:$4 sm:$0xff]  }
0x1098   :  { %16814 = vmatpush1.bf16.msra.mxu1 %v23083_v4  ;;  %16837 = vmatprep.mubr.bf16.mxu1 %v29059_v9  ;;  %v23092_v9 = vld [vmem:[%s29493_s9 + $0x670] ss:$8 sps:$4 sm:$0xff]   ;;  %v20439_v4 = vpack.c.bf16 %v16959_v48, %v16958_v6 }
0x1099   :  { %16815 = vmatprep.subr.bf16.mxu1 %v23088_v0  ;;  %v16976_v0 = vld [vmem:[%s29495_s11 + $0xc0] sm:$0xff] }
0x109c   :  { %16816 = vmatpush1.bf16.msra.mxu1 %v23086_v55  ;;  %v16977_v55 = vld [vmem:[%s29495_s11 + $0xc8] sm:$0xff] }
0x109d   :  { %16817 = vmatprep.subr.bf16.mxu1 %v23091_v20  ;;  %v16960_v20 = vld [vmem:[%s29495_s11 + $0x40] sm:$0xff] }
0x10a0   :  { %16818 = vmatpush1.bf16.msra.mxu1 %v23089_v38  ;;  %v20441_v38 = vpack.c.bf16 %v16977_v55, %v16976_v0 }
0x10a1   :  { %16819 = vmatprep.subr.bf16.mxu1 %v23094_v5  ;;  %v16961_v5 = vld [vmem:[%s29495_s11 + $0x48] sm:$0xff] }
0x10a2   :  { %v15895_v11 = vpop.f32.mrb[0].mxu1 }
0x10a3   :  { %v15896_v18 = vpop.f32.mrb[1].mxu1  ;;  %v20443_v11 = vpack.c.bf16 %v16961_v5, %v16960_v20 }
0x10a4   :  { %v15897_v12 = vpop.f32.mrb[2].mxu1  ;;  %16820 = vmatpush1.bf16.msra.mxu1 %v23092_v9  ;;  %v16978_v9 = vld [vmem:[%s29495_s11 + $0xd0] sm:$0xff] }
0x10a5   :  { %v15898_v19 = vpop.f32.mrb[3].mxu1  ;;  %16821 = vmatprep.subr.bf16.mxu1 %v23097_v17  ;;  %v16979_v17 = vld [vmem:[%s29495_s11 + $0xd8] sm:$0xff]  ;;  %v16962_v12 = vld [vmem:[%s29495_s11 + $0x50] sm:$0xff] }
0x10a6   :  { %v20445_v18 = vpack.c.bf16 %v16979_v17, %v16978_v9  ;;  %v16980_v19 = vld [vmem:[%s29495_s11 + $0xe0] sm:$0xff] }
0x10a8   :  { %16822 = vmatpush1.bf16.msra.mxu1 %v23095_v23  ;;  %v16963_v23 = vld [vmem:[%s29495_s11 + $0x58] sm:$0xff] }
0x10a9   :  { %16823 = vmatprep.subr.bf16.mxu1 %v23100_v28  ;;  %v16981_v28 = vld [vmem:[%s29495_s11 + $0xe8] sm:$0xff] }
0x10ac   :  { %16824 = vmatpush1.bf16.msra.mxu1 %v23098_v47  ;;  %v20447_v47 = vpack.c.bf16 %v16963_v23, %v16962_v12 }
0x10ad   :  { %16825 = vmatprep.subr.bf16.mxu1 %v23103_v27  ;;  %v20449_v27 = vpack.c.bf16 %v16981_v28, %v16980_v19 }
0x10b0   :  { %16826 = vmatpush1.bf16.msra.mxu1 %v23101_v3  ;;  %v16964_v3 = vld [vmem:[%s29495_s11 + $0x60] sm:$0xff] }
0x10b1   :  { %16827 = vmatprep.subr.bf16.mxu1 %v23106_v51  ;;  %v16965_v51 = vld [vmem:[%s29495_s11 + $0x68] sm:$0xff] }
0x10b4   :  { %16828 = vmatpush1.bf16.msra.mxu1 %v23104_v56  ;;  %v16982_v56 = vld [vmem:[%s29495_s11 + $0xf0] sm:$0xff] }
0x10b5   :  { %16829 = vmatprep.subr.bf16.mxu1 %v23109_v34  ;;  %v16983_v34 = vld [vmem:[%s29495_s11 + $0xf8] sm:$0xff] }
0x10b8   :  { %16830 = vmatpush1.bf16.msra.mxu1 %v23107_v41  ;;  %v20451_v41 = vpack.c.bf16 %v16965_v51, %v16964_v3 }
0x10b9   :  { %16831 = vmatprep.subr.bf16.mxu1 %v23112_v36  ;;  %v20453_v36 = vpack.c.bf16 %v16983_v34, %v16982_v56 }
0x10bc   :  { %16832 = vmatpush1.bf16.msra.mxu1 %v23110_v16  ;;  %v16966_v16 = vld [vmem:[%s29495_s11 + $0x70] sm:$0xff] }
0x10bd   :  { %16833 = vmatprep.subr.bf16.mxu1 %v23115_v15  ;;  %v16967_v15 = vld [vmem:[%s29495_s11 + $0x78] sm:$0xff] }
0x10c0   :  { %16834 = vmatpush1.bf16.msra.mxu1 %v23113_v57  ;;  %v20455_v57 = vpack.c.bf16 %v16967_v15, %v16966_v16 }
0x10c1   :  { %16835 = vmatprep.subr.bf16.mxu1 %v23118_v53 }
0x10c4   :  { %16836 = vmatpush1.bf16.msra.mxu1 %v23116_v13 }
0x10c7   :  { %16838 = vmatmul.mubr.bf16.vlgmr.msra.gmra.mrb[232].mxu1 %v29074_v42  ;;  %v16968_v42 = vld [vmem:[%s29495_s11 + $0x80] sm:$0xff] }
0x10c8   :  { %16847 = vmatprep.mubr.bf16.mxu1 %v23173_v30  ;;  %v20425_v52 = vpack.c.bf16 %v16969_v25, %v16968_v42 }
0x10ca   :  { %20426 = vmatprep.subr.bf16.mxu0 %v20425_v52 }
0x10cb   :  { %20428 = vmatpush3.bf16.msra.mxu0 %v20427_v39 }
0x10cc   :  { %20430 = vmatprep.subr.bf16.mxu0 %v20429_v45 }
0x10cf   :  { %16848 = vmatmul.mubr.bf16.gmra.mrb[24].mxu1 %v23174_v29  ;;  %20432 = vmatpush3.bf16.msra.mxu0 %v20431_v35 }
0x10d0   :  { %16853 = vmatprep.mubr.bf16.mxu1 %v15296_v2  ;;  %20434 = vmatprep.subr.bf16.mxu0 %v20433_v44  ;;  %v16896_v2 = vld [vmem:[%s29494_s10] sm:$0x3] }
0x10d3   :  { %20436 = vmatpush3.bf16.msra.mxu0 %v20435_v1 }
0x10d4   :  { %20438 = vmatprep.subr.bf16.mxu0 %v20437_v22 }
0x10d7   :  { %16854 = vmatmul.mubr.bf16.gmra.mrb[240].mxu1 %v15295_v10  ;;  %20440 = vmatpush3.bf16.msra.mxu0 %v20439_v4  ;;  %v16901_v10 = vrot.slane %v16896_v2, %v25100_v26 }
0x10d8   :  { %20442 = vmatprep.subr.bf16.mxu0 %v20441_v38 }
0x10db   :  { %20444 = vmatpush3.bf16.msra.mxu0 %v20443_v11 }
0x10dc   :  { %20446 = vmatprep.subr.bf16.mxu0 %v20445_v18 }
0x10df   :  { %20448 = vmatpush3.bf16.msra.mxu0 %v20447_v47  ;;  %v19971_v47 = vld [vmem:[%s29496_s12] ss:$0 sm:$0xff] }
0x10e0   :  { %20450 = vmatprep.subr.bf16.mxu0 %v20449_v27 }
0x10e2   :  { %v16114_v58 = vpop.f32.mrb[4].mxu1 }
0x10e3   :  { %v16115_v33 = vpop.f32.mrb[5].mxu1  ;;  %20452 = vmatpush3.bf16.msra.mxu0 %v20451_v41  ;;  %v16905_v58 = vrot.slane %v16896_v2, %v25106_v43 }
0x10e4   :  { %v16116_v37 = vpop.f32.mrb[6].mxu1  ;;  %20454 = vmatprep.subr.bf16.mxu0 %v20453_v36 }
0x10e5   :  { %v16117_v8 = vpop.f32.mrb[7].mxu1 }
0x10e7   :  { %20456 = vmatpush3.bf16.msra.mxu0 %v20455_v57 }
0x1122   :  { %v16355_v14 = vpop.f32.mrb[8].mxu1 }
0x1123   :  { %v16356_v60 = vpop.f32.mrb[9].mxu1 }
0x1124   :  { %v16357_v61 = vpop.f32.mrb[10].mxu1 }
0x1125   :  { %v16358_v21 = vpop.f32.mrb[11].mxu1 }
0x1162   :  { %v16630_v53 = vpop.f32.mrb[12].mxu1 }
0x1163   :  { %v16631_v13 = vpop.f32.mrb[13].mxu1 }
0x1164   :  { %v16632_v30 = vpop.f32.mrb[14].mxu1 }
0x1165   :  { %v16633_v29 = vpop.f32.mrb[15].mxu1 }
0x119a   :  { %v16839_v33 = vpop.f32.mrb[232].mxu1 }
0x119b   :  { %v16908_v37 = vadd.f32 %v16901_v10, %v16839_v33  ;;  %v16841_v8 = vpop.f32.mrb[233].mxu1 }
0x119c   :  { %v16909_v14 = vadd.f32 %v16905_v58, %v16841_v8  ;;  %v16843_v60 = vpop.f32.mrb[234].mxu1 }
0x119d   :  { %v16910_v61 = vadd.f32 %v16901_v10, %v16843_v60  ;;  %v16845_v21 = vpop.f32.mrb[235].mxu1  ;;  %v16916_v25 = vmax.f32 %v16908_v37, 0.0 }
0x119e   :  { %v16911_v42 = vadd.f32 %v16905_v58, %v16845_v21  ;;  %v16917_v49 = vmax.f32 %v16909_v14, 0.0 }
0x119f   :  { %v16918_v52 = vmax.f32 %v16910_v61, 0.0 }
0x11a0   :  { %v16919_v63 = vmax.f32 %v16911_v42, 0.0 }
0x11a1   :  { %v16924_v62 = vmax.f32 %v16916_v25, %v16918_v52 }
0x11a2   :  { %v16925_v39 = vmax.f32 %v16917_v49, %v16919_v63  ;;  %v16849_v32 = vpop.f32.mrb[24].mxu1 }
0x11a3   :  { %v16850_v50 = vpop.f32.mrb[25].mxu1  ;;  %v16928_v4 = vrot.slane %v16924_v62, 1 }
0x11a4   :  { %v16851_v40 = vpop.f32.mrb[26].mxu1  ;;  %v16929_v55 = vrot.slane %v16925_v39, 1 }
0x11a5   :  { %v16852_v26 = vpop.f32.mrb[27].mxu1  ;;  %v16932_v9 = vmax.f32 %v16924_v62, %v16928_v4 }
0x11a6   :  { %v16933_v11 = vmax.f32 %v16925_v39, %v16929_v55 }
0x11aa   :  { %v16855_v45 = vpop.f32.mrb[240].mxu1 }
0x11ab   :  { %v16912_v43 = vadd.f32 %v16901_v10, %v16855_v45  ;;  %v16857_v24 = vpop.f32.mrb[241].mxu1 }
0x11ac   :  { %v16913_v59 = vadd.f32 %v16905_v58, %v16857_v24  ;;  %v16859_v35 = vpop.f32.mrb[242].mxu1 }
0x11ad   :  { %v16914_v44 = vadd.f32 %v16901_v10, %v16859_v35  ;;  %v16861_v31 = vpop.f32.mrb[243].mxu1  ;;  %v16920_v7 = vmax.f32 %v16912_v43, 0.0 }
0x11ae   :  { %v16915_v46 = vadd.f32 %v16905_v58, %v16861_v31  ;;  %v16921_v1 = vmax.f32 %v16913_v59, 0.0 }
0x11af   :  { %v16922_v54 = vmax.f32 %v16914_v44, 0.0 }
0x11b0   :  { %v16923_v22 = vmax.f32 %v16915_v46, 0.0 }
0x11b1   :  { %v16934_v6 = vmax.f32 %v16920_v7, %v16922_v54 }
0x11b2   :  { %v16935_v48 = vmax.f32 %v16921_v1, %v16923_v22 }
0x11b3   :  { %v16938_v0 = vrot.slane %v16934_v6, 1 }
0x11b4   :  { %v16939_v20 = vrot.slane %v16935_v48, 1 }
0x11b5   :  { %v16942_v38 = vmax.f32 %v16934_v6, %v16938_v0 }
0x11b6   :  { %v16943_v5 = vmax.f32 %v16935_v48, %v16939_v20 }
0x11b7   :  { %v16946_v17 = vrot.slane %v16942_v38, 7 }
0x11b8   :  { %v16947_v18 = vrot.slane %v16943_v5, 7 }
0x11b9   :  { %v16950_v12 = vsel %vm664_vm1, %v16932_v9, %v16946_v17 }
0x11ba   :  { %v16951_v23 = vsel %vm664_vm1, %v16933_v11, %v16947_v18 }
0x11bb   :  { %17055 = vmatprep.mubr.f32.mxu0 %v16951_v23 }
0x11bc   :  { %17056 = vmatmul.mubr.f32.vlgmr.msra.gmra.mrb[8].mxu0 %v16950_v12 }
0x128f   :  { %v20390_v19 = vpop.f32.mrb[8].mxu0 }
0x1290   :  { %v20391_v28 = vpop.f32.mrb[9].mxu0 }
0x1291   :  { %v20392_v27 = vadd.f32 %v20391_v28, %v20390_v19 }
0x1293   :  { %v17058_v3 = vadd.f32 %v20392_v27, %v19971_v47 }
0x1295   :  { %17061 = vst [vmem:[#allocation6] sm:$0x3] %v17058_v3 }
0x1296   :  { %23186 = shalt.err (!%p23183_p4)
}
0x1297   :  { %s23187_s28 = scalar_lea.hbm %s29497_s13, 32 }
0x1298   :  { %p23188_p5 = scmp.ne.s32.totalorder %s29497_s13, %s23187_s28  ;;  %p23191_p6 = scmp.lt.u32.totalorder %s23187_s28, %s29497_s13 }
0x129a   :  { %p23193_p7 = pnand %p23191_p6, %p23188_p5 }
0x129c   :  { %23196 = shalt.err (!%p23193_p7)
}
0x129d   :  { %17071 = dma.vmem_to_hbm [thread:$0]  %s17069_s6, 32, %s29497_s13, [#allocation7]  }
0x129e   :  { %23197 = dma.done.wait [#allocation7], 32  }
0x129f   :  { %23198 = vsyncadd [#allocation7], 4294967264 }
0x12a0   :  { %17075 = vsyncpa [#allocation7], 1 }

</bundles_post_ra>
